<compile_context>
chip_gen: v7x
topology: tpu7x:2x2x1
jax: 0.10.0
libtpu: 0.0.40
codegen_flags: <defaults>
</compile_context>

<pallas_src>
import math

import jax
import jax.numpy as jnp
from jax.experimental import pallas as pl
from jax.experimental.pallas import tpu as pltpu

FB_LENGTH = 5
IN_H = 2
IN_W = FB_LENGTH + 12 + 1                      # 18
SEQ_LEN = (FB_LENGTH + 12 + 1) // 2            # 9
CH = 32
HIDDEN = 128
N_CLASSES = 4

_VMEM = pl.BlockSpec(memory_space=pltpu.MemorySpace.VMEM)


# --------------------------------------------------------------------------
# Single fused kernel: conv stage + pool/view relayout + LSTM head
# --------------------------------------------------------------------------
def _equalizer_kernel(x_ref, h_ref, c_ref,
                      w1_ref, b1_ref, w2_ref, b2_ref, sel_ref,
                      wih0_ref, whh0_ref, b0_ref,
                      w1cat_ref, b1l_ref, wp_ref, bp_ref,
                      probs_ref, feat_ref):
    n = probs_ref.shape[0]
    hdim = HIDDEN
    f32 = jnp.float32
    bf16 = jnp.bfloat16

    # ---------------- conv_1 + ReLU + conv_2 patches (per sample, unrolled) ----
    p2_blocks = []
    for b in range(n):
        xb = x_ref[b]                                            # (2, 18)
        zc = jnp.zeros((IN_H, 1), f32)
        zr = jnp.zeros((1, IN_W + 2), f32)
        xpad = jnp.concatenate(
            [zr, jnp.concatenate([zc, xb, zc], axis=1), zr], axis=0)      # (4, 20)

        # conv_1 im2col: P1 rows ordered (h, ky, kx); source row s = h + ky.
        rowblk = [jnp.concatenate(
            [xpad[s:s + 1, kx:kx + IN_W] for kx in range(3)], axis=0)
            for s in range(4)]                                   # each (3, 18)
        p1 = jnp.concatenate(
            [rowblk[0], rowblk[1], rowblk[2], rowblk[1], rowblk[2], rowblk[3]],
            axis=0)                                              # (18, 18)
        # conv_1 on the MXU; rows of a1 are (h*32 + ci), lanes are width.
        a1 = jnp.maximum(
            jnp.dot(w1_ref[...], p1, preferred_element_type=f32) + b1_ref[...],
            0.0)                                                 # (64, 18)

        # conv_2 im2col as a register value: width-pad then 3 shifted slabs.
        z64 = jnp.zeros((2 * CH, 1), f32)
        a1p = jnp.concatenate([z64, a1, z64], axis=1)            # (64, 20)
        p2_blocks.append(jnp.concatenate(
            [a1p[:, 0:IN_W], a1p[:, 1:1 + IN_W], a1p[:, 2:2 + IN_W]],
            axis=0))                                             # (192, 18)

    # ---------------- conv_2 + ReLU: one batched MXU matmul --------------------
    p2 = jnp.concatenate(p2_blocks, axis=1)                      # (192, n*18)
    a2 = jnp.maximum(
        jnp.dot(w2_ref[...], p2, preferred_element_type=f32) + b2_ref[...],
        0.0)                                                     # (32, n*18)

    # ---- MaxPool2d((1,2),2): even/odd lanes separated via 0/1 selection matmul
    sel = jnp.dot(a2, sel_ref[...], preferred_element_type=f32)  # (32, 2*n*9)
    pooled = jnp.maximum(sel[:, :n * SEQ_LEN], sel[:, n * SEQ_LEN:])  # (32, n*9)

    # ---- PyTorch `.view(-1, 9, 32)` on NCHW storage (bug-compatible) and
    #      time-major rows, built with lane/sublane concats only. ----
    flat = jnp.concatenate(
        [jnp.concatenate([pooled[c:c + 1, b * SEQ_LEN:(b + 1) * SEQ_LEN]
                          for b in range(n)], axis=0)
         for c in range(CH)], axis=1)                            # (n, 288)
    xtm = jnp.concatenate(
        [flat[:, CH * t:CH * (t + 1)] for t in range(SEQ_LEN)], axis=0)  # (9n, 32)

    # ---------------- 2-layer LSTM + ReLU + Linear + softmax -------------------
    # Hoisted layer-0 input projection for ALL timesteps, bf16 weights.
    zx0_full = jnp.dot(xtm.astype(bf16), wih0_ref[...],
                       preferred_element_type=f32) + b0_ref[...]          # (9n, 512)
    zx0 = [zx0_full[t * n:(t + 1) * n, :] for t in range(SEQ_LEN)]        # pre-split

    b1b = jnp.broadcast_to(b1l_ref[...], (n, 4 * hdim))          # hoisted bias bcast

    h0, h1 = h_ref[0], h_ref[1]
    c0, c1 = c_ref[0], c_ref[1]

    def sig(z):                                                  # overflow-safe sigmoid
        return 0.5 * (jnp.tanh(0.5 * z) + 1.0)

    # T = 9 is tiny; fully unrolled at trace time.
    for t in range(SEQ_LEN):
        # ---- layer 0: x-part precomputed; one bf16 recurrent matmul ----
        z0 = zx0[t] + jnp.dot(h0.astype(bf16), whh0_ref[...],
                              preferred_element_type=f32)
        i0 = sig(z0[:, 0 * hdim:1 * hdim])
        f0 = sig(z0[:, 1 * hdim:2 * hdim])
        g0 = jnp.tanh(z0[:, 2 * hdim:3 * hdim])
        o0 = sig(z0[:, 3 * hdim:4 * hdim])
        c0 = f0 * c0 + i0 * g0
        h0 = o0 * jnp.tanh(c0)
        # ---- layer 1: register-value [h0 | h1] feeding one K=256 matmul ----
        h01 = jnp.concatenate([h0, h1], axis=1).astype(bf16)
        z1 = jnp.dot(h01, w1cat_ref[...], preferred_element_type=f32) + b1b
        i1 = sig(z1[:, 0 * hdim:1 * hdim])
        f1 = sig(z1[:, 1 * hdim:2 * hdim])
        g1 = jnp.tanh(z1[:, 2 * hdim:3 * hdim])
        o1 = sig(z1[:, 3 * hdim:4 * hdim])
        c1 = f1 * c1 + i1 * g1
        h1 = o1 * jnp.tanh(c1)

    feat = jnp.maximum(h1, 0.0)                                  # relu(r_out[:, -1, :])
    logits = jnp.dot(feat, wp_ref[...], preferred_element_type=f32) + bp_ref[...]
    m = jnp.max(logits, axis=1, keepdims=True)
    e = jnp.exp(logits - m)
    probs_ref[...] = e / jnp.sum(e, axis=1, keepdims=True)
    feat_ref[...] = feat


def _make_pool_selector(n):
    """0/1 matrix separating even/odd width lanes of the (b, x) conv output."""
    b = jnp.repeat(jnp.arange(n), SEQ_LEN)
    w = jnp.tile(jnp.arange(SEQ_LEN), n)
    cols = b * SEQ_LEN + w
    rows_even = b * IN_W + 2 * w
    s = jnp.zeros((n * IN_W, 2 * n * SEQ_LEN), jnp.float32)
    s = s.at[rows_even, cols].set(1.0)
    s = s.at[rows_even + 1, cols + n * SEQ_LEN].set(1.0)
    return s


# --------------------------------------------------------------------------
# Forward pass (mirrors Equalizer.forward(data, h_state))
# --------------------------------------------------------------------------
def equalizer_forward(x, params, h_state=None):
    """Returns (softmax_output, relu_feature), like the PyTorch module."""
    n = x.shape[0]
    x3 = x.reshape(n, IN_H, IN_W).astype(jnp.float32)     # drop the C=1 channel dim

    if h_state is None:
        h_init = jnp.zeros((2, n, HIDDEN), jnp.float32)
        c_init = jnp.zeros((2, n, HIDDEN), jnp.float32)
    else:
        h_init, c_init = h_state                          # .detach() is a no-op here

    sel = _make_pool_selector(n)

    return pl.pallas_call(
        _equalizer_kernel,
        out_shape=(jax.ShapeDtypeStruct((n, N_CLASSES), jnp.float32),
                   jax.ShapeDtypeStruct((n, HIDDEN), jnp.float32)),
        in_specs=[_VMEM] * 15,
        out_specs=(_VMEM, _VMEM),
    )(x3, h_init, c_init,
      params["w1mx"], params["b1col"], params["w2row"], params["b2col"], sel,
      params["wih0"], params["whh0"], params["b0"],
      params["w1cat"], params["b1l"], params["wp"], params["bp"])


# --------------------------------------------------------------------------
# Parameter construction (PyTorch-style init) + kernel-ready packing
# --------------------------------------------------------------------------
def init_torch_params(key):
    ks = jax.random.split(key, 14)

    def u(k, shape, fan_in):
        b = 1.0 / math.sqrt(fan_in)
        return jax.random.uniform(k, shape, jnp.float32, -b, b)

    return {
        "conv1_w": u(ks[0], (CH, 1, 3, 3), 9),
        "conv1_b": u(ks[1], (CH,), 9),
        "conv2_w": u(ks[2], (CH, CH, 2, 3), CH * 6),
        "conv2_b": u(ks[3], (CH,), CH * 6),
        # PyTorch LSTM gate order: i, f, g, o.
        "w_ih_l0": u(ks[4], (4 * HIDDEN, CH), HIDDEN),
        "w_hh_l0": u(ks[5], (4 * HIDDEN, HIDDEN), HIDDEN),
        "b_ih_l0": u(ks[6], (4 * HIDDEN,), HIDDEN),
        "b_hh_l0": u(ks[7], (4 * HIDDEN,), HIDDEN),
        "w_ih_l1": u(ks[8], (4 * HIDDEN, HIDDEN), HIDDEN),
        "w_hh_l1": u(ks[9], (4 * HIDDEN, HIDDEN), HIDDEN),
        "b_ih_l1": u(ks[10], (4 * HIDDEN,), HIDDEN),
        "b_hh_l1": u(ks[11], (4 * HIDDEN,), HIDDEN),
        "fc_w": u(ks[12], (N_CLASSES, HIDDEN), HIDDEN),
        "fc_b": u(ks[13], (N_CLASSES,), HIDDEN),
    }


def prepare_params(tp):
    """Pack PyTorch-layout parameters into the layouts the fused kernel consumes."""
    bf16 = jnp.bfloat16
    # conv_1 as MXU matmul: rows (h*32+ci), cols (h'*9 + ky*3 + kx); zero off-block.
    w1r = tp["conv1_w"].reshape(CH, 9)
    w1mx = jnp.zeros((2, CH, 2, 9), jnp.float32)
    w1mx = w1mx.at[0, :, 0, :].set(w1r).at[1, :, 1, :].set(w1r)
    w1mx = w1mx.reshape(2 * CH, 18)
    b1col = jnp.tile(tp["conv1_b"], 2).reshape(2 * CH, 1)
    # conv_2: (32, 192) with columns ordered (kx, ky, ci) to match the P2 rows.
    w2row = jnp.transpose(tp["conv2_w"], (0, 3, 2, 1)).reshape(CH, 6 * CH)
    b2col = tp["conv2_b"].reshape(CH, 1)
    return {
        "w1mx": w1mx, "b1col": b1col, "w2row": w2row, "b2col": b2col,
        # LSTM layer 0 (bf16 weight staging for the MXU).
        "wih0": tp["w_ih_l0"].T.astype(bf16),                            # (32, 512)
        "whh0": tp["w_hh_l0"].T.astype(bf16),                            # (128, 512)
        "b0": (tp["b_ih_l0"] + tp["b_hh_l0"]).reshape(1, 4 * HIDDEN),
        # LSTM layer 1: concatenated [Wih1; Whh1] so [h0|h1] @ W1cat is one matmul.
        "w1cat": jnp.concatenate([tp["w_ih_l1"].T, tp["w_hh_l1"].T],
                                 axis=0).astype(bf16),                   # (256, 512)
        "b1l": (tp["b_ih_l1"] + tp["b_hh_l1"]).reshape(1, 4 * HIDDEN),
        # predict_1.
        "wp": tp["fc_w"].T,                                              # (128, 4)
        "bp": tp["fc_b"].reshape(1, N_CLASSES),
    }


# --------------------------------------------------------------------------
# Pure-JAX/XLA reference of the same module (for cross-checking the kernel)
# --------------------------------------------------------------------------
def reference_forward(x, tp, h_state=None):
    n = x.shape[0]
    dn = ("NCHW", "OIHW", "NCHW")
    hi = jax.lax.Precision.HIGHEST

    a1 = jax.lax.conv_general_dilated(x, tp["conv1_w"], (1, 1), ((1, 1), (1, 1)),
                                      dimension_numbers=dn, precision=hi)
    a1 = jax.nn.relu(a1 + tp["conv1_b"].reshape(1, CH, 1, 1))
    a2 = jax.lax.conv_general_dilated(a1, tp["conv2_w"], (1, 1), ((0, 0), (1, 1)),
                                      dimension_numbers=dn, precision=hi)
    a2 = jax.nn.relu(a2 + tp["conv2_b"].reshape(1, CH, 1, 1))        # (N, 32, 1, 18)

    pooled = jnp.max(a2.reshape(n, CH, 1, SEQ_LEN, 2), axis=4)       # (N, 32, 1, 9)
    seq = pooled.reshape(n, SEQ_LEN, CH)                             # PyTorch view(-1,9,32)

    if h_state is None:
        hh = jnp.zeros((2, n, HIDDEN), jnp.float32)
        cc = jnp.zeros((2, n, HIDDEN), jnp.float32)
    else:
        hh, cc = h_state

    def dot(a, b):
        return jnp.dot(a, b, precision=hi)

    def cell(x_t, h_prev, c_prev, w_ih, w_hh, b_ih, b_hh):
        z = dot(x_t, w_ih.T) + dot(h_prev, w_hh.T) + b_ih + b_hh
        i, f, g, o = jnp.split(z, 4, axis=1)
        i, f, o = jax.nn.sigmoid(i), jax.nn.sigmoid(f), jax.nn.sigmoid(o)
        g = jnp.tanh(g)
        c_new = f * c_prev + i * g
        return o * jnp.tanh(c_new), c_new

    h0, c0, h1, c1 = hh[0], cc[0], hh[1], cc[1]
    for t in range(SEQ_LEN):
        h0, c0 = cell(seq[:, t, :], h0, c0,
                      tp["w_ih_l0"], tp["w_hh_l0"], tp["b_ih_l0"], tp["b_hh_l0"])
        h1, c1 = cell(h0, h1, c1,
                      tp["w_ih_l1"], tp["w_hh_l1"], tp["b_ih_l1"], tp["b_hh_l1"])
    feat = jax.nn.relu(h1)
    logits = dot(feat, tp["fc_w"].T) + tp["fc_b"]
    return jax.nn.softmax(logits, axis=1), feat


if __name__ == "__main__":
    key = jax.random.PRNGKey(0)
    pkey, xkey = jax.random.split(key)

    torch_params = init_torch_params(pkey)
    params = prepare_params(torch_params)

    # Input implied by the forward pass: (N, 1, 2, fb_length + 12 + 1) = (2, 1, 2, 18)
    x = jax.random.normal(xkey, (2, 1, IN_H, IN_W), dtype=jnp.float32)

    fwd = jax.jit(equalizer_forward)
    probs, feat = fwd(x, params)
    jax.block_until_ready((probs, feat))

    # Shape / sanity checks.
    assert probs.shape == (2, N_CLASSES)
    assert feat.shape == (2, HIDDEN)
    assert bool(jnp.all(jnp.isfinite(probs))) and bool(jnp.all(jnp.isfinite(feat)))
    assert bool(jnp.all(jnp.abs(jnp.sum(probs, axis=1) - 1.0) < 1e-4))

    # Cross-check against a pure-XLA f32 reference.  Tolerance absorbs the
    # intentional bf16 weight staging of the LSTM matmuls (decided acceptable)
    # plus MXU f32 pass emulation; real wiring bugs are O(0.1+).
    probs_ref, feat_ref = jax.jit(reference_forward)(x, torch_params)
    jax.block_until_ready((probs_ref, feat_ref))
    perr = float(jnp.max(jnp.abs(probs - probs_ref)))
    ferr = float(jnp.max(jnp.abs(feat - feat_ref)))
    assert bool(jnp.allclose(probs, probs_ref, atol=5e-2, rtol=5e-2)), f"probs diff {perr}"
    assert bool(jnp.allclose(feat, feat_ref, atol=5e-2, rtol=5e-2)), f"feat diff {ferr}"

    print("KERNEL_OK")
</pallas_src>

<mosaic_0001>
module attributes {stable_mosaic.version = 11 : i64} {
  func.func @_equalizer_kernel(%arg0: memref<2x2x18xf32, #tpu.memory_space<vmem>>, %arg1: memref<2x2x128xf32, #tpu.memory_space<vmem>>, %arg2: memref<2x2x128xf32, #tpu.memory_space<vmem>>, %arg3: memref<64x18xf32, #tpu.memory_space<vmem>>, %arg4: memref<64x1xf32, #tpu.memory_space<vmem>>, %arg5: memref<32x192xf32, #tpu.memory_space<vmem>>, %arg6: memref<32x1xf32, #tpu.memory_space<vmem>>, %arg7: memref<36x36xf32, #tpu.memory_space<vmem>>, %arg8: memref<32x512xbf16, #tpu.memory_space<vmem>>, %arg9: memref<128x512xbf16, #tpu.memory_space<vmem>>, %arg10: memref<1x512xf32, #tpu.memory_space<vmem>>, %arg11: memref<256x512xbf16, #tpu.memory_space<vmem>>, %arg12: memref<1x512xf32, #tpu.memory_space<vmem>>, %arg13: memref<128x4xf32, #tpu.memory_space<vmem>>, %arg14: memref<1x4xf32, #tpu.memory_space<vmem>>, %arg15: memref<2x4xf32, #tpu.memory_space<vmem>>, %arg16: memref<2x128xf32, #tpu.memory_space<vmem>>) attributes {dimension_semantics = [], scalar_prefetch = 0 : i64, scratch_operands = 0 : i64, tpu.core_type = #tpu.core_type<tc>} {
    %c0 = arith.constant 0 : index
    %c0_0 = arith.constant 0 : index
    %c0_1 = arith.constant 0 : index
    %0 = vector.load %arg0[%c0, %c0_0, %c0_1] : memref<2x2x18xf32, #tpu.memory_space<vmem>>, vector<1x2x18xf32>
    %1 = vector.shape_cast %0 : vector<1x2x18xf32> to vector<2x18xf32>
    %cst = arith.constant 0.000000e+00 : f32
    %2 = vector.broadcast %cst : f32 to vector<2x1xf32>
    %cst_2 = arith.constant 0.000000e+00 : f32
    %3 = vector.broadcast %cst_2 : f32 to vector<1x20xf32>
    %4 = tpu.concatenate %2, %1, %2 in 1 : vector<2x1xf32>, vector<2x18xf32>, vector<2x1xf32> -> vector<2x20xf32>
    %5 = tpu.concatenate %3, %4, %3 in 0 : vector<1x20xf32>, vector<2x20xf32>, vector<1x20xf32> -> vector<4x20xf32>
    %6 = vector.extract_strided_slice %5 {offsets = [0, 0], sizes = [1, 18], strides = [1, 1]} : vector<4x20xf32> to vector<1x18xf32>
    %7 = vector.extract_strided_slice %5 {offsets = [0, 1], sizes = [1, 18], strides = [1, 1]} : vector<4x20xf32> to vector<1x18xf32>
    %8 = vector.extract_strided_slice %5 {offsets = [0, 2], sizes = [1, 18], strides = [1, 1]} : vector<4x20xf32> to vector<1x18xf32>
    %9 = tpu.concatenate %6, %7, %8 in 0 : vector<1x18xf32>, vector<1x18xf32>, vector<1x18xf32> -> vector<3x18xf32>
    %10 = vector.extract_strided_slice %5 {offsets = [1, 0], sizes = [1, 18], strides = [1, 1]} : vector<4x20xf32> to vector<1x18xf32>
    %11 = vector.extract_strided_slice %5 {offsets = [1, 1], sizes = [1, 18], strides = [1, 1]} : vector<4x20xf32> to vector<1x18xf32>
    %12 = vector.extract_strided_slice %5 {offsets = [1, 2], sizes = [1, 18], strides = [1, 1]} : vector<4x20xf32> to vector<1x18xf32>
    %13 = tpu.concatenate %10, %11, %12 in 0 : vector<1x18xf32>, vector<1x18xf32>, vector<1x18xf32> -> vector<3x18xf32>
    %14 = vector.extract_strided_slice %5 {offsets = [2, 0], sizes = [1, 18], strides = [1, 1]} : vector<4x20xf32> to vector<1x18xf32>
    %15 = vector.extract_strided_slice %5 {offsets = [2, 1], sizes = [1, 18], strides = [1, 1]} : vector<4x20xf32> to vector<1x18xf32>
    %16 = vector.extract_strided_slice %5 {offsets = [2, 2], sizes = [1, 18], strides = [1, 1]} : vector<4x20xf32> to vector<1x18xf32>
    %17 = tpu.concatenate %14, %15, %16 in 0 : vector<1x18xf32>, vector<1x18xf32>, vector<1x18xf32> -> vector<3x18xf32>
    %18 = vector.extract_strided_slice %5 {offsets = [3, 0], sizes = [1, 18], strides = [1, 1]} : vector<4x20xf32> to vector<1x18xf32>
    %19 = vector.extract_strided_slice %5 {offsets = [3, 1], sizes = [1, 18], strides = [1, 1]} : vector<4x20xf32> to vector<1x18xf32>
    %20 = vector.extract_strided_slice %5 {offsets = [3, 2], sizes = [1, 18], strides = [1, 1]} : vector<4x20xf32> to vector<1x18xf32>
    %21 = tpu.concatenate %18, %19, %20 in 0 : vector<1x18xf32>, vector<1x18xf32>, vector<1x18xf32> -> vector<3x18xf32>
    %22 = tpu.concatenate %9, %13, %17, %13, %17, %21 in 0 : vector<3x18xf32>, vector<3x18xf32>, vector<3x18xf32>, vector<3x18xf32>, vector<3x18xf32>, vector<3x18xf32> -> vector<18x18xf32>
    %c0_3 = arith.constant 0 : index
    %c0_4 = arith.constant 0 : index
    %23 = vector.load %arg3[%c0_3, %c0_4] : memref<64x18xf32, #tpu.memory_space<vmem>>, vector<64x18xf32>
    %cst_5 = arith.constant dense<0.000000e+00> : vector<64x18xf32>
    %24 = tpu.matmul %23, %22, %cst_5 {dimension_numbers = #tpu.dot_dimension_numbers<[1], [0], [0], [1], [0, 0, 1, 1], [], []>} : vector<64x18xf32>, vector<18x18xf32>, vector<64x18xf32> -> vector<64x18xf32>
    %c0_6 = arith.constant 0 : index
    %c0_7 = arith.constant 0 : index
    %25 = vector.load %arg4[%c0_6, %c0_7] : memref<64x1xf32, #tpu.memory_space<vmem>>, vector<64x1xf32>
    %26 = vector.broadcast %25 : vector<64x1xf32> to vector<64x18xf32>
    %27 = arith.addf %24, %26 : vector<64x18xf32>
    %cst_8 = arith.constant 0.000000e+00 : f32
    %28 = vector.broadcast %cst_8 : f32 to vector<64x18xf32>
    %29 = arith.maximumf %27, %28 : vector<64x18xf32>
    %cst_9 = arith.constant 0.000000e+00 : f32
    %30 = vector.broadcast %cst_9 : f32 to vector<64x1xf32>
    %31 = tpu.concatenate %30, %29, %30 in 1 : vector<64x1xf32>, vector<64x18xf32>, vector<64x1xf32> -> vector<64x20xf32>
    %32 = vector.extract_strided_slice %31 {offsets = [0, 0], sizes = [64, 18], strides = [1, 1]} : vector<64x20xf32> to vector<64x18xf32>
    %33 = vector.extract_strided_slice %31 {offsets = [0, 1], sizes = [64, 18], strides = [1, 1]} : vector<64x20xf32> to vector<64x18xf32>
    %34 = vector.extract_strided_slice %31 {offsets = [0, 2], sizes = [64, 18], strides = [1, 1]} : vector<64x20xf32> to vector<64x18xf32>
    %35 = tpu.concatenate %32, %33, %34 in 0 : vector<64x18xf32>, vector<64x18xf32>, vector<64x18xf32> -> vector<192x18xf32>
    %c1 = arith.constant 1 : index
    %c0_10 = arith.constant 0 : index
    %c0_11 = arith.constant 0 : index
    %36 = vector.load %arg0[%c1, %c0_10, %c0_11] : memref<2x2x18xf32, #tpu.memory_space<vmem>>, vector<1x2x18xf32>
    %37 = vector.shape_cast %36 : vector<1x2x18xf32> to vector<2x18xf32>
    %cst_12 = arith.constant 0.000000e+00 : f32
    %38 = vector.broadcast %cst_12 : f32 to vector<2x1xf32>
    %cst_13 = arith.constant 0.000000e+00 : f32
    %39 = vector.broadcast %cst_13 : f32 to vector<1x20xf32>
    %40 = tpu.concatenate %38, %37, %38 in 1 : vector<2x1xf32>, vector<2x18xf32>, vector<2x1xf32> -> vector<2x20xf32>
    %41 = tpu.concatenate %39, %40, %39 in 0 : vector<1x20xf32>, vector<2x20xf32>, vector<1x20xf32> -> vector<4x20xf32>
    %42 = vector.extract_strided_slice %41 {offsets = [0, 0], sizes = [1, 18], strides = [1, 1]} : vector<4x20xf32> to vector<1x18xf32>
    %43 = vector.extract_strided_slice %41 {offsets = [0, 1], sizes = [1, 18], strides = [1, 1]} : vector<4x20xf32> to vector<1x18xf32>
    %44 = vector.extract_strided_slice %41 {offsets = [0, 2], sizes = [1, 18], strides = [1, 1]} : vector<4x20xf32> to vector<1x18xf32>
    %45 = tpu.concatenate %42, %43, %44 in 0 : vector<1x18xf32>, vector<1x18xf32>, vector<1x18xf32> -> vector<3x18xf32>
    %46 = vector.extract_strided_slice %41 {offsets = [1, 0], sizes = [1, 18], strides = [1, 1]} : vector<4x20xf32> to vector<1x18xf32>
    %47 = vector.extract_strided_slice %41 {offsets = [1, 1], sizes = [1, 18], strides = [1, 1]} : vector<4x20xf32> to vector<1x18xf32>
    %48 = vector.extract_strided_slice %41 {offsets = [1, 2], sizes = [1, 18], strides = [1, 1]} : vector<4x20xf32> to vector<1x18xf32>
    %49 = tpu.concatenate %46, %47, %48 in 0 : vector<1x18xf32>, vector<1x18xf32>, vector<1x18xf32> -> vector<3x18xf32>
    %50 = vector.extract_strided_slice %41 {offsets = [2, 0], sizes = [1, 18], strides = [1, 1]} : vector<4x20xf32> to vector<1x18xf32>
    %51 = vector.extract_strided_slice %41 {offsets = [2, 1], sizes = [1, 18], strides = [1, 1]} : vector<4x20xf32> to vector<1x18xf32>
    %52 = vector.extract_strided_slice %41 {offsets = [2, 2], sizes = [1, 18], strides = [1, 1]} : vector<4x20xf32> to vector<1x18xf32>
    %53 = tpu.concatenate %50, %51, %52 in 0 : vector<1x18xf32>, vector<1x18xf32>, vector<1x18xf32> -> vector<3x18xf32>
    %54 = vector.extract_strided_slice %41 {offsets = [3, 0], sizes = [1, 18], strides = [1, 1]} : vector<4x20xf32> to vector<1x18xf32>
    %55 = vector.extract_strided_slice %41 {offsets = [3, 1], sizes = [1, 18], strides = [1, 1]} : vector<4x20xf32> to vector<1x18xf32>
    %56 = vector.extract_strided_slice %41 {offsets = [3, 2], sizes = [1, 18], strides = [1, 1]} : vector<4x20xf32> to vector<1x18xf32>
    %57 = tpu.concatenate %54, %55, %56 in 0 : vector<1x18xf32>, vector<1x18xf32>, vector<1x18xf32> -> vector<3x18xf32>
    %58 = tpu.concatenate %45, %49, %53, %49, %53, %57 in 0 : vector<3x18xf32>, vector<3x18xf32>, vector<3x18xf32>, vector<3x18xf32>, vector<3x18xf32>, vector<3x18xf32> -> vector<18x18xf32>
    %c0_14 = arith.constant 0 : index
    %c0_15 = arith.constant 0 : index
    %59 = vector.load %arg3[%c0_14, %c0_15] : memref<64x18xf32, #tpu.memory_space<vmem>>, vector<64x18xf32>
    %cst_16 = arith.constant dense<0.000000e+00> : vector<64x18xf32>
    %60 = tpu.matmul %59, %58, %cst_16 {dimension_numbers = #tpu.dot_dimension_numbers<[1], [0], [0], [1], [0, 0, 1, 1], [], []>} : vector<64x18xf32>, vector<18x18xf32>, vector<64x18xf32> -> vector<64x18xf32>
    %c0_17 = arith.constant 0 : index
    %c0_18 = arith.constant 0 : index
    %61 = vector.load %arg4[%c0_17, %c0_18] : memref<64x1xf32, #tpu.memory_space<vmem>>, vector<64x1xf32>
    %62 = vector.broadcast %61 : vector<64x1xf32> to vector<64x18xf32>
    %63 = arith.addf %60, %62 : vector<64x18xf32>
    %cst_19 = arith.constant 0.000000e+00 : f32
    %64 = vector.broadcast %cst_19 : f32 to vector<64x18xf32>
    %65 = arith.maximumf %63, %64 : vector<64x18xf32>
    %cst_20 = arith.constant 0.000000e+00 : f32
    %66 = vector.broadcast %cst_20 : f32 to vector<64x1xf32>
    %67 = tpu.concatenate %66, %65, %66 in 1 : vector<64x1xf32>, vector<64x18xf32>, vector<64x1xf32> -> vector<64x20xf32>
    %68 = vector.extract_strided_slice %67 {offsets = [0, 0], sizes = [64, 18], strides = [1, 1]} : vector<64x20xf32> to vector<64x18xf32>
    %69 = vector.extract_strided_slice %67 {offsets = [0, 1], sizes = [64, 18], strides = [1, 1]} : vector<64x20xf32> to vector<64x18xf32>
    %70 = vector.extract_strided_slice %67 {offsets = [0, 2], sizes = [64, 18], strides = [1, 1]} : vector<64x20xf32> to vector<64x18xf32>
    %71 = tpu.concatenate %68, %69, %70 in 0 : vector<64x18xf32>, vector<64x18xf32>, vector<64x18xf32> -> vector<192x18xf32>
    %72 = tpu.concatenate %35, %71 in 1 : vector<192x18xf32>, vector<192x18xf32> -> vector<192x36xf32>
    %c0_21 = arith.constant 0 : index
    %c0_22 = arith.constant 0 : index
    %73 = vector.load %arg5[%c0_21, %c0_22] : memref<32x192xf32, #tpu.memory_space<vmem>>, vector<32x192xf32>
    %cst_23 = arith.constant dense<0.000000e+00> : vector<32x36xf32>
    %74 = tpu.matmul %73, %72, %cst_23 {dimension_numbers = #tpu.dot_dimension_numbers<[1], [0], [0], [1], [0, 0, 1, 1], [], []>} : vector<32x192xf32>, vector<192x36xf32>, vector<32x36xf32> -> vector<32x36xf32>
    %c0_24 = arith.constant 0 : index
    %c0_25 = arith.constant 0 : index
    %75 = vector.load %arg6[%c0_24, %c0_25] : memref<32x1xf32, #tpu.memory_space<vmem>>, vector<32x1xf32>
    %76 = vector.broadcast %75 : vector<32x1xf32> to vector<32x36xf32>
    %77 = arith.addf %74, %76 : vector<32x36xf32>
    %cst_26 = arith.constant 0.000000e+00 : f32
    %78 = vector.broadcast %cst_26 : f32 to vector<32x36xf32>
    %79 = arith.maximumf %77, %78 : vector<32x36xf32>
    %c0_27 = arith.constant 0 : index
    %c0_28 = arith.constant 0 : index
    %80 = vector.load %arg7[%c0_27, %c0_28] : memref<36x36xf32, #tpu.memory_space<vmem>>, vector<36x36xf32>
    %cst_29 = arith.constant dense<0.000000e+00> : vector<32x36xf32>
    %81 = tpu.matmul %79, %80, %cst_29 {dimension_numbers = #tpu.dot_dimension_numbers<[1], [0], [0], [1], [0, 0, 1, 1], [], []>} : vector<32x36xf32>, vector<36x36xf32>, vector<32x36xf32> -> vector<32x36xf32>
    %82 = vector.extract_strided_slice %81 {offsets = [0, 0], sizes = [32, 18], strides = [1, 1]} : vector<32x36xf32> to vector<32x18xf32>
    %83 = vector.extract_strided_slice %81 {offsets = [0, 18], sizes = [32, 18], strides = [1, 1]} : vector<32x36xf32> to vector<32x18xf32>
    %84 = arith.maximumf %82, %83 : vector<32x18xf32>
    %85 = vector.extract_strided_slice %84 {offsets = [0, 0], sizes = [1, 9], strides = [1, 1]} : vector<32x18xf32> to vector<1x9xf32>
    %86 = vector.extract_strided_slice %84 {offsets = [0, 9], sizes = [1, 9], strides = [1, 1]} : vector<32x18xf32> to vector<1x9xf32>
    %87 = tpu.concatenate %85, %86 in 0 : vector<1x9xf32>, vector<1x9xf32> -> vector<2x9xf32>
    %88 = vector.extract_strided_slice %84 {offsets = [1, 0], sizes = [1, 9], strides = [1, 1]} : vector<32x18xf32> to vector<1x9xf32>
    %89 = vector.extract_strided_slice %84 {offsets = [1, 9], sizes = [1, 9], strides = [1, 1]} : vector<32x18xf32> to vector<1x9xf32>
    %90 = tpu.concatenate %88, %89 in 0 : vector<1x9xf32>, vector<1x9xf32> -> vector<2x9xf32>
    %91 = vector.extract_strided_slice %84 {offsets = [2, 0], sizes = [1, 9], strides = [1, 1]} : vector<32x18xf32> to vector<1x9xf32>
    %92 = vector.extract_strided_slice %84 {offsets = [2, 9], sizes = [1, 9], strides = [1, 1]} : vector<32x18xf32> to vector<1x9xf32>
    %93 = tpu.concatenate %91, %92 in 0 : vector<1x9xf32>, vector<1x9xf32> -> vector<2x9xf32>
    %94 = vector.extract_strided_slice %84 {offsets = [3, 0], sizes = [1, 9], strides = [1, 1]} : vector<32x18xf32> to vector<1x9xf32>
    %95 = vector.extract_strided_slice %84 {offsets = [3, 9], sizes = [1, 9], strides = [1, 1]} : vector<32x18xf32> to vector<1x9xf32>
    %96 = tpu.concatenate %94, %95 in 0 : vector<1x9xf32>, vector<1x9xf32> -> vector<2x9xf32>
    %97 = vector.extract_strided_slice %84 {offsets = [4, 0], sizes = [1, 9], strides = [1, 1]} : vector<32x18xf32> to vector<1x9xf32>
    %98 = vector.extract_strided_slice %84 {offsets = [4, 9], sizes = [1, 9], strides = [1, 1]} : vector<32x18xf32> to vector<1x9xf32>
    %99 = tpu.concatenate %97, %98 in 0 : vector<1x9xf32>, vector<1x9xf32> -> vector<2x9xf32>
    %100 = vector.extract_strided_slice %84 {offsets = [5, 0], sizes = [1, 9], strides = [1, 1]} : vector<32x18xf32> to vector<1x9xf32>
    %101 = vector.extract_strided_slice %84 {offsets = [5, 9], sizes = [1, 9], strides = [1, 1]} : vector<32x18xf32> to vector<1x9xf32>
    %102 = tpu.concatenate %100, %101 in 0 : vector<1x9xf32>, vector<1x9xf32> -> vector<2x9xf32>
    %103 = vector.extract_strided_slice %84 {offsets = [6, 0], sizes = [1, 9], strides = [1, 1]} : vector<32x18xf32> to vector<1x9xf32>
    %104 = vector.extract_strided_slice %84 {offsets = [6, 9], sizes = [1, 9], strides = [1, 1]} : vector<32x18xf32> to vector<1x9xf32>
    %105 = tpu.concatenate %103, %104 in 0 : vector<1x9xf32>, vector<1x9xf32> -> vector<2x9xf32>
    %106 = vector.extract_strided_slice %84 {offsets = [7, 0], sizes = [1, 9], strides = [1, 1]} : vector<32x18xf32> to vector<1x9xf32>
    %107 = vector.extract_strided_slice %84 {offsets = [7, 9], sizes = [1, 9], strides = [1, 1]} : vector<32x18xf32> to vector<1x9xf32>
    %108 = tpu.concatenate %106, %107 in 0 : vector<1x9xf32>, vector<1x9xf32> -> vector<2x9xf32>
    %109 = vector.extract_strided_slice %84 {offsets = [8, 0], sizes = [1, 9], strides = [1, 1]} : vector<32x18xf32> to vector<1x9xf32>
    %110 = vector.extract_strided_slice %84 {offsets = [8, 9], sizes = [1, 9], strides = [1, 1]} : vector<32x18xf32> to vector<1x9xf32>
    %111 = tpu.concatenate %109, %110 in 0 : vector<1x9xf32>, vector<1x9xf32> -> vector<2x9xf32>
    %112 = vector.extract_strided_slice %84 {offsets = [9, 0], sizes = [1, 9], strides = [1, 1]} : vector<32x18xf32> to vector<1x9xf32>
    %113 = vector.extract_strided_slice %84 {offsets = [9, 9], sizes = [1, 9], strides = [1, 1]} : vector<32x18xf32> to vector<1x9xf32>
    %114 = tpu.concatenate %112, %113 in 0 : vector<1x9xf32>, vector<1x9xf32> -> vector<2x9xf32>
    %115 = vector.extract_strided_slice %84 {offsets = [10, 0], sizes = [1, 9], strides = [1, 1]} : vector<32x18xf32> to vector<1x9xf32>
    %116 = vector.extract_strided_slice %84 {offsets = [10, 9], sizes = [1, 9], strides = [1, 1]} : vector<32x18xf32> to vector<1x9xf32>
    %117 = tpu.concatenate %115, %116 in 0 : vector<1x9xf32>, vector<1x9xf32> -> vector<2x9xf32>
    %118 = vector.extract_strided_slice %84 {offsets = [11, 0], sizes = [1, 9], strides = [1, 1]} : vector<32x18xf32> to vector<1x9xf32>
    %119 = vector.extract_strided_slice %84 {offsets = [11, 9], sizes = [1, 9], strides = [1, 1]} : vector<32x18xf32> to vector<1x9xf32>
    %120 = tpu.concatenate %118, %119 in 0 : vector<1x9xf32>, vector<1x9xf32> -> vector<2x9xf32>
    %121 = vector.extract_strided_slice %84 {offsets = [12, 0], sizes = [1, 9], strides = [1, 1]} : vector<32x18xf32> to vector<1x9xf32>
    %122 = vector.extract_strided_slice %84 {offsets = [12, 9], sizes = [1, 9], strides = [1, 1]} : vector<32x18xf32> to vector<1x9xf32>
    %123 = tpu.concatenate %121, %122 in 0 : vector<1x9xf32>, vector<1x9xf32> -> vector<2x9xf32>
    %124 = vector.extract_strided_slice %84 {offsets = [13, 0], sizes = [1, 9], strides = [1, 1]} : vector<32x18xf32> to vector<1x9xf32>
    %125 = vector.extract_strided_slice %84 {offsets = [13, 9], sizes = [1, 9], strides = [1, 1]} : vector<32x18xf32> to vector<1x9xf32>
    %126 = tpu.concatenate %124, %125 in 0 : vector<1x9xf32>, vector<1x9xf32> -> vector<2x9xf32>
    %127 = vector.extract_strided_slice %84 {offsets = [14, 0], sizes = [1, 9], strides = [1, 1]} : vector<32x18xf32> to vector<1x9xf32>
    %128 = vector.extract_strided_slice %84 {offsets = [14, 9], sizes = [1, 9], strides = [1, 1]} : vector<32x18xf32> to vector<1x9xf32>
    %129 = tpu.concatenate %127, %128 in 0 : vector<1x9xf32>, vector<1x9xf32> -> vector<2x9xf32>
    %130 = vector.extract_strided_slice %84 {offsets = [15, 0], sizes = [1, 9], strides = [1, 1]} : vector<32x18xf32> to vector<1x9xf32>
    %131 = vector.extract_strided_slice %84 {offsets = [15, 9], sizes = [1, 9], strides = [1, 1]} : vector<32x18xf32> to vector<1x9xf32>
    %132 = tpu.concatenate %130, %131 in 0 : vector<1x9xf32>, vector<1x9xf32> -> vector<2x9xf32>
    %133 = vector.extract_strided_slice %84 {offsets = [16, 0], sizes = [1, 9], strides = [1, 1]} : vector<32x18xf32> to vector<1x9xf32>
    %134 = vector.extract_strided_slice %84 {offsets = [16, 9], sizes = [1, 9], strides = [1, 1]} : vector<32x18xf32> to vector<1x9xf32>
    %135 = tpu.concatenate %133, %134 in 0 : vector<1x9xf32>, vector<1x9xf32> -> vector<2x9xf32>
    %136 = vector.extract_strided_slice %84 {offsets = [17, 0], sizes = [1, 9], strides = [1, 1]} : vector<32x18xf32> to vector<1x9xf32>
    %137 = vector.extract_strided_slice %84 {offsets = [17, 9], sizes = [1, 9], strides = [1, 1]} : vector<32x18xf32> to vector<1x9xf32>
    %138 = tpu.concatenate %136, %137 in 0 : vector<1x9xf32>, vector<1x9xf32> -> vector<2x9xf32>
    %139 = vector.extract_strided_slice %84 {offsets = [18, 0], sizes = [1, 9], strides = [1, 1]} : vector<32x18xf32> to vector<1x9xf32>
    %140 = vector.extract_strided_slice %84 {offsets = [18, 9], sizes = [1, 9], strides = [1, 1]} : vector<32x18xf32> to vector<1x9xf32>
    %141 = tpu.concatenate %139, %140 in 0 : vector<1x9xf32>, vector<1x9xf32> -> vector<2x9xf32>
    %142 = vector.extract_strided_slice %84 {offsets = [19, 0], sizes = [1, 9], strides = [1, 1]} : vector<32x18xf32> to vector<1x9xf32>
    %143 = vector.extract_strided_slice %84 {offsets = [19, 9], sizes = [1, 9], strides = [1, 1]} : vector<32x18xf32> to vector<1x9xf32>
    %144 = tpu.concatenate %142, %143 in 0 : vector<1x9xf32>, vector<1x9xf32> -> vector<2x9xf32>
    %145 = vector.extract_strided_slice %84 {offsets = [20, 0], sizes = [1, 9], strides = [1, 1]} : vector<32x18xf32> to vector<1x9xf32>
    %146 = vector.extract_strided_slice %84 {offsets = [20, 9], sizes = [1, 9], strides = [1, 1]} : vector<32x18xf32> to vector<1x9xf32>
    %147 = tpu.concatenate %145, %146 in 0 : vector<1x9xf32>, vector<1x9xf32> -> vector<2x9xf32>
    %148 = vector.extract_strided_slice %84 {offsets = [21, 0], sizes = [1, 9], strides = [1, 1]} : vector<32x18xf32> to vector<1x9xf32>
    %149 = vector.extract_strided_slice %84 {offsets = [21, 9], sizes = [1, 9], strides = [1, 1]} : vector<32x18xf32> to vector<1x9xf32>
    %150 = tpu.concatenate %148, %149 in 0 : vector<1x9xf32>, vector<1x9xf32> -> vector<2x9xf32>
    %151 = vector.extract_strided_slice %84 {offsets = [22, 0], sizes = [1, 9], strides = [1, 1]} : vector<32x18xf32> to vector<1x9xf32>
    %152 = vector.extract_strided_slice %84 {offsets = [22, 9], sizes = [1, 9], strides = [1, 1]} : vector<32x18xf32> to vector<1x9xf32>
    %153 = tpu.concatenate %151, %152 in 0 : vector<1x9xf32>, vector<1x9xf32> -> vector<2x9xf32>
    %154 = vector.extract_strided_slice %84 {offsets = [23, 0], sizes = [1, 9], strides = [1, 1]} : vector<32x18xf32> to vector<1x9xf32>
    %155 = vector.extract_strided_slice %84 {offsets = [23, 9], sizes = [1, 9], strides = [1, 1]} : vector<32x18xf32> to vector<1x9xf32>
    %156 = tpu.concatenate %154, %155 in 0 : vector<1x9xf32>, vector<1x9xf32> -> vector<2x9xf32>
    %157 = vector.extract_strided_slice %84 {offsets = [24, 0], sizes = [1, 9], strides = [1, 1]} : vector<32x18xf32> to vector<1x9xf32>
    %158 = vector.extract_strided_slice %84 {offsets = [24, 9], sizes = [1, 9], strides = [1, 1]} : vector<32x18xf32> to vector<1x9xf32>
    %159 = tpu.concatenate %157, %158 in 0 : vector<1x9xf32>, vector<1x9xf32> -> vector<2x9xf32>
    %160 = vector.extract_strided_slice %84 {offsets = [25, 0], sizes = [1, 9], strides = [1, 1]} : vector<32x18xf32> to vector<1x9xf32>
    %161 = vector.extract_strided_slice %84 {offsets = [25, 9], sizes = [1, 9], strides = [1, 1]} : vector<32x18xf32> to vector<1x9xf32>
    %162 = tpu.concatenate %160, %161 in 0 : vector<1x9xf32>, vector<1x9xf32> -> vector<2x9xf32>
    %163 = vector.extract_strided_slice %84 {offsets = [26, 0], sizes = [1, 9], strides = [1, 1]} : vector<32x18xf32> to vector<1x9xf32>
    %164 = vector.extract_strided_slice %84 {offsets = [26, 9], sizes = [1, 9], strides = [1, 1]} : vector<32x18xf32> to vector<1x9xf32>
    %165 = tpu.concatenate %163, %164 in 0 : vector<1x9xf32>, vector<1x9xf32> -> vector<2x9xf32>
    %166 = vector.extract_strided_slice %84 {offsets = [27, 0], sizes = [1, 9], strides = [1, 1]} : vector<32x18xf32> to vector<1x9xf32>
    %167 = vector.extract_strided_slice %84 {offsets = [27, 9], sizes = [1, 9], strides = [1, 1]} : vector<32x18xf32> to vector<1x9xf32>
    %168 = tpu.concatenate %166, %167 in 0 : vector<1x9xf32>, vector<1x9xf32> -> vector<2x9xf32>
    %169 = vector.extract_strided_slice %84 {offsets = [28, 0], sizes = [1, 9], strides = [1, 1]} : vector<32x18xf32> to vector<1x9xf32>
    %170 = vector.extract_strided_slice %84 {offsets = [28, 9], sizes = [1, 9], strides = [1, 1]} : vector<32x18xf32> to vector<1x9xf32>
    %171 = tpu.concatenate %169, %170 in 0 : vector<1x9xf32>, vector<1x9xf32> -> vector<2x9xf32>
    %172 = vector.extract_strided_slice %84 {offsets = [29, 0], sizes = [1, 9], strides = [1, 1]} : vector<32x18xf32> to vector<1x9xf32>
    %173 = vector.extract_strided_slice %84 {offsets = [29, 9], sizes = [1, 9], strides = [1, 1]} : vector<32x18xf32> to vector<1x9xf32>
    %174 = tpu.concatenate %172, %173 in 0 : vector<1x9xf32>, vector<1x9xf32> -> vector<2x9xf32>
    %175 = vector.extract_strided_slice %84 {offsets = [30, 0], sizes = [1, 9], strides = [1, 1]} : vector<32x18xf32> to vector<1x9xf32>
    %176 = vector.extract_strided_slice %84 {offsets = [30, 9], sizes = [1, 9], strides = [1, 1]} : vector<32x18xf32> to vector<1x9xf32>
    %177 = tpu.concatenate %175, %176 in 0 : vector<1x9xf32>, vector<1x9xf32> -> vector<2x9xf32>
    %178 = vector.extract_strided_slice %84 {offsets = [31, 0], sizes = [1, 9], strides = [1, 1]} : vector<32x18xf32> to vector<1x9xf32>
    %179 = vector.extract_strided_slice %84 {offsets = [31, 9], sizes = [1, 9], strides = [1, 1]} : vector<32x18xf32> to vector<1x9xf32>
    %180 = tpu.concatenate %178, %179 in 0 : vector<1x9xf32>, vector<1x9xf32> -> vector<2x9xf32>
    %181 = tpu.concatenate %87, %90, %93, %96, %99, %102, %105, %108, %111, %114, %117, %120, %123, %126, %129, %132 in 1 : vector<2x9xf32>, vector<2x9xf32>, vector<2x9xf32>, vector<2x9xf32>, vector<2x9xf32>, vector<2x9xf32>, vector<2x9xf32>, vector<2x9xf32>, vector<2x9xf32>, vector<2x9xf32>, vector<2x9xf32>, vector<2x9xf32>, vector<2x9xf32>, vector<2x9xf32>, vector<2x9xf32>, vector<2x9xf32> -> vector<2x144xf32>
    %182 = tpu.concatenate %135, %138, %141, %144, %147, %150, %153, %156, %159, %162, %165, %168, %171, %174, %177, %180 in 1 : vector<2x9xf32>, vector<2x9xf32>, vector<2x9xf32>, vector<2x9xf32>, vector<2x9xf32>, vector<2x9xf32>, vector<2x9xf32>, vector<2x9xf32>, vector<2x9xf32>, vector<2x9xf32>, vector<2x9xf32>, vector<2x9xf32>, vector<2x9xf32>, vector<2x9xf32>, vector<2x9xf32>, vector<2x9xf32> -> vector<2x144xf32>
    %183 = tpu.concatenate %181, %182 in 1 : vector<2x144xf32>, vector<2x144xf32> -> vector<2x288xf32>
    %184 = vector.extract_strided_slice %183 {offsets = [0, 0], sizes = [2, 32], strides = [1, 1]} : vector<2x288xf32> to vector<2x32xf32>
    %185 = vector.extract_strided_slice %183 {offsets = [0, 32], sizes = [2, 32], strides = [1, 1]} : vector<2x288xf32> to vector<2x32xf32>
    %186 = vector.extract_strided_slice %183 {offsets = [0, 64], sizes = [2, 32], strides = [1, 1]} : vector<2x288xf32> to vector<2x32xf32>
    %187 = vector.extract_strided_slice %183 {offsets = [0, 96], sizes = [2, 32], strides = [1, 1]} : vector<2x288xf32> to vector<2x32xf32>
    %188 = vector.extract_strided_slice %183 {offsets = [0, 128], sizes = [2, 32], strides = [1, 1]} : vector<2x288xf32> to vector<2x32xf32>
    %189 = vector.extract_strided_slice %183 {offsets = [0, 160], sizes = [2, 32], strides = [1, 1]} : vector<2x288xf32> to vector<2x32xf32>
    %190 = vector.extract_strided_slice %183 {offsets = [0, 192], sizes = [2, 32], strides = [1, 1]} : vector<2x288xf32> to vector<2x32xf32>
    %191 = vector.extract_strided_slice %183 {offsets = [0, 224], sizes = [2, 32], strides = [1, 1]} : vector<2x288xf32> to vector<2x32xf32>
    %192 = vector.extract_strided_slice %183 {offsets = [0, 256], sizes = [2, 32], strides = [1, 1]} : vector<2x288xf32> to vector<2x32xf32>
    %193 = tpu.concatenate %184, %185, %186, %187, %188, %189, %190, %191, %192 in 0 : vector<2x32xf32>, vector<2x32xf32>, vector<2x32xf32>, vector<2x32xf32>, vector<2x32xf32>, vector<2x32xf32>, vector<2x32xf32>, vector<2x32xf32>, vector<2x32xf32> -> vector<18x32xf32>
    %194 = arith.truncf %193 : vector<18x32xf32> to vector<18x32xbf16>
    %c0_30 = arith.constant 0 : index
    %c0_31 = arith.constant 0 : index
    %195 = vector.load %arg8[%c0_30, %c0_31] : memref<32x512xbf16, #tpu.memory_space<vmem>>, vector<32x512xbf16>
    %cst_32 = arith.constant dense<0.000000e+00> : vector<18x512xf32>
    %196 = tpu.matmul %194, %195, %cst_32 {dimension_numbers = #tpu.dot_dimension_numbers<[1], [0], [0], [1], [0, 0, 1, 1], [], []>} : vector<18x32xbf16>, vector<32x512xbf16>, vector<18x512xf32> -> vector<18x512xf32>
    %c0_33 = arith.constant 0 : index
    %c0_34 = arith.constant 0 : index
    %197 = vector.load %arg10[%c0_33, %c0_34] : memref<1x512xf32, #tpu.memory_space<vmem>>, vector<1x512xf32>
    %198 = vector.broadcast %197 : vector<1x512xf32> to vector<18x512xf32>
    %199 = arith.addf %196, %198 : vector<18x512xf32>
    %200 = vector.extract_strided_slice %199 {offsets = [0, 0], sizes = [2, 512], strides = [1, 1]} : vector<18x512xf32> to vector<2x512xf32>
    %201 = vector.extract_strided_slice %199 {offsets = [2, 0], sizes = [2, 512], strides = [1, 1]} : vector<18x512xf32> to vector<2x512xf32>
    %202 = vector.extract_strided_slice %199 {offsets = [4, 0], sizes = [2, 512], strides = [1, 1]} : vector<18x512xf32> to vector<2x512xf32>
    %203 = vector.extract_strided_slice %199 {offsets = [6, 0], sizes = [2, 512], strides = [1, 1]} : vector<18x512xf32> to vector<2x512xf32>
    %204 = vector.extract_strided_slice %199 {offsets = [8, 0], sizes = [2, 512], strides = [1, 1]} : vector<18x512xf32> to vector<2x512xf32>
    %205 = vector.extract_strided_slice %199 {offsets = [10, 0], sizes = [2, 512], strides = [1, 1]} : vector<18x512xf32> to vector<2x512xf32>
    %206 = vector.extract_strided_slice %199 {offsets = [12, 0], sizes = [2, 512], strides = [1, 1]} : vector<18x512xf32> to vector<2x512xf32>
    %207 = vector.extract_strided_slice %199 {offsets = [14, 0], sizes = [2, 512], strides = [1, 1]} : vector<18x512xf32> to vector<2x512xf32>
    %208 = vector.extract_strided_slice %199 {offsets = [16, 0], sizes = [2, 512], strides = [1, 1]} : vector<18x512xf32> to vector<2x512xf32>
    %c0_35 = arith.constant 0 : index
    %c0_36 = arith.constant 0 : index
    %209 = vector.load %arg12[%c0_35, %c0_36] : memref<1x512xf32, #tpu.memory_space<vmem>>, vector<1x512xf32>
    %210 = vector.shape_cast %209 : vector<1x512xf32> to vector<1x512xf32>
    %211 = vector.broadcast %210 : vector<1x512xf32> to vector<2x512xf32>
    %c0_37 = arith.constant 0 : index
    %c0_38 = arith.constant 0 : index
    %c0_39 = arith.constant 0 : index
    %212 = vector.load %arg1[%c0_37, %c0_38, %c0_39] : memref<2x2x128xf32, #tpu.memory_space<vmem>>, vector<1x2x128xf32>
    %213 = vector.shape_cast %212 : vector<1x2x128xf32> to vector<2x128xf32>
    %c1_40 = arith.constant 1 : index
    %c0_41 = arith.constant 0 : index
    %c0_42 = arith.constant 0 : index
    %214 = vector.load %arg1[%c1_40, %c0_41, %c0_42] : memref<2x2x128xf32, #tpu.memory_space<vmem>>, vector<1x2x128xf32>
    %215 = vector.shape_cast %214 : vector<1x2x128xf32> to vector<2x128xf32>
    %c0_43 = arith.constant 0 : index
    %c0_44 = arith.constant 0 : index
    %c0_45 = arith.constant 0 : index
    %216 = vector.load %arg2[%c0_43, %c0_44, %c0_45] : memref<2x2x128xf32, #tpu.memory_space<vmem>>, vector<1x2x128xf32>
    %217 = vector.shape_cast %216 : vector<1x2x128xf32> to vector<2x128xf32>
    %c1_46 = arith.constant 1 : index
    %c0_47 = arith.constant 0 : index
    %c0_48 = arith.constant 0 : index
    %218 = vector.load %arg2[%c1_46, %c0_47, %c0_48] : memref<2x2x128xf32, #tpu.memory_space<vmem>>, vector<1x2x128xf32>
    %219 = vector.shape_cast %218 : vector<1x2x128xf32> to vector<2x128xf32>
    %220 = arith.truncf %213 : vector<2x128xf32> to vector<2x128xbf16>
    %c0_49 = arith.constant 0 : index
    %c0_50 = arith.constant 0 : index
    %221 = vector.load %arg9[%c0_49, %c0_50] : memref<128x512xbf16, #tpu.memory_space<vmem>>, vector<128x512xbf16>
    %cst_51 = arith.constant dense<0.000000e+00> : vector<2x512xf32>
    %222 = tpu.matmul %220, %221, %cst_51 {dimension_numbers = #tpu.dot_dimension_numbers<[1], [0], [0], [1], [0, 0, 1, 1], [], []>} : vector<2x128xbf16>, vector<128x512xbf16>, vector<2x512xf32> -> vector<2x512xf32>
    %223 = arith.addf %200, %222 : vector<2x512xf32>
    %224 = vector.extract_strided_slice %223 {offsets = [0, 0], sizes = [2, 128], strides = [1, 1]} : vector<2x512xf32> to vector<2x128xf32>
    %cst_52 = arith.constant 5.000000e-01 : f32
    %225 = vector.broadcast %cst_52 : f32 to vector<2x128xf32>
    %226 = arith.mulf %225, %224 : vector<2x128xf32>
    %227 = math.tanh %226 : vector<2x128xf32>
    %cst_53 = arith.constant 1.000000e+00 : f32
    %228 = vector.broadcast %cst_53 : f32 to vector<2x128xf32>
    %229 = arith.addf %227, %228 : vector<2x128xf32>
    %cst_54 = arith.constant 5.000000e-01 : f32
    %230 = vector.broadcast %cst_54 : f32 to vector<2x128xf32>
    %231 = arith.mulf %230, %229 : vector<2x128xf32>
    %232 = vector.extract_strided_slice %223 {offsets = [0, 128], sizes = [2, 128], strides = [1, 1]} : vector<2x512xf32> to vector<2x128xf32>
    %cst_55 = arith.constant 5.000000e-01 : f32
    %233 = vector.broadcast %cst_55 : f32 to vector<2x128xf32>
    %234 = arith.mulf %233, %232 : vector<2x128xf32>
    %235 = math.tanh %234 : vector<2x128xf32>
    %cst_56 = arith.constant 1.000000e+00 : f32
    %236 = vector.broadcast %cst_56 : f32 to vector<2x128xf32>
    %237 = arith.addf %235, %236 : vector<2x128xf32>
    %cst_57 = arith.constant 5.000000e-01 : f32
    %238 = vector.broadcast %cst_57 : f32 to vector<2x128xf32>
    %239 = arith.mulf %238, %237 : vector<2x128xf32>
    %240 = vector.extract_strided_slice %223 {offsets = [0, 256], sizes = [2, 128], strides = [1, 1]} : vector<2x512xf32> to vector<2x128xf32>
    %241 = math.tanh %240 : vector<2x128xf32>
    %242 = vector.extract_strided_slice %223 {offsets = [0, 384], sizes = [2, 128], strides = [1, 1]} : vector<2x512xf32> to vector<2x128xf32>
    %cst_58 = arith.constant 5.000000e-01 : f32
    %243 = vector.broadcast %cst_58 : f32 to vector<2x128xf32>
    %244 = arith.mulf %243, %242 : vector<2x128xf32>
    %245 = math.tanh %244 : vector<2x128xf32>
    %cst_59 = arith.constant 1.000000e+00 : f32
    %246 = vector.broadcast %cst_59 : f32 to vector<2x128xf32>
    %247 = arith.addf %245, %246 : vector<2x128xf32>
    %cst_60 = arith.constant 5.000000e-01 : f32
    %248 = vector.broadcast %cst_60 : f32 to vector<2x128xf32>
    %249 = arith.mulf %248, %247 : vector<2x128xf32>
    %250 = arith.mulf %239, %217 : vector<2x128xf32>
    %251 = arith.mulf %231, %241 : vector<2x128xf32>
    %252 = arith.addf %250, %251 : vector<2x128xf32>
    %253 = math.tanh %252 : vector<2x128xf32>
    %254 = arith.mulf %249, %253 : vector<2x128xf32>
    %255 = tpu.concatenate %254, %215 in 1 : vector<2x128xf32>, vector<2x128xf32> -> vector<2x256xf32>
    %256 = arith.truncf %255 : vector<2x256xf32> to vector<2x256xbf16>
    %c0_61 = arith.constant 0 : index
    %c0_62 = arith.constant 0 : index
    %257 = vector.load %arg11[%c0_61, %c0_62] : memref<256x512xbf16, #tpu.memory_space<vmem>>, vector<256x512xbf16>
    %cst_63 = arith.constant dense<0.000000e+00> : vector<2x512xf32>
    %258 = tpu.matmul %256, %257, %cst_63 {dimension_numbers = #tpu.dot_dimension_numbers<[1], [0], [0], [1], [0, 0, 1, 1], [], []>} : vector<2x256xbf16>, vector<256x512xbf16>, vector<2x512xf32> -> vector<2x512xf32>
    %259 = arith.addf %258, %211 : vector<2x512xf32>
    %260 = vector.extract_strided_slice %259 {offsets = [0, 0], sizes = [2, 128], strides = [1, 1]} : vector<2x512xf32> to vector<2x128xf32>
    %cst_64 = arith.constant 5.000000e-01 : f32
    %261 = vector.broadcast %cst_64 : f32 to vector<2x128xf32>
    %262 = arith.mulf %261, %260 : vector<2x128xf32>
    %263 = math.tanh %262 : vector<2x128xf32>
    %cst_65 = arith.constant 1.000000e+00 : f32
    %264 = vector.broadcast %cst_65 : f32 to vector<2x128xf32>
    %265 = arith.addf %263, %264 : vector<2x128xf32>
    %cst_66 = arith.constant 5.000000e-01 : f32
    %266 = vector.broadcast %cst_66 : f32 to vector<2x128xf32>
    %267 = arith.mulf %266, %265 : vector<2x128xf32>
    %268 = vector.extract_strided_slice %259 {offsets = [0, 128], sizes = [2, 128], strides = [1, 1]} : vector<2x512xf32> to vector<2x128xf32>
    %cst_67 = arith.constant 5.000000e-01 : f32
    %269 = vector.broadcast %cst_67 : f32 to vector<2x128xf32>
    %270 = arith.mulf %269, %268 : vector<2x128xf32>
    %271 = math.tanh %270 : vector<2x128xf32>
    %cst_68 = arith.constant 1.000000e+00 : f32
    %272 = vector.broadcast %cst_68 : f32 to vector<2x128xf32>
    %273 = arith.addf %271, %272 : vector<2x128xf32>
    %cst_69 = arith.constant 5.000000e-01 : f32
    %274 = vector.broadcast %cst_69 : f32 to vector<2x128xf32>
    %275 = arith.mulf %274, %273 : vector<2x128xf32>
    %276 = vector.extract_strided_slice %259 {offsets = [0, 256], sizes = [2, 128], strides = [1, 1]} : vector<2x512xf32> to vector<2x128xf32>
    %277 = math.tanh %276 : vector<2x128xf32>
    %278 = vector.extract_strided_slice %259 {offsets = [0, 384], sizes = [2, 128], strides = [1, 1]} : vector<2x512xf32> to vector<2x128xf32>
    %cst_70 = arith.constant 5.000000e-01 : f32
    %279 = vector.broadcast %cst_70 : f32 to vector<2x128xf32>
    %280 = arith.mulf %279, %278 : vector<2x128xf32>
    %281 = math.tanh %280 : vector<2x128xf32>
    %cst_71 = arith.constant 1.000000e+00 : f32
    %282 = vector.broadcast %cst_71 : f32 to vector<2x128xf32>
    %283 = arith.addf %281, %282 : vector<2x128xf32>
    %cst_72 = arith.constant 5.000000e-01 : f32
    %284 = vector.broadcast %cst_72 : f32 to vector<2x128xf32>
    %285 = arith.mulf %284, %283 : vector<2x128xf32>
    %286 = arith.mulf %275, %219 : vector<2x128xf32>
    %287 = arith.mulf %267, %277 : vector<2x128xf32>
    %288 = arith.addf %286, %287 : vector<2x128xf32>
    %289 = math.tanh %288 : vector<2x128xf32>
    %290 = arith.mulf %285, %289 : vector<2x128xf32>
    %291 = arith.truncf %254 : vector<2x128xf32> to vector<2x128xbf16>
    %c0_73 = arith.constant 0 : index
    %c0_74 = arith.constant 0 : index
    %292 = vector.load %arg9[%c0_73, %c0_74] : memref<128x512xbf16, #tpu.memory_space<vmem>>, vector<128x512xbf16>
    %cst_75 = arith.constant dense<0.000000e+00> : vector<2x512xf32>
    %293 = tpu.matmul %291, %292, %cst_75 {dimension_numbers = #tpu.dot_dimension_numbers<[1], [0], [0], [1], [0, 0, 1, 1], [], []>} : vector<2x128xbf16>, vector<128x512xbf16>, vector<2x512xf32> -> vector<2x512xf32>
    %294 = arith.addf %201, %293 : vector<2x512xf32>
    %295 = vector.extract_strided_slice %294 {offsets = [0, 0], sizes = [2, 128], strides = [1, 1]} : vector<2x512xf32> to vector<2x128xf32>
    %cst_76 = arith.constant 5.000000e-01 : f32
    %296 = vector.broadcast %cst_76 : f32 to vector<2x128xf32>
    %297 = arith.mulf %296, %295 : vector<2x128xf32>
    %298 = math.tanh %297 : vector<2x128xf32>
    %cst_77 = arith.constant 1.000000e+00 : f32
    %299 = vector.broadcast %cst_77 : f32 to vector<2x128xf32>
    %300 = arith.addf %298, %299 : vector<2x128xf32>
    %cst_78 = arith.constant 5.000000e-01 : f32
    %301 = vector.broadcast %cst_78 : f32 to vector<2x128xf32>
    %302 = arith.mulf %301, %300 : vector<2x128xf32>
    %303 = vector.extract_strided_slice %294 {offsets = [0, 128], sizes = [2, 128], strides = [1, 1]} : vector<2x512xf32> to vector<2x128xf32>
    %cst_79 = arith.constant 5.000000e-01 : f32
    %304 = vector.broadcast %cst_79 : f32 to vector<2x128xf32>
    %305 = arith.mulf %304, %303 : vector<2x128xf32>
    %306 = math.tanh %305 : vector<2x128xf32>
    %cst_80 = arith.constant 1.000000e+00 : f32
    %307 = vector.broadcast %cst_80 : f32 to vector<2x128xf32>
    %308 = arith.addf %306, %307 : vector<2x128xf32>
    %cst_81 = arith.constant 5.000000e-01 : f32
    %309 = vector.broadcast %cst_81 : f32 to vector<2x128xf32>
    %310 = arith.mulf %309, %308 : vector<2x128xf32>
    %311 = vector.extract_strided_slice %294 {offsets = [0, 256], sizes = [2, 128], strides = [1, 1]} : vector<2x512xf32> to vector<2x128xf32>
    %312 = math.tanh %311 : vector<2x128xf32>
    %313 = vector.extract_strided_slice %294 {offsets = [0, 384], sizes = [2, 128], strides = [1, 1]} : vector<2x512xf32> to vector<2x128xf32>
    %cst_82 = arith.constant 5.000000e-01 : f32
    %314 = vector.broadcast %cst_82 : f32 to vector<2x128xf32>
    %315 = arith.mulf %314, %313 : vector<2x128xf32>
    %316 = math.tanh %315 : vector<2x128xf32>
    %cst_83 = arith.constant 1.000000e+00 : f32
    %317 = vector.broadcast %cst_83 : f32 to vector<2x128xf32>
    %318 = arith.addf %316, %317 : vector<2x128xf32>
    %cst_84 = arith.constant 5.000000e-01 : f32
    %319 = vector.broadcast %cst_84 : f32 to vector<2x128xf32>
    %320 = arith.mulf %319, %318 : vector<2x128xf32>
    %321 = arith.mulf %310, %252 : vector<2x128xf32>
    %322 = arith.mulf %302, %312 : vector<2x128xf32>
    %323 = arith.addf %321, %322 : vector<2x128xf32>
    %324 = math.tanh %323 : vector<2x128xf32>
    %325 = arith.mulf %320, %324 : vector<2x128xf32>
    %326 = tpu.concatenate %325, %290 in 1 : vector<2x128xf32>, vector<2x128xf32> -> vector<2x256xf32>
    %327 = arith.truncf %326 : vector<2x256xf32> to vector<2x256xbf16>
    %c0_85 = arith.constant 0 : index
    %c0_86 = arith.constant 0 : index
    %328 = vector.load %arg11[%c0_85, %c0_86] : memref<256x512xbf16, #tpu.memory_space<vmem>>, vector<256x512xbf16>
    %cst_87 = arith.constant dense<0.000000e+00> : vector<2x512xf32>
    %329 = tpu.matmul %327, %328, %cst_87 {dimension_numbers = #tpu.dot_dimension_numbers<[1], [0], [0], [1], [0, 0, 1, 1], [], []>} : vector<2x256xbf16>, vector<256x512xbf16>, vector<2x512xf32> -> vector<2x512xf32>
    %330 = arith.addf %329, %211 : vector<2x512xf32>
    %331 = vector.extract_strided_slice %330 {offsets = [0, 0], sizes = [2, 128], strides = [1, 1]} : vector<2x512xf32> to vector<2x128xf32>
    %cst_88 = arith.constant 5.000000e-01 : f32
    %332 = vector.broadcast %cst_88 : f32 to vector<2x128xf32>
    %333 = arith.mulf %332, %331 : vector<2x128xf32>
    %334 = math.tanh %333 : vector<2x128xf32>
    %cst_89 = arith.constant 1.000000e+00 : f32
    %335 = vector.broadcast %cst_89 : f32 to vector<2x128xf32>
    %336 = arith.addf %334, %335 : vector<2x128xf32>
    %cst_90 = arith.constant 5.000000e-01 : f32
    %337 = vector.broadcast %cst_90 : f32 to vector<2x128xf32>
    %338 = arith.mulf %337, %336 : vector<2x128xf32>
    %339 = vector.extract_strided_slice %330 {offsets = [0, 128], sizes = [2, 128], strides = [1, 1]} : vector<2x512xf32> to vector<2x128xf32>
    %cst_91 = arith.constant 5.000000e-01 : f32
    %340 = vector.broadcast %cst_91 : f32 to vector<2x128xf32>
    %341 = arith.mulf %340, %339 : vector<2x128xf32>
    %342 = math.tanh %341 : vector<2x128xf32>
    %cst_92 = arith.constant 1.000000e+00 : f32
    %343 = vector.broadcast %cst_92 : f32 to vector<2x128xf32>
    %344 = arith.addf %342, %343 : vector<2x128xf32>
    %cst_93 = arith.constant 5.000000e-01 : f32
    %345 = vector.broadcast %cst_93 : f32 to vector<2x128xf32>
    %346 = arith.mulf %345, %344 : vector<2x128xf32>
    %347 = vector.extract_strided_slice %330 {offsets = [0, 256], sizes = [2, 128], strides = [1, 1]} : vector<2x512xf32> to vector<2x128xf32>
    %348 = math.tanh %347 : vector<2x128xf32>
    %349 = vector.extract_strided_slice %330 {offsets = [0, 384], sizes = [2, 128], strides = [1, 1]} : vector<2x512xf32> to vector<2x128xf32>
    %cst_94 = arith.constant 5.000000e-01 : f32
    %350 = vector.broadcast %cst_94 : f32 to vector<2x128xf32>
    %351 = arith.mulf %350, %349 : vector<2x128xf32>
    %352 = math.tanh %351 : vector<2x128xf32>
    %cst_95 = arith.constant 1.000000e+00 : f32
    %353 = vector.broadcast %cst_95 : f32 to vector<2x128xf32>
    %354 = arith.addf %352, %353 : vector<2x128xf32>
    %cst_96 = arith.constant 5.000000e-01 : f32
    %355 = vector.broadcast %cst_96 : f32 to vector<2x128xf32>
    %356 = arith.mulf %355, %354 : vector<2x128xf32>
    %357 = arith.mulf %346, %288 : vector<2x128xf32>
    %358 = arith.mulf %338, %348 : vector<2x128xf32>
    %359 = arith.addf %357, %358 : vector<2x128xf32>
    %360 = math.tanh %359 : vector<2x128xf32>
    %361 = arith.mulf %356, %360 : vector<2x128xf32>
    %362 = arith.truncf %325 : vector<2x128xf32> to vector<2x128xbf16>
    %c0_97 = arith.constant 0 : index
    %c0_98 = arith.constant 0 : index
    %363 = vector.load %arg9[%c0_97, %c0_98] : memref<128x512xbf16, #tpu.memory_space<vmem>>, vector<128x512xbf16>
    %cst_99 = arith.constant dense<0.000000e+00> : vector<2x512xf32>
    %364 = tpu.matmul %362, %363, %cst_99 {dimension_numbers = #tpu.dot_dimension_numbers<[1], [0], [0], [1], [0, 0, 1, 1], [], []>} : vector<2x128xbf16>, vector<128x512xbf16>, vector<2x512xf32> -> vector<2x512xf32>
    %365 = arith.addf %202, %364 : vector<2x512xf32>
    %366 = vector.extract_strided_slice %365 {offsets = [0, 0], sizes = [2, 128], strides = [1, 1]} : vector<2x512xf32> to vector<2x128xf32>
    %cst_100 = arith.constant 5.000000e-01 : f32
    %367 = vector.broadcast %cst_100 : f32 to vector<2x128xf32>
    %368 = arith.mulf %367, %366 : vector<2x128xf32>
    %369 = math.tanh %368 : vector<2x128xf32>
    %cst_101 = arith.constant 1.000000e+00 : f32
    %370 = vector.broadcast %cst_101 : f32 to vector<2x128xf32>
    %371 = arith.addf %369, %370 : vector<2x128xf32>
    %cst_102 = arith.constant 5.000000e-01 : f32
    %372 = vector.broadcast %cst_102 : f32 to vector<2x128xf32>
    %373 = arith.mulf %372, %371 : vector<2x128xf32>
    %374 = vector.extract_strided_slice %365 {offsets = [0, 128], sizes = [2, 128], strides = [1, 1]} : vector<2x512xf32> to vector<2x128xf32>
    %cst_103 = arith.constant 5.000000e-01 : f32
    %375 = vector.broadcast %cst_103 : f32 to vector<2x128xf32>
    %376 = arith.mulf %375, %374 : vector<2x128xf32>
    %377 = math.tanh %376 : vector<2x128xf32>
    %cst_104 = arith.constant 1.000000e+00 : f32
    %378 = vector.broadcast %cst_104 : f32 to vector<2x128xf32>
    %379 = arith.addf %377, %378 : vector<2x128xf32>
    %cst_105 = arith.constant 5.000000e-01 : f32
    %380 = vector.broadcast %cst_105 : f32 to vector<2x128xf32>
    %381 = arith.mulf %380, %379 : vector<2x128xf32>
    %382 = vector.extract_strided_slice %365 {offsets = [0, 256], sizes = [2, 128], strides = [1, 1]} : vector<2x512xf32> to vector<2x128xf32>
    %383 = math.tanh %382 : vector<2x128xf32>
    %384 = vector.extract_strided_slice %365 {offsets = [0, 384], sizes = [2, 128], strides = [1, 1]} : vector<2x512xf32> to vector<2x128xf32>
    %cst_106 = arith.constant 5.000000e-01 : f32
    %385 = vector.broadcast %cst_106 : f32 to vector<2x128xf32>
    %386 = arith.mulf %385, %384 : vector<2x128xf32>
    %387 = math.tanh %386 : vector<2x128xf32>
    %cst_107 = arith.constant 1.000000e+00 : f32
    %388 = vector.broadcast %cst_107 : f32 to vector<2x128xf32>
    %389 = arith.addf %387, %388 : vector<2x128xf32>
    %cst_108 = arith.constant 5.000000e-01 : f32
    %390 = vector.broadcast %cst_108 : f32 to vector<2x128xf32>
    %391 = arith.mulf %390, %389 : vector<2x128xf32>
    %392 = arith.mulf %381, %323 : vector<2x128xf32>
    %393 = arith.mulf %373, %383 : vector<2x128xf32>
    %394 = arith.addf %392, %393 : vector<2x128xf32>
    %395 = math.tanh %394 : vector<2x128xf32>
    %396 = arith.mulf %391, %395 : vector<2x128xf32>
    %397 = tpu.concatenate %396, %361 in 1 : vector<2x128xf32>, vector<2x128xf32> -> vector<2x256xf32>
    %398 = arith.truncf %397 : vector<2x256xf32> to vector<2x256xbf16>
    %c0_109 = arith.constant 0 : index
    %c0_110 = arith.constant 0 : index
    %399 = vector.load %arg11[%c0_109, %c0_110] : memref<256x512xbf16, #tpu.memory_space<vmem>>, vector<256x512xbf16>
    %cst_111 = arith.constant dense<0.000000e+00> : vector<2x512xf32>
    %400 = tpu.matmul %398, %399, %cst_111 {dimension_numbers = #tpu.dot_dimension_numbers<[1], [0], [0], [1], [0, 0, 1, 1], [], []>} : vector<2x256xbf16>, vector<256x512xbf16>, vector<2x512xf32> -> vector<2x512xf32>
    %401 = arith.addf %400, %211 : vector<2x512xf32>
    %402 = vector.extract_strided_slice %401 {offsets = [0, 0], sizes = [2, 128], strides = [1, 1]} : vector<2x512xf32> to vector<2x128xf32>
    %cst_112 = arith.constant 5.000000e-01 : f32
    %403 = vector.broadcast %cst_112 : f32 to vector<2x128xf32>
    %404 = arith.mulf %403, %402 : vector<2x128xf32>
    %405 = math.tanh %404 : vector<2x128xf32>
    %cst_113 = arith.constant 1.000000e+00 : f32
    %406 = vector.broadcast %cst_113 : f32 to vector<2x128xf32>
    %407 = arith.addf %405, %406 : vector<2x128xf32>
    %cst_114 = arith.constant 5.000000e-01 : f32
    %408 = vector.broadcast %cst_114 : f32 to vector<2x128xf32>
    %409 = arith.mulf %408, %407 : vector<2x128xf32>
    %410 = vector.extract_strided_slice %401 {offsets = [0, 128], sizes = [2, 128], strides = [1, 1]} : vector<2x512xf32> to vector<2x128xf32>
    %cst_115 = arith.constant 5.000000e-01 : f32
    %411 = vector.broadcast %cst_115 : f32 to vector<2x128xf32>
    %412 = arith.mulf %411, %410 : vector<2x128xf32>
    %413 = math.tanh %412 : vector<2x128xf32>
    %cst_116 = arith.constant 1.000000e+00 : f32
    %414 = vector.broadcast %cst_116 : f32 to vector<2x128xf32>
    %415 = arith.addf %413, %414 : vector<2x128xf32>
    %cst_117 = arith.constant 5.000000e-01 : f32
    %416 = vector.broadcast %cst_117 : f32 to vector<2x128xf32>
    %417 = arith.mulf %416, %415 : vector<2x128xf32>
    %418 = vector.extract_strided_slice %401 {offsets = [0, 256], sizes = [2, 128], strides = [1, 1]} : vector<2x512xf32> to vector<2x128xf32>
    %419 = math.tanh %418 : vector<2x128xf32>
    %420 = vector.extract_strided_slice %401 {offsets = [0, 384], sizes = [2, 128], strides = [1, 1]} : vector<2x512xf32> to vector<2x128xf32>
    %cst_118 = arith.constant 5.000000e-01 : f32
    %421 = vector.broadcast %cst_118 : f32 to vector<2x128xf32>
    %422 = arith.mulf %421, %420 : vector<2x128xf32>
    %423 = math.tanh %422 : vector<2x128xf32>
    %cst_119 = arith.constant 1.000000e+00 : f32
    %424 = vector.broadcast %cst_119 : f32 to vector<2x128xf32>
    %425 = arith.addf %423, %424 : vector<2x128xf32>
    %cst_120 = arith.constant 5.000000e-01 : f32
    %426 = vector.broadcast %cst_120 : f32 to vector<2x128xf32>
    %427 = arith.mulf %426, %425 : vector<2x128xf32>
    %428 = arith.mulf %417, %359 : vector<2x128xf32>
    %429 = arith.mulf %409, %419 : vector<2x128xf32>
    %430 = arith.addf %428, %429 : vector<2x128xf32>
    %431 = math.tanh %430 : vector<2x128xf32>
    %432 = arith.mulf %427, %431 : vector<2x128xf32>
    %433 = arith.truncf %396 : vector<2x128xf32> to vector<2x128xbf16>
    %c0_121 = arith.constant 0 : index
    %c0_122 = arith.constant 0 : index
    %434 = vector.load %arg9[%c0_121, %c0_122] : memref<128x512xbf16, #tpu.memory_space<vmem>>, vector<128x512xbf16>
    %cst_123 = arith.constant dense<0.000000e+00> : vector<2x512xf32>
    %435 = tpu.matmul %433, %434, %cst_123 {dimension_numbers = #tpu.dot_dimension_numbers<[1], [0], [0], [1], [0, 0, 1, 1], [], []>} : vector<2x128xbf16>, vector<128x512xbf16>, vector<2x512xf32> -> vector<2x512xf32>
    %436 = arith.addf %203, %435 : vector<2x512xf32>
    %437 = vector.extract_strided_slice %436 {offsets = [0, 0], sizes = [2, 128], strides = [1, 1]} : vector<2x512xf32> to vector<2x128xf32>
    %cst_124 = arith.constant 5.000000e-01 : f32
    %438 = vector.broadcast %cst_124 : f32 to vector<2x128xf32>
    %439 = arith.mulf %438, %437 : vector<2x128xf32>
    %440 = math.tanh %439 : vector<2x128xf32>
    %cst_125 = arith.constant 1.000000e+00 : f32
    %441 = vector.broadcast %cst_125 : f32 to vector<2x128xf32>
    %442 = arith.addf %440, %441 : vector<2x128xf32>
    %cst_126 = arith.constant 5.000000e-01 : f32
    %443 = vector.broadcast %cst_126 : f32 to vector<2x128xf32>
    %444 = arith.mulf %443, %442 : vector<2x128xf32>
    %445 = vector.extract_strided_slice %436 {offsets = [0, 128], sizes = [2, 128], strides = [1, 1]} : vector<2x512xf32> to vector<2x128xf32>
    %cst_127 = arith.constant 5.000000e-01 : f32
    %446 = vector.broadcast %cst_127 : f32 to vector<2x128xf32>
    %447 = arith.mulf %446, %445 : vector<2x128xf32>
    %448 = math.tanh %447 : vector<2x128xf32>
    %cst_128 = arith.constant 1.000000e+00 : f32
    %449 = vector.broadcast %cst_128 : f32 to vector<2x128xf32>
    %450 = arith.addf %448, %449 : vector<2x128xf32>
    %cst_129 = arith.constant 5.000000e-01 : f32
    %451 = vector.broadcast %cst_129 : f32 to vector<2x128xf32>
    %452 = arith.mulf %451, %450 : vector<2x128xf32>
    %453 = vector.extract_strided_slice %436 {offsets = [0, 256], sizes = [2, 128], strides = [1, 1]} : vector<2x512xf32> to vector<2x128xf32>
    %454 = math.tanh %453 : vector<2x128xf32>
    %455 = vector.extract_strided_slice %436 {offsets = [0, 384], sizes = [2, 128], strides = [1, 1]} : vector<2x512xf32> to vector<2x128xf32>
    %cst_130 = arith.constant 5.000000e-01 : f32
    %456 = vector.broadcast %cst_130 : f32 to vector<2x128xf32>
    %457 = arith.mulf %456, %455 : vector<2x128xf32>
    %458 = math.tanh %457 : vector<2x128xf32>
    %cst_131 = arith.constant 1.000000e+00 : f32
    %459 = vector.broadcast %cst_131 : f32 to vector<2x128xf32>
    %460 = arith.addf %458, %459 : vector<2x128xf32>
    %cst_132 = arith.constant 5.000000e-01 : f32
    %461 = vector.broadcast %cst_132 : f32 to vector<2x128xf32>
    %462 = arith.mulf %461, %460 : vector<2x128xf32>
    %463 = arith.mulf %452, %394 : vector<2x128xf32>
    %464 = arith.mulf %444, %454 : vector<2x128xf32>
    %465 = arith.addf %463, %464 : vector<2x128xf32>
    %466 = math.tanh %465 : vector<2x128xf32>
    %467 = arith.mulf %462, %466 : vector<2x128xf32>
    %468 = tpu.concatenate %467, %432 in 1 : vector<2x128xf32>, vector<2x128xf32> -> vector<2x256xf32>
    %469 = arith.truncf %468 : vector<2x256xf32> to vector<2x256xbf16>
    %c0_133 = arith.constant 0 : index
    %c0_134 = arith.constant 0 : index
    %470 = vector.load %arg11[%c0_133, %c0_134] : memref<256x512xbf16, #tpu.memory_space<vmem>>, vector<256x512xbf16>
    %cst_135 = arith.constant dense<0.000000e+00> : vector<2x512xf32>
    %471 = tpu.matmul %469, %470, %cst_135 {dimension_numbers = #tpu.dot_dimension_numbers<[1], [0], [0], [1], [0, 0, 1, 1], [], []>} : vector<2x256xbf16>, vector<256x512xbf16>, vector<2x512xf32> -> vector<2x512xf32>
    %472 = arith.addf %471, %211 : vector<2x512xf32>
    %473 = vector.extract_strided_slice %472 {offsets = [0, 0], sizes = [2, 128], strides = [1, 1]} : vector<2x512xf32> to vector<2x128xf32>
    %cst_136 = arith.constant 5.000000e-01 : f32
    %474 = vector.broadcast %cst_136 : f32 to vector<2x128xf32>
    %475 = arith.mulf %474, %473 : vector<2x128xf32>
    %476 = math.tanh %475 : vector<2x128xf32>
    %cst_137 = arith.constant 1.000000e+00 : f32
    %477 = vector.broadcast %cst_137 : f32 to vector<2x128xf32>
    %478 = arith.addf %476, %477 : vector<2x128xf32>
    %cst_138 = arith.constant 5.000000e-01 : f32
    %479 = vector.broadcast %cst_138 : f32 to vector<2x128xf32>
    %480 = arith.mulf %479, %478 : vector<2x128xf32>
    %481 = vector.extract_strided_slice %472 {offsets = [0, 128], sizes = [2, 128], strides = [1, 1]} : vector<2x512xf32> to vector<2x128xf32>
    %cst_139 = arith.constant 5.000000e-01 : f32
    %482 = vector.broadcast %cst_139 : f32 to vector<2x128xf32>
    %483 = arith.mulf %482, %481 : vector<2x128xf32>
    %484 = math.tanh %483 : vector<2x128xf32>
    %cst_140 = arith.constant 1.000000e+00 : f32
    %485 = vector.broadcast %cst_140 : f32 to vector<2x128xf32>
    %486 = arith.addf %484, %485 : vector<2x128xf32>
    %cst_141 = arith.constant 5.000000e-01 : f32
    %487 = vector.broadcast %cst_141 : f32 to vector<2x128xf32>
    %488 = arith.mulf %487, %486 : vector<2x128xf32>
    %489 = vector.extract_strided_slice %472 {offsets = [0, 256], sizes = [2, 128], strides = [1, 1]} : vector<2x512xf32> to vector<2x128xf32>
    %490 = math.tanh %489 : vector<2x128xf32>
    %491 = vector.extract_strided_slice %472 {offsets = [0, 384], sizes = [2, 128], strides = [1, 1]} : vector<2x512xf32> to vector<2x128xf32>
    %cst_142 = arith.constant 5.000000e-01 : f32
    %492 = vector.broadcast %cst_142 : f32 to vector<2x128xf32>
    %493 = arith.mulf %492, %491 : vector<2x128xf32>
    %494 = math.tanh %493 : vector<2x128xf32>
    %cst_143 = arith.constant 1.000000e+00 : f32
    %495 = vector.broadcast %cst_143 : f32 to vector<2x128xf32>
    %496 = arith.addf %494, %495 : vector<2x128xf32>
    %cst_144 = arith.constant 5.000000e-01 : f32
    %497 = vector.broadcast %cst_144 : f32 to vector<2x128xf32>
    %498 = arith.mulf %497, %496 : vector<2x128xf32>
    %499 = arith.mulf %488, %430 : vector<2x128xf32>
    %500 = arith.mulf %480, %490 : vector<2x128xf32>
    %501 = arith.addf %499, %500 : vector<2x128xf32>
    %502 = math.tanh %501 : vector<2x128xf32>
    %503 = arith.mulf %498, %502 : vector<2x128xf32>
    %504 = arith.truncf %467 : vector<2x128xf32> to vector<2x128xbf16>
    %c0_145 = arith.constant 0 : index
    %c0_146 = arith.constant 0 : index
    %505 = vector.load %arg9[%c0_145, %c0_146] : memref<128x512xbf16, #tpu.memory_space<vmem>>, vector<128x512xbf16>
    %cst_147 = arith.constant dense<0.000000e+00> : vector<2x512xf32>
    %506 = tpu.matmul %504, %505, %cst_147 {dimension_numbers = #tpu.dot_dimension_numbers<[1], [0], [0], [1], [0, 0, 1, 1], [], []>} : vector<2x128xbf16>, vector<128x512xbf16>, vector<2x512xf32> -> vector<2x512xf32>
    %507 = arith.addf %204, %506 : vector<2x512xf32>
    %508 = vector.extract_strided_slice %507 {offsets = [0, 0], sizes = [2, 128], strides = [1, 1]} : vector<2x512xf32> to vector<2x128xf32>
    %cst_148 = arith.constant 5.000000e-01 : f32
    %509 = vector.broadcast %cst_148 : f32 to vector<2x128xf32>
    %510 = arith.mulf %509, %508 : vector<2x128xf32>
    %511 = math.tanh %510 : vector<2x128xf32>
    %cst_149 = arith.constant 1.000000e+00 : f32
    %512 = vector.broadcast %cst_149 : f32 to vector<2x128xf32>
    %513 = arith.addf %511, %512 : vector<2x128xf32>
    %cst_150 = arith.constant 5.000000e-01 : f32
    %514 = vector.broadcast %cst_150 : f32 to vector<2x128xf32>
    %515 = arith.mulf %514, %513 : vector<2x128xf32>
    %516 = vector.extract_strided_slice %507 {offsets = [0, 128], sizes = [2, 128], strides = [1, 1]} : vector<2x512xf32> to vector<2x128xf32>
    %cst_151 = arith.constant 5.000000e-01 : f32
    %517 = vector.broadcast %cst_151 : f32 to vector<2x128xf32>
    %518 = arith.mulf %517, %516 : vector<2x128xf32>
    %519 = math.tanh %518 : vector<2x128xf32>
    %cst_152 = arith.constant 1.000000e+00 : f32
    %520 = vector.broadcast %cst_152 : f32 to vector<2x128xf32>
    %521 = arith.addf %519, %520 : vector<2x128xf32>
    %cst_153 = arith.constant 5.000000e-01 : f32
    %522 = vector.broadcast %cst_153 : f32 to vector<2x128xf32>
    %523 = arith.mulf %522, %521 : vector<2x128xf32>
    %524 = vector.extract_strided_slice %507 {offsets = [0, 256], sizes = [2, 128], strides = [1, 1]} : vector<2x512xf32> to vector<2x128xf32>
    %525 = math.tanh %524 : vector<2x128xf32>
    %526 = vector.extract_strided_slice %507 {offsets = [0, 384], sizes = [2, 128], strides = [1, 1]} : vector<2x512xf32> to vector<2x128xf32>
    %cst_154 = arith.constant 5.000000e-01 : f32
    %527 = vector.broadcast %cst_154 : f32 to vector<2x128xf32>
    %528 = arith.mulf %527, %526 : vector<2x128xf32>
    %529 = math.tanh %528 : vector<2x128xf32>
    %cst_155 = arith.constant 1.000000e+00 : f32
    %530 = vector.broadcast %cst_155 : f32 to vector<2x128xf32>
    %531 = arith.addf %529, %530 : vector<2x128xf32>
    %cst_156 = arith.constant 5.000000e-01 : f32
    %532 = vector.broadcast %cst_156 : f32 to vector<2x128xf32>
    %533 = arith.mulf %532, %531 : vector<2x128xf32>
    %534 = arith.mulf %523, %465 : vector<2x128xf32>
    %535 = arith.mulf %515, %525 : vector<2x128xf32>
    %536 = arith.addf %534, %535 : vector<2x128xf32>
    %537 = math.tanh %536 : vector<2x128xf32>
    %538 = arith.mulf %533, %537 : vector<2x128xf32>
    %539 = tpu.concatenate %538, %503 in 1 : vector<2x128xf32>, vector<2x128xf32> -> vector<2x256xf32>
    %540 = arith.truncf %539 : vector<2x256xf32> to vector<2x256xbf16>
    %c0_157 = arith.constant 0 : index
    %c0_158 = arith.constant 0 : index
    %541 = vector.load %arg11[%c0_157, %c0_158] : memref<256x512xbf16, #tpu.memory_space<vmem>>, vector<256x512xbf16>
    %cst_159 = arith.constant dense<0.000000e+00> : vector<2x512xf32>
    %542 = tpu.matmul %540, %541, %cst_159 {dimension_numbers = #tpu.dot_dimension_numbers<[1], [0], [0], [1], [0, 0, 1, 1], [], []>} : vector<2x256xbf16>, vector<256x512xbf16>, vector<2x512xf32> -> vector<2x512xf32>
    %543 = arith.addf %542, %211 : vector<2x512xf32>
    %544 = vector.extract_strided_slice %543 {offsets = [0, 0], sizes = [2, 128], strides = [1, 1]} : vector<2x512xf32> to vector<2x128xf32>
    %cst_160 = arith.constant 5.000000e-01 : f32
    %545 = vector.broadcast %cst_160 : f32 to vector<2x128xf32>
    %546 = arith.mulf %545, %544 : vector<2x128xf32>
    %547 = math.tanh %546 : vector<2x128xf32>
    %cst_161 = arith.constant 1.000000e+00 : f32
    %548 = vector.broadcast %cst_161 : f32 to vector<2x128xf32>
    %549 = arith.addf %547, %548 : vector<2x128xf32>
    %cst_162 = arith.constant 5.000000e-01 : f32
    %550 = vector.broadcast %cst_162 : f32 to vector<2x128xf32>
    %551 = arith.mulf %550, %549 : vector<2x128xf32>
    %552 = vector.extract_strided_slice %543 {offsets = [0, 128], sizes = [2, 128], strides = [1, 1]} : vector<2x512xf32> to vector<2x128xf32>
    %cst_163 = arith.constant 5.000000e-01 : f32
    %553 = vector.broadcast %cst_163 : f32 to vector<2x128xf32>
    %554 = arith.mulf %553, %552 : vector<2x128xf32>
    %555 = math.tanh %554 : vector<2x128xf32>
    %cst_164 = arith.constant 1.000000e+00 : f32
    %556 = vector.broadcast %cst_164 : f32 to vector<2x128xf32>
    %557 = arith.addf %555, %556 : vector<2x128xf32>
    %cst_165 = arith.constant 5.000000e-01 : f32
    %558 = vector.broadcast %cst_165 : f32 to vector<2x128xf32>
    %559 = arith.mulf %558, %557 : vector<2x128xf32>
    %560 = vector.extract_strided_slice %543 {offsets = [0, 256], sizes = [2, 128], strides = [1, 1]} : vector<2x512xf32> to vector<2x128xf32>
    %561 = math.tanh %560 : vector<2x128xf32>
    %562 = vector.extract_strided_slice %543 {offsets = [0, 384], sizes = [2, 128], strides = [1, 1]} : vector<2x512xf32> to vector<2x128xf32>
    %cst_166 = arith.constant 5.000000e-01 : f32
    %563 = vector.broadcast %cst_166 : f32 to vector<2x128xf32>
    %564 = arith.mulf %563, %562 : vector<2x128xf32>
    %565 = math.tanh %564 : vector<2x128xf32>
    %cst_167 = arith.constant 1.000000e+00 : f32
    %566 = vector.broadcast %cst_167 : f32 to vector<2x128xf32>
    %567 = arith.addf %565, %566 : vector<2x128xf32>
    %cst_168 = arith.constant 5.000000e-01 : f32
    %568 = vector.broadcast %cst_168 : f32 to vector<2x128xf32>
    %569 = arith.mulf %568, %567 : vector<2x128xf32>
    %570 = arith.mulf %559, %501 : vector<2x128xf32>
    %571 = arith.mulf %551, %561 : vector<2x128xf32>
    %572 = arith.addf %570, %571 : vector<2x128xf32>
    %573 = math.tanh %572 : vector<2x128xf32>
    %574 = arith.mulf %569, %573 : vector<2x128xf32>
    %575 = arith.truncf %538 : vector<2x128xf32> to vector<2x128xbf16>
    %c0_169 = arith.constant 0 : index
    %c0_170 = arith.constant 0 : index
    %576 = vector.load %arg9[%c0_169, %c0_170] : memref<128x512xbf16, #tpu.memory_space<vmem>>, vector<128x512xbf16>
    %cst_171 = arith.constant dense<0.000000e+00> : vector<2x512xf32>
    %577 = tpu.matmul %575, %576, %cst_171 {dimension_numbers = #tpu.dot_dimension_numbers<[1], [0], [0], [1], [0, 0, 1, 1], [], []>} : vector<2x128xbf16>, vector<128x512xbf16>, vector<2x512xf32> -> vector<2x512xf32>
    %578 = arith.addf %205, %577 : vector<2x512xf32>
    %579 = vector.extract_strided_slice %578 {offsets = [0, 0], sizes = [2, 128], strides = [1, 1]} : vector<2x512xf32> to vector<2x128xf32>
    %cst_172 = arith.constant 5.000000e-01 : f32
    %580 = vector.broadcast %cst_172 : f32 to vector<2x128xf32>
    %581 = arith.mulf %580, %579 : vector<2x128xf32>
    %582 = math.tanh %581 : vector<2x128xf32>
    %cst_173 = arith.constant 1.000000e+00 : f32
    %583 = vector.broadcast %cst_173 : f32 to vector<2x128xf32>
    %584 = arith.addf %582, %583 : vector<2x128xf32>
    %cst_174 = arith.constant 5.000000e-01 : f32
    %585 = vector.broadcast %cst_174 : f32 to vector<2x128xf32>
    %586 = arith.mulf %585, %584 : vector<2x128xf32>
    %587 = vector.extract_strided_slice %578 {offsets = [0, 128], sizes = [2, 128], strides = [1, 1]} : vector<2x512xf32> to vector<2x128xf32>
    %cst_175 = arith.constant 5.000000e-01 : f32
    %588 = vector.broadcast %cst_175 : f32 to vector<2x128xf32>
    %589 = arith.mulf %588, %587 : vector<2x128xf32>
    %590 = math.tanh %589 : vector<2x128xf32>
    %cst_176 = arith.constant 1.000000e+00 : f32
    %591 = vector.broadcast %cst_176 : f32 to vector<2x128xf32>
    %592 = arith.addf %590, %591 : vector<2x128xf32>
    %cst_177 = arith.constant 5.000000e-01 : f32
    %593 = vector.broadcast %cst_177 : f32 to vector<2x128xf32>
    %594 = arith.mulf %593, %592 : vector<2x128xf32>
    %595 = vector.extract_strided_slice %578 {offsets = [0, 256], sizes = [2, 128], strides = [1, 1]} : vector<2x512xf32> to vector<2x128xf32>
    %596 = math.tanh %595 : vector<2x128xf32>
    %597 = vector.extract_strided_slice %578 {offsets = [0, 384], sizes = [2, 128], strides = [1, 1]} : vector<2x512xf32> to vector<2x128xf32>
    %cst_178 = arith.constant 5.000000e-01 : f32
    %598 = vector.broadcast %cst_178 : f32 to vector<2x128xf32>
    %599 = arith.mulf %598, %597 : vector<2x128xf32>
    %600 = math.tanh %599 : vector<2x128xf32>
    %cst_179 = arith.constant 1.000000e+00 : f32
    %601 = vector.broadcast %cst_179 : f32 to vector<2x128xf32>
    %602 = arith.addf %600, %601 : vector<2x128xf32>
    %cst_180 = arith.constant 5.000000e-01 : f32
    %603 = vector.broadcast %cst_180 : f32 to vector<2x128xf32>
    %604 = arith.mulf %603, %602 : vector<2x128xf32>
    %605 = arith.mulf %594, %536 : vector<2x128xf32>
    %606 = arith.mulf %586, %596 : vector<2x128xf32>
    %607 = arith.addf %605, %606 : vector<2x128xf32>
    %608 = math.tanh %607 : vector<2x128xf32>
    %609 = arith.mulf %604, %608 : vector<2x128xf32>
    %610 = tpu.concatenate %609, %574 in 1 : vector<2x128xf32>, vector<2x128xf32> -> vector<2x256xf32>
    %611 = arith.truncf %610 : vector<2x256xf32> to vector<2x256xbf16>
    %c0_181 = arith.constant 0 : index
    %c0_182 = arith.constant 0 : index
    %612 = vector.load %arg11[%c0_181, %c0_182] : memref<256x512xbf16, #tpu.memory_space<vmem>>, vector<256x512xbf16>
    %cst_183 = arith.constant dense<0.000000e+00> : vector<2x512xf32>
    %613 = tpu.matmul %611, %612, %cst_183 {dimension_numbers = #tpu.dot_dimension_numbers<[1], [0], [0], [1], [0, 0, 1, 1], [], []>} : vector<2x256xbf16>, vector<256x512xbf16>, vector<2x512xf32> -> vector<2x512xf32>
    %614 = arith.addf %613, %211 : vector<2x512xf32>
    %615 = vector.extract_strided_slice %614 {offsets = [0, 0], sizes = [2, 128], strides = [1, 1]} : vector<2x512xf32> to vector<2x128xf32>
    %cst_184 = arith.constant 5.000000e-01 : f32
    %616 = vector.broadcast %cst_184 : f32 to vector<2x128xf32>
    %617 = arith.mulf %616, %615 : vector<2x128xf32>
    %618 = math.tanh %617 : vector<2x128xf32>
    %cst_185 = arith.constant 1.000000e+00 : f32
    %619 = vector.broadcast %cst_185 : f32 to vector<2x128xf32>
    %620 = arith.addf %618, %619 : vector<2x128xf32>
    %cst_186 = arith.constant 5.000000e-01 : f32
    %621 = vector.broadcast %cst_186 : f32 to vector<2x128xf32>
    %622 = arith.mulf %621, %620 : vector<2x128xf32>
    %623 = vector.extract_strided_slice %614 {offsets = [0, 128], sizes = [2, 128], strides = [1, 1]} : vector<2x512xf32> to vector<2x128xf32>
    %cst_187 = arith.constant 5.000000e-01 : f32
    %624 = vector.broadcast %cst_187 : f32 to vector<2x128xf32>
    %625 = arith.mulf %624, %623 : vector<2x128xf32>
    %626 = math.tanh %625 : vector<2x128xf32>
    %cst_188 = arith.constant 1.000000e+00 : f32
    %627 = vector.broadcast %cst_188 : f32 to vector<2x128xf32>
    %628 = arith.addf %626, %627 : vector<2x128xf32>
    %cst_189 = arith.constant 5.000000e-01 : f32
    %629 = vector.broadcast %cst_189 : f32 to vector<2x128xf32>
    %630 = arith.mulf %629, %628 : vector<2x128xf32>
    %631 = vector.extract_strided_slice %614 {offsets = [0, 256], sizes = [2, 128], strides = [1, 1]} : vector<2x512xf32> to vector<2x128xf32>
    %632 = math.tanh %631 : vector<2x128xf32>
    %633 = vector.extract_strided_slice %614 {offsets = [0, 384], sizes = [2, 128], strides = [1, 1]} : vector<2x512xf32> to vector<2x128xf32>
    %cst_190 = arith.constant 5.000000e-01 : f32
    %634 = vector.broadcast %cst_190 : f32 to vector<2x128xf32>
    %635 = arith.mulf %634, %633 : vector<2x128xf32>
    %636 = math.tanh %635 : vector<2x128xf32>
    %cst_191 = arith.constant 1.000000e+00 : f32
    %637 = vector.broadcast %cst_191 : f32 to vector<2x128xf32>
    %638 = arith.addf %636, %637 : vector<2x128xf32>
    %cst_192 = arith.constant 5.000000e-01 : f32
    %639 = vector.broadcast %cst_192 : f32 to vector<2x128xf32>
    %640 = arith.mulf %639, %638 : vector<2x128xf32>
    %641 = arith.mulf %630, %572 : vector<2x128xf32>
    %642 = arith.mulf %622, %632 : vector<2x128xf32>
    %643 = arith.addf %641, %642 : vector<2x128xf32>
    %644 = math.tanh %643 : vector<2x128xf32>
    %645 = arith.mulf %640, %644 : vector<2x128xf32>
    %646 = arith.truncf %609 : vector<2x128xf32> to vector<2x128xbf16>
    %c0_193 = arith.constant 0 : index
    %c0_194 = arith.constant 0 : index
    %647 = vector.load %arg9[%c0_193, %c0_194] : memref<128x512xbf16, #tpu.memory_space<vmem>>, vector<128x512xbf16>
    %cst_195 = arith.constant dense<0.000000e+00> : vector<2x512xf32>
    %648 = tpu.matmul %646, %647, %cst_195 {dimension_numbers = #tpu.dot_dimension_numbers<[1], [0], [0], [1], [0, 0, 1, 1], [], []>} : vector<2x128xbf16>, vector<128x512xbf16>, vector<2x512xf32> -> vector<2x512xf32>
    %649 = arith.addf %206, %648 : vector<2x512xf32>
    %650 = vector.extract_strided_slice %649 {offsets = [0, 0], sizes = [2, 128], strides = [1, 1]} : vector<2x512xf32> to vector<2x128xf32>
    %cst_196 = arith.constant 5.000000e-01 : f32
    %651 = vector.broadcast %cst_196 : f32 to vector<2x128xf32>
    %652 = arith.mulf %651, %650 : vector<2x128xf32>
    %653 = math.tanh %652 : vector<2x128xf32>
    %cst_197 = arith.constant 1.000000e+00 : f32
    %654 = vector.broadcast %cst_197 : f32 to vector<2x128xf32>
    %655 = arith.addf %653, %654 : vector<2x128xf32>
    %cst_198 = arith.constant 5.000000e-01 : f32
    %656 = vector.broadcast %cst_198 : f32 to vector<2x128xf32>
    %657 = arith.mulf %656, %655 : vector<2x128xf32>
    %658 = vector.extract_strided_slice %649 {offsets = [0, 128], sizes = [2, 128], strides = [1, 1]} : vector<2x512xf32> to vector<2x128xf32>
    %cst_199 = arith.constant 5.000000e-01 : f32
    %659 = vector.broadcast %cst_199 : f32 to vector<2x128xf32>
    %660 = arith.mulf %659, %658 : vector<2x128xf32>
    %661 = math.tanh %660 : vector<2x128xf32>
    %cst_200 = arith.constant 1.000000e+00 : f32
    %662 = vector.broadcast %cst_200 : f32 to vector<2x128xf32>
    %663 = arith.addf %661, %662 : vector<2x128xf32>
    %cst_201 = arith.constant 5.000000e-01 : f32
    %664 = vector.broadcast %cst_201 : f32 to vector<2x128xf32>
    %665 = arith.mulf %664, %663 : vector<2x128xf32>
    %666 = vector.extract_strided_slice %649 {offsets = [0, 256], sizes = [2, 128], strides = [1, 1]} : vector<2x512xf32> to vector<2x128xf32>
    %667 = math.tanh %666 : vector<2x128xf32>
    %668 = vector.extract_strided_slice %649 {offsets = [0, 384], sizes = [2, 128], strides = [1, 1]} : vector<2x512xf32> to vector<2x128xf32>
    %cst_202 = arith.constant 5.000000e-01 : f32
    %669 = vector.broadcast %cst_202 : f32 to vector<2x128xf32>
    %670 = arith.mulf %669, %668 : vector<2x128xf32>
    %671 = math.tanh %670 : vector<2x128xf32>
    %cst_203 = arith.constant 1.000000e+00 : f32
    %672 = vector.broadcast %cst_203 : f32 to vector<2x128xf32>
    %673 = arith.addf %671, %672 : vector<2x128xf32>
    %cst_204 = arith.constant 5.000000e-01 : f32
    %674 = vector.broadcast %cst_204 : f32 to vector<2x128xf32>
    %675 = arith.mulf %674, %673 : vector<2x128xf32>
    %676 = arith.mulf %665, %607 : vector<2x128xf32>
    %677 = arith.mulf %657, %667 : vector<2x128xf32>
    %678 = arith.addf %676, %677 : vector<2x128xf32>
    %679 = math.tanh %678 : vector<2x128xf32>
    %680 = arith.mulf %675, %679 : vector<2x128xf32>
    %681 = tpu.concatenate %680, %645 in 1 : vector<2x128xf32>, vector<2x128xf32> -> vector<2x256xf32>
    %682 = arith.truncf %681 : vector<2x256xf32> to vector<2x256xbf16>
    %c0_205 = arith.constant 0 : index
    %c0_206 = arith.constant 0 : index
    %683 = vector.load %arg11[%c0_205, %c0_206] : memref<256x512xbf16, #tpu.memory_space<vmem>>, vector<256x512xbf16>
    %cst_207 = arith.constant dense<0.000000e+00> : vector<2x512xf32>
    %684 = tpu.matmul %682, %683, %cst_207 {dimension_numbers = #tpu.dot_dimension_numbers<[1], [0], [0], [1], [0, 0, 1, 1], [], []>} : vector<2x256xbf16>, vector<256x512xbf16>, vector<2x512xf32> -> vector<2x512xf32>
    %685 = arith.addf %684, %211 : vector<2x512xf32>
    %686 = vector.extract_strided_slice %685 {offsets = [0, 0], sizes = [2, 128], strides = [1, 1]} : vector<2x512xf32> to vector<2x128xf32>
    %cst_208 = arith.constant 5.000000e-01 : f32
    %687 = vector.broadcast %cst_208 : f32 to vector<2x128xf32>
    %688 = arith.mulf %687, %686 : vector<2x128xf32>
    %689 = math.tanh %688 : vector<2x128xf32>
    %cst_209 = arith.constant 1.000000e+00 : f32
    %690 = vector.broadcast %cst_209 : f32 to vector<2x128xf32>
    %691 = arith.addf %689, %690 : vector<2x128xf32>
    %cst_210 = arith.constant 5.000000e-01 : f32
    %692 = vector.broadcast %cst_210 : f32 to vector<2x128xf32>
    %693 = arith.mulf %692, %691 : vector<2x128xf32>
    %694 = vector.extract_strided_slice %685 {offsets = [0, 128], sizes = [2, 128], strides = [1, 1]} : vector<2x512xf32> to vector<2x128xf32>
    %cst_211 = arith.constant 5.000000e-01 : f32
    %695 = vector.broadcast %cst_211 : f32 to vector<2x128xf32>
    %696 = arith.mulf %695, %694 : vector<2x128xf32>
    %697 = math.tanh %696 : vector<2x128xf32>
    %cst_212 = arith.constant 1.000000e+00 : f32
    %698 = vector.broadcast %cst_212 : f32 to vector<2x128xf32>
    %699 = arith.addf %697, %698 : vector<2x128xf32>
    %cst_213 = arith.constant 5.000000e-01 : f32
    %700 = vector.broadcast %cst_213 : f32 to vector<2x128xf32>
    %701 = arith.mulf %700, %699 : vector<2x128xf32>
    %702 = vector.extract_strided_slice %685 {offsets = [0, 256], sizes = [2, 128], strides = [1, 1]} : vector<2x512xf32> to vector<2x128xf32>
    %703 = math.tanh %702 : vector<2x128xf32>
    %704 = vector.extract_strided_slice %685 {offsets = [0, 384], sizes = [2, 128], strides = [1, 1]} : vector<2x512xf32> to vector<2x128xf32>
    %cst_214 = arith.constant 5.000000e-01 : f32
    %705 = vector.broadcast %cst_214 : f32 to vector<2x128xf32>
    %706 = arith.mulf %705, %704 : vector<2x128xf32>
    %707 = math.tanh %706 : vector<2x128xf32>
    %cst_215 = arith.constant 1.000000e+00 : f32
    %708 = vector.broadcast %cst_215 : f32 to vector<2x128xf32>
    %709 = arith.addf %707, %708 : vector<2x128xf32>
    %cst_216 = arith.constant 5.000000e-01 : f32
    %710 = vector.broadcast %cst_216 : f32 to vector<2x128xf32>
    %711 = arith.mulf %710, %709 : vector<2x128xf32>
    %712 = arith.mulf %701, %643 : vector<2x128xf32>
    %713 = arith.mulf %693, %703 : vector<2x128xf32>
    %714 = arith.addf %712, %713 : vector<2x128xf32>
    %715 = math.tanh %714 : vector<2x128xf32>
    %716 = arith.mulf %711, %715 : vector<2x128xf32>
    %717 = arith.truncf %680 : vector<2x128xf32> to vector<2x128xbf16>
    %c0_217 = arith.constant 0 : index
    %c0_218 = arith.constant 0 : index
    %718 = vector.load %arg9[%c0_217, %c0_218] : memref<128x512xbf16, #tpu.memory_space<vmem>>, vector<128x512xbf16>
    %cst_219 = arith.constant dense<0.000000e+00> : vector<2x512xf32>
    %719 = tpu.matmul %717, %718, %cst_219 {dimension_numbers = #tpu.dot_dimension_numbers<[1], [0], [0], [1], [0, 0, 1, 1], [], []>} : vector<2x128xbf16>, vector<128x512xbf16>, vector<2x512xf32> -> vector<2x512xf32>
    %720 = arith.addf %207, %719 : vector<2x512xf32>
    %721 = vector.extract_strided_slice %720 {offsets = [0, 0], sizes = [2, 128], strides = [1, 1]} : vector<2x512xf32> to vector<2x128xf32>
    %cst_220 = arith.constant 5.000000e-01 : f32
    %722 = vector.broadcast %cst_220 : f32 to vector<2x128xf32>
    %723 = arith.mulf %722, %721 : vector<2x128xf32>
    %724 = math.tanh %723 : vector<2x128xf32>
    %cst_221 = arith.constant 1.000000e+00 : f32
    %725 = vector.broadcast %cst_221 : f32 to vector<2x128xf32>
    %726 = arith.addf %724, %725 : vector<2x128xf32>
    %cst_222 = arith.constant 5.000000e-01 : f32
    %727 = vector.broadcast %cst_222 : f32 to vector<2x128xf32>
    %728 = arith.mulf %727, %726 : vector<2x128xf32>
    %729 = vector.extract_strided_slice %720 {offsets = [0, 128], sizes = [2, 128], strides = [1, 1]} : vector<2x512xf32> to vector<2x128xf32>
    %cst_223 = arith.constant 5.000000e-01 : f32
    %730 = vector.broadcast %cst_223 : f32 to vector<2x128xf32>
    %731 = arith.mulf %730, %729 : vector<2x128xf32>
    %732 = math.tanh %731 : vector<2x128xf32>
    %cst_224 = arith.constant 1.000000e+00 : f32
    %733 = vector.broadcast %cst_224 : f32 to vector<2x128xf32>
    %734 = arith.addf %732, %733 : vector<2x128xf32>
    %cst_225 = arith.constant 5.000000e-01 : f32
    %735 = vector.broadcast %cst_225 : f32 to vector<2x128xf32>
    %736 = arith.mulf %735, %734 : vector<2x128xf32>
    %737 = vector.extract_strided_slice %720 {offsets = [0, 256], sizes = [2, 128], strides = [1, 1]} : vector<2x512xf32> to vector<2x128xf32>
    %738 = math.tanh %737 : vector<2x128xf32>
    %739 = vector.extract_strided_slice %720 {offsets = [0, 384], sizes = [2, 128], strides = [1, 1]} : vector<2x512xf32> to vector<2x128xf32>
    %cst_226 = arith.constant 5.000000e-01 : f32
    %740 = vector.broadcast %cst_226 : f32 to vector<2x128xf32>
    %741 = arith.mulf %740, %739 : vector<2x128xf32>
    %742 = math.tanh %741 : vector<2x128xf32>
    %cst_227 = arith.constant 1.000000e+00 : f32
    %743 = vector.broadcast %cst_227 : f32 to vector<2x128xf32>
    %744 = arith.addf %742, %743 : vector<2x128xf32>
    %cst_228 = arith.constant 5.000000e-01 : f32
    %745 = vector.broadcast %cst_228 : f32 to vector<2x128xf32>
    %746 = arith.mulf %745, %744 : vector<2x128xf32>
    %747 = arith.mulf %736, %678 : vector<2x128xf32>
    %748 = arith.mulf %728, %738 : vector<2x128xf32>
    %749 = arith.addf %747, %748 : vector<2x128xf32>
    %750 = math.tanh %749 : vector<2x128xf32>
    %751 = arith.mulf %746, %750 : vector<2x128xf32>
    %752 = tpu.concatenate %751, %716 in 1 : vector<2x128xf32>, vector<2x128xf32> -> vector<2x256xf32>
    %753 = arith.truncf %752 : vector<2x256xf32> to vector<2x256xbf16>
    %c0_229 = arith.constant 0 : index
    %c0_230 = arith.constant 0 : index
    %754 = vector.load %arg11[%c0_229, %c0_230] : memref<256x512xbf16, #tpu.memory_space<vmem>>, vector<256x512xbf16>
    %cst_231 = arith.constant dense<0.000000e+00> : vector<2x512xf32>
    %755 = tpu.matmul %753, %754, %cst_231 {dimension_numbers = #tpu.dot_dimension_numbers<[1], [0], [0], [1], [0, 0, 1, 1], [], []>} : vector<2x256xbf16>, vector<256x512xbf16>, vector<2x512xf32> -> vector<2x512xf32>
    %756 = arith.addf %755, %211 : vector<2x512xf32>
    %757 = vector.extract_strided_slice %756 {offsets = [0, 0], sizes = [2, 128], strides = [1, 1]} : vector<2x512xf32> to vector<2x128xf32>
    %cst_232 = arith.constant 5.000000e-01 : f32
    %758 = vector.broadcast %cst_232 : f32 to vector<2x128xf32>
    %759 = arith.mulf %758, %757 : vector<2x128xf32>
    %760 = math.tanh %759 : vector<2x128xf32>
    %cst_233 = arith.constant 1.000000e+00 : f32
    %761 = vector.broadcast %cst_233 : f32 to vector<2x128xf32>
    %762 = arith.addf %760, %761 : vector<2x128xf32>
    %cst_234 = arith.constant 5.000000e-01 : f32
    %763 = vector.broadcast %cst_234 : f32 to vector<2x128xf32>
    %764 = arith.mulf %763, %762 : vector<2x128xf32>
    %765 = vector.extract_strided_slice %756 {offsets = [0, 128], sizes = [2, 128], strides = [1, 1]} : vector<2x512xf32> to vector<2x128xf32>
    %cst_235 = arith.constant 5.000000e-01 : f32
    %766 = vector.broadcast %cst_235 : f32 to vector<2x128xf32>
    %767 = arith.mulf %766, %765 : vector<2x128xf32>
    %768 = math.tanh %767 : vector<2x128xf32>
    %cst_236 = arith.constant 1.000000e+00 : f32
    %769 = vector.broadcast %cst_236 : f32 to vector<2x128xf32>
    %770 = arith.addf %768, %769 : vector<2x128xf32>
    %cst_237 = arith.constant 5.000000e-01 : f32
    %771 = vector.broadcast %cst_237 : f32 to vector<2x128xf32>
    %772 = arith.mulf %771, %770 : vector<2x128xf32>
    %773 = vector.extract_strided_slice %756 {offsets = [0, 256], sizes = [2, 128], strides = [1, 1]} : vector<2x512xf32> to vector<2x128xf32>
    %774 = math.tanh %773 : vector<2x128xf32>
    %775 = vector.extract_strided_slice %756 {offsets = [0, 384], sizes = [2, 128], strides = [1, 1]} : vector<2x512xf32> to vector<2x128xf32>
    %cst_238 = arith.constant 5.000000e-01 : f32
    %776 = vector.broadcast %cst_238 : f32 to vector<2x128xf32>
    %777 = arith.mulf %776, %775 : vector<2x128xf32>
    %778 = math.tanh %777 : vector<2x128xf32>
    %cst_239 = arith.constant 1.000000e+00 : f32
    %779 = vector.broadcast %cst_239 : f32 to vector<2x128xf32>
    %780 = arith.addf %778, %779 : vector<2x128xf32>
    %cst_240 = arith.constant 5.000000e-01 : f32
    %781 = vector.broadcast %cst_240 : f32 to vector<2x128xf32>
    %782 = arith.mulf %781, %780 : vector<2x128xf32>
    %783 = arith.mulf %772, %714 : vector<2x128xf32>
    %784 = arith.mulf %764, %774 : vector<2x128xf32>
    %785 = arith.addf %783, %784 : vector<2x128xf32>
    %786 = math.tanh %785 : vector<2x128xf32>
    %787 = arith.mulf %782, %786 : vector<2x128xf32>
    %788 = arith.truncf %751 : vector<2x128xf32> to vector<2x128xbf16>
    %c0_241 = arith.constant 0 : index
    %c0_242 = arith.constant 0 : index
    %789 = vector.load %arg9[%c0_241, %c0_242] : memref<128x512xbf16, #tpu.memory_space<vmem>>, vector<128x512xbf16>
    %cst_243 = arith.constant dense<0.000000e+00> : vector<2x512xf32>
    %790 = tpu.matmul %788, %789, %cst_243 {dimension_numbers = #tpu.dot_dimension_numbers<[1], [0], [0], [1], [0, 0, 1, 1], [], []>} : vector<2x128xbf16>, vector<128x512xbf16>, vector<2x512xf32> -> vector<2x512xf32>
    %791 = arith.addf %208, %790 : vector<2x512xf32>
    %792 = vector.extract_strided_slice %791 {offsets = [0, 0], sizes = [2, 128], strides = [1, 1]} : vector<2x512xf32> to vector<2x128xf32>
    %cst_244 = arith.constant 5.000000e-01 : f32
    %793 = vector.broadcast %cst_244 : f32 to vector<2x128xf32>
    %794 = arith.mulf %793, %792 : vector<2x128xf32>
    %795 = math.tanh %794 : vector<2x128xf32>
    %cst_245 = arith.constant 1.000000e+00 : f32
    %796 = vector.broadcast %cst_245 : f32 to vector<2x128xf32>
    %797 = arith.addf %795, %796 : vector<2x128xf32>
    %cst_246 = arith.constant 5.000000e-01 : f32
    %798 = vector.broadcast %cst_246 : f32 to vector<2x128xf32>
    %799 = arith.mulf %798, %797 : vector<2x128xf32>
    %800 = vector.extract_strided_slice %791 {offsets = [0, 128], sizes = [2, 128], strides = [1, 1]} : vector<2x512xf32> to vector<2x128xf32>
    %cst_247 = arith.constant 5.000000e-01 : f32
    %801 = vector.broadcast %cst_247 : f32 to vector<2x128xf32>
    %802 = arith.mulf %801, %800 : vector<2x128xf32>
    %803 = math.tanh %802 : vector<2x128xf32>
    %cst_248 = arith.constant 1.000000e+00 : f32
    %804 = vector.broadcast %cst_248 : f32 to vector<2x128xf32>
    %805 = arith.addf %803, %804 : vector<2x128xf32>
    %cst_249 = arith.constant 5.000000e-01 : f32
    %806 = vector.broadcast %cst_249 : f32 to vector<2x128xf32>
    %807 = arith.mulf %806, %805 : vector<2x128xf32>
    %808 = vector.extract_strided_slice %791 {offsets = [0, 256], sizes = [2, 128], strides = [1, 1]} : vector<2x512xf32> to vector<2x128xf32>
    %809 = math.tanh %808 : vector<2x128xf32>
    %810 = vector.extract_strided_slice %791 {offsets = [0, 384], sizes = [2, 128], strides = [1, 1]} : vector<2x512xf32> to vector<2x128xf32>
    %cst_250 = arith.constant 5.000000e-01 : f32
    %811 = vector.broadcast %cst_250 : f32 to vector<2x128xf32>
    %812 = arith.mulf %811, %810 : vector<2x128xf32>
    %813 = math.tanh %812 : vector<2x128xf32>
    %cst_251 = arith.constant 1.000000e+00 : f32
    %814 = vector.broadcast %cst_251 : f32 to vector<2x128xf32>
    %815 = arith.addf %813, %814 : vector<2x128xf32>
    %cst_252 = arith.constant 5.000000e-01 : f32
    %816 = vector.broadcast %cst_252 : f32 to vector<2x128xf32>
    %817 = arith.mulf %816, %815 : vector<2x128xf32>
    %818 = arith.mulf %807, %749 : vector<2x128xf32>
    %819 = arith.mulf %799, %809 : vector<2x128xf32>
    %820 = arith.addf %818, %819 : vector<2x128xf32>
    %821 = math.tanh %820 : vector<2x128xf32>
    %822 = arith.mulf %817, %821 : vector<2x128xf32>
    %823 = tpu.concatenate %822, %787 in 1 : vector<2x128xf32>, vector<2x128xf32> -> vector<2x256xf32>
    %824 = arith.truncf %823 : vector<2x256xf32> to vector<2x256xbf16>
    %c0_253 = arith.constant 0 : index
    %c0_254 = arith.constant 0 : index
    %825 = vector.load %arg11[%c0_253, %c0_254] : memref<256x512xbf16, #tpu.memory_space<vmem>>, vector<256x512xbf16>
    %cst_255 = arith.constant dense<0.000000e+00> : vector<2x512xf32>
    %826 = tpu.matmul %824, %825, %cst_255 {dimension_numbers = #tpu.dot_dimension_numbers<[1], [0], [0], [1], [0, 0, 1, 1], [], []>} : vector<2x256xbf16>, vector<256x512xbf16>, vector<2x512xf32> -> vector<2x512xf32>
    %827 = arith.addf %826, %211 : vector<2x512xf32>
    %828 = vector.extract_strided_slice %827 {offsets = [0, 0], sizes = [2, 128], strides = [1, 1]} : vector<2x512xf32> to vector<2x128xf32>
    %cst_256 = arith.constant 5.000000e-01 : f32
    %829 = vector.broadcast %cst_256 : f32 to vector<2x128xf32>
    %830 = arith.mulf %829, %828 : vector<2x128xf32>
    %831 = math.tanh %830 : vector<2x128xf32>
    %cst_257 = arith.constant 1.000000e+00 : f32
    %832 = vector.broadcast %cst_257 : f32 to vector<2x128xf32>
    %833 = arith.addf %831, %832 : vector<2x128xf32>
    %cst_258 = arith.constant 5.000000e-01 : f32
    %834 = vector.broadcast %cst_258 : f32 to vector<2x128xf32>
    %835 = arith.mulf %834, %833 : vector<2x128xf32>
    %836 = vector.extract_strided_slice %827 {offsets = [0, 128], sizes = [2, 128], strides = [1, 1]} : vector<2x512xf32> to vector<2x128xf32>
    %cst_259 = arith.constant 5.000000e-01 : f32
    %837 = vector.broadcast %cst_259 : f32 to vector<2x128xf32>
    %838 = arith.mulf %837, %836 : vector<2x128xf32>
    %839 = math.tanh %838 : vector<2x128xf32>
    %cst_260 = arith.constant 1.000000e+00 : f32
    %840 = vector.broadcast %cst_260 : f32 to vector<2x128xf32>
    %841 = arith.addf %839, %840 : vector<2x128xf32>
    %cst_261 = arith.constant 5.000000e-01 : f32
    %842 = vector.broadcast %cst_261 : f32 to vector<2x128xf32>
    %843 = arith.mulf %842, %841 : vector<2x128xf32>
    %844 = vector.extract_strided_slice %827 {offsets = [0, 256], sizes = [2, 128], strides = [1, 1]} : vector<2x512xf32> to vector<2x128xf32>
    %845 = math.tanh %844 : vector<2x128xf32>
    %846 = vector.extract_strided_slice %827 {offsets = [0, 384], sizes = [2, 128], strides = [1, 1]} : vector<2x512xf32> to vector<2x128xf32>
    %cst_262 = arith.constant 5.000000e-01 : f32
    %847 = vector.broadcast %cst_262 : f32 to vector<2x128xf32>
    %848 = arith.mulf %847, %846 : vector<2x128xf32>
    %849 = math.tanh %848 : vector<2x128xf32>
    %cst_263 = arith.constant 1.000000e+00 : f32
    %850 = vector.broadcast %cst_263 : f32 to vector<2x128xf32>
    %851 = arith.addf %849, %850 : vector<2x128xf32>
    %cst_264 = arith.constant 5.000000e-01 : f32
    %852 = vector.broadcast %cst_264 : f32 to vector<2x128xf32>
    %853 = arith.mulf %852, %851 : vector<2x128xf32>
    %854 = arith.mulf %843, %785 : vector<2x128xf32>
    %855 = arith.mulf %835, %845 : vector<2x128xf32>
    %856 = arith.addf %854, %855 : vector<2x128xf32>
    %857 = math.tanh %856 : vector<2x128xf32>
    %858 = arith.mulf %853, %857 : vector<2x128xf32>
    %cst_265 = arith.constant 0.000000e+00 : f32
    %859 = vector.broadcast %cst_265 : f32 to vector<2x128xf32>
    %860 = arith.maximumf %858, %859 : vector<2x128xf32>
    %c0_266 = arith.constant 0 : index
    %c0_267 = arith.constant 0 : index
    %861 = vector.load %arg13[%c0_266, %c0_267] : memref<128x4xf32, #tpu.memory_space<vmem>>, vector<128x4xf32>
    %cst_268 = arith.constant dense<0.000000e+00> : vector<2x4xf32>
    %862 = tpu.matmul %860, %861, %cst_268 {dimension_numbers = #tpu.dot_dimension_numbers<[1], [0], [0], [1], [0, 0, 1, 1], [], []>} : vector<2x128xf32>, vector<128x4xf32>, vector<2x4xf32> -> vector<2x4xf32>
    %c0_269 = arith.constant 0 : index
    %c0_270 = arith.constant 0 : index
    %863 = vector.load %arg14[%c0_269, %c0_270] : memref<1x4xf32, #tpu.memory_space<vmem>>, vector<1x4xf32>
    %864 = vector.broadcast %863 : vector<1x4xf32> to vector<2x4xf32>
    %865 = arith.addf %862, %864 : vector<2x4xf32>
    %cst_271 = arith.constant dense<0xFF800000> : vector<2xf32>
    %866 = vector.multi_reduction <maximumf>, %865, %cst_271 [1] : vector<2x4xf32> to vector<2xf32>
    %867 = vector.shape_cast %866 : vector<2xf32> to vector<2x1xf32>
    %868 = vector.broadcast %867 : vector<2x1xf32> to vector<2x4xf32>
    %869 = arith.subf %865, %868 : vector<2x4xf32>
    %870 = math.exp %869 : vector<2x4xf32>
    %cst_272 = arith.constant dense<0.000000e+00> : vector<2xf32>
    %871 = vector.multi_reduction <add>, %870, %cst_272 [1] : vector<2x4xf32> to vector<2xf32>
    %872 = vector.shape_cast %871 : vector<2xf32> to vector<2x1xf32>
    %873 = vector.broadcast %872 : vector<2x1xf32> to vector<2x4xf32>
    %874 = arith.divf %870, %873 : vector<2x4xf32>
    %c0_273 = arith.constant 0 : index
    %c0_274 = arith.constant 0 : index
    %875 = vector.load %arg15[%c0_273, %c0_274] : memref<2x4xf32, #tpu.memory_space<vmem>>, vector<2x4xf32>
    tpu.vector_store %arg15[%c0_273, %c0_274], %874 {strides = array<i32>} : memref<2x4xf32, #tpu.memory_space<vmem>>, vector<2x4xf32>,
    %c0_275 = arith.constant 0 : index
    %c0_276 = arith.constant 0 : index
    %876 = vector.load %arg16[%c0_275, %c0_276] : memref<2x128xf32, #tpu.memory_space<vmem>>, vector<2x128xf32>
    tpu.vector_store %arg16[%c0_275, %c0_276], %860 {strides = array<i32>} : memref<2x128xf32, #tpu.memory_space<vmem>>, vector<2x128xf32>,
    return
  }
}

</mosaic_0001>

<bundles_post_ra>
// kernel: equalizer_forward.1
= control target key start
LH: loop header
LB: loop body
LE: loop exit
PB: predicated region body
PF: predicated region fallthrough
CT: control target
= control target key end

     0   :  { %s9082_s0 = inlined_call_operand.vmem [shape: f32[2,2,18], index: 0, kind: input, shape index: {}]   ;;  %s9083_s1 = inlined_call_operand.vmem [shape: f32[2,2,128], index: 1, kind: input, shape index: {}, may-alias: {1,2}]   ;;  %s9084_s2 = inlined_call_operand.vmem [shape: f32[2,2,128], index: 2, kind: input, shape index: {}, may-alias: {1,2}]   ;;  %s9085_s3 = inlined_call_operand.vmem [shape: f32[64,18], index: 3, kind: input, shape index: {}]   ;;  %s9086_s4 = inlined_call_operand.vmem [shape: f32[64,1], index: 4, kind: input, shape index: {}]   ;;  %s9087_s5 = inlined_call_operand.vmem [shape: f32[32,192], index: 5, kind: input, shape index: {}]   ;;  %s9088_s6 = inlined_call_operand.vmem [shape: f32[32,1], index: 6, kind: input, shape index: {}]   ;;  %s9089_s7 = inlined_call_operand.vmem [shape: f32[36,36], index: 7, kind: input, shape index: {}]   ;;  %s9090_s8 = inlined_call_operand.vmem [shape: bf16[32,512], index: 8, kind: input, shape index: {}]   ;;  %s9091_s9 = inlined_call_operand.vmem [shape: bf16[128,512], index: 9, kind: input, shape index: {}]   ;;  %s9092_s10 = inlined_call_operand.vmem [shape: f32[1,512], index: 10, kind: input, shape index: {}]   ;;  %s9093_s11 = inlined_call_operand.vmem [shape: bf16[256,512], index: 11, kind: input, shape index: {}]   ;;  %s9094_s12 = inlined_call_operand.vmem [shape: f32[1,512], index: 12, kind: input, shape index: {}]   ;;  %s9095_s13 = inlined_call_operand.vmem [shape: f32[128,4], index: 13, kind: input, shape index: {}]   ;;  %s9096_s14 = inlined_call_operand.vmem [shape: f32[1,4], index: 14, kind: input, shape index: {}]   ;;  %s9097_s15 = inlined_call_operand.hbm [shape: f32[2,4], index: 15, kind: output, shape index: {0}]   ;;  %s9098_s16 = inlined_call_operand.hbm [shape: f32[2,128], index: 16, kind: output, shape index: {1}]  }
   0x1   :  { %9495 = sst [smem:[#allocation89_spill]] %s9082_s0 }
   0x2   :  { %22 = vsyncpa [#allocation3], 0  ;;  %s9496_s23 = sld [smem:[#allocation89_spill]]  ;;  %s5659_s24 = smov 1  }
   0x8   :  { %v55_v0 = vld [vmem:[%s9496_s23] sm:$0x3]  ;;  %v4394_v1 = vld [vmem:[%s9496_s23 + $0x2] sm:$0x3] }
   0x9   :  { %57 = vrot.lane.b32.xlu0 %v55_v0, %s5659_s24 }
   0xd   :  { %437 = vrot.lane.b32.xlu0 %v4394_v1, %s5659_s24 }
   0xe   :  { %23 = vsyncpa [#allocation5], 0  ;;  %vm60_vm0 = vcmask 7168   ;;  %vm62_vm1 = vcmask 154624   ;;  %vm67_vm2 = vcmask 1040384   ;;  %vm69_vm3 = vcmask 1042432  }
   0xf   :  { %s5660_s27 = smov 127   ;;  %s5661_s28 = smov 126   ;;  %v5814_v23 = vld [vmem:[%s9085_s3] sm:$0xff]  ;;  %vm190_vm4 = vcmask 146432   ;;  %v143_v28 = vld [vmem:[%s9086_s4 + $0x8] sm:$0xff]  ;;  %v9104_v29 = vmov 0  }
  0x10   :  { %4578 = vmatprep.mubr.msk.f32.mxu0 %vm190_vm4, %v5814_v23  ;;  %v142_v27 = vld [vmem:[%s9086_s4] sm:$0xff]  ;;  %4797 = vset.pattern.permute.xlu1 %v9104_v29  ;;  %v145_v30 = vld [vmem:[%s9086_s4 + $0x18] sm:$0xff]  ;;  %v144_v31 = vld [vmem:[%s9086_s4 + $0x10] sm:$0xff]  ;;  %vm81_vm5 = vcmask 1041408   ;;  %vm9101_vm6 = vcmask 1043456   ;;  %vm132_vm7 = vcmask 1046528  }
  0x11   :  { %4796 = vset.pattern.permute.xlu0 %v9104_v29  ;;  %v147_v32 = vld [vmem:[%s9086_s4 + $0x28] sm:$0xff]  ;;  %v146_v33 = vld [vmem:[%s9086_s4 + $0x20] sm:$0xff]  ;;  %v149_v34 = vld [vmem:[%s9086_s4 + $0x38] sm:$0xff]  ;;  %vm9100_vm8 = vcmask 1045504   ;;  %vm837_vm9 = vcmask 523264   ;;  %vm944_vm10 = vcmask 293888  }
  0x12   :  { %v148_v35 = vld [vmem:[%s9086_s4 + $0x30] sm:$0xff]  ;;  %s5667_s21 = smov 72   ;;  %s5668_s22 = smov 81   ;;  %vm1313_vm11 = vcmask 72704   ;;  %vm1316_vm12 = vcmask 220160   ;;  %vm1319_vm13 = vcmask 367616  }
  0x13   :  { %s5670_s23 = smov 9   ;;  %s5671_s25 = smov 27   ;;  %vm1321_vm14 = vcmask 441344   ;;  %vm1323_vm15 = vcmask 515072  }
  0x14   :  { %s5672_s26 = smov 90   ;;  %s5673_s29 = smov 36  }
  0x15   :  { %s5674_s30 = smov 63   ;;  %s5675_s0 = smov 45  }
  0x16   :  { %s5676_s17 = smov 108   ;;  %s5677_s18 = smov 54  }
  0x17   :  { %s5678_s19 = smov 117  }
  0x7b   :  { %v58_v2 = vpop.permute.xlu0 %57 }
  0x7c   :  { %v61_v3 = vsel %vm60_vm0, 0.0, %v58_v2 }
  0x7d   :  { %v63_v4 = vsel %vm62_vm1, %v61_v3, 0.0 }
  0x7e   :  { %v65_v5 = vrot.slane %v63_v4, 7 }
  0x7f   :  { %v438_v6 = vpop.permute.xlu0 %437 }
  0x80   :  { %v68_v7 = vsel %vm67_vm2, 0.0, %v65_v5  ;;  %v440_v8 = vsel %vm60_vm0, 0.0, %v438_v6 }
  0x81   :  { %v5786_v9 = vsel %vm69_vm3, %v68_v7, 0.0  ;;  %v441_v10 = vsel %vm62_vm1, %v440_v8, 0.0 }
  0x82   :  { %v443_v11 = vrot.slane %v441_v10, 7  ;;  %v93_v12 = vrot.slane %v5786_v9, 2  ;;  %v83_v13 = vrot.slane %v5786_v9, 1  ;;  %v72_v16 = vrot.slane %v5786_v9, 7 }
  0x83   :  { %v76_v24 = vrot.slane %v5786_v9, 6  ;;  %v103_v46 = vrot.slane %v5786_v9, 3 }
  0x84   :  { %v445_v14 = vsel %vm67_vm2, 0.0, %v443_v11  ;;  %105 = vrot.lane.b32.xlu0 %v93_v12, %s5660_s27  ;;  %v4776_v15 = vpack.i.bf16 %v83_v13, %v5786_v9  ;;  %v4781_v19 = vpack.i.bf16 %v5786_v9, %v72_v16 }
  0x85   :  { %v5796_v17 = vsel %vm69_vm3, %v445_v14, 0.0 }
  0x86   :  { %4777 = vrot.lane.b32.xlu1 %v4776_v15, %s5660_s27  ;;  %v5800_v18 = vrot.slane %v5796_v17, 1  ;;  %v468_v21 = vrot.slane %v5796_v17, 2  ;;  %v448_v22 = vrot.slane %v5796_v17, 7  ;;  %v452_v26 = vrot.slane %v5796_v17, 6 }
  0x87   :  { %v478_v11 = vrot.slane %v5796_v17, 3 }
  0x88   :  { %108 = vrot.lane.b32.xlu0 %v83_v13, %s5661_s28  ;;  %v4786_v20 = vpack.i.bf16 %v5800_v18, %v5796_v17  ;;  %v4791_v25 = vpack.i.bf16 %v5796_v17, %v448_v22 }
  0x8a   :  { %4782 = vrot.lane.b32.xlu1 %v4781_v19, %s5661_s28 }
  0x8c   :  { %4787 = vrot.lane.b32.xlu0 %v4786_v20, %s5660_s27 }
  0x8e   :  { %73 = vrot.lane.b32.xlu1 %v72_v16, %s5660_s27 }
  0x90   :  { %480 = vrot.lane.b32.xlu0 %v468_v21, %s5660_s27 }
  0x92   :  { %77 = vrot.lane.b32.xlu1 %v76_v24, %s5661_s28  ;;  %v136_v24 = vld [vmem:[%s9085_s3 + $0x10] sm:$0xff] }
  0x94   :  { %483 = vrot.lane.b32.xlu0 %v5800_v18, %s5661_s28 }
  0x96   :  { %4792 = vrot.lane.b32.xlu1 %v4791_v25, %s5661_s28 }
  0x98   :  { %152 = vperm.xlu0 %4796, %v142_v27  }
  0x9a   :  { %449 = vrot.lane.b32.xlu1 %v448_v22, %s5660_s27 }
  0x9c   :  { %167 = vperm.xlu0 %4796, %v145_v30  }
  0x9e   :  { %453 = vrot.lane.b32.xlu1 %v452_v26, %s5661_s28 }
  0xa0   :  { %177 = vperm.xlu0 %4796, %v147_v32  }
  0xa2   :  { %157 = vperm.xlu1 %4797, %v143_v28  }
  0xa4   :  { %187 = vperm.xlu0 %4796, %v149_v34  }
  0xa6   :  { %162 = vperm.xlu1 %4797, %v144_v31  }
  0xaa   :  { %172 = vperm.xlu1 %4797, %v146_v33   ;;  %v137_v33 = vld [vmem:[%s9085_s3 + $0x18] sm:$0xff] }
  0xae   :  { %182 = vperm.xlu1 %4797, %v148_v35  }
  0xf6   :  { %v106_v36 = vpop.permute.xlu0 %105 }
  0xf7   :  { %v111_v54 = vsel %vm67_vm2, %v103_v46, %v106_v36 }
  0xf8   :  { %v4778_v37 = vpop.permute.xlu1 %4777 }
  0xf9   :  { %v4780_v38 = vunpack.i.h.bf16 %v4778_v37  ;;  %v4779_v39 = vunpack.i.l.bf16 %v4778_v37 }
  0xfa   :  { %v109_v40 = vpop.permute.xlu0 %108 }
  0xfb   :  { %v101_v44 = vsel %vm67_vm2, %v93_v12, %v4780_v38  ;;  %v91_v45 = vsel %vm67_vm2, %v83_v13, %v4779_v39  ;;  %v112_v55 = vsel %vm81_vm5, %v111_v54, %v109_v40  ;;  %v139_v38 = vld [vmem:[%s9085_s3 + $0x28] sm:$0xff]  ;;  %v140_v39 = vld [vmem:[%s9085_s3 + $0x30] sm:$0xff]  ;;  %v141_v40 = vld [vmem:[%s9085_s3 + $0x38] sm:$0xff] }
  0xfc   :  { %v4783_v41 = vpop.permute.xlu1 %4782  ;;  %v124_v61 = vrot.slane %v112_v55, 1 }
  0xfd   :  { %v4785_v42 = vunpack.i.h.bf16 %v4783_v41  ;;  %v4784_v43 = vunpack.i.l.bf16 %v4783_v41 }
  0xfe   :  { %v4788_v48 = vpop.permute.xlu0 %4787 }
  0xff   :  { %v92_v47 = vsel %vm81_vm5, %v91_v45, %v4784_v43  ;;  %v102_v49 = vsel %vm81_vm5, %v101_v44, %v4785_v42  ;;  %v4790_v0 = vunpack.i.h.bf16 %v4788_v48  ;;  %v4789_v1 = vunpack.i.l.bf16 %v4788_v48 }
 0x100   :  { %v119_v50 = vrot.slane %v92_v47, 7  ;;  %v74_v51 = vpop.permute.xlu1 %73  ;;  %v117_v52 = vrot.slane %v102_v49, 2  ;;  %v121_v53 = vrot.slane %v102_v49, 4  ;;  %v114_v59 = vrot.slane %v92_v47, 5 }
 0x101   :  { %v80_v57 = vsel %vm67_vm2, %v5786_v9, %v74_v51  ;;  %v476_v9 = vsel %vm67_vm2, %v468_v21, %v4790_v0  ;;  %v466_v10 = vsel %vm67_vm2, %v5800_v18, %v4789_v1  ;;  %v135_v18 = vld [vmem:[%s9085_s3 + $0x8] sm:$0xff] }
 0x102   :  { %v129_v56 = vsel %vm67_vm2, %v117_v52, %v119_v50  ;;  %v481_v62 = vpop.permute.xlu0 %480 }
 0x103   :  { %v131_v60 = vsel %vm9101_vm6, %v129_v56, %v121_v53  ;;  %v486_v21 = vsel %vm67_vm2, %v478_v11, %v481_v62 }
 0x104   :  { %v78_v58 = vpop.permute.xlu1 %77  ;;  %v133_v4 = vsel %vm132_vm7, %v131_v60, %v124_v61 }
 0x105   :  { %v82_v63 = vsel %vm81_vm5, %v80_v57, %v78_v58 }
 0x106   :  { %v126_v2 = vsel %vm69_vm3, %v82_v63, %v114_v59  ;;  %v484_v12 = vpop.permute.xlu0 %483 }
 0x107   :  { %v128_v3 = vsel %vm9100_vm8, %v126_v2, %v117_v52  ;;  %v487_v22 = vsel %vm81_vm5, %v486_v21, %v484_v12 }
 0x108   :  { %v4793_v5 = vpop.permute.xlu1 %4792  ;;  %v4659_v6 = vpack.c.bf16 %v133_v4, %v128_v3  ;;  %v499_v31 = vrot.slane %v487_v22, 1 }
 0x109   :  { %v4795_v7 = vunpack.i.h.bf16 %v4793_v5  ;;  %v4794_v8 = vunpack.i.l.bf16 %v4793_v5 }
 0x10a   :  { %4660 = vmatprep.subr.bf16.mxu0 %v4659_v6 }
 0x10b   :  { %v467_v13 = vsel %vm81_vm5, %v466_v10, %v4794_v8  ;;  %v477_v14 = vsel %vm81_vm5, %v476_v9, %v4795_v7  ;;  %4662 = vmatpush3.bf16.msra.mxu0 %v4659_v6 }
 0x10c   :  { %v492_v15 = vrot.slane %v477_v14, 2  ;;  %v494_v16 = vrot.slane %v467_v13, 7  ;;  %v496_v19 = vrot.slane %v477_v14, 4  ;;  %v450_v20 = vpop.permute.xlu1 %449  ;;  %4576 = vmatprep.subr.msk.mxu0 %vm81_vm5, %v124_v61  ;;  %v489_v28 = vrot.slane %v467_v13, 5 }
 0x10d   :  { %v456_v26 = vsel %vm67_vm2, %v5796_v17, %v450_v20  ;;  %v138_v17 = vld [vmem:[%s9085_s3 + $0x20] sm:$0xff]  ;;  %s5664_s3 = smov 18  }
 0x10e   :  { %v503_v25 = vsel %vm67_vm2, %v492_v15, %v494_v16 }
 0x10f   :  { %4577 = vmatpush3.msk.msra.mxu0 %vm81_vm5, %v124_v61  ;;  %v504_v30 = vsel %vm9101_vm6, %v503_v25, %v496_v19 }
 0x110   :  { %v454_v27 = vpop.permute.xlu1 %453  ;;  %4579 = vmatmul.mubr.msk.f32.vlgmr.msra.gmra.mrb[0].mxu0 %vm190_vm4, %v135_v18  ;;  %v505_v36 = vsel %vm132_vm7, %v504_v30, %v499_v31  ;;  %vm1331_vm7 = vcmask 809984  }
 0x111   :  { %v457_v32 = vsel %vm81_vm5, %v456_v26, %v454_v27  ;;  %4581 = vmatprep.mubr.msk.f32.mxu0 %vm190_vm4, %v136_v24 }
 0x112   :  { %v501_v34 = vsel %vm69_vm3, %v457_v32, %v489_v28  ;;  %vm1329_vm3 = vcmask 736256  }
 0x113   :  { %v502_v35 = vsel %vm9100_vm8, %v501_v34, %v492_v15  ;;  %vm1335_vm8 = vcmask 957440  }
 0x114   :  { %4582 = vmatmul.mubr.msk.f32.gmra.mrb[2].mxu0 %vm190_vm4, %v137_v33  ;;  %v4663_v37 = vpack.c.bf16 %v505_v36, %v502_v35 }
 0x115   :  { %4584 = vmatprep.mubr.msk.f32.mxu0 %vm190_vm4, %v138_v17 }
 0x116   :  { %4664 = vmatprep.subr.bf16.mxu0 %v4663_v37 }
 0x117   :  { %4666 = vmatpush3.bf16.msra.mxu0 %v4663_v37  ;;  %v153_v41 = vpop.permute.xlu0 %152 }
 0x118   :  { %4585 = vmatmul.mubr.msk.f32.gmra.mrb[4].mxu0 %vm190_vm4, %v139_v38  ;;  %4594 = vmatprep.subr.msk.mxu0 %vm81_vm5, %v499_v31 }
 0x119   :  { %4587 = vmatprep.mubr.msk.f32.mxu0 %vm190_vm4, %v140_v39 }
 0x11b   :  { %4595 = vmatpush3.msk.msra.mxu0 %vm81_vm5, %v499_v31  ;;  %v168_v43 = vpop.permute.xlu0 %167 }
 0x11c   :  { %4588 = vmatmul.mubr.msk.f32.gmra.mrb[6].mxu0 %vm190_vm4, %v141_v40 }
 0x11d   :  { %4596 = vmatprep.mubr.msk.f32.mxu0 %vm190_vm4, %v5814_v23 }
 0x11f   :  { %v178_v51 = vpop.permute.xlu0 %177 }
 0x120   :  { %4597 = vmatmul.mubr.msk.f32.vlgmr.msra.gmra.mrb[8].mxu0 %vm190_vm4, %v135_v18 }
 0x121   :  { %4599 = vmatprep.mubr.msk.f32.mxu0 %vm190_vm4, %v136_v24  ;;  %v158_v42 = vpop.permute.xlu1 %157 }
 0x123   :  { %v188_v63 = vpop.permute.xlu0 %187 }
 0x124   :  { %4600 = vmatmul.mubr.msk.f32.gmra.mrb[10].mxu0 %vm190_vm4, %v137_v33 }
 0x125   :  { %4602 = vmatprep.mubr.msk.f32.mxu0 %vm190_vm4, %v138_v17  ;;  %v163_v44 = vpop.permute.xlu1 %162 }
 0x128   :  { %4603 = vmatmul.mubr.msk.f32.gmra.mrb[12].mxu0 %vm190_vm4, %v139_v38 }
 0x129   :  { %4605 = vmatprep.mubr.msk.f32.mxu0 %vm190_vm4, %v140_v39  ;;  %v173_v54 = vpop.permute.xlu1 %172 }
 0x12c   :  { %4606 = vmatmul.mubr.msk.f32.gmra.mrb[14].mxu0 %vm190_vm4, %v141_v40 }
 0x12d   :  { %v183_v2 = vpop.permute.xlu1 %182 }
 0x1e3   :  { %v4580_v45 = vpop.f32.mrb[0].mxu0 }
 0x1e4   :  { %v289_v23 = vadd.f32 %v4580_v45, %v158_v42  ;;  %v283_v46 = vpop.f32.mrb[1].mxu0 }
 0x1e5   :  { %v284_v47 = vadd.f32 %v283_v46, %v153_v41 }
 0x1e6   :  { %v323_v48 = vmax.f32 %v289_v23, 0.0 }
 0x1e7   :  { %v322_v49 = vmax.f32 %v284_v47, 0.0  ;;  %v4583_v50 = vpop.f32.mrb[2].mxu0 }
 0x1e8   :  { %v293_v52 = vpop.f32.mrb[3].mxu0  ;;  %v299_v53 = vadd.f32 %v4583_v50, %v168_v43 }
 0x1e9   :  { %v294_v55 = vadd.f32 %v293_v52, %v163_v44  ;;  %v4818_v56 = vpack.i.bf16 %v323_v48, %v322_v49 }
 0x1ea   :  { %v325_v57 = vmax.f32 %v299_v53, 0.0 }
 0x1eb   :  { %v324_v58 = vmax.f32 %v294_v55, 0.0  ;;  %v4586_v59 = vpop.f32.mrb[4].mxu0 }
 0x1ec   :  { %v303_v60 = vpop.f32.mrb[5].mxu0  ;;  %v309_v61 = vadd.f32 %v4586_v59, %v178_v51 }
 0x1ed   :  { %v304_v62 = vadd.f32 %v303_v60, %v173_v54  ;;  %v4823_v0 = vpack.i.bf16 %v325_v57, %v324_v58 }
 0x1ee   :  { %v327_v1 = vmax.f32 %v309_v61, 0.0 }
 0x1ef   :  { %v4589_v3 = vpop.f32.mrb[6].mxu0  ;;  %v326_v4 = vmax.f32 %v304_v62, 0.0  ;;  %v9102_v62 = vmov 0.0|0.0  }
 0x1f0   :  { %v313_v5 = vpop.f32.mrb[7].mxu0  ;;  %v319_v6 = vadd.f32 %v4589_v3, %v188_v63  ;;  %4667 = vmatprep.subr.bf16.mxu0 %v9102_v62 }
 0x1f1   :  { %v314_v7 = vadd.f32 %v313_v5, %v183_v2  ;;  %v4828_v8 = vpack.i.bf16 %v327_v1, %v326_v4 }
 0x1f2   :  { %v329_v9 = vmax.f32 %v319_v6, 0.0 }
 0x1f3   :  { %v4598_v10 = vpop.f32.mrb[8].mxu0  ;;  %v328_v11 = vmax.f32 %v314_v7, 0.0 }
 0x1f4   :  { %v580_v12 = vadd.f32 %v4598_v10, %v158_v42  ;;  %v574_v13 = vpop.f32.mrb[9].mxu0 }
 0x1f5   :  { %v575_v14 = vadd.f32 %v574_v13, %v153_v41  ;;  %v4833_v15 = vpack.i.bf16 %v329_v9, %v328_v11 }
 0x1f6   :  { %v614_v16 = vmax.f32 %v580_v12, 0.0 }
 0x1f7   :  { %v613_v19 = vmax.f32 %v575_v14, 0.0  ;;  %v4601_v20 = vpop.f32.mrb[10].mxu0 }
 0x1f8   :  { %v590_v21 = vadd.f32 %v4601_v20, %v168_v43  ;;  %v584_v18 = vpop.f32.mrb[11].mxu0 }
 0x1f9   :  { %v4798_v22 = vpack.i.bf16 %v614_v16, %v613_v19  ;;  %v585_v24 = vadd.f32 %v584_v18, %v163_v44 }
 0x1fa   :  { %v616_v25 = vmax.f32 %v590_v21, 0.0 }
 0x1fb   :  { %v615_v26 = vmax.f32 %v585_v24, 0.0  ;;  %v4604_v27 = vpop.f32.mrb[12].mxu0  ;;  %4799 = vrot.lane.b32.xlu1 %v4798_v22, %s5659_s24 }
 0x1fc   :  { %v600_v28 = vadd.f32 %v4604_v27, %v178_v51  ;;  %v594_v30 = vpop.f32.mrb[13].mxu0 }
 0x1fd   :  { %v4803_v31 = vpack.i.bf16 %v616_v25, %v615_v26  ;;  %v595_v32 = vadd.f32 %v594_v30, %v173_v54 }
 0x1fe   :  { %v618_v33 = vmax.f32 %v600_v28, 0.0 }
 0x1ff   :  { %v617_v34 = vmax.f32 %v595_v32, 0.0  ;;  %v4607_v17 = vpop.f32.mrb[14].mxu0  ;;  %4804 = vrot.lane.b32.xlu0 %v4803_v31, %s5659_s24 }
 0x200   :  { %v610_v35 = vadd.f32 %v4607_v17, %v188_v63  ;;  %v604_v36 = vpop.f32.mrb[15].mxu0 }
 0x201   :  { %v4808_v37 = vpack.i.bf16 %v618_v33, %v617_v34  ;;  %v605_v38 = vadd.f32 %v604_v36, %v183_v2 }
 0x202   :  { %v620_v39 = vmax.f32 %v610_v35, 0.0 }
 0x203   :  { %v619_v40 = vmax.f32 %v605_v38, 0.0  ;;  %4809 = vrot.lane.b32.xlu1 %v4808_v37, %s5659_s24 }
 0x205   :  { %v4813_v41 = vpack.i.bf16 %v620_v39, %v619_v40 }
 0x207   :  { %4814 = vrot.lane.b32.xlu0 %v4813_v41, %s5659_s24  ;;  %4819 = vrot.lane.b32.xlu1 %v4818_v56, %s5659_s24 }
 0x20b   :  { %4824 = vrot.lane.b32.xlu1 %v4823_v0, %s5659_s24 }
 0x20f   :  { %4829 = vrot.lane.b32.xlu1 %v4828_v8, %s5659_s24 }
 0x213   :  { %4834 = vrot.lane.b32.xlu1 %v4833_v15, %s5659_s24 }
 0x26d   :  { %v4800_v42 = vpop.permute.xlu1 %4799 }
 0x26e   :  { %v4802_v43 = vunpack.i.h.bf16 %v4800_v42  ;;  %v4801_v44 = vunpack.i.l.bf16 %v4800_v42 }
 0x270   :  { %v654_v45 = vsel %vm60_vm0, 0.0, %v4802_v43  ;;  %v653_v23 = vsel %vm60_vm0, 0.0, %v4801_v44  ;;  %v813_v44 = vld [vmem:[%s9088_s6] sm:$0xff] }
 0x271   :  { %v662_v46 = vsel %vm62_vm1, %v654_v45, 0.0  ;;  %v661_v47 = vsel %vm62_vm1, %v653_v23, 0.0  ;;  %v4805_v48 = vpop.permute.xlu0 %4804  ;;  %v815_v45 = vld [vmem:[%s9088_s6 + $0x10] sm:$0xff] }
 0x272   :  { %v4807_v49 = vunpack.i.h.bf16 %v4805_v48  ;;  %v4806_v50 = vunpack.i.l.bf16 %v4805_v48  ;;  %v4838_v51 = vpack.i.bf16 %v662_v46, %v661_v47 }
 0x274   :  { %v656_v52 = vsel %vm60_vm0, 0.0, %v4807_v49  ;;  %v655_v53 = vsel %vm60_vm0, 0.0, %v4806_v50  ;;  %4839 = vrot.lane.b32.xlu0 %v4838_v51, %s5660_s27  ;;  %4859 = vrot.lane.b32.xlu1 %v4838_v51, %s5661_s28 }
 0x275   :  { %v664_v54 = vsel %vm62_vm1, %v656_v52, 0.0  ;;  %v663_v55 = vsel %vm62_vm1, %v655_v53, 0.0  ;;  %v4810_v56 = vpop.permute.xlu1 %4809 }
 0x276   :  { %v4812_v57 = vunpack.i.h.bf16 %v4810_v56  ;;  %v4811_v58 = vunpack.i.l.bf16 %v4810_v56  ;;  %v4843_v59 = vpack.i.bf16 %v664_v54, %v663_v55 }
 0x278   :  { %v658_v60 = vsel %vm60_vm0, 0.0, %v4812_v57  ;;  %v657_v61 = vsel %vm60_vm0, 0.0, %v4811_v58  ;;  %4844 = vrot.lane.b32.xlu0 %v4843_v59, %s5660_s27 }
 0x279   :  { %v666_v63 = vsel %vm62_vm1, %v658_v60, 0.0  ;;  %v665_v0 = vsel %vm62_vm1, %v657_v61, 0.0  ;;  %v4815_v1 = vpop.permute.xlu0 %4814  ;;  %v4820_v2 = vpop.permute.xlu1 %4819 }
 0x27a   :  { %v4817_v3 = vunpack.i.h.bf16 %v4815_v1  ;;  %v4816_v4 = vunpack.i.l.bf16 %v4815_v1  ;;  %v4868_v5 = vpack.i.bf16 %v666_v63, %v665_v0  ;;  %v4822_v10 = vunpack.i.h.bf16 %v4820_v2 }
 0x27b   :  { %v4821_v11 = vunpack.i.l.bf16 %v4820_v2  ;;  %v806_v2 = vld [vmem:[%s9087_s5 + $0x8] sm:$0xff] }
 0x27c   :  { %v660_v6 = vsel %vm60_vm0, 0.0, %v4817_v3  ;;  %v659_v7 = vsel %vm60_vm0, 0.0, %v4816_v4  ;;  %4869 = vrot.lane.b32.xlu1 %v4868_v5, %s5661_s28  ;;  %4849 = vrot.lane.b32.xlu0 %v4868_v5, %s5660_s27  ;;  %v363_v14 = vsel %vm60_vm0, 0.0, %v4822_v10 }
 0x27d   :  { %v668_v8 = vsel %vm62_vm1, %v660_v6, 0.0  ;;  %v667_v9 = vsel %vm62_vm1, %v659_v7, 0.0  ;;  %v4825_v12 = vpop.permute.xlu1 %4824  ;;  %v362_v15 = vsel %vm60_vm0, 0.0, %v4821_v11  ;;  %v371_v21 = vsel %vm62_vm1, %v363_v14, 0.0  ;;  %4404 = vmatprep.mubr.msk.f32.mxu0 %vm837_vm9, %v806_v2  ;;  %v814_v14 = vld [vmem:[%s9088_s6 + $0x8] sm:$0xff] }
 0x27e   :  { %v4853_v13 = vpack.i.bf16 %v668_v8, %v667_v9  ;;  %v4827_v16 = vunpack.i.h.bf16 %v4825_v12  ;;  %v4826_v19 = vunpack.i.l.bf16 %v4825_v12  ;;  %v370_v18 = vsel %vm62_vm1, %v362_v15, 0.0 }
 0x27f   :  { %v4893_v28 = vpack.i.bf16 %v371_v21, %v370_v18 }
 0x280   :  { %4879 = vrot.lane.b32.xlu1 %v4838_v51, %s5664_s3  ;;  %4854 = vrot.lane.b32.xlu0 %v4853_v13, %s5660_s27  ;;  %v365_v22 = vsel %vm60_vm0, 0.0, %v4827_v16  ;;  %v364_v24 = vsel %vm60_vm0, 0.0, %v4826_v19  ;;  %v816_v16 = vld [vmem:[%s9088_s6 + $0x18] sm:$0xff]  ;;  %v939_v19 = vld [vmem:[%s9089_s7] sm:$0xff] }
 0x281   :  { %v4830_v20 = vpop.permute.xlu1 %4829  ;;  %v373_v30 = vsel %vm62_vm1, %v365_v22, 0.0  ;;  %v372_v31 = vsel %vm62_vm1, %v364_v24, 0.0 }
 0x282   :  { %v4832_v25 = vunpack.i.h.bf16 %v4830_v20  ;;  %v4831_v26 = vunpack.i.l.bf16 %v4830_v20  ;;  %v4898_v35 = vpack.i.bf16 %v373_v30, %v372_v31  ;;  %v940_v20 = vld [vmem:[%s9089_s7 + $0x8] sm:$0xff] }
 0x284   :  { %4889 = vrot.lane.b32.xlu1 %v4868_v5, %s5664_s3  ;;  %4864 = vrot.lane.b32.xlu0 %v4843_v59, %s5661_s28  ;;  %v367_v32 = vsel %vm60_vm0, 0.0, %v4832_v25  ;;  %v366_v33 = vsel %vm60_vm0, 0.0, %v4831_v26 }
 0x285   :  { %v4835_v27 = vpop.permute.xlu1 %4834  ;;  %v375_v36 = vsel %vm62_vm1, %v367_v32, 0.0  ;;  %v374_v37 = vsel %vm62_vm1, %v366_v33, 0.0 }
 0x286   :  { %v4837_v34 = vunpack.i.h.bf16 %v4835_v27  ;;  %v4836_v17 = vunpack.i.l.bf16 %v4835_v27  ;;  %v4903_v40 = vpack.i.bf16 %v375_v36, %v374_v37 }
 0x288   :  { %4894 = vrot.lane.b32.xlu1 %v4893_v28, %s5660_s27  ;;  %4874 = vrot.lane.b32.xlu0 %v4853_v13, %s5661_s28  ;;  %v369_v38 = vsel %vm60_vm0, 0.0, %v4837_v34  ;;  %v368_v39 = vsel %vm60_vm0, 0.0, %v4836_v17  ;;  %vm1325_vm0 = vcmask 588800  }
 0x289   :  { %v377_v41 = vsel %vm62_vm1, %v369_v38, 0.0  ;;  %v376_v42 = vsel %vm62_vm1, %v368_v39, 0.0  ;;  %vm1327_vm1 = vcmask 662528  }
 0x28a   :  { %v4908_v43 = vpack.i.bf16 %v377_v41, %v376_v42 }
 0x28c   :  { %4899 = vrot.lane.b32.xlu1 %v4898_v35, %s5660_s27  ;;  %4884 = vrot.lane.b32.xlu0 %v4843_v59, %s5664_s3 }
 0x290   :  { %4904 = vrot.lane.b32.xlu1 %v4903_v40, %s5660_s27  ;;  %4919 = vrot.lane.b32.xlu0 %v4853_v13, %s5664_s3 }
 0x294   :  { %4909 = vrot.lane.b32.xlu1 %v4908_v43, %s5660_s27  ;;  %s5669_s27 = smov 99  }
 0x298   :  { %4914 = vrot.lane.b32.xlu1 %v4893_v28, %s5661_s28 }
 0x29c   :  { %4949 = vrot.lane.b32.xlu1 %v4898_v35, %s5661_s28 }
 0x2a0   :  { %4959 = vrot.lane.b32.xlu1 %v4903_v40, %s5661_s28 }
 0x2a4   :  { %4969 = vrot.lane.b32.xlu1 %v4908_v43, %s5661_s28 }
 0x2a8   :  { %819 = vperm.xlu1 %4797, %v813_v44  }
 0x2ac   :  { %829 = vperm.xlu1 %4797, %v815_v45  }
 0x2e6   :  { %v4840_v23 = vpop.permute.xlu0 %4839  ;;  %v4860_v47 = vpop.permute.xlu1 %4859 }
 0x2e7   :  { %4924 = vrot.lane.b32.xlu0 %v4840_v23, %s5664_s3 }
 0x2ea   :  { %v4845_v46 = vpop.permute.xlu0 %4844 }
 0x2eb   :  { %4929 = vrot.lane.b32.xlu0 %v4845_v46, %s5664_s3 }
 0x2ee   :  { %v4870_v48 = vpop.permute.xlu1 %4869  ;;  %v4850_v49 = vpop.permute.xlu0 %4849 }
 0x2ef   :  { %4934 = vrot.lane.b32.xlu0 %v4850_v49, %s5664_s3 }
 0x2f2   :  { %v4880_v50 = vpop.permute.xlu1 %4879  ;;  %v4855_v51 = vpop.permute.xlu0 %4854 }
 0x2f3   :  { %v4882_v52 = vunpack.i.h.bf16 %v4880_v50  ;;  %v4881_v53 = vunpack.i.l.bf16 %v4880_v50  ;;  %4939 = vrot.lane.b32.xlu0 %v4855_v51, %s5664_s3 }
 0x2f5   :  { %v782_v54 = vsel %vm190_vm4, %v371_v21, %v4882_v52  ;;  %v781_v55 = vsel %vm190_vm4, %v370_v18, %v4881_v53  ;;  %v4703_v21 = vpack.c.bf16 %v940_v20, %v939_v19 }
 0x2f6   :  { %v4668_v56 = vpack.c.bf16 %v782_v54, %v781_v55  ;;  %v4865_v57 = vpop.permute.xlu0 %4864  ;;  %v4890_v59 = vpop.permute.xlu1 %4889 }
 0x2f7   :  { %4944 = vrot.lane.b32.xlu0 %v4860_v47, %s5664_s3  ;;  %v4892_v61 = vunpack.i.h.bf16 %v4890_v59  ;;  %v4891_v63 = vunpack.i.l.bf16 %v4890_v59  ;;  %4704 = vmatprep.subr.bf16.mxu1 %v4703_v21 }
 0x2f8   :  { %4669 = vmatpush1.bf16.msra.mxu0 %v4668_v56  ;;  %4706 = vmatpush3.bf16.msra.mxu1 %v4703_v21 }
 0x2f9   :  { %4670 = vmatprep.subr.bf16.mxu0 %v9102_v62  ;;  %v786_v7 = vsel %vm190_vm4, %v375_v36, %v4892_v61  ;;  %v785_v8 = vsel %vm190_vm4, %v374_v37, %v4891_v63 }
 0x2fa   :  { %v4875_v58 = vpop.permute.xlu0 %4874  ;;  %v4674_v11 = vpack.c.bf16 %v786_v7, %v785_v8  ;;  %v4895_v18 = vpop.permute.xlu1 %4894 }
 0x2fb   :  { %4954 = vrot.lane.b32.xlu0 %v4865_v57, %s5664_s3  ;;  %v4897_v26 = vunpack.i.h.bf16 %v4895_v18  ;;  %v4896_v27 = vunpack.i.l.bf16 %v4895_v18 }
 0x2fe   :  { %v4885_v60 = vpop.permute.xlu0 %4884  ;;  %v4900_v22 = vpop.permute.xlu1 %4899 }
 0x2ff   :  { %v4887_v0 = vunpack.i.h.bf16 %v4885_v60  ;;  %v4886_v1 = vunpack.i.l.bf16 %v4885_v60  ;;  %4964 = vrot.lane.b32.xlu0 %v4870_v48, %s5664_s3  ;;  %v4902_v35 = vunpack.i.h.bf16 %v4900_v22  ;;  %v4901_v36 = vunpack.i.l.bf16 %v4900_v22 }
 0x301   :  { %v784_v3 = vsel %vm190_vm4, %v373_v30, %v4887_v0  ;;  %v783_v4 = vsel %vm190_vm4, %v372_v31, %v4886_v1 }
 0x302   :  { %v4671_v5 = vpack.c.bf16 %v784_v3, %v783_v4  ;;  %v4920_v6 = vpop.permute.xlu0 %4919  ;;  %v4905_v24 = vpop.permute.xlu1 %4904 }
 0x303   :  { %v4922_v9 = vunpack.i.h.bf16 %v4920_v6  ;;  %v4921_v10 = vunpack.i.l.bf16 %v4920_v6  ;;  %4974 = vrot.lane.b32.xlu0 %v4875_v58, %s5664_s3  ;;  %v4907_v44 = vunpack.i.h.bf16 %v4905_v24  ;;  %v4906_v45 = vunpack.i.l.bf16 %v4905_v24 }
 0x304   :  { %4672 = vmatpush1.bf16.msra.mxu0 %v4671_v5 }
 0x305   :  { %4673 = vmatprep.subr.bf16.mxu0 %v9102_v62  ;;  %v788_v12 = vsel %vm190_vm4, %v377_v41, %v4922_v9  ;;  %v787_v13 = vsel %vm190_vm4, %v376_v42, %v4921_v10 }
 0x306   :  { %v4677_v15 = vpack.c.bf16 %v788_v12, %v787_v13  ;;  %v4910_v31 = vpop.permute.xlu1 %4909 }
 0x307   :  { %824 = vperm.xlu0 %4796, %v814_v14   ;;  %v4912_v51 = vunpack.i.h.bf16 %v4910_v31  ;;  %v4911_v52 = vunpack.i.l.bf16 %v4910_v31 }
 0x308   :  { %4675 = vmatpush1.bf16.msra.mxu0 %v4674_v11 }
 0x309   :  { %4676 = vmatprep.subr.bf16.mxu0 %v9102_v62 }
 0x30a   :  { %v4915_v42 = vpop.permute.xlu1 %4914 }
 0x30b   :  { %834 = vperm.xlu0 %4796, %v816_v16   ;;  %v4917_v60 = vunpack.i.h.bf16 %v4915_v42  ;;  %v4916_v61 = vunpack.i.l.bf16 %v4915_v42  ;;  %v943_v42 = vld [vmem:[%s9089_s7 + $0x20] sm:$0xf] }
 0x30c   :  { %4678 = vmatpush1.bf16.msra.mxu0 %v4677_v15 }
 0x30d   :  { %4679 = vmatprep.subr.bf16.mxu0 %v9102_v62 }
 0x30e   :  { %v4950_v55 = vpop.permute.xlu1 %4949 }
 0x30f   :  { %v4952_v6 = vunpack.i.h.bf16 %v4950_v55  ;;  %v4951_v7 = vunpack.i.l.bf16 %v4950_v55 }
 0x312   :  { %v4960_v3 = vpop.permute.xlu1 %4959 }
 0x313   :  { %v4962_v14 = vunpack.i.h.bf16 %v4960_v3  ;;  %v4961_v15 = vunpack.i.l.bf16 %v4960_v3 }
 0x316   :  { %v4970_v20 = vpop.permute.xlu1 %4969 }
 0x359   :  { %v4925_v25 = vpop.permute.xlu0 %4924 }
 0x35a   :  { %v4927_v28 = vunpack.i.h.bf16 %v4925_v25  ;;  %v4926_v30 = vunpack.i.l.bf16 %v4925_v25  ;;  %v4972_v25 = vunpack.i.h.bf16 %v4970_v20 }
 0x35c   :  { %v790_v32 = vsel %vm190_vm4, %v4897_v26, %v4927_v28  ;;  %v789_v33 = vsel %vm190_vm4, %v4896_v27, %v4926_v30  ;;  %v4971_v26 = vunpack.i.l.bf16 %v4970_v20 }
 0x35d   :  { %v4680_v34 = vpack.c.bf16 %v790_v32, %v789_v33  ;;  %v4930_v17 = vpop.permute.xlu0 %4929  ;;  %v805_v33 = vld [vmem:[%s9087_s5] sm:$0xff] }
 0x35e   :  { %v4932_v37 = vunpack.i.h.bf16 %v4930_v17  ;;  %v4931_v38 = vunpack.i.l.bf16 %v4930_v17  ;;  %v807_v17 = vld [vmem:[%s9087_s5 + $0x10] sm:$0xff] }
 0x35f   :  { %4681 = vmatpush1.bf16.msra.mxu0 %v4680_v34  ;;  %v808_v34 = vld [vmem:[%s9087_s5 + $0x18] sm:$0xff] }
 0x360   :  { %v792_v39 = vsel %vm190_vm4, %v4902_v35, %v4932_v37  ;;  %v791_v40 = vsel %vm190_vm4, %v4901_v36, %v4931_v38  ;;  %4682 = vmatprep.subr.bf16.mxu0 %v9102_v62  ;;  %v810_v35 = vld [vmem:[%s9087_s5 + $0x28] sm:$0xff]  ;;  %v809_v36 = vld [vmem:[%s9087_s5 + $0x20] sm:$0xff]  ;;  %v812_v37 = vld [vmem:[%s9087_s5 + $0x38] sm:$0xff] }
 0x361   :  { %v4683_v41 = vpack.c.bf16 %v792_v39, %v791_v40  ;;  %v4935_v43 = vpop.permute.xlu0 %4934  ;;  %v811_v38 = vld [vmem:[%s9087_s5 + $0x30] sm:$0xff]  ;;  %v942_v40 = vld [vmem:[%s9089_s7 + $0x18] sm:$0xff]  ;;  %s5665_s5 = smov 110  }
 0x362   :  { %v4937_v23 = vunpack.i.h.bf16 %v4935_v43  ;;  %v4936_v46 = vunpack.i.l.bf16 %v4935_v43  ;;  %v941_v39 = vld [vmem:[%s9089_s7 + $0x10] sm:$0xff]  ;;  %v820_v43 = vpop.permute.xlu1 %819  ;;  %s5666_s7 = smov 119  }
 0x363   :  { %4684 = vmatpush1.bf16.msra.mxu0 %v4683_v41  ;;  %v4707_v41 = vpack.c.bf16 %v942_v40, %v941_v39 }
 0x364   :  { %4685 = vmatprep.subr.bf16.mxu0 %v9102_v62  ;;  %v794_v47 = vsel %vm190_vm4, %v4907_v44, %v4937_v23  ;;  %v793_v48 = vsel %vm190_vm4, %v4906_v45, %v4936_v46 }
 0x365   :  { %v4686_v49 = vpack.c.bf16 %v794_v47, %v793_v48  ;;  %v4940_v50 = vpop.permute.xlu0 %4939  ;;  %4708 = vmatprep.subr.bf16.mxu1 %v4707_v41 }
 0x366   :  { %v4942_v53 = vunpack.i.h.bf16 %v4940_v50  ;;  %v4941_v54 = vunpack.i.l.bf16 %v4940_v50  ;;  %4710 = vmatpush3.bf16.msra.mxu1 %v4707_v41 }
 0x367   :  { %4687 = vmatpush1.bf16.msra.mxu0 %v4686_v49  ;;  %4616 = vmatprep.subr.msk.mxu1 %vm9101_vm6, %v943_v42 }
 0x368   :  { %v796_v56 = vsel %vm190_vm4, %v4912_v51, %v4942_v53  ;;  %v795_v57 = vsel %vm190_vm4, %v4911_v52, %v4941_v54  ;;  %4688 = vmatprep.subr.bf16.mxu0 %v9102_v62  ;;  %v830_v52 = vpop.permute.xlu1 %829 }
 0x369   :  { %v4689_v58 = vpack.c.bf16 %v796_v56, %v795_v57  ;;  %v4945_v59 = vpop.permute.xlu0 %4944 }
 0x36a   :  { %v4947_v63 = vunpack.i.h.bf16 %v4945_v59  ;;  %v4946_v0 = vunpack.i.l.bf16 %v4945_v59  ;;  %4617 = vmatpush3.msk.msra.mxu1 %vm9101_vm6, %v943_v42  ;;  %vm1337_vm6 = vcmask 1031168  }
 0x36b   :  { %4690 = vmatpush1.bf16.msra.mxu0 %v4689_v58 }
 0x36c   :  { %v798_v1 = vsel %vm190_vm4, %v4917_v60, %v4947_v63  ;;  %v797_v2 = vsel %vm190_vm4, %v4916_v61, %v4946_v0  ;;  %4691 = vmatprep.subr.bf16.mxu0 %v9102_v62 }
 0x36d   :  { %v4692_v4 = vpack.c.bf16 %v798_v1, %v797_v2  ;;  %v4955_v5 = vpop.permute.xlu0 %4954 }
 0x36e   :  { %v4957_v8 = vunpack.i.h.bf16 %v4955_v5  ;;  %v4956_v9 = vunpack.i.l.bf16 %v4955_v5 }
 0x36f   :  { %4693 = vmatpush1.bf16.msra.mxu0 %v4692_v4 }
 0x370   :  { %v800_v10 = vsel %vm190_vm4, %v4952_v6, %v4957_v8  ;;  %v799_v11 = vsel %vm190_vm4, %v4951_v7, %v4956_v9  ;;  %4694 = vmatprep.subr.bf16.mxu0 %v9102_v62 }
 0x371   :  { %v4695_v12 = vpack.c.bf16 %v800_v10, %v799_v11  ;;  %v4965_v13 = vpop.permute.xlu0 %4964 }
 0x372   :  { %v4967_v16 = vunpack.i.h.bf16 %v4965_v13  ;;  %v4966_v19 = vunpack.i.l.bf16 %v4965_v13 }
 0x373   :  { %4696 = vmatpush1.bf16.msra.mxu0 %v4695_v12 }
 0x374   :  { %v802_v21 = vsel %vm190_vm4, %v4962_v14, %v4967_v16  ;;  %v801_v18 = vsel %vm190_vm4, %v4961_v15, %v4966_v19  ;;  %4697 = vmatprep.subr.bf16.mxu0 %v9102_v62 }
 0x375   :  { %v4698_v22 = vpack.c.bf16 %v802_v21, %v801_v18  ;;  %v4975_v24 = vpop.permute.xlu0 %4974 }
 0x376   :  { %v4977_v27 = vunpack.i.h.bf16 %v4975_v24  ;;  %v4976_v28 = vunpack.i.l.bf16 %v4975_v24 }
 0x377   :  { %4699 = vmatpush1.bf16.msra.mxu0 %v4698_v22 }
 0x378   :  { %v804_v30 = vsel %vm190_vm4, %v4972_v25, %v4977_v27  ;;  %v803_v31 = vsel %vm190_vm4, %v4971_v26, %v4976_v28  ;;  %4700 = vmatprep.subr.bf16.mxu0 %v9102_v62  ;;  %v6782_v62 = vld [vmem:[%s9093_s11 + $0xe4] ss:$16 sps:$4 sm:$0xff]  }
 0x379   :  { %v4701_v32 = vpack.c.bf16 %v804_v30, %v803_v31  ;;  %9519 = vst [vmem:[#allocation26_spill] sm:$0xff] %v6782_v62 }
 0x37b   :  { %4702 = vmatpush1.bf16.msra.mxu0 %v4701_v32 }
 0x37e   :  { %915 = vmatmul.mubr.f32.vlgmr.msra.gmra.mrb[16].mxu0 %v805_v33 }
 0x37f   :  { %4405 = vmatprep.mubr.msk.f32.mxu0 %vm837_vm9, %v808_v34 }
 0x382   :  { %920 = vmatmul.mubr.f32.gmra.mrb[18].mxu0 %v807_v17 }
 0x383   :  { %4406 = vmatprep.mubr.msk.f32.mxu0 %vm837_vm9, %v810_v35 }
 0x386   :  { %925 = vmatmul.mubr.f32.gmra.mrb[20].mxu0 %v809_v36  ;;  %v825_v47 = vpop.permute.xlu0 %824 }
 0x387   :  { %4407 = vmatprep.mubr.msk.f32.mxu0 %vm837_vm9, %v812_v37  ;;  %vm1333_vm9 = vcmask 883712  }
 0x38a   :  { %930 = vmatmul.mubr.f32.gmra.mrb[22].mxu0 %v811_v38  ;;  %v835_v57 = vpop.permute.xlu0 %834 }
 0x38b   :  { %1934 = vmatprep.mubr.bf16.mxu0 %v9104_v29 }
 0x451   :  { %v916_v44 = vpop.f32.mrb[16].mxu0 }
 0x452   :  { %v917_v45 = vadd.f32 %v916_v44, %v820_v43  ;;  %v918_v23 = vpop.f32.mrb[17].mxu0 }
 0x454   :  { %v935_v46 = vmax.f32 %v917_v45, 0.0 }
 0x455   :  { %v921_v48 = vpop.f32.mrb[18].mxu0 }
 0x456   :  { %v922_v49 = vadd.f32 %v921_v48, %v825_v47  ;;  %4618 = vmatprep.mubr.msk.f32.mxu1 %vm944_vm10, %v935_v46  ;;  %v923_v50 = vpop.f32.mrb[19].mxu0 }
 0x458   :  { %v936_v51 = vmax.f32 %v922_v49, 0.0 }
 0x459   :  { %v926_v53 = vpop.f32.mrb[20].mxu0 }
 0x45a   :  { %v927_v54 = vadd.f32 %v926_v53, %v830_v52  ;;  %4619 = vmatmul.mubr.msk.f32.vlgmr.msra.gmra.mrb[0].mxu1 %vm944_vm10, %v936_v51  ;;  %v928_v55 = vpop.f32.mrb[21].mxu0 }
 0x45c   :  { %v937_v56 = vmax.f32 %v927_v54, 0.0 }
 0x45d   :  { %v931_v58 = vpop.f32.mrb[22].mxu0 }
 0x45e   :  { %v932_v59 = vadd.f32 %v931_v58, %v835_v57  ;;  %4621 = vmatprep.mubr.msk.f32.mxu1 %vm944_vm10, %v937_v56  ;;  %v933_v60 = vpop.f32.mrb[23].mxu0 }
 0x460   :  { %v938_v61 = vmax.f32 %v932_v59, 0.0 }
 0x462   :  { %4622 = vmatmul.mubr.msk.f32.gmra.mrb[2].mxu1 %vm944_vm10, %v938_v61 }
 0x463   :  { %1570 = vmatprep.mubr.bf16.mxu1 %v9104_v29 }
 0x52d   :  { %v4620_v63 = vpop.f32.mrb[0].mxu1 }
 0x52e   :  { %v1026_v0 = vpop.f32.mrb[1].mxu1 }
 0x52f   :  { %v4978_v1 = vpack.i.bf16 %v4620_v63, %v1026_v0 }
 0x535   :  { %v4623_v2 = vpop.f32.mrb[2].mxu1 }
 0x536   :  { %1055 = vrot.lane.b32.xlu0 %v4623_v2, %s5665_s5  ;;  %v1036_v3 = vpop.f32.mrb[3].mxu1 }
 0x537   :  { %1053 = vrot.lane.b32.xlu1 %v1036_v3, %s5665_s5 }
 0x53b   :  { %4979 = vrot.lane.b32.xlu1 %v4978_v1, %s5665_s5 }
 0x5a8   :  { %v1056_v4 = vpop.permute.xlu0 %1055 }
 0x5a9   :  { %v6097_v5 = vmax.f32 %v4623_v2, %v1056_v4  ;;  %v1054_v6 = vpop.permute.xlu1 %1053 }
 0x5aa   :  { %v6099_v7 = vmax.f32 %v1036_v3, %v1054_v6 }
 0x5ab   :  { %v1207_v13 = vrot.slane %v6097_v5, 7  ;;  %v1218_v21 = vrot.slane %v6097_v5, 2  ;;  %v1224_v18 = vrot.slane %v6097_v5, 3  ;;  %v1212_v26 = vrot.slane %v6097_v5, 1 }
 0x5ac   :  { %v1171_v8 = vrot.slane %v6099_v7, 2  ;;  %v1177_v9 = vrot.slane %v6099_v7, 3  ;;  %v1165_v10 = vrot.slane %v6099_v7, 1  ;;  %v1195_v12 = vrot.slane %v6099_v7, 6 }
 0x5ad   :  { %v4980_v11 = vpop.permute.xlu1 %4979  ;;  %v1183_v14 = vrot.slane %v6099_v7, 4  ;;  %v1189_v20 = vrot.slane %v6099_v7, 5  ;;  %v1230_v28 = vrot.slane %v6097_v5, 4  ;;  %v1236_v30 = vrot.slane %v6097_v5, 5 }
 0x5ae   :  { %v4981_v15 = vunpack.i.l.bf16 %v4980_v11  ;;  %v4988_v16 = vpack.i.bf16 %v1177_v9, %v1171_v8  ;;  %v4983_v19 = vpack.i.bf16 %v1165_v10, %v6099_v7  ;;  %v5003_v24 = vpack.i.bf16 %v1207_v13, %v1195_v12 }
 0x5af   :  { %v4993_v25 = vpack.i.bf16 %v1189_v20, %v1183_v14  ;;  %v4982_v27 = vunpack.i.h.bf16 %v4980_v11  ;;  %v5008_v31 = vpack.i.bf16 %v1224_v18, %v1218_v21  ;;  %v4998_v32 = vpack.i.bf16 %v1212_v26, %v6097_v5 }
 0x5b0   :  { %4989 = vrot.lane.b32.xlu1 %v4988_v16, %s5666_s7  ;;  %4984 = vrot.lane.b32.xlu0 %v4983_v19, %s5666_s7  ;;  %v6119_v22 = vmax.f32 %v1026_v0, %v4981_v15  ;;  %v5013_v35 = vpack.i.bf16 %v1236_v30, %v1230_v28  ;;  %v1160_v49 = vrot.slane %v6099_v7, 7 }
 0x5b1   :  { %v6141_v17 = vmax.f32 %v4620_v63, %v4982_v27 }
 0x5b2   :  { %v1071_v33 = vrot.slane %v6119_v22, 1  ;;  %v1077_v34 = vrot.slane %v6119_v22, 2  ;;  %v1083_v36 = vrot.slane %v6119_v22, 3  ;;  %v1089_v38 = vrot.slane %v6119_v22, 4 }
 0x5b3   :  { %v1095_v39 = vrot.slane %v6119_v22, 5  ;;  %v1101_v40 = vrot.slane %v6119_v22, 6  ;;  %v1113_v41 = vrot.slane %v6141_v17, 7  ;;  %v1118_v44 = vrot.slane %v6141_v17, 1 }
 0x5b4   :  { %5004 = vrot.lane.b32.xlu1 %v5003_v24, %s5666_s7  ;;  %4994 = vrot.lane.b32.xlu0 %v4993_v25, %s5666_s7  ;;  %v5018_v37 = vpack.i.bf16 %v1077_v34, %v1071_v33  ;;  %v5023_v42 = vpack.i.bf16 %v1089_v38, %v1083_v36  ;;  %v1124_v45 = vrot.slane %v6141_v17, 2  ;;  %v1130_v47 = vrot.slane %v6141_v17, 3 }
 0x5b5   :  { %v5028_v43 = vpack.i.bf16 %v1101_v40, %v1095_v39  ;;  %v5033_v23 = vpack.i.bf16 %v6141_v17, %v1113_v41  ;;  %v1136_v48 = vrot.slane %v6141_v17, 4  ;;  %v5048_v51 = vpack.i.bf16 %v6119_v22, %v1160_v49 }
 0x5b6   :  { %v5038_v46 = vpack.i.bf16 %v1124_v45, %v1118_v44 }
 0x5b7   :  { %v5043_v50 = vpack.i.bf16 %v1136_v48, %v1130_v47 }
 0x5b8   :  { %5009 = vrot.lane.b32.xlu1 %v5008_v31, %s5666_s7  ;;  %4999 = vrot.lane.b32.xlu0 %v4998_v32, %s5666_s7 }
 0x5bc   :  { %5014 = vrot.lane.b32.xlu0 %v5013_v35, %s5666_s7  ;;  %5019 = vrot.lane.b32.xlu1 %v5018_v37, %s5666_s7  ;;  %v1142_v37 = vrot.slane %v6141_v17, 5 }
 0x5c0   :  { %5024 = vrot.lane.b32.xlu0 %v5023_v42, %s5666_s7  ;;  %5029 = vrot.lane.b32.xlu1 %v5028_v43, %s5666_s7  ;;  %v1148_v42 = vrot.slane %v6141_v17, 6 }
 0x5c4   :  { %5034 = vrot.lane.b32.xlu0 %v5033_v23, %s5666_s7  ;;  %5039 = vrot.lane.b32.xlu1 %v5038_v46, %s5666_s7  ;;  %v1242_v46 = vrot.slane %v6097_v5, 6 }
 0x5c8   :  { %5044 = vrot.lane.b32.xlu0 %v5043_v50, %s5666_s7  ;;  %5049 = vrot.lane.b32.xlu1 %v5048_v51, %s5666_s7 }
 0x622   :  { %v4985_v52 = vpop.permute.xlu0 %4984  ;;  %v4990_v53 = vpop.permute.xlu1 %4989 }
 0x623   :  { %v4986_v63 = vunpack.i.l.bf16 %v4985_v52  ;;  %v4991_v0 = vunpack.i.l.bf16 %v4990_v53  ;;  %v4992_v4 = vunpack.i.h.bf16 %v4990_v53  ;;  %v4987_v16 = vunpack.i.h.bf16 %v4985_v52 }
 0x624   :  { %v1066_v53 = vrot.slane %v6119_v22, 7 }
 0x625   :  { %v1170_v11 = vsel %vm67_vm2, %v1165_v10, %v4986_v63  ;;  %v1182_v15 = vsel %vm67_vm2, %v1177_v9, %v4991_v0  ;;  %v1188_v10 = vsel %vm67_vm2, %v1183_v14, %v4992_v4 }
 0x626   :  { %v4995_v54 = vpop.permute.xlu0 %4994  ;;  %v5005_v55 = vpop.permute.xlu1 %5004 }
 0x627   :  { %v5007_v56 = vunpack.i.h.bf16 %v5005_v55  ;;  %v5006_v19 = vunpack.i.l.bf16 %v5005_v55  ;;  %v4996_v9 = vunpack.i.l.bf16 %v4995_v54  ;;  %v4997_v31 = vunpack.i.h.bf16 %v4995_v54 }
 0x629   :  { %v1211_v57 = vsel %vm67_vm2, %v6097_v5, %v5007_v56  ;;  %v1194_v35 = vsel %vm67_vm2, %v1189_v20, %v4996_v9  ;;  %v1200_v43 = vsel %vm67_vm2, %v1195_v12, %v4997_v31 }
 0x62a   :  { %v5000_v58 = vpop.permute.xlu0 %4999  ;;  %v5010_v59 = vpop.permute.xlu1 %5009  ;;  %1370 = vrot.lane.b32.xlu1 %v1211_v57, %s5667_s21 }
 0x62b   :  { %v5001_v60 = vunpack.i.l.bf16 %v5000_v58  ;;  %v5011_v61 = vunpack.i.l.bf16 %v5010_v59  ;;  %v5002_v6 = vunpack.i.h.bf16 %v5000_v58  ;;  %v5012_v25 = vunpack.i.h.bf16 %v5010_v59 }
 0x62d   :  { %v1217_v1 = vsel %vm67_vm2, %v1212_v26, %v5001_v60  ;;  %v1229_v2 = vsel %vm67_vm2, %v1224_v18, %v5011_v61  ;;  %v1223_v18 = vsel %vm67_vm2, %v1218_v21, %v5002_v6  ;;  %v1176_v26 = vsel %vm67_vm2, %v1171_v8, %v4987_v16 }
 0x62e   :  { %1374 = vrot.lane.b32.xlu0 %v1217_v1, %s5668_s22  ;;  %1382 = vrot.lane.b32.xlu1 %v1229_v2, %s5669_s27  ;;  %v6196_v3 = vpop.permute.xlu1 %5019  ;;  %v1205_v21 = vsel %vm67_vm2, %v1160_v49, %v5006_v19  ;;  %v5015_v27 = vpop.permute.xlu0 %5014  ;;  %v1235_v8 = vsel %vm67_vm2, %v1230_v28, %v5012_v25  ;;  %v5053_v28 = vpack.i.bf16 %v1148_v42, %v1142_v37 }
 0x62f   :  { %v5016_v32 = vunpack.i.l.bf16 %v5015_v27  ;;  %v5017_v49 = vunpack.i.h.bf16 %v5015_v27  ;;  %v5021_v54 = vunpack.i.l.bf16 %v6196_v3 }
 0x631   :  { %v1241_v20 = vsel %vm67_vm2, %v1236_v30, %v5016_v32  ;;  %v5022_v30 = vunpack.i.h.bf16 %v6196_v3  ;;  %v1247_v50 = vsel %vm67_vm2, %v1242_v46, %v5017_v49  ;;  %v1082_v59 = vsel %vm67_vm2, %v1077_v34, %v5021_v54 }
 0x632   :  { %1342 = vrot.lane.b32.xlu0 %v1170_v11, %s5670_s23  ;;  %1350 = vrot.lane.b32.xlu1 %v1182_v15, %s5671_s25  ;;  %v6212_v24 = vpop.permute.xlu1 %5029  ;;  %v5025_v52 = vpop.permute.xlu0 %5024 }
 0x633   :  { %v5027_v55 = vunpack.i.h.bf16 %v5025_v52  ;;  %v1088_v56 = vsel %vm67_vm2, %v1083_v36, %v5022_v30  ;;  %v5026_v57 = vunpack.i.l.bf16 %v5025_v52  ;;  %v5031_v36 = vunpack.i.l.bf16 %v6212_v24 }
 0x635   :  { %v1100_v58 = vsel %vm67_vm2, %v1095_v39, %v5027_v55  ;;  %v1094_v63 = vsel %vm67_vm2, %v1089_v38, %v5026_v57  ;;  %v1106_v1 = vsel %vm67_vm2, %v1101_v40, %v5031_v36 }
 0x636   :  { %1378 = vrot.lane.b32.xlu0 %v1223_v18, %s5672_s26  ;;  %1354 = vrot.lane.b32.xlu1 %v1188_v10, %s5673_s29  ;;  %v6222_v14 = vpop.permute.xlu1 %5039  ;;  %v5035_v60 = vpop.permute.xlu0 %5034 }
 0x637   :  { %v5037_v61 = vunpack.i.h.bf16 %v5035_v60  ;;  %v5036_v39 = vunpack.i.l.bf16 %v5035_v60  ;;  %v5042_v34 = vunpack.i.h.bf16 %v6222_v14  ;;  %v5041_v38 = vunpack.i.l.bf16 %v6222_v14 }
 0x639   :  { %v1123_v2 = vsel %vm67_vm2, %v1118_v44, %v5037_v61  ;;  %v1117_v6 = vsel %vm67_vm2, %v6141_v17, %v5036_v39  ;;  %v1135_v11 = vsel %vm67_vm2, %v1130_v47, %v5042_v34  ;;  %v1129_v44 = vsel %vm67_vm2, %v1124_v45, %v5041_v38  ;;  %v6340_v17 = vld [vmem:[%s9091_s9 + $0x8] ss:$16 sps:$4 sm:$0xff]  }
 0x63a   :  { %1346 = vrot.lane.b32.xlu0 %v1176_v26, %s5664_s3  ;;  %1366 = vrot.lane.b32.xlu1 %v1205_v21, %s5674_s30  ;;  %v6240_v23 = vpop.permute.xlu1 %5049  ;;  %v5045_v3 = vpop.permute.xlu0 %5044 }
 0x63b   :  { %v5052_v12 = vunpack.i.h.bf16 %v6240_v23  ;;  %v5047_v4 = vunpack.i.h.bf16 %v5045_v3  ;;  %v5046_v40 = vunpack.i.l.bf16 %v5045_v3  ;;  %v5051_v9 = vunpack.i.l.bf16 %v6240_v23 }
 0x63d   :  { %v1076_v51 = vsel %vm67_vm2, %v1071_v33, %v5052_v12  ;;  %v5032_v33 = vunpack.i.h.bf16 %v6212_v24  ;;  %v1147_v15 = vsel %vm67_vm2, %v1142_v37, %v5047_v4  ;;  %v1141_v16 = vsel %vm67_vm2, %v1136_v48, %v5046_v40 }
 0x63e   :  { %1358 = vrot.lane.b32.xlu0 %v1194_v35, %s5675_s0  ;;  %1386 = vrot.lane.b32.xlu1 %v1235_v8, %s5676_s17  ;;  %v1164_v26 = vsel %vm67_vm2, %v6099_v7, %v5051_v9 }
 0x63f   :  { %v1111_v0 = vsel %vm67_vm2, %v1066_v53, %v5032_v33 }
 0x642   :  { %1362 = vrot.lane.b32.xlu0 %v1200_v43, %s5677_s18  ;;  %1390 = vrot.lane.b32.xlu1 %v1241_v20, %s5678_s19 }
 0x646   :  { %5054 = vrot.lane.b32.xlu0 %v5053_v28, %s5666_s7  ;;  %1249 = vrot.lane.b32.xlu1 %v1242_v46, %s5666_s7 }
 0x64a   :  { %1394 = vrot.lane.b32.xlu0 %v1247_v50, %s5661_s28  ;;  %1254 = vrot.lane.b32.xlu1 %v1076_v51, %s5670_s23  ;;  %s5681_s23 = smov 64  }
 0x64e   :  { %1262 = vrot.lane.b32.xlu1 %v1088_v56, %s5671_s25  ;;  %1067 = vrot.lane.b32.xlu0 %v1066_v53, %s5666_s7  ;;  %s5682_s25 = smov 96  }
 0x652   :  { %1270 = vrot.lane.b32.xlu1 %v1100_v58, %s5675_s0  ;;  %1258 = vrot.lane.b32.xlu0 %v1082_v59, %s5664_s3  ;;  %s5679_s3 = smov 7   ;;  %v6335_v58 = vld [vmem:[%s9091_s9 + $0xc] ss:$16 sps:$4 sm:$0xff]  }
 0x653   :  { %9497 = vst [vmem:[#allocation8_spill] sm:$0xff] %v6335_v58  ;;  %1902 = vmatprep.subr.bf16.mxu0 %v6335_v58 }
 0x654   :  { %1903 = vmatpush1.bf16.msra.mxu0 %v6340_v17 }
 0x656   :  { %1266 = vrot.lane.b32.xlu0 %v1094_v63, %s5673_s29  ;;  %1278 = vrot.lane.b32.xlu1 %v1111_v0, %s5674_s30 }
 0x65a   :  { %1274 = vrot.lane.b32.xlu0 %v1106_v1, %s5677_s18  ;;  %1286 = vrot.lane.b32.xlu1 %v1123_v2, %s5668_s22 }
 0x65e   :  { %1282 = vrot.lane.b32.xlu0 %v1117_v6, %s5667_s21  ;;  %1294 = vrot.lane.b32.xlu1 %v1135_v11, %s5669_s27 }
 0x662   :  { %1290 = vrot.lane.b32.xlu0 %v1129_v44, %s5672_s26  ;;  %1302 = vrot.lane.b32.xlu1 %v1147_v15, %s5678_s19 }
 0x666   :  { %1298 = vrot.lane.b32.xlu0 %v1141_v16, %s5676_s17  ;;  %s5683_s17 = smov 32  }
 0x69c   :  { %v1371_v47 = vpop.permute.xlu1 %1370 }
 0x6a0   :  { %v1375_v19 = vpop.permute.xlu0 %1374  ;;  %v1383_v18 = vpop.permute.xlu1 %1382 }
 0x6a4   :  { %v1343_v10 = vpop.permute.xlu0 %1342  ;;  %v1351_v24 = vpop.permute.xlu1 %1350 }
 0x6a5   :  { %v1401_v21 = vsel %vm1313_vm11, %v1164_v26, %v1343_v10  ;;  %v5079_v26 = vld [vmem:[%s9090_s8] ss:$16 sps:$4 sm:$0xff]  }
 0x6a8   :  { %v1379_v45 = vpop.permute.xlu0 %1378  ;;  %v1355_v25 = vpop.permute.xlu1 %1354 }
 0x6ac   :  { %v1347_v27 = vpop.permute.xlu0 %1346  ;;  %v1367_v48 = vpop.permute.xlu1 %1366 }
 0x6ad   :  { %v1402_v14 = vsel %vm190_vm4, %v1401_v21, %v1347_v27  ;;  %v5081_v21 = vld [vmem:[%s9090_s8 + $0x4] ss:$16 sps:$4 sm:$0xff]  }
 0x6ae   :  { %v1403_v31 = vsel %vm1316_vm12, %v1402_v14, %v1351_v24  ;;  %1538 = vmatprep.subr.bf16.mxu1 %v5081_v21  ;;  %v6520_v21 = vld [vmem:[%s9091_s9 + $0x24] ss:$16 sps:$4 sm:$0xff]  }
 0x6af   :  { %v1404_v8 = vsel %vm944_vm10, %v1403_v31, %v1355_v25  ;;  %v6374_v25 = vld [vmem:[%s9091_s9 + $0x28] ss:$16 sps:$4 sm:$0xff]   ;;  %1539 = vmatpush1.bf16.msra.mxu1 %v5079_v26  ;;  %v6515_v26 = vld [vmem:[%s9091_s9] ss:$16 sps:$4 sm:$0xff]  }
 0x6b0   :  { %v1359_v32 = vpop.permute.xlu0 %1358  ;;  %v1387_v35 = vpop.permute.xlu1 %1386 }
 0x6b1   :  { %v1405_v37 = vsel %vm1319_vm13, %v1404_v8, %v1359_v32  ;;  %v5085_v8 = vld [vmem:[%s9090_s8 + $0x20] ss:$16 sps:$4 sm:$0xff]  }
 0x6b4   :  { %v1363_v7 = vpop.permute.xlu0 %1362  ;;  %v1391_v43 = vpop.permute.xlu1 %1390 }
 0x6b5   :  { %v1406_v20 = vsel %vm1321_vm14, %v1405_v37, %v1363_v7  ;;  %v5087_v37 = vld [vmem:[%s9090_s8 + $0x24] ss:$16 sps:$4 sm:$0xff]  }
 0x6b6   :  { %v1407_v23 = vsel %vm1323_vm15, %v1406_v20, %v1367_v48  ;;  %v6385_v48 = vld [vmem:[%s9091_s9 + $0x4c] ss:$16 sps:$4 sm:$0xff]   ;;  %1540 = vmatprep.subr.bf16.mxu1 %v5087_v37  ;;  %v6560_v37 = vld [vmem:[%s9091_s9 + $0x84] ss:$16 sps:$4 sm:$0xff]  }
 0x6b7   :  { %v1408_v28 = vsel %vm1325_vm0, %v1407_v23, %v1371_v47  ;;  %1541 = vmatpush1.bf16.msra.mxu1 %v5085_v8  ;;  %v6553_v8 = vld [vmem:[%s9091_s9 + $0x60] ss:$16 sps:$4 sm:$0xff]  }
 0x6b8   :  { %v1409_v46 = vsel %vm1327_vm1, %v1408_v28, %v1375_v19  ;;  %v5055_v49 = vpop.permute.xlu0 %5054  ;;  %v1250_v12 = vpop.permute.xlu1 %1249 }
 0x6b9   :  { %v1410_v30 = vsel %vm1329_vm3, %v1409_v46, %v1379_v45  ;;  %v5057_v50 = vunpack.i.h.bf16 %v5055_v49  ;;  %v5056_v51 = vunpack.i.l.bf16 %v5055_v49  ;;  %v6420_v49 = vld [vmem:[%s9091_s9 + $0x68] ss:$16 sps:$4 sm:$0xff]  }
 0x6ba   :  { %v1411_v52 = vsel %vm1331_vm7, %v1410_v30, %v1383_v18 }
 0x6bb   :  { %v1412_v53 = vsel %vm1333_vm9, %v1411_v52, %v1387_v35  ;;  %v1153_v54 = vsel %vm67_vm2, %v1148_v42, %v5056_v51  ;;  %v1158_v55 = vsel %vm67_vm2, %v1113_v41, %v5057_v50  ;;  %v6345_v41 = vld [vmem:[%s9091_s9 + $0x2c] ss:$16 sps:$4 sm:$0xff]   ;;  %v1252_v42 = vsel %vm67_vm2, %v1207_v13, %v1250_v12  ;;  %v6398_v35 = vld [vmem:[%s9091_s9 + $0x48] ss:$16 sps:$4 sm:$0xff]  }
 0x6bc   :  { %v1413_v56 = vsel %vm1335_vm8, %v1412_v53, %v1391_v43  ;;  %v6329_v57 = vpop.permute.xlu0 %1394  ;;  %v1255_v33 = vpop.permute.xlu1 %1254  ;;  %1306 = vrot.lane.b32.xlu0 %v1153_v54, %s5661_s28  ;;  %1310 = vrot.lane.b32.xlu1 %v1158_v55, %s5679_s3  ;;  %s5680_s28 = smov 16   ;;  %v6411_v43 = vld [vmem:[%s9091_s9 + $0x6c] ss:$16 sps:$4 sm:$0xff]   ;;  %v6435_v55 = vld [vmem:[%s9091_s9 + $0x88] ss:$16 sps:$4 sm:$0xff]  }
 0x6bd   :  { %v1414_v59 = vsel %vm1337_vm6, %v1413_v56, %v6329_v57  ;;  %1904 = vmatprep.subr.bf16.mxu0 %v6345_v41  ;;  %v5096_v12 = vld [vmem:[%s9090_s8 + $0xc] ss:$16 sps:$4 sm:$0xff]  }
 0x6be   :  { %1905 = vmatpush1.bf16.msra.mxu0 %v6374_v25  ;;  %v6428_v52 = vld [vmem:[%s9091_s9 + $0x8c] ss:$16 sps:$4 sm:$0xff]   ;;  %1589 = vmatprep.subr.bf16.mxu1 %v5096_v12  ;;  %v6596_v12 = vld [vmem:[%s9091_s9 + $0xe4] ss:$16 sps:$4 sm:$0xff]  }
 0x6bf   :  { %1906 = vmatprep.subr.bf16.mxu0 %v6385_v48 }
 0x6c0   :  { %v1263_v60 = vpop.permute.xlu1 %1262  ;;  %1418 = vrot.lane.b32.xlu0 %v1414_v59, %s5680_s28  ;;  %v1068_v36 = vpop.permute.xlu0 %1067  ;;  %1398 = vrot.lane.b32.xlu1 %v1252_v42, %s5679_s3  ;;  %v6450_v59 = vld [vmem:[%s9091_s9 + $0xa8] ss:$16 sps:$4 sm:$0xff]  }
 0x6c1   :  { %v1070_v61 = vsel %vm67_vm2, %v6119_v22, %v1068_v36  ;;  %vm1339_vm2 = vcmask 56320   ;;  %v6468_v36 = vld [vmem:[%s9091_s9 + $0xec] ss:$16 sps:$4 sm:$0xff]  }
 0x6c2   :  { %v1314_v5 = vsel %vm1313_vm11, %v1070_v61, %v1255_v33  ;;  %1907 = vmatpush1.bf16.msra.mxu0 %v6398_v35  ;;  %v6441_v33 = vld [vmem:[%s9091_s9 + $0xac] ss:$16 sps:$4 sm:$0xff]   ;;  %v6474_v61 = vld [vmem:[%s9091_s9 + $0xe8] ss:$16 sps:$4 sm:$0xff]  }
 0x6c3   :  { %1908 = vmatprep.subr.bf16.mxu0 %v6411_v43 }
 0x6c4   :  { %v1271_v63 = vpop.permute.xlu1 %1270  ;;  %v1259_v13 = vpop.permute.xlu0 %1258 }
 0x6c5   :  { %v1315_v0 = vsel %vm190_vm4, %v1314_v5, %v1259_v13  ;;  %vm1422_vm4 = vcmask 130048  }
 0x6c6   :  { %v1317_v39 = vsel %vm1316_vm12, %v1315_v0, %v1263_v60  ;;  %1909 = vmatpush1.bf16.msra.mxu0 %v6420_v49  ;;  %v6456_v60 = vld [vmem:[%s9091_s9 + $0xcc] ss:$16 sps:$4 sm:$0xff]   ;;  %vm1531_vm12 = vcmask 261120  }
 0x6c7   :  { %1910 = vmatprep.subr.bf16.mxu0 %v6428_v52 }
 0x6c8   :  { %v1267_v34 = vpop.permute.xlu0 %1266  ;;  %v1279_v1 = vpop.permute.xlu1 %1278 }
 0x6c9   :  { %v1318_v2 = vsel %vm944_vm10, %v1317_v39, %v1267_v34  ;;  %vm9500_vm10 = vcmask 1045504  }
 0x6ca   :  { %v1320_v3 = vsel %vm1319_vm13, %v1318_v2, %v1271_v63  ;;  %1911 = vmatpush1.bf16.msra.mxu0 %v6435_v55  ;;  %v1662_v63 = vld [vmem:[%s9083_s1] sm:$0x3]  ;;  %vm9501_vm11 = vmmov %vm9500_vm10  ;;  %vm4343_vm13 = vcmask 25600  }
 0x6cb   :  { %1912 = vmatprep.subr.bf16.mxu0 %v6441_v33  ;;  %v6480_v5 = vpack.c.bf16 %v1662_v63, %v1662_v63 }
 0x6cc   :  { %v1275_v38 = vpop.permute.xlu0 %1274  ;;  %v1287_v22 = vpop.permute.xlu1 %1286 }
 0x6cd   :  { %v1322_v4 = vsel %vm1321_vm14, %v1320_v3, %v1275_v38 }
 0x6ce   :  { %v1324_v6 = vsel %vm1323_vm15, %v1322_v4, %v1279_v1  ;;  %1913 = vmatpush1.bf16.msra.mxu0 %v6450_v59 }
 0x6cf   :  { %1914 = vmatprep.subr.bf16.mxu0 %v6456_v60 }
 0x6d0   :  { %v1283_v11 = vpop.permute.xlu0 %1282  ;;  %v1295_v15 = vpop.permute.xlu1 %1294 }
 0x6d1   :  { %v1326_v40 = vsel %vm1325_vm0, %v1324_v6, %v1283_v11 }
 0x6d2   :  { %v1328_v44 = vsel %vm1327_vm1, %v1326_v40, %v1287_v22 }
 0x6d4   :  { %v1291_v16 = vpop.permute.xlu0 %1290  ;;  %v1303_v10 = vpop.permute.xlu1 %1302 }
 0x6d5   :  { %v1330_v47 = vsel %vm1329_vm3, %v1328_v44, %v1291_v16  ;;  %v5094_v16 = vld [vmem:[%s9090_s8 + $0x8] ss:$16 sps:$4 sm:$0xff]  }
 0x6d6   :  { %v1332_v19 = vsel %vm1331_vm7, %v1330_v47, %v1295_v15 }
 0x6d8   :  { %v1299_v18 = vpop.permute.xlu0 %1298 }
 0x6d9   :  { %v1334_v24 = vsel %vm1333_vm9, %v1332_v19, %v1299_v18  ;;  %v5104_v19 = vld [vmem:[%s9090_s8 + $0x2c] ss:$16 sps:$4 sm:$0xff]  }
 0x6da   :  { %v1336_v9 = vsel %vm1335_vm8, %v1334_v24, %v1303_v10  ;;  %v5102_v10 = vld [vmem:[%s9090_s8 + $0x28] ss:$16 sps:$4 sm:$0xff]   ;;  %v6505_v24 = vld [vmem:[%s9091_s9 + $0x4] ss:$16 sps:$4 sm:$0xff]  }
 0x6db   :  { %9502 = vst [vmem:[#allocation9_spill] sm:$0xff] %v6505_v24 }
 0x72e   :  { %v1307_v45 = vpop.permute.xlu0 %1306  ;;  %v1311_v27 = vpop.permute.xlu1 %1310 }
 0x72f   :  { %v6389_v14 = vsel %vm1337_vm6, %v1336_v9, %v1307_v45  ;;  %v1340_v31 = vsel %vm1339_vm2, %v1307_v45, %v1311_v27  ;;  %vm9498_vm6 = vcmask 1043456   ;;  %v6527_v27 = vld [vmem:[%s9091_s9 + $0x20] ss:$16 sps:$4 sm:$0xff]  }
 0x730   :  { %v1428_v20 = vrot.slane %v6389_v14, 6  ;;  %v1432_v23 = vrot.slane %v6389_v14, 4  ;;  %v1436_v53 = vrot.slane %v6389_v14, 2  ;;  %vm9499_vm8 = vmmov %vm9498_vm6 }
 0x732   :  { %v6393_v32 = vpop.permute.xlu0 %1418  ;;  %v1399_v54 = vpop.permute.xlu1 %1398 }
 0x733   :  { %v1426_v7 = vsel %vm1422_vm4, %v1340_v31, %v6393_v32  ;;  %v1415_v42 = vsel %vm1339_vm2, %v6329_v57, %v1399_v54  ;;  %v6462_v57 = vld [vmem:[%s9091_s9 + $0xc8] ss:$16 sps:$4 sm:$0xff]   ;;  %v6540_v31 = vld [vmem:[%s9091_s9 + $0x40] ss:$16 sps:$4 sm:$0xff]   ;;  %v6619_v54 = vld [vmem:[%s9093_s11 + $0xc] ss:$16 sps:$4 sm:$0xff]  }
 0x734   :  { %v1441_v28 = vrot.slane %v1426_v7, 6  ;;  %v1445_v46 = vrot.slane %v1426_v7, 4  ;;  %v1449_v30 = vrot.slane %v1426_v7, 2  ;;  %1915 = vmatpush1.bf16.msra.mxu0 %v6462_v57 }
 0x735   :  { %1916 = vmatprep.subr.bf16.mxu0 %v6468_v36 }
 0x736   :  { %v5063_v50 = vpack.i.bf16 %v1445_v46, %v1432_v23  ;;  %v5058_v51 = vpack.i.bf16 %v1441_v28, %v1428_v20  ;;  %v5068_v56 = vpack.i.bf16 %v1449_v30, %v1436_v53  ;;  %v6572_v20 = vld [vmem:[%s9091_s9 + $0xa4] ss:$16 sps:$4 sm:$0xff]   ;;  %v6578_v23 = vld [vmem:[%s9091_s9 + $0xa0] ss:$16 sps:$4 sm:$0xff]  }
 0x737   :  { %v6584_v28 = vld [vmem:[%s9091_s9 + $0xc4] ss:$16 sps:$4 sm:$0xff]   ;;  %v6590_v46 = vld [vmem:[%s9091_s9 + $0xc0] ss:$16 sps:$4 sm:$0xff]  }
 0x738   :  { %5064 = vrot.lane.b32.xlu1 %v5063_v50, %s5681_s23  ;;  %5059 = vrot.lane.b32.xlu0 %v5058_v51, %s5682_s25  ;;  %v6602_v30 = vld [vmem:[%s9091_s9 + $0xe0] ss:$16 sps:$4 sm:$0xff]   ;;  %v6614_v53 = vld [vmem:[%s9093_s11 + $0x4] ss:$16 sps:$4 sm:$0xff]  }
 0x739   :  { %1917 = vmatpush1.bf16.msra.mxu0 %v6474_v61 }
 0x73a   :  { %2392 = vmatprep.subr.bf16.mxu0 %v6619_v54 }
 0x73c   :  { %5069 = vrot.lane.b32.xlu0 %v5068_v56, %s5683_s17  ;;  %1420 = vrot.lane.b32.xlu1 %v1415_v42, %s5680_s28  ;;  %v6624_v56 = vld [vmem:[%s9093_s11] ss:$16 sps:$4 sm:$0xff]   ;;  %v6629_v42 = vld [vmem:[%s9093_s11 + $0x8] ss:$16 sps:$4 sm:$0xff]  }
 0x73d   :  { %1935 = vmatmul.mubr.bf16.vlgmr.msra.gmra.mrb[24].mxu0 %v6480_v5 }
 0x73e   :  { %2393 = vmatpush1.bf16.msra.mxu0 %v6629_v42 }
 0x7aa   :  { %v5060_v13 = vpop.permute.xlu0 %5059  ;;  %v5065_v0 = vpop.permute.xlu1 %5064 }
 0x7ab   :  { %v5062_v39 = vunpack.i.h.bf16 %v5060_v13  ;;  %v5061_v34 = vunpack.i.l.bf16 %v5060_v13  ;;  %v5067_v1 = vunpack.i.h.bf16 %v5065_v0  ;;  %v5066_v2 = vunpack.i.l.bf16 %v5065_v0  ;;  %v6638_v13 = vld [vmem:[%s9093_s11 + $0x24] ss:$16 sps:$4 sm:$0xff]   ;;  %v6643_v0 = vld [vmem:[%s9093_s11 + $0x2c] ss:$16 sps:$4 sm:$0xff]  }
 0x7ac   :  { %2394 = vmatprep.subr.bf16.mxu0 %v6643_v0 }
 0x7ad   :  { %v1456_v3 = vsel %vm81_vm5, %v1426_v7, %v5062_v39  ;;  %v1453_v38 = vsel %vm81_vm5, %v6389_v14, %v5061_v34  ;;  %v6534_v14 = vld [vmem:[%s9091_s9 + $0x44] ss:$16 sps:$4 sm:$0xff]   ;;  %v6566_v7 = vld [vmem:[%s9091_s9 + $0x80] ss:$16 sps:$4 sm:$0xff]   ;;  %v6653_v34 = vld [vmem:[%s9093_s11 + $0x28] ss:$16 sps:$4 sm:$0xff]  }
 0x7ae   :  { %v5070_v4 = vpop.permute.xlu0 %5069  ;;  %v1457_v11 = vsel %vm9498_vm6, %v1456_v3, %v5067_v1  ;;  %v1454_v40 = vsel %vm9499_vm8, %v1453_v38, %v5066_v2  ;;  %v1421_v18 = vpop.permute.xlu1 %1420  ;;  %v6648_v39 = vld [vmem:[%s9093_s11 + $0x20] ss:$16 sps:$4 sm:$0xff]   ;;  %2395 = vmatpush1.bf16.msra.mxu0 %v6653_v34  ;;  %v6662_v1 = vld [vmem:[%s9093_s11 + $0x44] ss:$16 sps:$4 sm:$0xff]   ;;  %v6667_v2 = vld [vmem:[%s9093_s11 + $0x4c] ss:$16 sps:$4 sm:$0xff]  }
 0x7af   :  { %v5072_v22 = vunpack.i.h.bf16 %v5070_v4  ;;  %v5071_v6 = vunpack.i.l.bf16 %v5070_v4  ;;  %v1423_v9 = vsel %vm1422_vm4, %v6393_v32, %v1421_v18  ;;  %v6546_v32 = vld [vmem:[%s9091_s9 + $0x64] ss:$16 sps:$4 sm:$0xff]   ;;  %v6672_v3 = vld [vmem:[%s9093_s11 + $0x40] ss:$16 sps:$4 sm:$0xff]   ;;  %v6677_v38 = vld [vmem:[%s9093_s11 + $0x48] ss:$16 sps:$4 sm:$0xff]   ;;  %2396 = vmatprep.subr.bf16.mxu0 %v6667_v2 }
 0x7b0   :  { %v1460_v45 = vpack.c.bf16 %v1423_v9, %v1423_v9  ;;  %v6686_v4 = vld [vmem:[%s9093_s11 + $0x64] ss:$16 sps:$4 sm:$0xff]   ;;  %v6744_v18 = vld [vmem:[%s9093_s11 + $0xa0] ss:$16 sps:$4 sm:$0xff]   ;;  %vm5684_vm5 = vmmov 0  }
 0x7b1   :  { %v1455_v44 = vsel %vm9500_vm10, %v1454_v40, %v5071_v6  ;;  %v1458_v15 = vsel %vm9501_vm11, %v1457_v11, %v5072_v22  ;;  %9503 = vst [vmem:[#allocation10_spill] sm:$0xff] %v6686_v4  ;;  %v6691_v22 = vld [vmem:[%s9093_s11 + $0x6c] ss:$16 sps:$4 sm:$0xff]   ;;  %v6696_v6 = vld [vmem:[%s9093_s11 + $0x60] ss:$16 sps:$4 sm:$0xff]   ;;  %9513 = vst [vmem:[#allocation20_spill] sm:$0xff] %v6744_v18 }
 0x7b2   :  { %v1459_v47 = vpack.c.bf16 %v1458_v15, %v1455_v44  ;;  %2397 = vmatpush1.bf16.msra.mxu0 %v6677_v38  ;;  %9504 = vst [vmem:[#allocation11_spill] sm:$0xff] %v6691_v22  ;;  %9505 = vst [vmem:[#allocation12_spill] sm:$0xff] %v6696_v6  ;;  %v6701_v11 = vld [vmem:[%s9093_s11 + $0x68] ss:$16 sps:$4 sm:$0xff]   ;;  %v6706_v40 = vld [vmem:[%s9093_s11 + $0x84] ss:$16 sps:$4 sm:$0xff]  }
 0x7b3   :  { %9506 = vst [vmem:[#allocation13_spill] sm:$0xff] %v6701_v11  ;;  %9507 = vst [vmem:[#allocation14_spill] sm:$0xff] %v6706_v40  ;;  %v6711_v44 = vld [vmem:[%s9093_s11 + $0x8c] ss:$16 sps:$4 sm:$0xff]   ;;  %2398 = vmatprep.subr.bf16.mxu0 %v6691_v22  ;;  %v6720_v15 = vld [vmem:[%s9093_s11 + $0x80] ss:$16 sps:$4 sm:$0xff]  }
 0x7b4   :  { %4421 = vmatmul.mubr.msk.bf16.vlgmr.msra.gmra.mrb[4].mxu1 %vm1531_vm12, %v1459_v47  ;;  %9508 = vst [vmem:[#allocation15_spill] sm:$0xff] %v6711_v44  ;;  %9509 = vst [vmem:[#allocation16_spill] sm:$0xff] %v6720_v15  ;;  %v6756_v9 = vld [vmem:[%s9093_s11 + $0xc4] ss:$16 sps:$4 sm:$0xff]  }
 0x7b5   :  { %1580 = vmatprep.mubr.bf16.mxu1 %v9104_v29  ;;  %1590 = vmatpush1.bf16.msra.mxu1 %v5094_v16  ;;  %v6725_v16 = vld [vmem:[%s9093_s11 + $0x88] ss:$16 sps:$4 sm:$0xff]   ;;  %9515 = vst [vmem:[#allocation22_spill] sm:$0xff] %v6756_v9 }
 0x7b6   :  { %1591 = vmatprep.subr.bf16.mxu1 %v5104_v19  ;;  %2399 = vmatpush1.bf16.msra.mxu0 %v6701_v11  ;;  %9510 = vst [vmem:[#allocation17_spill] sm:$0xff] %v6725_v16  ;;  %v6737_v19 = vld [vmem:[%s9093_s11 + $0xac] ss:$16 sps:$4 sm:$0xff]  }
 0x7b7   :  { %2400 = vmatprep.subr.bf16.mxu0 %v6711_v44  ;;  %9512 = vst [vmem:[#allocation19_spill] sm:$0xff] %v6737_v19 }
 0x7b9   :  { %1592 = vmatpush1.bf16.msra.mxu1 %v5102_v10  ;;  %v6749_v10 = vld [vmem:[%s9093_s11 + $0xa8] ss:$16 sps:$4 sm:$0xff]  }
 0x7ba   :  { %1861 = vmatprep.subr.bf16.mxu1 %v6505_v24  ;;  %2401 = vmatpush1.bf16.msra.mxu0 %v6725_v16  ;;  %9514 = vst [vmem:[#allocation21_spill] sm:$0xff] %v6749_v10 }
 0x7bb   :  { %2402 = vmatprep.subr.bf16.mxu0 %v6737_v19 }
 0x7bc   :  { %4422 = vmatmul.mubr.msk.bf16.gmra.mrb[8].mxu1 %vm1531_vm12, %v1460_v45 }
 0x7bd   :  { %1621 = vmatprep.mubr.bf16.mxu1 %v9104_v29 }
 0x7be   :  { %2403 = vmatpush1.bf16.msra.mxu0 %v6749_v10  ;;  %v6936_v10 = vld [vmem:[%s9093_s11 + $0x1a0] ss:$16 sps:$4 sm:$0xff]  }
 0x7bf   :  { %9545 = vst [vmem:[#allocation52_spill] sm:$0xff] %v6936_v10 }
 0x7c4   :  { %4423 = vmatmul.mubr.msk.bf16.vlgmr.msra.gmra.mrb[12].mxu1 %vm1531_vm12, %v1459_v47  ;;  %v6732_v47 = vld [vmem:[%s9093_s11 + $0xa4] ss:$16 sps:$4 sm:$0xff]  }
 0x7c5   :  { %1862 = vmatpush1.bf16.msra.mxu1 %v6515_v26  ;;  %1631 = vmatprep.mubr.bf16.mxu1 %v9104_v29  ;;  %9511 = vst [vmem:[#allocation18_spill] sm:$0xff] %v6732_v47 }
 0x7c6   :  { %1863 = vmatprep.subr.bf16.mxu1 %v6520_v21 }
 0x7c9   :  { %1864 = vmatpush1.bf16.msra.mxu1 %v6527_v27 }
 0x7ca   :  { %1865 = vmatprep.subr.bf16.mxu1 %v6534_v14 }
 0x7cc   :  { %4424 = vmatmul.mubr.msk.bf16.gmra.mrb[16].mxu1 %vm1531_vm12, %v1460_v45  ;;  %v6761_v45 = vld [vmem:[%s9093_s11 + $0xcc] ss:$16 sps:$4 sm:$0xff]  }
 0x7cd   :  { %1866 = vmatpush1.bf16.msra.mxu1 %v6540_v31  ;;  %1893 = vmatprep.mubr.bf16.mxu1 %v9104_v29  ;;  %9516 = vst [vmem:[#allocation23_spill] sm:$0xff] %v6761_v45  ;;  %v6787_v29 = vld [vmem:[%s9093_s11 + $0xec] ss:$16 sps:$4 sm:$0xff]  }
 0x7ce   :  { %1867 = vmatprep.subr.bf16.mxu1 %v6546_v32  ;;  %2404 = vmatprep.subr.bf16.mxu0 %v6761_v45  ;;  %9520 = vst [vmem:[#allocation27_spill] sm:$0xff] %v6787_v29  ;;  %v6792_v45 = vld [vmem:[%s9093_s11 + $0xe0] ss:$16 sps:$4 sm:$0xff]  }
 0x7cf   :  { %9521 = vst [vmem:[#allocation28_spill] sm:$0xff] %v6792_v45 }
 0x7d1   :  { %1868 = vmatpush1.bf16.msra.mxu1 %v6553_v8 }
 0x7d2   :  { %1869 = vmatprep.subr.bf16.mxu1 %v6560_v37 }
 0x7d5   :  { %1870 = vmatpush1.bf16.msra.mxu1 %v6566_v7 }
 0x7d6   :  { %1871 = vmatprep.subr.bf16.mxu1 %v6572_v20 }
 0x7d9   :  { %1872 = vmatpush1.bf16.msra.mxu1 %v6578_v23 }
 0x7da   :  { %1873 = vmatprep.subr.bf16.mxu1 %v6584_v28 }
 0x7dd   :  { %1874 = vmatpush1.bf16.msra.mxu1 %v6590_v46 }
 0x7de   :  { %1875 = vmatprep.subr.bf16.mxu1 %v6596_v12 }
 0x7e1   :  { %1876 = vmatpush1.bf16.msra.mxu1 %v6602_v30 }
 0x7e2   :  { %2351 = vmatprep.subr.bf16.mxu1 %v6614_v53 }
 0x7e4   :  { %1894 = vmatmul.mubr.bf16.vlgmr.msra.gmra.mrb[20].mxu1 %v6480_v5 }
 0x7e5   :  { %2352 = vmatpush1.bf16.msra.mxu1 %v6624_v56 }
 0x7e6   :  { %2353 = vmatprep.subr.bf16.mxu1 %v6638_v13 }
 0x7e9   :  { %2354 = vmatpush1.bf16.msra.mxu1 %v6648_v39 }
 0x7ea   :  { %2355 = vmatprep.subr.bf16.mxu1 %v6662_v1 }
 0x7ed   :  { %2356 = vmatpush1.bf16.msra.mxu1 %v6672_v3 }
 0x7ee   :  { %2357 = vmatprep.subr.bf16.mxu1 %v6686_v4 }
 0x7f1   :  { %2358 = vmatpush1.bf16.msra.mxu1 %v6696_v6 }
 0x7f2   :  { %2359 = vmatprep.subr.bf16.mxu1 %v6706_v40 }
 0x7f5   :  { %2360 = vmatpush1.bf16.msra.mxu1 %v6720_v15 }
 0x7f6   :  { %2361 = vmatprep.subr.bf16.mxu1 %v6732_v47 }
 0x7f9   :  { %2362 = vmatpush1.bf16.msra.mxu1 %v6744_v18  ;;  %v6941_v18 = vld [vmem:[%s9093_s11 + $0x1a8] ss:$16 sps:$4 sm:$0xff]  }
 0x7fa   :  { %2363 = vmatprep.subr.bf16.mxu1 %v6756_v9  ;;  %v6811_v9 = vld [vmem:[%s9093_s11 + $0x10c] ss:$16 sps:$4 sm:$0xff]   ;;  %9546 = vst [vmem:[#allocation53_spill] sm:$0xff] %v6941_v18 }
 0x7fb   :  { %9524 = vst [vmem:[#allocation31_spill] sm:$0xff] %v6811_v9 }
 0x810   :  { %v6607_v50 = vpop.f32.mrb[24].mxu0 }
 0x811   :  { %v6609_v51 = vpop.f32.mrb[25].mxu0 }
 0x812   :  { %v1940_v63 = vpop.f32.mrb[26].mxu0 }
 0x813   :  { %v1941_v5 = vpop.f32.mrb[27].mxu0  ;;  %v6770_v63 = vld [vmem:[%s9093_s11 + $0xc0] ss:$16 sps:$4 sm:$0xff]  }
 0x814   :  { %9517 = vst [vmem:[#allocation24_spill] sm:$0xff] %v6770_v63  ;;  %v6775_v5 = vld [vmem:[%s9093_s11 + $0xc8] ss:$16 sps:$4 sm:$0xff]   ;;  %2364 = vmatpush1.bf16.msra.mxu1 %v6770_v63 }
 0x815   :  { %9518 = vst [vmem:[#allocation25_spill] sm:$0xff] %v6775_v5  ;;  %2405 = vmatpush1.bf16.msra.mxu0 %v6775_v5  ;;  %v6797_v63 = vld [vmem:[%s9093_s11 + $0xe8] ss:$16 sps:$4 sm:$0xff]   ;;  %2365 = vmatprep.subr.bf16.mxu1 %v6782_v62  ;;  %v6806_v5 = vld [vmem:[%s9093_s11 + $0x104] ss:$16 sps:$4 sm:$0xff]  }
 0x816   :  { %9522 = vst [vmem:[#allocation29_spill] sm:$0xff] %v6797_v63  ;;  %2406 = vmatprep.subr.bf16.mxu0 %v6787_v29  ;;  %9523 = vst [vmem:[#allocation30_spill] sm:$0xff] %v6806_v5  ;;  %v6816_v62 = vld [vmem:[%s9093_s11 + $0x100] ss:$16 sps:$4 sm:$0xff]   ;;  %v6835_v29 = vld [vmem:[%s9093_s11 + $0x12c] ss:$16 sps:$4 sm:$0xff]  }
 0x817   :  { %9525 = vst [vmem:[#allocation32_spill] sm:$0xff] %v6816_v62  ;;  %9528 = vst [vmem:[#allocation35_spill] sm:$0xff] %v6835_v29 }
 0x818   :  { %2366 = vmatpush1.bf16.msra.mxu1 %v6792_v45  ;;  %v6821_v45 = vld [vmem:[%s9093_s11 + $0x108] ss:$16 sps:$4 sm:$0xff]  }
 0x819   :  { %2407 = vmatpush1.bf16.msra.mxu0 %v6797_v63  ;;  %9526 = vst [vmem:[#allocation33_spill] sm:$0xff] %v6821_v45  ;;  %2367 = vmatprep.subr.bf16.mxu1 %v6806_v5  ;;  %v6830_v63 = vld [vmem:[%s9093_s11 + $0x124] ss:$16 sps:$4 sm:$0xff]   ;;  %v6840_v5 = vld [vmem:[%s9093_s11 + $0x120] ss:$16 sps:$4 sm:$0xff]  }
 0x81a   :  { %2408 = vmatprep.subr.bf16.mxu0 %v6811_v9  ;;  %9527 = vst [vmem:[#allocation34_spill] sm:$0xff] %v6830_v63  ;;  %9529 = vst [vmem:[#allocation36_spill] sm:$0xff] %v6840_v5  ;;  %v6859_v9 = vld [vmem:[%s9093_s11 + $0x14c] ss:$16 sps:$4 sm:$0xff]  }
 0x81b   :  { %9532 = vst [vmem:[#allocation39_spill] sm:$0xff] %v6859_v9 }
 0x81c   :  { %2368 = vmatpush1.bf16.msra.mxu1 %v6816_v62  ;;  %v6845_v62 = vld [vmem:[%s9093_s11 + $0x128] ss:$16 sps:$4 sm:$0xff]  }
 0x81d   :  { %2409 = vmatpush1.bf16.msra.mxu0 %v6821_v45  ;;  %9530 = vst [vmem:[#allocation37_spill] sm:$0xff] %v6845_v62  ;;  %2369 = vmatprep.subr.bf16.mxu1 %v6830_v63  ;;  %v6854_v45 = vld [vmem:[%s9093_s11 + $0x144] ss:$16 sps:$4 sm:$0xff]   ;;  %v6864_v63 = vld [vmem:[%s9093_s11 + $0x140] ss:$16 sps:$4 sm:$0xff]  }
 0x81e   :  { %2410 = vmatprep.subr.bf16.mxu0 %v6835_v29  ;;  %9531 = vst [vmem:[#allocation38_spill] sm:$0xff] %v6854_v45  ;;  %9533 = vst [vmem:[#allocation40_spill] sm:$0xff] %v6864_v63  ;;  %v6883_v29 = vld [vmem:[%s9093_s11 + $0x16c] ss:$16 sps:$4 sm:$0xff]  }
 0x81f   :  { %9536 = vst [vmem:[#allocation43_spill] sm:$0xff] %v6883_v29 }
 0x820   :  { %2370 = vmatpush1.bf16.msra.mxu1 %v6840_v5  ;;  %v6869_v5 = vld [vmem:[%s9093_s11 + $0x148] ss:$16 sps:$4 sm:$0xff]  }
 0x821   :  { %2411 = vmatpush1.bf16.msra.mxu0 %v6845_v62  ;;  %9534 = vst [vmem:[#allocation41_spill] sm:$0xff] %v6869_v5  ;;  %2371 = vmatprep.subr.bf16.mxu1 %v6854_v45  ;;  %v6878_v62 = vld [vmem:[%s9093_s11 + $0x164] ss:$16 sps:$4 sm:$0xff]   ;;  %v6888_v45 = vld [vmem:[%s9093_s11 + $0x160] ss:$16 sps:$4 sm:$0xff]  }
 0x822   :  { %2412 = vmatprep.subr.bf16.mxu0 %v6859_v9  ;;  %9535 = vst [vmem:[#allocation42_spill] sm:$0xff] %v6878_v62  ;;  %9537 = vst [vmem:[#allocation44_spill] sm:$0xff] %v6888_v45  ;;  %v6907_v9 = vld [vmem:[%s9093_s11 + $0x18c] ss:$16 sps:$4 sm:$0xff]  }
 0x823   :  { %9540 = vst [vmem:[#allocation47_spill] sm:$0xff] %v6907_v9 }
 0x824   :  { %2372 = vmatpush1.bf16.msra.mxu1 %v6864_v63  ;;  %v6893_v63 = vld [vmem:[%s9093_s11 + $0x168] ss:$16 sps:$4 sm:$0xff]  }
 0x825   :  { %2413 = vmatpush1.bf16.msra.mxu0 %v6869_v5  ;;  %9538 = vst [vmem:[#allocation45_spill] sm:$0xff] %v6893_v63  ;;  %2373 = vmatprep.subr.bf16.mxu1 %v6878_v62  ;;  %v6902_v5 = vld [vmem:[%s9093_s11 + $0x184] ss:$16 sps:$4 sm:$0xff]   ;;  %v6912_v62 = vld [vmem:[%s9093_s11 + $0x180] ss:$16 sps:$4 sm:$0xff]  }
 0x826   :  { %2414 = vmatprep.subr.bf16.mxu0 %v6883_v29  ;;  %9539 = vst [vmem:[#allocation46_spill] sm:$0xff] %v6902_v5  ;;  %9541 = vst [vmem:[#allocation48_spill] sm:$0xff] %v6912_v62  ;;  %v6927_v29 = vld [vmem:[%s9093_s11 + $0x1ac] ss:$16 sps:$4 sm:$0xff]  }
 0x827   :  { %9544 = vst [vmem:[#allocation51_spill] sm:$0xff] %v6927_v29 }
 0x828   :  { %2374 = vmatpush1.bf16.msra.mxu1 %v6888_v45  ;;  %v6917_v45 = vld [vmem:[%s9093_s11 + $0x188] ss:$16 sps:$4 sm:$0xff]  }
 0x829   :  { %2415 = vmatpush1.bf16.msra.mxu0 %v6893_v63  ;;  %9542 = vst [vmem:[#allocation49_spill] sm:$0xff] %v6917_v45  ;;  %v6922_v63 = vld [vmem:[%s9093_s11 + $0x1a4] ss:$16 sps:$4 sm:$0xff]   ;;  %2375 = vmatprep.subr.bf16.mxu1 %v6902_v5 }
 0x82a   :  { %9543 = vst [vmem:[#allocation50_spill] sm:$0xff] %v6922_v63  ;;  %2416 = vmatprep.subr.bf16.mxu0 %v6907_v9  ;;  %v4425_v9 = vld [vmem:[%s9083_s1 + $0x2] sm:$0x3] }
 0x82b   :  { %v1966_v5 = vpack.c.bf16 %v4425_v9, %v4425_v9  ;;  %v6975_v9 = vld [vmem:[%s9093_s11 + $0x1e4] ss:$16 sps:$4 sm:$0xff]  }
 0x82c   :  { %2376 = vmatpush1.bf16.msra.mxu1 %v6912_v62  ;;  %v6948_v62 = vld [vmem:[%s9093_s11 + $0x1c4] ss:$16 sps:$4 sm:$0xff]   ;;  %9551 = vst [vmem:[#allocation58_spill] sm:$0xff] %v6975_v9 }
 0x82d   :  { %2417 = vmatpush1.bf16.msra.mxu0 %v6917_v45  ;;  %2377 = vmatprep.subr.bf16.mxu1 %v6922_v63  ;;  %9547 = vst [vmem:[#allocation54_spill] sm:$0xff] %v6948_v62  ;;  %v6953_v45 = vld [vmem:[%s9093_s11 + $0x1cc] ss:$16 sps:$4 sm:$0xff]   ;;  %v6968_v63 = vld [vmem:[%s9093_s11 + $0x1c8] ss:$16 sps:$4 sm:$0xff]  }
 0x82e   :  { %2418 = vmatprep.subr.bf16.mxu0 %v6927_v29  ;;  %9548 = vst [vmem:[#allocation55_spill] sm:$0xff] %v6953_v45  ;;  %v6963_v29 = vld [vmem:[%s9093_s11 + $0x1c0] ss:$16 sps:$4 sm:$0xff]   ;;  %9550 = vst [vmem:[#allocation57_spill] sm:$0xff] %v6968_v63  ;;  %2383 = vmatprep.mubr.bf16.mxu1 %v1966_v5 }
 0x82f   :  { %9549 = vst [vmem:[#allocation56_spill] sm:$0xff] %v6963_v29  ;;  %2424 = vmatprep.mubr.bf16.mxu0 %v1966_v5 }
 0x830   :  { %2378 = vmatpush1.bf16.msra.mxu1 %v6936_v10 }
 0x831   :  { %2419 = vmatpush1.bf16.msra.mxu0 %v6941_v18  ;;  %2379 = vmatprep.subr.bf16.mxu1 %v6948_v62  ;;  %v6980_v18 = vld [vmem:[%s9093_s11 + $0x1ec] ss:$16 sps:$4 sm:$0xff]   ;;  %v6992_v62 = vld [vmem:[%s9093_s11 + $0x1e8] ss:$16 sps:$4 sm:$0xff]  }
 0x832   :  { %2420 = vmatprep.subr.bf16.mxu0 %v6953_v45  ;;  %9552 = vst [vmem:[#allocation59_spill] sm:$0xff] %v6980_v18  ;;  %v6987_v45 = vld [vmem:[%s9093_s11 + $0x1e0] ss:$16 sps:$4 sm:$0xff]   ;;  %9554 = vst [vmem:[#allocation61_spill] sm:$0xff] %v6992_v62 }
 0x833   :  { %9553 = vst [vmem:[#allocation60_spill] sm:$0xff] %v6987_v45 }
 0x834   :  { %2380 = vmatpush1.bf16.msra.mxu1 %v6963_v29 }
 0x835   :  { %2421 = vmatpush1.bf16.msra.mxu0 %v6968_v63  ;;  %2381 = vmatprep.subr.bf16.mxu1 %v6975_v9 }
 0x836   :  { %2422 = vmatprep.subr.bf16.mxu0 %v6980_v18  ;;  %v1471_v18 = vlaneseq }
 0x838   :  { %2382 = vmatpush1.bf16.msra.mxu1 %v6987_v45  ;;  %v7008_v45 = vshrl.u32 %v1471_v18, 7 }
 0x839   :  { %2423 = vmatpush1.bf16.msra.mxu0 %v6992_v62  ;;  %2451 = vmatprep.subr.bf16.mxu1 %v6505_v24 }
 0x83a   :  { %2492 = vmatprep.subr.bf16.mxu0 %v6335_v58  ;;  %v9204_v62 = vsub.s32 0, %v7008_v45  ;;  %v1469_v58 = vld [vmem:[%s9092_s10] sm:$0xf]  ;;  %v9205_v24 = vsub.s32 1, %v7008_v45 }
 0x887   :  { %v1572_v5 = vpop.f32.mrb[4].mxu1 }
 0x888   :  { %v1574_v63 = vpop.f32.mrb[5].mxu1 }
 0x889   :  { %v7000_v29 = vpop.f32.mrb[6].mxu1 }
 0x88a   :  { %9555 = vst [vmem:[#allocation62_spill] sm:$0xff] %v7000_v29  ;;  %v7002_v10 = vpop.f32.mrb[7].mxu1  ;;  %v9208_v29 = vsub.s32 2, %v7008_v45 }
 0x88b   :  { %9556 = vst [vmem:[#allocation63_spill] sm:$0xff] %v7002_v10  ;;  %v7018_v10 = vrot.slane %v1469_v58, %v9204_v62 }
 0x88c   :  { %v7026_v18 = vrot.slane %v1469_v58, %v9208_v29 }
 0x88d   :  { %9559 = vst [vmem:[#allocation66_spill] sm:$0xff] %v7018_v10  ;;  %v7030_v15 = vadd.f32 %v1572_v5, %v7018_v10 }
 0x88e   :  { %9561 = vst [vmem:[#allocation68_spill] sm:$0xff] %v7026_v18 }
 0x897   :  { %v1623_v19 = vpop.f32.mrb[12].mxu1 }
 0x898   :  { %v1625_v47 = vpop.f32.mrb[13].mxu1  ;;  %v7036_v62 = vadd.f32 %v1623_v19, %v7026_v18 }
 0x899   :  { %v7004_v16 = vpop.f32.mrb[14].mxu1 }
 0x89a   :  { %9557 = vst [vmem:[#allocation64_spill] sm:$0xff] %v7004_v16  ;;  %v7006_v9 = vpop.f32.mrb[15].mxu1  ;;  %v9217_v16 = vsub.s32 3, %v7008_v45  ;;  %v1945_v19 = vadd.f32 %v6607_v50, %v7036_v62 }
 0x89b   :  { %9558 = vst [vmem:[#allocation65_spill] sm:$0xff] %v7006_v9  ;;  %v7022_v9 = vrot.slane %v1469_v58, %v9205_v24 }
 0x89c   :  { %v7040_v24 = vrot.slane %v1469_v58, %v9217_v16 }
 0x89d   :  { %9560 = vst [vmem:[#allocation67_spill] sm:$0xff] %v7022_v9  ;;  %v7033_v44 = vadd.f32 %v1574_v63, %v7022_v9  ;;  %v9584_v9 = vld [vmem:[#allocation30_spill] sm:$0xff] }
 0x89e   :  { %9562 = vst [vmem:[#allocation69_spill] sm:$0xff] %v7040_v24  ;;  %v7045_v63 = vadd.f32 %v1625_v47, %v7040_v24 }
 0x8a0   :  { %v1946_v58 = vadd.f32 %v6609_v51, %v7045_v63 }
 0x8b7   :  { %v1895_v40 = vpop.f32.mrb[20].mxu1 }
 0x8b8   :  { %v1943_v11 = vadd.f32 %v1895_v40, %v7030_v15  ;;  %v1897_v29 = vpop.f32.mrb[21].mxu1  ;;  %v1956_v40 = vmul.f32 0.5, %v1946_v58 }
 0x8b9   :  { %v1944_v6 = vadd.f32 %v1897_v29, %v7033_v44  ;;  %v1899_v22 = vpop.f32.mrb[22].mxu1 }
 0x8ba   :  { %v1947_v4 = vmul.f32 0.5, %v1943_v11  ;;  %v1900_v5 = vpop.f32.mrb[23].mxu1 }
 0x8bb   :  { %v1951_v10 = vmul.f32 0.5, %v1944_v6  ;;  %v1665_v6 = vld [vmem:[%s9084_s2] sm:$0x3] }
 0x8bc   :  { %5229 = vtanh.f32 %v1947_v4 }
 0x8bd   :  { %5231 = vtanh.f32 %v1951_v10 }
 0x8be   :  { %5233 = vtanh.f32 %v1945_v19 }
 0x8bf   :  { %5235 = vtanh.f32 %v1956_v40 }
 0x8c6   :  { %v5230_v16 = vpop.eup %5229 }
 0x8c7   :  { %v5232_v18 = vpop.eup %5231  ;;  %v1949_v29 = vadd.f32 1.0, %v5230_v16 }
 0x8c8   :  { %v1953_v22 = vadd.f32 1.0, %v5232_v18  ;;  %v5234_v47 = vpop.eup %5233  ;;  %v9563_v18 = vmov 0  }
 0x8c9   :  { %v1950_v11 = vmul.f32 0.5, %v1949_v29  ;;  %v5236_v51 = vpop.eup %5235  ;;  %v9571_v29 = vld [vmem:[#allocation17_spill] sm:$0xff] }
 0x8ca   :  { %v1954_v5 = vmul.f32 0.5, %v1953_v22  ;;  %v1958_v19 = vadd.f32 1.0, %v5236_v51  ;;  %v9572_v22 = vld [vmem:[#allocation18_spill] sm:$0xff]  ;;  %v9579_v51 = vld [vmem:[#allocation25_spill] sm:$0xff] }
 0x8cb   :  { %v1961_v50 = vmul.f32 %v5234_v47, %v1950_v11  ;;  %v9573_v11 = vld [vmem:[#allocation19_spill] sm:$0xff]  ;;  %v9575_v47 = vld [vmem:[#allocation21_spill] sm:$0xff] }
 0x8cc   :  { %v1960_v4 = vmul.f32 %v1954_v5, %v1665_v6  ;;  %v1959_v58 = vmul.f32 0.5, %v1958_v19  ;;  %v9574_v6 = vld [vmem:[#allocation20_spill] sm:$0xff]  ;;  %v9576_v5 = vld [vmem:[#allocation22_spill] sm:$0xff] }
 0x8cd   :  { %v9580_v19 = vld [vmem:[#allocation26_spill] sm:$0xff] }
 0x8ce   :  { %v7054_v10 = vadd.f32 %v1961_v50, %v1960_v4  ;;  %v9577_v50 = vld [vmem:[#allocation23_spill] sm:$0xff]  ;;  %v9578_v4 = vld [vmem:[#allocation24_spill] sm:$0xff] }
 0x8d0   :  { %5237 = vtanh.f32 %v7054_v10 }
 0x8da   :  { %v5238_v24 = vpop.eup %5237 }
 0x8db   :  { %v1964_v16 = vmul.f32 %v5238_v24, %v1959_v58  ;;  %v9570_v24 = vld [vmem:[#allocation16_spill] sm:$0xff]  ;;  %v9581_v58 = vld [vmem:[#allocation27_spill] sm:$0xff] }
 0x8dd   :  { %v1965_v40 = vpack.c.bf16 %v1964_v16, %v1964_v16  ;;  %v9582_v16 = vld [vmem:[#allocation28_spill] sm:$0xff] }
 0x8df   :  { %2384 = vmatmul.mubr.bf16.vlgmr.msra.gmra.mrb[24].mxu1 %v1965_v40  ;;  %2425 = vmatmul.mubr.bf16.vlgmr.msra.gmra.mrb[28].mxu0 %v1965_v40 }
 0x8e0   :  { %2452 = vmatpush1.bf16.msra.mxu1 %v6515_v26  ;;  %2493 = vmatpush1.bf16.msra.mxu0 %v6340_v17  ;;  %v9564_v17 = vld [vmem:[#allocation10_spill] sm:$0xff] }
 0x8e1   :  { %2453 = vmatprep.subr.bf16.mxu1 %v6520_v21  ;;  %2494 = vmatprep.subr.bf16.mxu0 %v6345_v41  ;;  %v9565_v41 = vld [vmem:[#allocation11_spill] sm:$0xff] }
 0x8e2   :  { %2483 = vmatprep.mubr.bf16.mxu1 %v9563_v18  ;;  %2524 = vmatprep.mubr.bf16.mxu0 %v9563_v18 }
 0x8e4   :  { %2454 = vmatpush1.bf16.msra.mxu1 %v6527_v27  ;;  %2495 = vmatpush1.bf16.msra.mxu0 %v6374_v25  ;;  %v9566_v25 = vld [vmem:[#allocation12_spill] sm:$0xff] }
 0x8e5   :  { %2455 = vmatprep.subr.bf16.mxu1 %v6534_v14  ;;  %2496 = vmatprep.subr.bf16.mxu0 %v6385_v48  ;;  %v9567_v48 = vld [vmem:[#allocation13_spill] sm:$0xff] }
 0x8e8   :  { %2456 = vmatpush1.bf16.msra.mxu1 %v6540_v31  ;;  %2497 = vmatpush1.bf16.msra.mxu0 %v6398_v35  ;;  %v9568_v35 = vld [vmem:[#allocation14_spill] sm:$0xff] }
 0x8e9   :  { %2457 = vmatprep.subr.bf16.mxu1 %v6546_v32  ;;  %2498 = vmatprep.subr.bf16.mxu0 %v6411_v43  ;;  %v9569_v43 = vld [vmem:[#allocation15_spill] sm:$0xff] }
 0x8ec   :  { %2458 = vmatpush1.bf16.msra.mxu1 %v6553_v8  ;;  %2499 = vmatpush1.bf16.msra.mxu0 %v6420_v49 }
 0x8ed   :  { %2459 = vmatprep.subr.bf16.mxu1 %v6560_v37  ;;  %2500 = vmatprep.subr.bf16.mxu0 %v6428_v52 }
 0x8f0   :  { %2460 = vmatpush1.bf16.msra.mxu1 %v6566_v7  ;;  %2501 = vmatpush1.bf16.msra.mxu0 %v6435_v55 }
 0x8f1   :  { %2461 = vmatprep.subr.bf16.mxu1 %v6572_v20  ;;  %2502 = vmatprep.subr.bf16.mxu0 %v6441_v33 }
 0x8f4   :  { %2462 = vmatpush1.bf16.msra.mxu1 %v6578_v23  ;;  %2503 = vmatpush1.bf16.msra.mxu0 %v6450_v59 }
 0x8f5   :  { %2463 = vmatprep.subr.bf16.mxu1 %v6584_v28  ;;  %2504 = vmatprep.subr.bf16.mxu0 %v6456_v60 }
 0x8f8   :  { %2464 = vmatpush1.bf16.msra.mxu1 %v6590_v46  ;;  %2505 = vmatpush1.bf16.msra.mxu0 %v6462_v57 }
 0x8f9   :  { %2465 = vmatprep.subr.bf16.mxu1 %v6596_v12  ;;  %2506 = vmatprep.subr.bf16.mxu0 %v6468_v36 }
 0x8fc   :  { %2466 = vmatpush1.bf16.msra.mxu1 %v6602_v30  ;;  %2507 = vmatpush1.bf16.msra.mxu0 %v6474_v61 }
 0x8fd   :  { %2581 = vmatprep.subr.bf16.mxu1 %v6614_v53  ;;  %2622 = vmatprep.subr.bf16.mxu0 %v6619_v54 }
 0x8ff   :  { %2484 = vmatmul.mubr.bf16.vlgmr.msra.gmra.mrb[28].mxu1 %v1965_v40  ;;  %2525 = vmatmul.mubr.bf16.vlgmr.msra.gmra.mrb[32].mxu0 %v1965_v40  ;;  %v9583_v40 = vld [vmem:[#allocation29_spill] sm:$0xff] }
 0x900   :  { %2582 = vmatpush1.bf16.msra.mxu1 %v6624_v56  ;;  %2623 = vmatpush1.bf16.msra.mxu0 %v6629_v42 }
 0x901   :  { %2583 = vmatprep.subr.bf16.mxu1 %v6638_v13  ;;  %2624 = vmatprep.subr.bf16.mxu0 %v6643_v0 }
 0x904   :  { %2584 = vmatpush1.bf16.msra.mxu1 %v6648_v39  ;;  %2625 = vmatpush1.bf16.msra.mxu0 %v6653_v34 }
 0x905   :  { %2585 = vmatprep.subr.bf16.mxu1 %v6662_v1  ;;  %2626 = vmatprep.subr.bf16.mxu0 %v6667_v2 }
 0x908   :  { %2586 = vmatpush1.bf16.msra.mxu1 %v6672_v3  ;;  %2627 = vmatpush1.bf16.msra.mxu0 %v6677_v38 }
 0x909   :  { %2587 = vmatprep.subr.bf16.mxu1 %v9564_v17  ;;  %2628 = vmatprep.subr.bf16.mxu0 %v9565_v41 }
 0x90c   :  { %2588 = vmatpush1.bf16.msra.mxu1 %v9566_v25  ;;  %2629 = vmatpush1.bf16.msra.mxu0 %v9567_v48 }
 0x90d   :  { %2589 = vmatprep.subr.bf16.mxu1 %v9568_v35  ;;  %2630 = vmatprep.subr.bf16.mxu0 %v9569_v43 }
 0x910   :  { %2590 = vmatpush1.bf16.msra.mxu1 %v9570_v24  ;;  %2631 = vmatpush1.bf16.msra.mxu0 %v9571_v29 }
 0x911   :  { %2591 = vmatprep.subr.bf16.mxu1 %v9572_v22  ;;  %2632 = vmatprep.subr.bf16.mxu0 %v9573_v11 }
 0x914   :  { %2592 = vmatpush1.bf16.msra.mxu1 %v9574_v6  ;;  %2633 = vmatpush1.bf16.msra.mxu0 %v9575_v47  ;;  %v9585_v6 = vld [vmem:[#allocation31_spill] sm:$0xff]  ;;  %v9586_v47 = vld [vmem:[#allocation32_spill] sm:$0xff] }
 0x915   :  { %2593 = vmatprep.subr.bf16.mxu1 %v9576_v5  ;;  %2634 = vmatprep.subr.bf16.mxu0 %v9577_v50  ;;  %v9587_v5 = vld [vmem:[#allocation33_spill] sm:$0xff]  ;;  %v9588_v50 = vld [vmem:[#allocation34_spill] sm:$0xff] }
 0x918   :  { %2594 = vmatpush1.bf16.msra.mxu1 %v9578_v4  ;;  %2635 = vmatpush1.bf16.msra.mxu0 %v9579_v51  ;;  %v9589_v4 = vld [vmem:[#allocation35_spill] sm:$0xff]  ;;  %v9590_v51 = vld [vmem:[#allocation36_spill] sm:$0xff] }
 0x919   :  { %2595 = vmatprep.subr.bf16.mxu1 %v9580_v19  ;;  %2636 = vmatprep.subr.bf16.mxu0 %v9581_v58  ;;  %v9591_v19 = vld [vmem:[#allocation37_spill] sm:$0xff]  ;;  %v9592_v58 = vld [vmem:[#allocation38_spill] sm:$0xff] }
 0x91c   :  { %2596 = vmatpush1.bf16.msra.mxu1 %v9582_v16  ;;  %2637 = vmatpush1.bf16.msra.mxu0 %v9583_v40  ;;  %v9593_v16 = vld [vmem:[#allocation39_spill] sm:$0xff]  ;;  %v9594_v40 = vld [vmem:[#allocation40_spill] sm:$0xff] }
 0x91d   :  { %2597 = vmatprep.subr.bf16.mxu1 %v9584_v9  ;;  %2638 = vmatprep.subr.bf16.mxu0 %v9585_v6  ;;  %v9595_v9 = vld [vmem:[#allocation41_spill] sm:$0xff]  ;;  %v9596_v6 = vld [vmem:[#allocation42_spill] sm:$0xff] }
 0x920   :  { %2598 = vmatpush1.bf16.msra.mxu1 %v9586_v47  ;;  %2639 = vmatpush1.bf16.msra.mxu0 %v9587_v5  ;;  %v9597_v47 = vld [vmem:[#allocation43_spill] sm:$0xff]  ;;  %v9598_v5 = vld [vmem:[#allocation44_spill] sm:$0xff] }
 0x921   :  { %2599 = vmatprep.subr.bf16.mxu1 %v9588_v50  ;;  %2640 = vmatprep.subr.bf16.mxu0 %v9589_v4  ;;  %v9599_v50 = vld [vmem:[#allocation45_spill] sm:$0xff]  ;;  %v9600_v4 = vld [vmem:[#allocation46_spill] sm:$0xff] }
 0x924   :  { %2600 = vmatpush1.bf16.msra.mxu1 %v9590_v51  ;;  %2641 = vmatpush1.bf16.msra.mxu0 %v9591_v19  ;;  %v9601_v51 = vld [vmem:[#allocation47_spill] sm:$0xff]  ;;  %v9602_v19 = vld [vmem:[#allocation48_spill] sm:$0xff] }
 0x925   :  { %2601 = vmatprep.subr.bf16.mxu1 %v9592_v58  ;;  %2642 = vmatprep.subr.bf16.mxu0 %v9593_v16  ;;  %v9603_v58 = vld [vmem:[#allocation49_spill] sm:$0xff]  ;;  %v9604_v16 = vld [vmem:[#allocation50_spill] sm:$0xff] }
 0x928   :  { %2602 = vmatpush1.bf16.msra.mxu1 %v9594_v40  ;;  %2643 = vmatpush1.bf16.msra.mxu0 %v9595_v9  ;;  %v9605_v40 = vld [vmem:[#allocation51_spill] sm:$0xff]  ;;  %v9606_v9 = vld [vmem:[#allocation52_spill] sm:$0xff] }
 0x929   :  { %2603 = vmatprep.subr.bf16.mxu1 %v9596_v6  ;;  %2644 = vmatprep.subr.bf16.mxu0 %v9597_v47  ;;  %v9607_v6 = vld [vmem:[#allocation53_spill] sm:$0xff]  ;;  %v9608_v47 = vld [vmem:[#allocation54_spill] sm:$0xff] }
 0x92c   :  { %2604 = vmatpush1.bf16.msra.mxu1 %v9598_v5  ;;  %2645 = vmatpush1.bf16.msra.mxu0 %v9599_v50  ;;  %v9609_v5 = vld [vmem:[#allocation55_spill] sm:$0xff]  ;;  %v9610_v50 = vld [vmem:[#allocation56_spill] sm:$0xff] }
 0x92d   :  { %2605 = vmatprep.subr.bf16.mxu1 %v9600_v4  ;;  %2646 = vmatprep.subr.bf16.mxu0 %v9601_v51  ;;  %v9611_v4 = vld [vmem:[#allocation57_spill] sm:$0xff]  ;;  %v9612_v51 = vld [vmem:[#allocation58_spill] sm:$0xff] }
 0x930   :  { %2606 = vmatpush1.bf16.msra.mxu1 %v9602_v19  ;;  %2647 = vmatpush1.bf16.msra.mxu0 %v9603_v58  ;;  %v9613_v19 = vld [vmem:[#allocation59_spill] sm:$0xff]  ;;  %v9614_v58 = vld [vmem:[#allocation60_spill] sm:$0xff] }
 0x931   :  { %2607 = vmatprep.subr.bf16.mxu1 %v9604_v16  ;;  %2648 = vmatprep.subr.bf16.mxu0 %v9605_v40  ;;  %v9615_v16 = vld [vmem:[#allocation61_spill] sm:$0xff] }
 0x932   :  { %v9616_v40 = vld [vmem:[#allocation9_spill] sm:$0xff] }
 0x934   :  { %2608 = vmatpush1.bf16.msra.mxu1 %v9606_v9  ;;  %2649 = vmatpush1.bf16.msra.mxu0 %v9607_v6  ;;  %v9617_v9 = vld [vmem:[#allocation8_spill] sm:$0xff] }
 0x935   :  { %2609 = vmatprep.subr.bf16.mxu1 %v9608_v47  ;;  %2650 = vmatprep.subr.bf16.mxu0 %v9609_v5  ;;  %v1640_v5 = vld [vmem:[%s9094_s12] sm:$0xf] }
 0x938   :  { %2610 = vmatpush1.bf16.msra.mxu1 %v9610_v50  ;;  %2651 = vmatpush1.bf16.msra.mxu0 %v9611_v4  ;;  %v9618_v50 = vsub.s32 0, %v7008_v45 }
 0x939   :  { %2611 = vmatprep.subr.bf16.mxu1 %v9612_v51  ;;  %2652 = vmatprep.subr.bf16.mxu0 %v9613_v19  ;;  %v9620_v51 = vsub.s32 1, %v7008_v45 }
 0x93a   :  { %v7160_v47 = vrot.slane %v1640_v5, %v9618_v50 }
 0x93b   :  { %v7164_v4 = vrot.slane %v1640_v5, %v9620_v51  ;;  %v9624_v51 = vsub.s32 3, %v7008_v45 }
 0x93c   :  { %2612 = vmatpush1.bf16.msra.mxu1 %v9614_v58  ;;  %2653 = vmatpush1.bf16.msra.mxu0 %v9615_v16  ;;  %9619 = vst [vmem:[#allocation10_spill] sm:$0xff] %v7160_v47  ;;  %v9622_v16 = vsub.s32 2, %v7008_v45  ;;  %v4426_v45 = vld [vmem:[%s9084_s2 + $0x2] sm:$0x3]  ;;  %s5686_s2 = smov [#allocation4]  }
 0x93d   :  { %2681 = vmatprep.subr.bf16.mxu1 %v9616_v40  ;;  %2722 = vmatprep.subr.bf16.mxu0 %v9617_v9  ;;  %9621 = vst [vmem:[#allocation9_spill] sm:$0xff] %v7164_v4  ;;  %v7174_v25 = vrot.slane %v1640_v5, %v9624_v51  ;;  %s4373_s30 = sshll.u32 %s5686_s2, 4  ;;  %s4374_s30 = int_to_ptr.vmem [resolvable:$true] %s4373_s30 }
 0x93e   :  { %v7168_v6 = vrot.slane %v1640_v5, %v9622_v16  ;;  %s5611_s0 = scalar_lea.vmem %s4374_s30, 32  ;;  %p5616_p1 = scmp.lt.s32.totalorder %s4374_s30, %s4374_s30 }
 0x93f   :  { %9625 = vst [vmem:[#allocation70_spill] sm:$0xff] %v7174_v25  ;;  %p5612_p0 = scmp.ne.s32.totalorder %s4374_s30, %s5611_s0  ;;  %p5617_p2 = scmp.lt.s32.totalorder %s5611_s0, %s5611_s0 }
 0x940   :  { %9623 = vst [vmem:[#allocation8_spill] sm:$0xff] %v7168_v6 }
 0x941   :  { %p5618_p3 = por %p5617_p2, %p5616_p1 }
 0x943   :  { %p5619_p4 = pnand %p5618_p3, %p5612_p0 }
 0x9b2   :  { %v2385_v19 = vpop.f32.mrb[24].mxu1  ;;  %v2426_v58 = vpop.f32.mrb[28].mxu0 }
 0x9b3   :  { %v2386_v9 = vadd.f32 %v2385_v19, %v7160_v47  ;;  %v2387_v40 = vpop.f32.mrb[25].mxu1  ;;  %v2428_v11 = vpop.f32.mrb[29].mxu0  ;;  %v2427_v16 = vadd.f32 %v2426_v58, %v7168_v6 }
 0x9b4   :  { %v2388_v22 = vadd.f32 %v2387_v40, %v7164_v4  ;;  %v2389_v29 = vpop.f32.mrb[26].mxu1  ;;  %v2430_v24 = vpop.f32.mrb[30].mxu0  ;;  %v2429_v19 = vadd.f32 %v2428_v11, %v7174_v25 }
 0x9b5   :  { %v2433_v50 = vmul.f32 0.5, %v2386_v9  ;;  %v2390_v43 = vpop.f32.mrb[27].mxu1  ;;  %v2431_v35 = vpop.f32.mrb[31].mxu0 }
 0x9b6   :  { %v2437_v48 = vmul.f32 0.5, %v2388_v22  ;;  %v2442_v47 = vmul.f32 0.5, %v2429_v19 }
 0x9b7   :  { %5239 = vtanh.f32 %v2433_v50 }
 0x9b8   :  { %5241 = vtanh.f32 %v2437_v48 }
 0x9b9   :  { %5243 = vtanh.f32 %v2427_v16 }
 0x9ba   :  { %5245 = vtanh.f32 %v2442_v47 }
 0x9c1   :  { %v5240_v41 = vpop.eup %5239 }
 0x9c2   :  { %v5242_v40 = vpop.eup %5241  ;;  %v2435_v29 = vadd.f32 1.0, %v5240_v41 }
 0x9c3   :  { %v2439_v24 = vadd.f32 1.0, %v5242_v40  ;;  %v5244_v35 = vpop.eup %5243 }
 0x9c4   :  { %v2436_v43 = vmul.f32 0.5, %v2435_v29  ;;  %v5246_v48 = vpop.eup %5245 }
 0x9c5   :  { %v2440_v22 = vmul.f32 0.5, %v2439_v24  ;;  %v2444_v11 = vadd.f32 1.0, %v5246_v48 }
 0x9c6   :  { %v2447_v5 = vmul.f32 %v5244_v35, %v2436_v43 }
 0x9c7   :  { %v2446_v9 = vmul.f32 %v4426_v45, %v2440_v22  ;;  %v2445_v19 = vmul.f32 0.5, %v2444_v11 }
 0x9c9   :  { %v7181_v58 = vadd.f32 %v2447_v5, %v2446_v9 }
 0x9cb   :  { %9626 = vst [vmem:[#allocation71_spill] sm:$0xff] %v7181_v58  ;;  %5247 = vtanh.f32 %v7181_v58 }
 0x9d2   :  { %v2485_v50 = vpop.f32.mrb[28].mxu1  ;;  %v2526_v51 = vpop.f32.mrb[32].mxu0 }
 0x9d3   :  { %v2537_v41 = vrot.slane %v2485_v50, 6  ;;  %v2487_v16 = vpop.f32.mrb[29].mxu1  ;;  %v2528_v47 = vpop.f32.mrb[33].mxu0  ;;  %v2539_v43 = vrot.slane %v2526_v51, 6 }
 0x9d4   :  { %v2538_v40 = vrot.slane %v2487_v16, 6  ;;  %v2489_v29 = vpop.f32.mrb[30].mxu1  ;;  %v2530_v25 = vpop.f32.mrb[34].mxu0  ;;  %v2540_v4 = vrot.slane %v2528_v47, 6 }
 0x9d5   :  { %v5248_v6 = vpop.eup %5247  ;;  %v2545_v24 = vadd.f32 %v2537_v41, %v7030_v15  ;;  %v2490_v45 = vpop.f32.mrb[31].mxu1  ;;  %v2547_v50 = vadd.f32 %v2539_v43, %v7036_v62  ;;  %v2563_v43 = vrot.slane %v7054_v10, 6  ;;  %v7196_v10 = vld [vmem:[%s9091_s9 + $0x8] ss:$16 sps:$4 sm:$0xff]  }
 0x9d6   :  { %v2531_v35 = vpop.f32.mrb[35].mxu0  ;;  %v2546_v22 = vadd.f32 %v2538_v40, %v7033_v44  ;;  %v2450_v5 = vmul.f32 %v5248_v6, %v2445_v19  ;;  %v2548_v25 = vadd.f32 %v2540_v4, %v7045_v63 }
 0x9d7   :  { %v2549_v9 = vmul.f32 0.5, %v2545_v24 }
 0x9d8   :  { %v2553_v48 = vmul.f32 0.5, %v2546_v22  ;;  %v2571_v58 = vrot.slane %v2450_v5, 6  ;;  %v2558_v51 = vmul.f32 0.5, %v2548_v25  ;;  %v9660_v25 = vld [vmem:[#allocation44_spill] sm:$0xff] }
 0x9d9   :  { %5249 = vtanh.f32 %v2549_v9 }
 0x9da   :  { %5251 = vtanh.f32 %v2553_v48  ;;  %v2574_v11 = vpack.c.bf16 %v2571_v58, %v2571_v58 }
 0x9db   :  { %5253 = vtanh.f32 %v2547_v50 }
 0x9dc   :  { %v2578_v16 = vrot.slane %v2574_v11, 1  ;;  %5255 = vtanh.f32 %v2558_v51  ;;  %v9661_v51 = vld [vmem:[#allocation45_spill] sm:$0xff] }
 0x9de   :  { %2613 = vmatprep.mubr.bf16.mxu1 %v2578_v16  ;;  %2654 = vmatprep.mubr.bf16.mxu0 %v2578_v16  ;;  %v7203_v16 = vld [vmem:[%s9091_s9 + $0x2c] ss:$16 sps:$4 sm:$0xff]  }
 0x9e3   :  { %v5250_v41 = vpop.eup %5249 }
 0x9e4   :  { %v5252_v29 = vpop.eup %5251  ;;  %v2551_v40 = vadd.f32 1.0, %v5250_v41  ;;  %v9662_v41 = vld [vmem:[#allocation46_spill] sm:$0xff] }
 0x9e5   :  { %v2555_v6 = vadd.f32 1.0, %v5252_v29  ;;  %v5254_v24 = vpop.eup %5253  ;;  %v9663_v29 = vld [vmem:[#allocation47_spill] sm:$0xff] }
 0x9e6   :  { %v2552_v19 = vmul.f32 0.5, %v2551_v40  ;;  %v5256_v4 = vpop.eup %5255  ;;  %v9664_v40 = vld [vmem:[#allocation48_spill] sm:$0xff] }
 0x9e7   :  { %v2556_v45 = vmul.f32 0.5, %v2555_v6  ;;  %v2560_v22 = vadd.f32 1.0, %v5256_v4  ;;  %v9665_v6 = vld [vmem:[#allocation49_spill] sm:$0xff]  ;;  %v9672_v4 = vld [vmem:[#allocation56_spill] sm:$0xff] }
 0x9e8   :  { %v2566_v47 = vmul.f32 %v5254_v24, %v2552_v19  ;;  %v9666_v19 = vld [vmem:[#allocation50_spill] sm:$0xff]  ;;  %v9667_v24 = vld [vmem:[#allocation51_spill] sm:$0xff] }
 0x9e9   :  { %v2565_v35 = vmul.f32 %v2563_v43, %v2556_v45  ;;  %v2561_v5 = vmul.f32 0.5, %v2560_v22  ;;  %v9668_v45 = vld [vmem:[#allocation52_spill] sm:$0xff]  ;;  %v9669_v43 = vld [vmem:[#allocation53_spill] sm:$0xff] }
 0x9ea   :  { %v9673_v22 = vld [vmem:[#allocation57_spill] sm:$0xff] }
 0x9eb   :  { %v7189_v58 = vadd.f32 %v2566_v47, %v2565_v35  ;;  %v9670_v47 = vld [vmem:[#allocation54_spill] sm:$0xff]  ;;  %v9671_v35 = vld [vmem:[#allocation55_spill] sm:$0xff] }
 0x9ed   :  { %5257 = vtanh.f32 %v7189_v58 }
 0x9f7   :  { %v5258_v9 = vpop.eup %5257 }
 0x9f8   :  { %v2569_v48 = vmul.f32 %v5258_v9, %v2561_v5  ;;  %v9674_v5 = vld [vmem:[#allocation58_spill] sm:$0xff]  ;;  %v9675_v9 = vld [vmem:[#allocation59_spill] sm:$0xff] }
 0x9fa   :  { %v2573_v50 = vpack.c.bf16 %v2569_v48, %v2569_v48  ;;  %v9676_v48 = vld [vmem:[#allocation60_spill] sm:$0xff] }
 0x9fc   :  { %v2577_v11 = vrot.slane %v2573_v50, 1  ;;  %v9677_v50 = vld [vmem:[#allocation61_spill] sm:$0xff] }
 0x9fe   :  { %2614 = vmatmul.mubr.bf16.vlgmr.msra.gmra.mrb[32].mxu1 %v2577_v11  ;;  %2655 = vmatmul.mubr.bf16.vlgmr.msra.gmra.mrb[36].mxu0 %v2577_v11 }
 0x9ff   :  { %2682 = vmatpush1.bf16.msra.mxu1 %v6515_v26  ;;  %2723 = vmatpush1.bf16.msra.mxu0 %v7196_v10  ;;  %v7212_v26 = vld [vmem:[%s9091_s9 + $0x28] ss:$16 sps:$4 sm:$0xff]  }
 0xa00   :  { %2683 = vmatprep.subr.bf16.mxu1 %v6520_v21  ;;  %2724 = vmatprep.subr.bf16.mxu0 %v7203_v16  ;;  %v7219_v21 = vld [vmem:[%s9091_s9 + $0x4c] ss:$16 sps:$4 sm:$0xff]  }
 0xa01   :  { %2713 = vmatprep.mubr.bf16.mxu1 %v9563_v18  ;;  %2754 = vmatprep.mubr.bf16.mxu0 %v9563_v18 }
 0xa03   :  { %2684 = vmatpush1.bf16.msra.mxu1 %v6527_v27  ;;  %2725 = vmatpush1.bf16.msra.mxu0 %v7212_v26  ;;  %v7226_v27 = vld [vmem:[%s9091_s9 + $0x48] ss:$16 sps:$4 sm:$0xff]  }
 0xa04   :  { %2685 = vmatprep.subr.bf16.mxu1 %v6534_v14  ;;  %2726 = vmatprep.subr.bf16.mxu0 %v7219_v21  ;;  %v7233_v14 = vld [vmem:[%s9091_s9 + $0x6c] ss:$16 sps:$4 sm:$0xff]  }
 0xa07   :  { %2686 = vmatpush1.bf16.msra.mxu1 %v6540_v31  ;;  %2727 = vmatpush1.bf16.msra.mxu0 %v7226_v27  ;;  %v9636_v31 = vld [vmem:[#allocation20_spill] sm:$0xff] }
 0xa08   :  { %2687 = vmatprep.subr.bf16.mxu1 %v6546_v32  ;;  %2728 = vmatprep.subr.bf16.mxu0 %v7233_v14  ;;  %v9637_v32 = vld [vmem:[#allocation21_spill] sm:$0xff] }
 0xa0b   :  { %2688 = vmatpush1.bf16.msra.mxu1 %v6553_v8  ;;  %2729 = vmatpush1.bf16.msra.mxu0 %v6420_v49  ;;  %v9627_v49 = vld [vmem:[#allocation11_spill] sm:$0xff]  ;;  %v9638_v8 = vld [vmem:[#allocation22_spill] sm:$0xff] }
 0xa0c   :  { %2689 = vmatprep.subr.bf16.mxu1 %v6560_v37  ;;  %2730 = vmatprep.subr.bf16.mxu0 %v6428_v52  ;;  %v9628_v52 = vld [vmem:[#allocation12_spill] sm:$0xff]  ;;  %v9639_v37 = vld [vmem:[#allocation23_spill] sm:$0xff] }
 0xa0f   :  { %2690 = vmatpush1.bf16.msra.mxu1 %v6566_v7  ;;  %2731 = vmatpush1.bf16.msra.mxu0 %v6435_v55  ;;  %v9629_v55 = vld [vmem:[#allocation13_spill] sm:$0xff]  ;;  %v9640_v7 = vld [vmem:[#allocation24_spill] sm:$0xff] }
 0xa10   :  { %2691 = vmatprep.subr.bf16.mxu1 %v6572_v20  ;;  %2732 = vmatprep.subr.bf16.mxu0 %v6441_v33  ;;  %v9630_v33 = vld [vmem:[#allocation14_spill] sm:$0xff]  ;;  %v9641_v20 = vld [vmem:[#allocation25_spill] sm:$0xff] }
 0xa13   :  { %2692 = vmatpush1.bf16.msra.mxu1 %v6578_v23  ;;  %2733 = vmatpush1.bf16.msra.mxu0 %v6450_v59  ;;  %v9631_v59 = vld [vmem:[#allocation15_spill] sm:$0xff]  ;;  %v9642_v23 = vld [vmem:[#allocation26_spill] sm:$0xff] }
 0xa14   :  { %2693 = vmatprep.subr.bf16.mxu1 %v6584_v28  ;;  %2734 = vmatprep.subr.bf16.mxu0 %v6456_v60  ;;  %v9632_v60 = vld [vmem:[#allocation16_spill] sm:$0xff]  ;;  %v9643_v28 = vld [vmem:[#allocation27_spill] sm:$0xff] }
 0xa17   :  { %2694 = vmatpush1.bf16.msra.mxu1 %v6590_v46  ;;  %2735 = vmatpush1.bf16.msra.mxu0 %v6462_v57  ;;  %v9633_v57 = vld [vmem:[#allocation17_spill] sm:$0xff]  ;;  %v9644_v46 = vld [vmem:[#allocation28_spill] sm:$0xff] }
 0xa18   :  { %2695 = vmatprep.subr.bf16.mxu1 %v6596_v12  ;;  %2736 = vmatprep.subr.bf16.mxu0 %v6468_v36  ;;  %v9634_v36 = vld [vmem:[#allocation18_spill] sm:$0xff]  ;;  %v9645_v12 = vld [vmem:[#allocation29_spill] sm:$0xff] }
 0xa1b   :  { %2696 = vmatpush1.bf16.msra.mxu1 %v6602_v30  ;;  %2737 = vmatpush1.bf16.msra.mxu0 %v6474_v61  ;;  %v9635_v61 = vld [vmem:[#allocation19_spill] sm:$0xff]  ;;  %v9646_v30 = vld [vmem:[#allocation30_spill] sm:$0xff] }
 0xa1c   :  { %2811 = vmatprep.subr.bf16.mxu1 %v6614_v53  ;;  %2852 = vmatprep.subr.bf16.mxu0 %v6619_v54  ;;  %v9647_v53 = vld [vmem:[#allocation31_spill] sm:$0xff]  ;;  %v9648_v54 = vld [vmem:[#allocation32_spill] sm:$0xff] }
 0xa1e   :  { %2714 = vmatmul.mubr.bf16.vlgmr.msra.gmra.mrb[36].mxu1 %v2577_v11  ;;  %2755 = vmatmul.mubr.bf16.vlgmr.msra.gmra.mrb[40].mxu0 %v2577_v11  ;;  %v7321_v11 = vld [vmem:[%s9091_s9 + $0x4] ss:$16 sps:$4 sm:$0xff]  }
 0xa1f   :  { %2812 = vmatpush1.bf16.msra.mxu1 %v6624_v56  ;;  %2853 = vmatpush1.bf16.msra.mxu0 %v6629_v42  ;;  %v9649_v56 = vld [vmem:[#allocation33_spill] sm:$0xff]  ;;  %v9650_v42 = vld [vmem:[#allocation34_spill] sm:$0xff]  ;;  %9678 = vst [vmem:[#allocation11_spill] sm:$0xff] %v7321_v11 }
 0xa20   :  { %2813 = vmatprep.subr.bf16.mxu1 %v6638_v13  ;;  %2854 = vmatprep.subr.bf16.mxu0 %v6643_v0  ;;  %v9651_v13 = vld [vmem:[#allocation35_spill] sm:$0xff]  ;;  %v9652_v0 = vld [vmem:[#allocation36_spill] sm:$0xff] }
 0xa23   :  { %2814 = vmatpush1.bf16.msra.mxu1 %v6648_v39  ;;  %2855 = vmatpush1.bf16.msra.mxu0 %v6653_v34  ;;  %v9653_v39 = vld [vmem:[#allocation37_spill] sm:$0xff]  ;;  %v9654_v34 = vld [vmem:[#allocation38_spill] sm:$0xff] }
 0xa24   :  { %2815 = vmatprep.subr.bf16.mxu1 %v6662_v1  ;;  %2856 = vmatprep.subr.bf16.mxu0 %v6667_v2  ;;  %v9655_v1 = vld [vmem:[#allocation39_spill] sm:$0xff]  ;;  %v9656_v2 = vld [vmem:[#allocation40_spill] sm:$0xff] }
 0xa27   :  { %2816 = vmatpush1.bf16.msra.mxu1 %v6672_v3  ;;  %2857 = vmatpush1.bf16.msra.mxu0 %v6677_v38  ;;  %v9657_v3 = vld [vmem:[#allocation41_spill] sm:$0xff]  ;;  %v9658_v38 = vld [vmem:[#allocation42_spill] sm:$0xff] }
 0xa28   :  { %2817 = vmatprep.subr.bf16.mxu1 %v9564_v17  ;;  %2858 = vmatprep.subr.bf16.mxu0 %v9627_v49  ;;  %v9659_v17 = vld [vmem:[#allocation43_spill] sm:$0xff] }
 0xa29   :  { %v7327_v49 = vld [vmem:[%s9091_s9 + $0xc] ss:$16 sps:$4 sm:$0xff]  }
 0xa2a   :  { %9679 = vst [vmem:[#allocation12_spill] sm:$0xff] %v7327_v49 }
 0xa2b   :  { %2818 = vmatpush1.bf16.msra.mxu1 %v9628_v52  ;;  %2859 = vmatpush1.bf16.msra.mxu0 %v9629_v55 }
 0xa2c   :  { %2819 = vmatprep.subr.bf16.mxu1 %v9630_v33  ;;  %2860 = vmatprep.subr.bf16.mxu0 %v9631_v59  ;;  %v9680_v33 = vld [vmem:[#allocation10_spill] sm:$0xff] }
 0xa2f   :  { %2820 = vmatpush1.bf16.msra.mxu1 %v9632_v60  ;;  %2861 = vmatpush1.bf16.msra.mxu0 %v9633_v57 }
 0xa30   :  { %2821 = vmatprep.subr.bf16.mxu1 %v9634_v36  ;;  %2862 = vmatprep.subr.bf16.mxu0 %v9635_v61  ;;  %v9681_v36 = vld [vmem:[#allocation9_spill] sm:$0xff] }
 0xa33   :  { %2822 = vmatpush1.bf16.msra.mxu1 %v9636_v31  ;;  %2863 = vmatpush1.bf16.msra.mxu0 %v9637_v32 }
 0xa34   :  { %2823 = vmatprep.subr.bf16.mxu1 %v9638_v8  ;;  %2864 = vmatprep.subr.bf16.mxu0 %v9639_v37 }
 0xa37   :  { %2824 = vmatpush1.bf16.msra.mxu1 %v9640_v7  ;;  %2865 = vmatpush1.bf16.msra.mxu0 %v9641_v20 }
 0xa38   :  { %2825 = vmatprep.subr.bf16.mxu1 %v9642_v23  ;;  %2866 = vmatprep.subr.bf16.mxu0 %v9643_v28  ;;  %v9682_v23 = vld [vmem:[#allocation8_spill] sm:$0xff] }
 0xa3b   :  { %2826 = vmatpush1.bf16.msra.mxu1 %v9644_v46  ;;  %2867 = vmatpush1.bf16.msra.mxu0 %v9645_v12  ;;  %v9683_v46 = vld [vmem:[#allocation70_spill] sm:$0xff] }
 0xa3c   :  { %2827 = vmatprep.subr.bf16.mxu1 %v9646_v30  ;;  %2868 = vmatprep.subr.bf16.mxu0 %v9647_v53 }
 0xa3f   :  { %2828 = vmatpush1.bf16.msra.mxu1 %v9648_v54  ;;  %2869 = vmatpush1.bf16.msra.mxu0 %v9649_v56 }
 0xa40   :  { %2829 = vmatprep.subr.bf16.mxu1 %v9650_v42  ;;  %2870 = vmatprep.subr.bf16.mxu0 %v9651_v13 }
 0xa43   :  { %2830 = vmatpush1.bf16.msra.mxu1 %v9652_v0  ;;  %2871 = vmatpush1.bf16.msra.mxu0 %v9653_v39 }
 0xa44   :  { %2831 = vmatprep.subr.bf16.mxu1 %v9654_v34  ;;  %2872 = vmatprep.subr.bf16.mxu0 %v9655_v1  ;;  %v9684_v1 = vld [vmem:[#allocation71_spill] sm:$0xff] }
 0xa47   :  { %2832 = vmatpush1.bf16.msra.mxu1 %v9656_v2  ;;  %2873 = vmatpush1.bf16.msra.mxu0 %v9657_v3 }
 0xa48   :  { %2833 = vmatprep.subr.bf16.mxu1 %v9658_v38  ;;  %2874 = vmatprep.subr.bf16.mxu0 %v9659_v17 }
 0xa4b   :  { %2834 = vmatpush1.bf16.msra.mxu1 %v9660_v25  ;;  %2875 = vmatpush1.bf16.msra.mxu0 %v9661_v51 }
 0xa4c   :  { %2835 = vmatprep.subr.bf16.mxu1 %v9662_v41  ;;  %2876 = vmatprep.subr.bf16.mxu0 %v9663_v29 }
 0xa4f   :  { %2836 = vmatpush1.bf16.msra.mxu1 %v9664_v40  ;;  %2877 = vmatpush1.bf16.msra.mxu0 %v9665_v6 }
 0xa50   :  { %2837 = vmatprep.subr.bf16.mxu1 %v9666_v19  ;;  %2878 = vmatprep.subr.bf16.mxu0 %v9667_v24 }
 0xa53   :  { %2838 = vmatpush1.bf16.msra.mxu1 %v9668_v45  ;;  %2879 = vmatpush1.bf16.msra.mxu0 %v9669_v43 }
 0xa54   :  { %2839 = vmatprep.subr.bf16.mxu1 %v9670_v47  ;;  %2880 = vmatprep.subr.bf16.mxu0 %v9671_v35 }
 0xa57   :  { %2840 = vmatpush1.bf16.msra.mxu1 %v9672_v4  ;;  %2881 = vmatpush1.bf16.msra.mxu0 %v9673_v22 }
 0xa58   :  { %2841 = vmatprep.subr.bf16.mxu1 %v9674_v5  ;;  %2882 = vmatprep.subr.bf16.mxu0 %v9675_v9 }
 0xa5b   :  { %2842 = vmatpush1.bf16.msra.mxu1 %v9676_v48  ;;  %2883 = vmatpush1.bf16.msra.mxu0 %v9677_v50 }
 0xa5c   :  { %2911 = vmatprep.subr.bf16.mxu1 %v7321_v11  ;;  %2952 = vmatprep.subr.bf16.mxu0 %v7327_v49 }
 0xad1   :  { %v2615_v52 = vpop.f32.mrb[32].mxu1  ;;  %v2656_v55 = vpop.f32.mrb[36].mxu0 }
 0xad2   :  { %v2616_v59 = vadd.f32 %v2615_v52, %v9680_v33  ;;  %v2617_v60 = vpop.f32.mrb[33].mxu1  ;;  %v2658_v57 = vpop.f32.mrb[37].mxu0  ;;  %v2657_v28 = vadd.f32 %v2656_v55, %v9682_v23 }
 0xad3   :  { %v2618_v61 = vadd.f32 %v2617_v60, %v9681_v36  ;;  %v2619_v31 = vpop.f32.mrb[34].mxu1  ;;  %v2660_v32 = vpop.f32.mrb[38].mxu0  ;;  %v2659_v12 = vadd.f32 %v2658_v57, %v9683_v46 }
 0xad4   :  { %v2663_v8 = vmul.f32 0.5, %v2616_v59  ;;  %v2620_v37 = vpop.f32.mrb[35].mxu1  ;;  %v2661_v7 = vpop.f32.mrb[39].mxu0 }
 0xad5   :  { %v2667_v20 = vmul.f32 0.5, %v2618_v61  ;;  %v2672_v30 = vmul.f32 0.5, %v2659_v12 }
 0xad6   :  { %5259 = vtanh.f32 %v2663_v8 }
 0xad7   :  { %5261 = vtanh.f32 %v2667_v20 }
 0xad8   :  { %5263 = vtanh.f32 %v2657_v28 }
 0xad9   :  { %5265 = vtanh.f32 %v2672_v30  ;;  %v2793_v30 = vrot.slane %v7189_v58, 6  ;;  %v7353_v58 = vld [vmem:[%s9091_s9] ss:$16 sps:$4 sm:$0xff]  }
 0xae0   :  { %v5260_v53 = vpop.eup %5259 }
 0xae1   :  { %v5262_v54 = vpop.eup %5261  ;;  %v2665_v56 = vadd.f32 1.0, %v5260_v53 }
 0xae2   :  { %v2669_v42 = vadd.f32 1.0, %v5262_v54  ;;  %v5264_v0 = vpop.eup %5263 }
 0xae3   :  { %v2666_v13 = vmul.f32 0.5, %v2665_v56  ;;  %v5266_v38 = vpop.eup %5265 }
 0xae4   :  { %v2670_v39 = vmul.f32 0.5, %v2669_v42  ;;  %v2674_v17 = vadd.f32 1.0, %v5266_v38  ;;  %v7360_v38 = vld [vmem:[%s9091_s9 + $0x24] ss:$16 sps:$4 sm:$0xff]  }
 0xae5   :  { %v2677_v34 = vmul.f32 %v5264_v0, %v2666_v13 }
 0xae6   :  { %v2676_v2 = vmul.f32 %v2670_v39, %v9684_v1  ;;  %v2675_v6 = vmul.f32 0.5, %v2674_v17  ;;  %v7369_v17 = vld [vmem:[%s9091_s9 + $0x20] ss:$16 sps:$4 sm:$0xff]  }
 0xae8   :  { %v7335_v3 = vadd.f32 %v2677_v34, %v2676_v2 }
 0xaea   :  { %5267 = vtanh.f32 %v7335_v3 }
 0xaf1   :  { %v2715_v25 = vpop.f32.mrb[36].mxu1  ;;  %v2756_v51 = vpop.f32.mrb[40].mxu0 }
 0xaf2   :  { %v2767_v41 = vrot.slane %v2715_v25, 4  ;;  %v2717_v29 = vpop.f32.mrb[37].mxu1  ;;  %v2758_v40 = vpop.f32.mrb[41].mxu0  ;;  %v2769_v35 = vrot.slane %v2756_v51, 4  ;;  %v7376_v25 = vld [vmem:[%s9091_s9 + $0x44] ss:$16 sps:$4 sm:$0xff]  }
 0xaf3   :  { %v2768_v19 = vrot.slane %v2717_v29, 4  ;;  %v2719_v24 = vpop.f32.mrb[38].mxu1  ;;  %v2760_v45 = vpop.f32.mrb[42].mxu0  ;;  %v2770_v59 = vrot.slane %v2758_v40, 4  ;;  %v7383_v51 = vld [vmem:[%s9091_s9 + $0x40] ss:$16 sps:$4 sm:$0xff]  }
 0xaf4   :  { %v5268_v43 = vpop.eup %5267  ;;  %v2775_v47 = vadd.f32 %v2767_v41, %v7030_v15  ;;  %v2720_v4 = vpop.f32.mrb[39].mxu1  ;;  %v2777_v55 = vadd.f32 %v2769_v35, %v7036_v62  ;;  %v7390_v41 = vld [vmem:[%s9091_s9 + $0x64] ss:$16 sps:$4 sm:$0xff]   ;;  %v7397_v29 = vld [vmem:[%s9091_s9 + $0x60] ss:$16 sps:$4 sm:$0xff]  }
 0xaf5   :  { %v2761_v22 = vpop.f32.mrb[43].mxu0  ;;  %v2776_v5 = vadd.f32 %v2768_v19, %v7033_v44  ;;  %v2680_v9 = vmul.f32 %v5268_v43, %v2675_v6  ;;  %v2778_v61 = vadd.f32 %v2770_v59, %v7045_v63  ;;  %v7403_v40 = vld [vmem:[%s9091_s9 + $0x68] ss:$16 sps:$4 sm:$0xff]   ;;  %v7409_v6 = vld [vmem:[%s9091_s9 + $0x84] ss:$16 sps:$4 sm:$0xff]  }
 0xaf6   :  { %v2779_v48 = vmul.f32 0.5, %v2775_v47  ;;  %v7415_v19 = vld [vmem:[%s9091_s9 + $0x8c] ss:$16 sps:$4 sm:$0xff]   ;;  %v7421_v24 = vld [vmem:[%s9091_s9 + $0x80] ss:$16 sps:$4 sm:$0xff]  }
 0xaf7   :  { %v2783_v50 = vmul.f32 0.5, %v2776_v5  ;;  %v2801_v52 = vrot.slane %v2680_v9, 4  ;;  %v2788_v31 = vmul.f32 0.5, %v2778_v61  ;;  %v7427_v45 = vld [vmem:[%s9091_s9 + $0x88] ss:$16 sps:$4 sm:$0xff]  }
 0xaf8   :  { %5269 = vtanh.f32 %v2779_v48  ;;  %v7433_v43 = vld [vmem:[%s9091_s9 + $0xa4] ss:$16 sps:$4 sm:$0xff]   ;;  %v7439_v47 = vld [vmem:[%s9091_s9 + $0xac] ss:$16 sps:$4 sm:$0xff]   ;;  %v7445_v35 = vld [vmem:[%s9091_s9 + $0xa0] ss:$16 sps:$4 sm:$0xff]  }
 0xaf9   :  { %5271 = vtanh.f32 %v2783_v50  ;;  %v2804_v60 = vpack.c.bf16 %v2801_v52, %v2801_v52  ;;  %v7451_v4 = vld [vmem:[%s9091_s9 + $0xa8] ss:$16 sps:$4 sm:$0xff]   ;;  %v7457_v22 = vld [vmem:[%s9091_s9 + $0xc4] ss:$16 sps:$4 sm:$0xff]   ;;  %v7463_v5 = vld [vmem:[%s9091_s9 + $0xcc] ss:$16 sps:$4 sm:$0xff]  }
 0xafa   :  { %5273 = vtanh.f32 %v2777_v55  ;;  %v7469_v9 = vld [vmem:[%s9091_s9 + $0xc0] ss:$16 sps:$4 sm:$0xff]   ;;  %v7475_v48 = vld [vmem:[%s9091_s9 + $0xc8] ss:$16 sps:$4 sm:$0xff]   ;;  %v7481_v50 = vld [vmem:[%s9091_s9 + $0xe4] ss:$16 sps:$4 sm:$0xff]  }
 0xafb   :  { %v2808_v57 = vrot.slane %v2804_v60, 2  ;;  %5275 = vtanh.f32 %v2788_v31  ;;  %v7487_v52 = vld [vmem:[%s9091_s9 + $0xec] ss:$16 sps:$4 sm:$0xff]   ;;  %v7493_v55 = vld [vmem:[%s9091_s9 + $0xe0] ss:$16 sps:$4 sm:$0xff]  }
 0xafc   :  { %v7499_v59 = vld [vmem:[%s9091_s9 + $0xe8] ss:$16 sps:$4 sm:$0xff]   ;;  %v7505_v60 = vld [vmem:[%s9093_s11 + $0x4] ss:$16 sps:$4 sm:$0xff]   ;;  %v7519_v61 = vld [vmem:[%s9093_s11] ss:$16 sps:$4 sm:$0xff]  }
 0xafd   :  { %2843 = vmatprep.mubr.bf16.mxu1 %v2808_v57  ;;  %2884 = vmatprep.mubr.bf16.mxu0 %v2808_v57  ;;  %v7511_v57 = vld [vmem:[%s9093_s11 + $0xc] ss:$16 sps:$4 sm:$0xff]   ;;  %v7525_v31 = vld [vmem:[%s9093_s11 + $0x8] ss:$16 sps:$4 sm:$0xff]  }
 0xb02   :  { %v5270_v32 = vpop.eup %5269 }
 0xb03   :  { %v5272_v8 = vpop.eup %5271  ;;  %v2781_v37 = vadd.f32 1.0, %v5270_v32  ;;  %v7531_v32 = vld [vmem:[%s9093_s11 + $0x24] ss:$16 sps:$4 sm:$0xff]  }
 0xb04   :  { %v2785_v7 = vadd.f32 1.0, %v5272_v8  ;;  %v5274_v28 = vpop.eup %5273  ;;  %v7537_v8 = vld [vmem:[%s9093_s11 + $0x2c] ss:$16 sps:$4 sm:$0xff]  }
 0xb05   :  { %v2782_v20 = vmul.f32 0.5, %v2781_v37  ;;  %v5276_v42 = vpop.eup %5275  ;;  %v7543_v37 = vld [vmem:[%s9093_s11 + $0x20] ss:$16 sps:$4 sm:$0xff]  }
 0xb06   :  { %v2786_v12 = vmul.f32 0.5, %v2785_v7  ;;  %v2790_v13 = vadd.f32 1.0, %v5276_v42  ;;  %9685 = vst [vmem:[#allocation13_spill] sm:$0xff] %v7543_v37  ;;  %v7549_v7 = vld [vmem:[%s9093_s11 + $0x28] ss:$16 sps:$4 sm:$0xff]  }
 0xb07   :  { %v2796_v53 = vmul.f32 %v5274_v28, %v2782_v20  ;;  %9686 = vst [vmem:[#allocation14_spill] sm:$0xff] %v7549_v7  ;;  %v7555_v20 = vld [vmem:[%s9093_s11 + $0x44] ss:$16 sps:$4 sm:$0xff]   ;;  %v7561_v28 = vld [vmem:[%s9093_s11 + $0x4c] ss:$16 sps:$4 sm:$0xff]  }
 0xb08   :  { %v2795_v54 = vmul.f32 %v2793_v30, %v2786_v12  ;;  %v2791_v0 = vmul.f32 0.5, %v2790_v13  ;;  %9687 = vst [vmem:[#allocation15_spill] sm:$0xff] %v7555_v20  ;;  %9688 = vst [vmem:[#allocation16_spill] sm:$0xff] %v7561_v28  ;;  %v7567_v12 = vld [vmem:[%s9093_s11 + $0x40] ss:$16 sps:$4 sm:$0xff]  }
 0xb09   :  { %9689 = vst [vmem:[#allocation17_spill] sm:$0xff] %v7567_v12  ;;  %v7573_v30 = vld [vmem:[%s9093_s11 + $0x48] ss:$16 sps:$4 sm:$0xff]   ;;  %v7591_v42 = vld [vmem:[%s9093_s11 + $0x60] ss:$16 sps:$4 sm:$0xff]  }
 0xb0a   :  { %v7343_v56 = vadd.f32 %v2796_v53, %v2795_v54  ;;  %9690 = vst [vmem:[#allocation18_spill] sm:$0xff] %v7573_v30  ;;  %v7579_v53 = vld [vmem:[%s9093_s11 + $0x64] ss:$16 sps:$4 sm:$0xff]   ;;  %v7585_v54 = vld [vmem:[%s9093_s11 + $0x6c] ss:$16 sps:$4 sm:$0xff]   ;;  %9693 = vst [vmem:[#allocation21_spill] sm:$0xff] %v7591_v42 }
 0xb0b   :  { %9691 = vst [vmem:[#allocation19_spill] sm:$0xff] %v7579_v53  ;;  %9692 = vst [vmem:[#allocation20_spill] sm:$0xff] %v7585_v54  ;;  %v7597_v13 = vld [vmem:[%s9093_s11 + $0x68] ss:$16 sps:$4 sm:$0xff]  }
 0xb0c   :  { %5277 = vtanh.f32 %v7343_v56  ;;  %9694 = vst [vmem:[#allocation22_spill] sm:$0xff] %v7597_v13 }
 0xb16   :  { %v5278_v39 = vpop.eup %5277 }
 0xb17   :  { %v2799_v34 = vmul.f32 %v5278_v39, %v2791_v0  ;;  %v7603_v0 = vld [vmem:[%s9093_s11 + $0x84] ss:$16 sps:$4 sm:$0xff]   ;;  %v7609_v39 = vld [vmem:[%s9093_s11 + $0x8c] ss:$16 sps:$4 sm:$0xff]  }
 0xb18   :  { %9695 = vst [vmem:[#allocation23_spill] sm:$0xff] %v7603_v0  ;;  %9696 = vst [vmem:[#allocation24_spill] sm:$0xff] %v7609_v39 }
 0xb19   :  { %v2803_v1 = vpack.c.bf16 %v2799_v34, %v2799_v34  ;;  %v7615_v34 = vld [vmem:[%s9093_s11 + $0x80] ss:$16 sps:$4 sm:$0xff]  }
 0xb1a   :  { %9697 = vst [vmem:[#allocation25_spill] sm:$0xff] %v7615_v34 }
 0xb1b   :  { %v7346_v2 = vrot.slane %v2803_v1, 2  ;;  %v7621_v1 = vld [vmem:[%s9093_s11 + $0x88] ss:$16 sps:$4 sm:$0xff]  }
 0xb1c   :  { %9698 = vst [vmem:[#allocation26_spill] sm:$0xff] %v7621_v1 }
 0xb1d   :  { %2844 = vmatmul.mubr.bf16.vlgmr.msra.gmra.mrb[40].mxu1 %v7346_v2  ;;  %2885 = vmatmul.mubr.bf16.vlgmr.msra.gmra.mrb[44].mxu0 %v7346_v2 }
 0xb1e   :  { %2912 = vmatpush1.bf16.msra.mxu1 %v7353_v58  ;;  %2953 = vmatpush1.bf16.msra.mxu0 %v7196_v10 }
 0xb1f   :  { %2913 = vmatprep.subr.bf16.mxu1 %v7360_v38  ;;  %2954 = vmatprep.subr.bf16.mxu0 %v7203_v16 }
 0xb20   :  { %2943 = vmatprep.mubr.bf16.mxu1 %v9563_v18  ;;  %2984 = vmatprep.mubr.bf16.mxu0 %v9563_v18 }
 0xb22   :  { %2914 = vmatpush1.bf16.msra.mxu1 %v7369_v17  ;;  %2955 = vmatpush1.bf16.msra.mxu0 %v7212_v26 }
 0xb23   :  { %2915 = vmatprep.subr.bf16.mxu1 %v7376_v25  ;;  %2956 = vmatprep.subr.bf16.mxu0 %v7219_v21 }
 0xb26   :  { %2916 = vmatpush1.bf16.msra.mxu1 %v7383_v51  ;;  %2957 = vmatpush1.bf16.msra.mxu0 %v7226_v27 }
 0xb27   :  { %2917 = vmatprep.subr.bf16.mxu1 %v7390_v41  ;;  %2958 = vmatprep.subr.bf16.mxu0 %v7233_v14 }
 0xb2a   :  { %2918 = vmatpush1.bf16.msra.mxu1 %v7397_v29  ;;  %2959 = vmatpush1.bf16.msra.mxu0 %v7403_v40 }
 0xb2b   :  { %2919 = vmatprep.subr.bf16.mxu1 %v7409_v6  ;;  %2960 = vmatprep.subr.bf16.mxu0 %v7415_v19 }
 0xb2e   :  { %2920 = vmatpush1.bf16.msra.mxu1 %v7421_v24  ;;  %2961 = vmatpush1.bf16.msra.mxu0 %v7427_v45 }
 0xb2f   :  { %2921 = vmatprep.subr.bf16.mxu1 %v7433_v43  ;;  %2962 = vmatprep.subr.bf16.mxu0 %v7439_v47 }
 0xb32   :  { %2922 = vmatpush1.bf16.msra.mxu1 %v7445_v35  ;;  %2963 = vmatpush1.bf16.msra.mxu0 %v7451_v4 }
 0xb33   :  { %2923 = vmatprep.subr.bf16.mxu1 %v7457_v22  ;;  %2964 = vmatprep.subr.bf16.mxu0 %v7463_v5 }
 0xb36   :  { %2924 = vmatpush1.bf16.msra.mxu1 %v7469_v9  ;;  %2965 = vmatpush1.bf16.msra.mxu0 %v7475_v48 }
 0xb37   :  { %2925 = vmatprep.subr.bf16.mxu1 %v7481_v50  ;;  %2966 = vmatprep.subr.bf16.mxu0 %v7487_v52 }
 0xb3a   :  { %2926 = vmatpush1.bf16.msra.mxu1 %v7493_v55  ;;  %2967 = vmatpush1.bf16.msra.mxu0 %v7499_v59 }
 0xb3b   :  { %3041 = vmatprep.subr.bf16.mxu1 %v7505_v60  ;;  %3082 = vmatprep.subr.bf16.mxu0 %v7511_v57 }
 0xb3d   :  { %2944 = vmatmul.mubr.bf16.vlgmr.msra.gmra.mrb[44].mxu1 %v7346_v2  ;;  %2985 = vmatmul.mubr.bf16.vlgmr.msra.gmra.mrb[48].mxu0 %v7346_v2  ;;  %v7627_v2 = vld [vmem:[%s9093_s11 + $0xa4] ss:$16 sps:$4 sm:$0xff]  }
 0xb3e   :  { %3042 = vmatpush1.bf16.msra.mxu1 %v7519_v61  ;;  %3083 = vmatpush1.bf16.msra.mxu0 %v7525_v31  ;;  %9699 = vst [vmem:[#allocation27_spill] sm:$0xff] %v7627_v2 }
 0xb3f   :  { %3043 = vmatprep.subr.bf16.mxu1 %v7531_v32  ;;  %3084 = vmatprep.subr.bf16.mxu0 %v7537_v8 }
 0xb42   :  { %3044 = vmatpush1.bf16.msra.mxu1 %v7543_v37  ;;  %3085 = vmatpush1.bf16.msra.mxu0 %v7549_v7 }
 0xb43   :  { %3045 = vmatprep.subr.bf16.mxu1 %v7555_v20  ;;  %3086 = vmatprep.subr.bf16.mxu0 %v7561_v28 }
 0xb46   :  { %3046 = vmatpush1.bf16.msra.mxu1 %v7567_v12  ;;  %3087 = vmatpush1.bf16.msra.mxu0 %v7573_v30 }
 0xb47   :  { %3047 = vmatprep.subr.bf16.mxu1 %v7579_v53  ;;  %3088 = vmatprep.subr.bf16.mxu0 %v7585_v54 }
 0xb4a   :  { %3048 = vmatpush1.bf16.msra.mxu1 %v7591_v42  ;;  %3089 = vmatpush1.bf16.msra.mxu0 %v7597_v13 }
 0xb4b   :  { %3049 = vmatprep.subr.bf16.mxu1 %v7603_v0  ;;  %3090 = vmatprep.subr.bf16.mxu0 %v7609_v39  ;;  %v7633_v39 = vld [vmem:[%s9093_s11 + $0xac] ss:$16 sps:$4 sm:$0xff]  }
 0xb4c   :  { %9700 = vst [vmem:[#allocation28_spill] sm:$0xff] %v7633_v39 }
 0xb4e   :  { %3050 = vmatpush1.bf16.msra.mxu1 %v7615_v34  ;;  %3091 = vmatpush1.bf16.msra.mxu0 %v7621_v1  ;;  %v7639_v34 = vld [vmem:[%s9093_s11 + $0xa0] ss:$16 sps:$4 sm:$0xff]   ;;  %v7645_v1 = vld [vmem:[%s9093_s11 + $0xa8] ss:$16 sps:$4 sm:$0xff]  }
 0xb4f   :  { %3051 = vmatprep.subr.bf16.mxu1 %v7627_v2  ;;  %3092 = vmatprep.subr.bf16.mxu0 %v7633_v39  ;;  %9701 = vst [vmem:[#allocation29_spill] sm:$0xff] %v7639_v34  ;;  %9702 = vst [vmem:[#allocation30_spill] sm:$0xff] %v7645_v1  ;;  %v7651_v2 = vld [vmem:[%s9093_s11 + $0xc4] ss:$16 sps:$4 sm:$0xff]   ;;  %v7657_v39 = vld [vmem:[%s9093_s11 + $0xcc] ss:$16 sps:$4 sm:$0xff]  }
 0xb50   :  { %9703 = vst [vmem:[#allocation31_spill] sm:$0xff] %v7651_v2  ;;  %9704 = vst [vmem:[#allocation32_spill] sm:$0xff] %v7657_v39 }
 0xb52   :  { %3052 = vmatpush1.bf16.msra.mxu1 %v7639_v34  ;;  %3093 = vmatpush1.bf16.msra.mxu0 %v7645_v1  ;;  %v7663_v34 = vld [vmem:[%s9093_s11 + $0xc0] ss:$16 sps:$4 sm:$0xff]   ;;  %v7669_v1 = vld [vmem:[%s9093_s11 + $0xc8] ss:$16 sps:$4 sm:$0xff]  }
 0xb53   :  { %3053 = vmatprep.subr.bf16.mxu1 %v7651_v2  ;;  %3094 = vmatprep.subr.bf16.mxu0 %v7657_v39  ;;  %9705 = vst [vmem:[#allocation33_spill] sm:$0xff] %v7663_v34  ;;  %9706 = vst [vmem:[#allocation34_spill] sm:$0xff] %v7669_v1  ;;  %v7675_v2 = vld [vmem:[%s9093_s11 + $0xe4] ss:$16 sps:$4 sm:$0xff]   ;;  %v7681_v39 = vld [vmem:[%s9093_s11 + $0xec] ss:$16 sps:$4 sm:$0xff]  }
 0xb54   :  { %9707 = vst [vmem:[#allocation35_spill] sm:$0xff] %v7675_v2  ;;  %9708 = vst [vmem:[#allocation36_spill] sm:$0xff] %v7681_v39 }
 0xb56   :  { %3054 = vmatpush1.bf16.msra.mxu1 %v7663_v34  ;;  %3095 = vmatpush1.bf16.msra.mxu0 %v7669_v1  ;;  %v7687_v34 = vld [vmem:[%s9093_s11 + $0xe0] ss:$16 sps:$4 sm:$0xff]   ;;  %v7693_v1 = vld [vmem:[%s9093_s11 + $0xe8] ss:$16 sps:$4 sm:$0xff]  }
 0xb57   :  { %3055 = vmatprep.subr.bf16.mxu1 %v7675_v2  ;;  %3096 = vmatprep.subr.bf16.mxu0 %v7681_v39  ;;  %9709 = vst [vmem:[#allocation37_spill] sm:$0xff] %v7687_v34  ;;  %9710 = vst [vmem:[#allocation38_spill] sm:$0xff] %v7693_v1  ;;  %v7699_v2 = vld [vmem:[%s9093_s11 + $0x104] ss:$16 sps:$4 sm:$0xff]   ;;  %v7705_v39 = vld [vmem:[%s9093_s11 + $0x10c] ss:$16 sps:$4 sm:$0xff]  }
 0xb58   :  { %9711 = vst [vmem:[#allocation39_spill] sm:$0xff] %v7699_v2  ;;  %9712 = vst [vmem:[#allocation40_spill] sm:$0xff] %v7705_v39 }
 0xb5a   :  { %3056 = vmatpush1.bf16.msra.mxu1 %v7687_v34  ;;  %3097 = vmatpush1.bf16.msra.mxu0 %v7693_v1  ;;  %v7711_v34 = vld [vmem:[%s9093_s11 + $0x100] ss:$16 sps:$4 sm:$0xff]   ;;  %v7717_v1 = vld [vmem:[%s9093_s11 + $0x108] ss:$16 sps:$4 sm:$0xff]  }
 0xb5b   :  { %3057 = vmatprep.subr.bf16.mxu1 %v7699_v2  ;;  %3098 = vmatprep.subr.bf16.mxu0 %v7705_v39  ;;  %9713 = vst [vmem:[#allocation41_spill] sm:$0xff] %v7711_v34  ;;  %9714 = vst [vmem:[#allocation42_spill] sm:$0xff] %v7717_v1  ;;  %v7723_v2 = vld [vmem:[%s9093_s11 + $0x124] ss:$16 sps:$4 sm:$0xff]   ;;  %v7729_v39 = vld [vmem:[%s9093_s11 + $0x12c] ss:$16 sps:$4 sm:$0xff]  }
 0xb5c   :  { %9715 = vst [vmem:[#allocation43_spill] sm:$0xff] %v7723_v2  ;;  %9716 = vst [vmem:[#allocation44_spill] sm:$0xff] %v7729_v39 }
 0xb5e   :  { %3058 = vmatpush1.bf16.msra.mxu1 %v7711_v34  ;;  %3099 = vmatpush1.bf16.msra.mxu0 %v7717_v1  ;;  %v7735_v34 = vld [vmem:[%s9093_s11 + $0x120] ss:$16 sps:$4 sm:$0xff]   ;;  %v7741_v1 = vld [vmem:[%s9093_s11 + $0x128] ss:$16 sps:$4 sm:$0xff]  }
 0xb5f   :  { %3059 = vmatprep.subr.bf16.mxu1 %v7723_v2  ;;  %3100 = vmatprep.subr.bf16.mxu0 %v7729_v39  ;;  %9717 = vst [vmem:[#allocation45_spill] sm:$0xff] %v7735_v34  ;;  %9718 = vst [vmem:[#allocation46_spill] sm:$0xff] %v7741_v1  ;;  %v7747_v2 = vld [vmem:[%s9093_s11 + $0x144] ss:$16 sps:$4 sm:$0xff]   ;;  %v7753_v39 = vld [vmem:[%s9093_s11 + $0x14c] ss:$16 sps:$4 sm:$0xff]  }
 0xb60   :  { %9719 = vst [vmem:[#allocation47_spill] sm:$0xff] %v7747_v2  ;;  %9720 = vst [vmem:[#allocation48_spill] sm:$0xff] %v7753_v39 }
 0xb62   :  { %3060 = vmatpush1.bf16.msra.mxu1 %v7735_v34  ;;  %3101 = vmatpush1.bf16.msra.mxu0 %v7741_v1  ;;  %v7759_v34 = vld [vmem:[%s9093_s11 + $0x140] ss:$16 sps:$4 sm:$0xff]   ;;  %v7765_v1 = vld [vmem:[%s9093_s11 + $0x148] ss:$16 sps:$4 sm:$0xff]  }
 0xb63   :  { %3061 = vmatprep.subr.bf16.mxu1 %v7747_v2  ;;  %3102 = vmatprep.subr.bf16.mxu0 %v7753_v39  ;;  %9721 = vst [vmem:[#allocation49_spill] sm:$0xff] %v7759_v34  ;;  %9722 = vst [vmem:[#allocation50_spill] sm:$0xff] %v7765_v1  ;;  %v7771_v2 = vld [vmem:[%s9093_s11 + $0x164] ss:$16 sps:$4 sm:$0xff]   ;;  %v7777_v39 = vld [vmem:[%s9093_s11 + $0x16c] ss:$16 sps:$4 sm:$0xff]  }
 0xb64   :  { %9723 = vst [vmem:[#allocation51_spill] sm:$0xff] %v7771_v2  ;;  %9724 = vst [vmem:[#allocation52_spill] sm:$0xff] %v7777_v39 }
 0xb66   :  { %3062 = vmatpush1.bf16.msra.mxu1 %v7759_v34  ;;  %3103 = vmatpush1.bf16.msra.mxu0 %v7765_v1  ;;  %v7783_v34 = vld [vmem:[%s9093_s11 + $0x160] ss:$16 sps:$4 sm:$0xff]   ;;  %v7789_v1 = vld [vmem:[%s9093_s11 + $0x168] ss:$16 sps:$4 sm:$0xff]  }
 0xb67   :  { %3063 = vmatprep.subr.bf16.mxu1 %v7771_v2  ;;  %3104 = vmatprep.subr.bf16.mxu0 %v7777_v39  ;;  %9725 = vst [vmem:[#allocation53_spill] sm:$0xff] %v7783_v34  ;;  %9726 = vst [vmem:[#allocation54_spill] sm:$0xff] %v7789_v1  ;;  %v7795_v2 = vld [vmem:[%s9093_s11 + $0x184] ss:$16 sps:$4 sm:$0xff]   ;;  %v7801_v39 = vld [vmem:[%s9093_s11 + $0x18c] ss:$16 sps:$4 sm:$0xff]  }
 0xb68   :  { %9727 = vst [vmem:[#allocation55_spill] sm:$0xff] %v7795_v2  ;;  %9728 = vst [vmem:[#allocation56_spill] sm:$0xff] %v7801_v39 }
 0xb6a   :  { %3064 = vmatpush1.bf16.msra.mxu1 %v7783_v34  ;;  %3105 = vmatpush1.bf16.msra.mxu0 %v7789_v1  ;;  %v7807_v34 = vld [vmem:[%s9093_s11 + $0x180] ss:$16 sps:$4 sm:$0xff]   ;;  %v7813_v1 = vld [vmem:[%s9093_s11 + $0x188] ss:$16 sps:$4 sm:$0xff]  }
 0xb6b   :  { %3065 = vmatprep.subr.bf16.mxu1 %v7795_v2  ;;  %3106 = vmatprep.subr.bf16.mxu0 %v7801_v39  ;;  %9729 = vst [vmem:[#allocation57_spill] sm:$0xff] %v7807_v34  ;;  %9730 = vst [vmem:[#allocation58_spill] sm:$0xff] %v7813_v1  ;;  %v7819_v2 = vld [vmem:[%s9093_s11 + $0x1a4] ss:$16 sps:$4 sm:$0xff]   ;;  %v7825_v39 = vld [vmem:[%s9093_s11 + $0x1ac] ss:$16 sps:$4 sm:$0xff]  }
 0xb6c   :  { %9731 = vst [vmem:[#allocation59_spill] sm:$0xff] %v7819_v2  ;;  %9732 = vst [vmem:[#allocation60_spill] sm:$0xff] %v7825_v39 }
 0xb6e   :  { %3066 = vmatpush1.bf16.msra.mxu1 %v7807_v34  ;;  %3107 = vmatpush1.bf16.msra.mxu0 %v7813_v1  ;;  %v7831_v34 = vld [vmem:[%s9093_s11 + $0x1a0] ss:$16 sps:$4 sm:$0xff]   ;;  %v7837_v1 = vld [vmem:[%s9093_s11 + $0x1a8] ss:$16 sps:$4 sm:$0xff]  }
 0xb6f   :  { %3067 = vmatprep.subr.bf16.mxu1 %v7819_v2  ;;  %3108 = vmatprep.subr.bf16.mxu0 %v7825_v39  ;;  %9733 = vst [vmem:[#allocation61_spill] sm:$0xff] %v7831_v34  ;;  %9734 = vst [vmem:[#allocation71_spill] sm:$0xff] %v7837_v1  ;;  %v7843_v2 = vld [vmem:[%s9093_s11 + $0x1c4] ss:$16 sps:$4 sm:$0xff]   ;;  %v7849_v39 = vld [vmem:[%s9093_s11 + $0x1cc] ss:$16 sps:$4 sm:$0xff]  }
 0xb70   :  { %9735 = vst [vmem:[#allocation72_spill] sm:$0xff] %v7843_v2  ;;  %9736 = vst [vmem:[#allocation73_spill] sm:$0xff] %v7849_v39 }
 0xb72   :  { %3068 = vmatpush1.bf16.msra.mxu1 %v7831_v34  ;;  %3109 = vmatpush1.bf16.msra.mxu0 %v7837_v1  ;;  %v7855_v34 = vld [vmem:[%s9093_s11 + $0x1c0] ss:$16 sps:$4 sm:$0xff]   ;;  %v7861_v1 = vld [vmem:[%s9093_s11 + $0x1c8] ss:$16 sps:$4 sm:$0xff]  }
 0xb73   :  { %3069 = vmatprep.subr.bf16.mxu1 %v7843_v2  ;;  %3110 = vmatprep.subr.bf16.mxu0 %v7849_v39  ;;  %9737 = vst [vmem:[#allocation74_spill] sm:$0xff] %v7855_v34  ;;  %9738 = vst [vmem:[#allocation75_spill] sm:$0xff] %v7861_v1  ;;  %v7867_v2 = vld [vmem:[%s9093_s11 + $0x1e4] ss:$16 sps:$4 sm:$0xff]   ;;  %v7873_v39 = vld [vmem:[%s9093_s11 + $0x1ec] ss:$16 sps:$4 sm:$0xff]  }
 0xb74   :  { %9739 = vst [vmem:[#allocation76_spill] sm:$0xff] %v7867_v2  ;;  %9740 = vst [vmem:[#allocation77_spill] sm:$0xff] %v7873_v39 }
 0xb76   :  { %3070 = vmatpush1.bf16.msra.mxu1 %v7855_v34  ;;  %3111 = vmatpush1.bf16.msra.mxu0 %v7861_v1  ;;  %v7879_v34 = vld [vmem:[%s9093_s11 + $0x1e0] ss:$16 sps:$4 sm:$0xff]   ;;  %v7885_v1 = vld [vmem:[%s9093_s11 + $0x1e8] ss:$16 sps:$4 sm:$0xff]  }
 0xb77   :  { %3071 = vmatprep.subr.bf16.mxu1 %v7867_v2  ;;  %3112 = vmatprep.subr.bf16.mxu0 %v7873_v39  ;;  %9741 = vst [vmem:[#allocation78_spill] sm:$0xff] %v7879_v34  ;;  %9742 = vst [vmem:[#allocation79_spill] sm:$0xff] %v7885_v1 }
 0xb7a   :  { %3072 = vmatpush1.bf16.msra.mxu1 %v7879_v34  ;;  %3113 = vmatpush1.bf16.msra.mxu0 %v7885_v1 }
 0xb7b   :  { %3141 = vmatprep.subr.bf16.mxu1 %v7321_v11  ;;  %3182 = vmatprep.subr.bf16.mxu0 %v7327_v49 }
 0xbf0   :  { %v2845_v2 = vpop.f32.mrb[40].mxu1  ;;  %v2886_v39 = vpop.f32.mrb[44].mxu0 }
 0xbf1   :  { %v2846_v0 = vadd.f32 %v2845_v2, %v9680_v33  ;;  %v2847_v13 = vpop.f32.mrb[41].mxu1  ;;  %v2888_v42 = vpop.f32.mrb[45].mxu0  ;;  %v2887_v1 = vadd.f32 %v2886_v39, %v9682_v23 }
 0xbf2   :  { %v2848_v54 = vadd.f32 %v2847_v13, %v9681_v36  ;;  %v2849_v34 = vpop.f32.mrb[42].mxu1  ;;  %v2890_v53 = vpop.f32.mrb[46].mxu0  ;;  %v2889_v49 = vadd.f32 %v2888_v42, %v9683_v46 }
 0xbf3   :  { %v2893_v30 = vmul.f32 0.5, %v2846_v0  ;;  %v2850_v12 = vpop.f32.mrb[43].mxu1  ;;  %v2891_v28 = vpop.f32.mrb[47].mxu0 }
 0xbf4   :  { %v2897_v20 = vmul.f32 0.5, %v2848_v54  ;;  %v2902_v11 = vmul.f32 0.5, %v2889_v49 }
 0xbf5   :  { %5279 = vtanh.f32 %v2893_v30 }
 0xbf6   :  { %5281 = vtanh.f32 %v2897_v20 }
 0xbf7   :  { %5283 = vtanh.f32 %v2887_v1 }
 0xbf8   :  { %5285 = vtanh.f32 %v2902_v11 }
 0xbff   :  { %v5280_v7 = vpop.eup %5279 }
 0xc00   :  { %v5282_v2 = vpop.eup %5281  ;;  %v2895_v33 = vadd.f32 1.0, %v5280_v7 }
 0xc01   :  { %v2899_v37 = vadd.f32 1.0, %v5282_v2  ;;  %v5284_v34 = vpop.eup %5283 }
 0xc02   :  { %v2896_v13 = vmul.f32 0.5, %v2895_v33  ;;  %v5286_v20 = vpop.eup %5285 }
 0xc03   :  { %v2900_v53 = vmul.f32 0.5, %v2899_v37  ;;  %v2904_v30 = vadd.f32 1.0, %v5286_v20 }
 0xc04   :  { %v2907_v0 = vmul.f32 %v5284_v34, %v2896_v13 }
 0xc05   :  { %v2906_v28 = vmul.f32 %v2900_v53, %v7335_v3  ;;  %v2905_v7 = vmul.f32 0.5, %v2904_v30 }
 0xc07   :  { %v7895_v12 = vadd.f32 %v2907_v0, %v2906_v28 }
 0xc09   :  { %9743 = vst [vmem:[#allocation80_spill] sm:$0xff] %v7895_v12  ;;  %5287 = vtanh.f32 %v7895_v12 }
 0xc10   :  { %v2945_v54 = vpop.f32.mrb[44].mxu1  ;;  %v2986_v42 = vpop.f32.mrb[48].mxu0 }
 0xc11   :  { %v2997_v49 = vrot.slane %v2945_v54, 2  ;;  %v2947_v39 = vpop.f32.mrb[45].mxu1  ;;  %v2988_v1 = vpop.f32.mrb[49].mxu0  ;;  %v2999_v13 = vrot.slane %v2986_v42, 2 }
 0xc12   :  { %v2998_v2 = vrot.slane %v2947_v39, 2  ;;  %v2949_v11 = vpop.f32.mrb[46].mxu1  ;;  %v2990_v33 = vpop.f32.mrb[50].mxu0  ;;  %v3000_v23 = vrot.slane %v2988_v1, 2 }
 0xc13   :  { %v5288_v46 = vpop.eup %5287  ;;  %v3005_v37 = vadd.f32 %v2997_v49, %v7030_v15  ;;  %v2950_v3 = vpop.f32.mrb[47].mxu1  ;;  %v3007_v54 = vadd.f32 %v2999_v13, %v7036_v62  ;;  %v3023_v62 = vrot.slane %v7343_v56, 6  ;;  %v9750_v56 = vld [vmem:[#allocation19_spill] sm:$0xff] }
 0xc14   :  { %v2991_v34 = vpop.f32.mrb[51].mxu0  ;;  %v3006_v53 = vadd.f32 %v2998_v2, %v7033_v44  ;;  %v2910_v0 = vmul.f32 %v5288_v46, %v2905_v7  ;;  %v3008_v11 = vadd.f32 %v3000_v23, %v7045_v63 }
 0xc15   :  { %v3009_v28 = vmul.f32 0.5, %v3005_v37 }
 0xc16   :  { %v3013_v20 = vmul.f32 0.5, %v3006_v53  ;;  %v3031_v12 = vrot.slane %v2910_v0, 2  ;;  %v3018_v15 = vmul.f32 0.5, %v3008_v11  ;;  %v9756_v11 = vld [vmem:[#allocation25_spill] sm:$0xff] }
 0xc17   :  { %5289 = vtanh.f32 %v3009_v28  ;;  %v9751_v28 = vld [vmem:[#allocation20_spill] sm:$0xff] }
 0xc18   :  { %5291 = vtanh.f32 %v3013_v20  ;;  %v3034_v30 = vpack.c.bf16 %v3031_v12, %v3031_v12  ;;  %v9752_v20 = vld [vmem:[#allocation21_spill] sm:$0xff] }
 0xc19   :  { %5293 = vtanh.f32 %v3007_v54  ;;  %v9753_v54 = vld [vmem:[#allocation22_spill] sm:$0xff] }
 0xc1a   :  { %v3038_v39 = vrot.slane %v3034_v30, 3  ;;  %5295 = vtanh.f32 %v3018_v15  ;;  %v9754_v30 = vld [vmem:[#allocation23_spill] sm:$0xff]  ;;  %v9757_v15 = vld [vmem:[#allocation26_spill] sm:$0xff] }
 0xc1c   :  { %3073 = vmatprep.mubr.bf16.mxu1 %v3038_v39  ;;  %3114 = vmatprep.mubr.bf16.mxu0 %v3038_v39  ;;  %v9755_v39 = vld [vmem:[#allocation24_spill] sm:$0xff] }
 0xc21   :  { %v5290_v42 = vpop.eup %5289 }
 0xc22   :  { %v5292_v49 = vpop.eup %5291  ;;  %v3011_v44 = vadd.f32 1.0, %v5290_v42  ;;  %v9758_v42 = vld [vmem:[#allocation27_spill] sm:$0xff] }
 0xc23   :  { %v3015_v46 = vadd.f32 1.0, %v5292_v49  ;;  %v5294_v2 = vpop.eup %5293  ;;  %v9759_v49 = vld [vmem:[#allocation28_spill] sm:$0xff] }
 0xc24   :  { %v3012_v7 = vmul.f32 0.5, %v3011_v44  ;;  %v5296_v63 = vpop.eup %5295  ;;  %v9760_v44 = vld [vmem:[#allocation29_spill] sm:$0xff] }
 0xc25   :  { %v3016_v33 = vmul.f32 0.5, %v3015_v46  ;;  %v3020_v23 = vadd.f32 1.0, %v5296_v63  ;;  %v9761_v46 = vld [vmem:[#allocation30_spill] sm:$0xff]  ;;  %v9768_v63 = vld [vmem:[#allocation37_spill] sm:$0xff] }
 0xc26   :  { %v3026_v1 = vmul.f32 %v5294_v2, %v3012_v7  ;;  %v9762_v7 = vld [vmem:[#allocation31_spill] sm:$0xff]  ;;  %v9763_v2 = vld [vmem:[#allocation32_spill] sm:$0xff] }
 0xc27   :  { %v3025_v37 = vmul.f32 %v3023_v62, %v3016_v33  ;;  %v3021_v13 = vmul.f32 0.5, %v3020_v23  ;;  %v9764_v33 = vld [vmem:[#allocation33_spill] sm:$0xff]  ;;  %v9765_v62 = vld [vmem:[#allocation34_spill] sm:$0xff] }
 0xc28   :  { %v9769_v23 = vld [vmem:[#allocation38_spill] sm:$0xff] }
 0xc29   :  { %v7903_v12 = vadd.f32 %v3026_v1, %v3025_v37  ;;  %v9766_v1 = vld [vmem:[#allocation35_spill] sm:$0xff]  ;;  %v9767_v37 = vld [vmem:[#allocation36_spill] sm:$0xff] }
 0xc2b   :  { %5297 = vtanh.f32 %v7903_v12 }
 0xc35   :  { %v5298_v3 = vpop.eup %5297 }
 0xc36   :  { %v3029_v34 = vmul.f32 %v5298_v3, %v3021_v13  ;;  %v9770_v13 = vld [vmem:[#allocation39_spill] sm:$0xff]  ;;  %v9771_v3 = vld [vmem:[#allocation40_spill] sm:$0xff] }
 0xc38   :  { %v3033_v53 = vpack.c.bf16 %v3029_v34, %v3029_v34  ;;  %v9772_v34 = vld [vmem:[#allocation41_spill] sm:$0xff] }
 0xc3a   :  { %v3037_v0 = vrot.slane %v3033_v53, 3  ;;  %v9773_v53 = vld [vmem:[#allocation42_spill] sm:$0xff] }
 0xc3c   :  { %3074 = vmatmul.mubr.bf16.vlgmr.msra.gmra.mrb[48].mxu1 %v3037_v0  ;;  %3115 = vmatmul.mubr.bf16.vlgmr.msra.gmra.mrb[52].mxu0 %v3037_v0 }
 0xc3d   :  { %3142 = vmatpush1.bf16.msra.mxu1 %v7353_v58  ;;  %3183 = vmatpush1.bf16.msra.mxu0 %v7196_v10  ;;  %v9744_v10 = vld [vmem:[#allocation13_spill] sm:$0xff] }
 0xc3e   :  { %3143 = vmatprep.subr.bf16.mxu1 %v7360_v38  ;;  %3184 = vmatprep.subr.bf16.mxu0 %v7203_v16  ;;  %v9745_v16 = vld [vmem:[#allocation14_spill] sm:$0xff] }
 0xc3f   :  { %3173 = vmatprep.mubr.bf16.mxu1 %v9563_v18  ;;  %3214 = vmatprep.mubr.bf16.mxu0 %v9563_v18 }
 0xc41   :  { %3144 = vmatpush1.bf16.msra.mxu1 %v7369_v17  ;;  %3185 = vmatpush1.bf16.msra.mxu0 %v7212_v26  ;;  %v9746_v26 = vld [vmem:[#allocation15_spill] sm:$0xff] }
 0xc42   :  { %3145 = vmatprep.subr.bf16.mxu1 %v7376_v25  ;;  %3186 = vmatprep.subr.bf16.mxu0 %v7219_v21  ;;  %v9747_v21 = vld [vmem:[#allocation16_spill] sm:$0xff] }
 0xc45   :  { %3146 = vmatpush1.bf16.msra.mxu1 %v7383_v51  ;;  %3187 = vmatpush1.bf16.msra.mxu0 %v7226_v27  ;;  %v9748_v27 = vld [vmem:[#allocation17_spill] sm:$0xff] }
 0xc46   :  { %3147 = vmatprep.subr.bf16.mxu1 %v7390_v41  ;;  %3188 = vmatprep.subr.bf16.mxu0 %v7233_v14  ;;  %v9749_v14 = vld [vmem:[#allocation18_spill] sm:$0xff] }
 0xc49   :  { %3148 = vmatpush1.bf16.msra.mxu1 %v7397_v29  ;;  %3189 = vmatpush1.bf16.msra.mxu0 %v7403_v40 }
 0xc4a   :  { %3149 = vmatprep.subr.bf16.mxu1 %v7409_v6  ;;  %3190 = vmatprep.subr.bf16.mxu0 %v7415_v19 }
 0xc4d   :  { %3150 = vmatpush1.bf16.msra.mxu1 %v7421_v24  ;;  %3191 = vmatpush1.bf16.msra.mxu0 %v7427_v45 }
 0xc4e   :  { %3151 = vmatprep.subr.bf16.mxu1 %v7433_v43  ;;  %3192 = vmatprep.subr.bf16.mxu0 %v7439_v47 }
 0xc51   :  { %3152 = vmatpush1.bf16.msra.mxu1 %v7445_v35  ;;  %3193 = vmatpush1.bf16.msra.mxu0 %v7451_v4 }
 0xc52   :  { %3153 = vmatprep.subr.bf16.mxu1 %v7457_v22  ;;  %3194 = vmatprep.subr.bf16.mxu0 %v7463_v5 }
 0xc55   :  { %3154 = vmatpush1.bf16.msra.mxu1 %v7469_v9  ;;  %3195 = vmatpush1.bf16.msra.mxu0 %v7475_v48 }
 0xc56   :  { %3155 = vmatprep.subr.bf16.mxu1 %v7481_v50  ;;  %3196 = vmatprep.subr.bf16.mxu0 %v7487_v52 }
 0xc59   :  { %3156 = vmatpush1.bf16.msra.mxu1 %v7493_v55  ;;  %3197 = vmatpush1.bf16.msra.mxu0 %v7499_v59 }
 0xc5a   :  { %3250 = vmatprep.subr.bf16.mxu1 %v7505_v60  ;;  %3291 = vmatprep.subr.bf16.mxu0 %v7511_v57 }
 0xc5c   :  { %3174 = vmatmul.mubr.bf16.vlgmr.msra.gmra.mrb[52].mxu1 %v3037_v0  ;;  %3215 = vmatmul.mubr.bf16.vlgmr.msra.gmra.mrb[56].mxu0 %v3037_v0  ;;  %v9774_v0 = vld [vmem:[#allocation43_spill] sm:$0xff] }
 0xc5d   :  { %3251 = vmatpush1.bf16.msra.mxu1 %v7519_v61  ;;  %3292 = vmatpush1.bf16.msra.mxu0 %v7525_v31 }
 0xc5e   :  { %3252 = vmatprep.subr.bf16.mxu1 %v7531_v32  ;;  %3293 = vmatprep.subr.bf16.mxu0 %v7537_v8 }
 0xc61   :  { %3253 = vmatpush1.bf16.msra.mxu1 %v9744_v10  ;;  %3294 = vmatpush1.bf16.msra.mxu0 %v9745_v16 }
 0xc62   :  { %3254 = vmatprep.subr.bf16.mxu1 %v9746_v26  ;;  %3295 = vmatprep.subr.bf16.mxu0 %v9747_v21 }
 0xc65   :  { %3255 = vmatpush1.bf16.msra.mxu1 %v9748_v27  ;;  %3296 = vmatpush1.bf16.msra.mxu0 %v9749_v14 }
 0xc66   :  { %3256 = vmatprep.subr.bf16.mxu1 %v9750_v56  ;;  %3297 = vmatprep.subr.bf16.mxu0 %v9751_v28 }
 0xc69   :  { %3257 = vmatpush1.bf16.msra.mxu1 %v9752_v20  ;;  %3298 = vmatpush1.bf16.msra.mxu0 %v9753_v54 }
 0xc6a   :  { %3258 = vmatprep.subr.bf16.mxu1 %v9754_v30  ;;  %3299 = vmatprep.subr.bf16.mxu0 %v9755_v39  ;;  %v9817_v30 = vld [vmem:[#allocation65_spill] sm:$0xff] }
 0xc6d   :  { %3259 = vmatpush1.bf16.msra.mxu1 %v9756_v11  ;;  %3300 = vmatpush1.bf16.msra.mxu0 %v9757_v15 }
 0xc6e   :  { %3260 = vmatprep.subr.bf16.mxu1 %v9758_v42  ;;  %3301 = vmatprep.subr.bf16.mxu0 %v9759_v49 }
 0xc71   :  { %3261 = vmatpush1.bf16.msra.mxu1 %v9760_v44  ;;  %3302 = vmatpush1.bf16.msra.mxu0 %v9761_v46 }
 0xc72   :  { %3262 = vmatprep.subr.bf16.mxu1 %v9762_v7  ;;  %3303 = vmatprep.subr.bf16.mxu0 %v9763_v2  ;;  %v9804_v2 = vld [vmem:[#allocation10_spill] sm:$0xff] }
 0xc75   :  { %3263 = vmatpush1.bf16.msra.mxu1 %v9764_v33  ;;  %3304 = vmatpush1.bf16.msra.mxu0 %v9765_v62  ;;  %v9775_v33 = vld [vmem:[#allocation44_spill] sm:$0xff]  ;;  %v9776_v62 = vld [vmem:[#allocation45_spill] sm:$0xff] }
 0xc76   :  { %3264 = vmatprep.subr.bf16.mxu1 %v9766_v1  ;;  %3305 = vmatprep.subr.bf16.mxu0 %v9767_v37  ;;  %v9777_v1 = vld [vmem:[#allocation46_spill] sm:$0xff]  ;;  %v9778_v37 = vld [vmem:[#allocation47_spill] sm:$0xff] }
 0xc79   :  { %3265 = vmatpush1.bf16.msra.mxu1 %v9768_v63  ;;  %3306 = vmatpush1.bf16.msra.mxu0 %v9769_v23  ;;  %v9779_v63 = vld [vmem:[#allocation48_spill] sm:$0xff]  ;;  %v9780_v23 = vld [vmem:[#allocation49_spill] sm:$0xff] }
 0xc7a   :  { %3266 = vmatprep.subr.bf16.mxu1 %v9770_v13  ;;  %3307 = vmatprep.subr.bf16.mxu0 %v9771_v3  ;;  %v9781_v13 = vld [vmem:[#allocation50_spill] sm:$0xff]  ;;  %v9782_v3 = vld [vmem:[#allocation51_spill] sm:$0xff] }
 0xc7d   :  { %3267 = vmatpush1.bf16.msra.mxu1 %v9772_v34  ;;  %3308 = vmatpush1.bf16.msra.mxu0 %v9773_v53  ;;  %v9783_v34 = vld [vmem:[#allocation52_spill] sm:$0xff]  ;;  %v9784_v53 = vld [vmem:[#allocation53_spill] sm:$0xff] }
 0xc7e   :  { %3268 = vmatprep.subr.bf16.mxu1 %v9774_v0  ;;  %3309 = vmatprep.subr.bf16.mxu0 %v9775_v33  ;;  %v9785_v0 = vld [vmem:[#allocation54_spill] sm:$0xff]  ;;  %v9786_v33 = vld [vmem:[#allocation55_spill] sm:$0xff] }
 0xc81   :  { %3269 = vmatpush1.bf16.msra.mxu1 %v9776_v62  ;;  %3310 = vmatpush1.bf16.msra.mxu0 %v9777_v1  ;;  %v9787_v62 = vld [vmem:[#allocation56_spill] sm:$0xff]  ;;  %v9788_v1 = vld [vmem:[#allocation57_spill] sm:$0xff] }
 0xc82   :  { %3270 = vmatprep.subr.bf16.mxu1 %v9778_v37  ;;  %3311 = vmatprep.subr.bf16.mxu0 %v9779_v63  ;;  %v9789_v37 = vld [vmem:[#allocation58_spill] sm:$0xff]  ;;  %v9790_v63 = vld [vmem:[#allocation59_spill] sm:$0xff] }
 0xc85   :  { %3271 = vmatpush1.bf16.msra.mxu1 %v9780_v23  ;;  %3312 = vmatpush1.bf16.msra.mxu0 %v9781_v13  ;;  %v9791_v23 = vld [vmem:[#allocation60_spill] sm:$0xff]  ;;  %v9792_v13 = vld [vmem:[#allocation61_spill] sm:$0xff] }
 0xc86   :  { %3272 = vmatprep.subr.bf16.mxu1 %v9782_v3  ;;  %3313 = vmatprep.subr.bf16.mxu0 %v9783_v34  ;;  %v9793_v3 = vld [vmem:[#allocation71_spill] sm:$0xff]  ;;  %v9794_v34 = vld [vmem:[#allocation72_spill] sm:$0xff] }
 0xc89   :  { %3273 = vmatpush1.bf16.msra.mxu1 %v9784_v53  ;;  %3314 = vmatpush1.bf16.msra.mxu0 %v9785_v0  ;;  %v9795_v53 = vld [vmem:[#allocation73_spill] sm:$0xff]  ;;  %v9796_v0 = vld [vmem:[#allocation74_spill] sm:$0xff] }
 0xc8a   :  { %3274 = vmatprep.subr.bf16.mxu1 %v9786_v33  ;;  %3315 = vmatprep.subr.bf16.mxu0 %v9787_v62  ;;  %v9797_v33 = vld [vmem:[#allocation75_spill] sm:$0xff]  ;;  %v9798_v62 = vld [vmem:[#allocation76_spill] sm:$0xff] }
 0xc8d   :  { %3275 = vmatpush1.bf16.msra.mxu1 %v9788_v1  ;;  %3316 = vmatpush1.bf16.msra.mxu0 %v9789_v37  ;;  %v9799_v1 = vld [vmem:[#allocation77_spill] sm:$0xff]  ;;  %v9800_v37 = vld [vmem:[#allocation78_spill] sm:$0xff] }
 0xc8e   :  { %3276 = vmatprep.subr.bf16.mxu1 %v9790_v63  ;;  %3317 = vmatprep.subr.bf16.mxu0 %v9791_v23  ;;  %v9801_v63 = vld [vmem:[#allocation79_spill] sm:$0xff] }
 0xc8f   :  { %v9802_v23 = vld [vmem:[#allocation11_spill] sm:$0xff] }
 0xc91   :  { %3277 = vmatpush1.bf16.msra.mxu1 %v9792_v13  ;;  %3318 = vmatpush1.bf16.msra.mxu0 %v9793_v3  ;;  %v9803_v13 = vld [vmem:[#allocation12_spill] sm:$0xff] }
 0xc92   :  { %3278 = vmatprep.subr.bf16.mxu1 %v9794_v34  ;;  %3319 = vmatprep.subr.bf16.mxu0 %v9795_v53 }
 0xc95   :  { %3279 = vmatpush1.bf16.msra.mxu1 %v9796_v0  ;;  %3320 = vmatpush1.bf16.msra.mxu0 %v9797_v33 }
 0xc96   :  { %3280 = vmatprep.subr.bf16.mxu1 %v9798_v62  ;;  %3321 = vmatprep.subr.bf16.mxu0 %v9799_v1 }
 0xc99   :  { %3281 = vmatpush1.bf16.msra.mxu1 %v9800_v37  ;;  %3322 = vmatpush1.bf16.msra.mxu0 %v9801_v63  ;;  %v9805_v63 = vld [vmem:[#allocation8_spill] sm:$0xff] }
 0xc9a   :  { %3350 = vmatprep.subr.bf16.mxu1 %v9802_v23  ;;  %3391 = vmatprep.subr.bf16.mxu0 %v9803_v13  ;;  %v9806_v23 = vld [vmem:[#allocation70_spill] sm:$0xff] }
 0xd0f   :  { %v3075_v3 = vpop.f32.mrb[48].mxu1  ;;  %v3116_v34 = vpop.f32.mrb[52].mxu0 }
 0xd10   :  { %v3076_v53 = vadd.f32 %v3075_v3, %v9804_v2  ;;  %v3077_v7 = vpop.f32.mrb[49].mxu1  ;;  %v3118_v0 = vpop.f32.mrb[53].mxu0  ;;  %v3117_v42 = vadd.f32 %v3116_v34, %v9805_v63  ;;  %v9810_v34 = vld [vmem:[#allocation62_spill] sm:$0xff] }
 0xd11   :  { %v3078_v33 = vadd.f32 %v3077_v7, %v9681_v36  ;;  %v3079_v46 = vpop.f32.mrb[50].mxu1  ;;  %v3120_v62 = vpop.f32.mrb[54].mxu0  ;;  %v3119_v13 = vadd.f32 %v3118_v0, %v9806_v23  ;;  %v9815_v23 = vld [vmem:[#allocation64_spill] sm:$0xff] }
 0xd12   :  { %v3123_v44 = vmul.f32 0.5, %v3076_v53  ;;  %v3080_v1 = vpop.f32.mrb[51].mxu1  ;;  %v3121_v49 = vpop.f32.mrb[55].mxu0 }
 0xd13   :  { %v3127_v37 = vmul.f32 0.5, %v3078_v33  ;;  %v3132_v15 = vmul.f32 0.5, %v3119_v13  ;;  %v9807_v1 = vld [vmem:[#allocation80_spill] sm:$0xff]  ;;  %v9812_v13 = vld [vmem:[#allocation67_spill] sm:$0xff] }
 0xd14   :  { %5299 = vtanh.f32 %v3123_v44 }
 0xd15   :  { %5301 = vtanh.f32 %v3127_v37  ;;  %v9809_v37 = vld [vmem:[#allocation66_spill] sm:$0xff] }
 0xd16   :  { %5303 = vtanh.f32 %v3117_v42  ;;  %v8014_v0 = vadd.f32 %v9810_v34, %v9809_v37 }
 0xd17   :  { %5305 = vtanh.f32 %v3132_v15 }
 0xd18   :  { %9811 = vst [vmem:[#allocation14_spill] sm:$0xff] %v8014_v0 }
 0xd1e   :  { %v5300_v11 = vpop.eup %5299 }
 0xd1f   :  { %v5302_v3 = vpop.eup %5301  ;;  %v3125_v2 = vadd.f32 1.0, %v5300_v11  ;;  %v9813_v11 = vld [vmem:[#allocation63_spill] sm:$0xff] }
 0xd20   :  { %v3129_v39 = vadd.f32 1.0, %v5302_v3  ;;  %v5304_v46 = vpop.eup %5303  ;;  %v8018_v3 = vadd.f32 %v9813_v11, %v9812_v13 }
 0xd21   :  { %v3126_v7 = vmul.f32 0.5, %v3125_v2  ;;  %v5306_v44 = vpop.eup %5305 }
 0xd22   :  { %v3130_v62 = vmul.f32 0.5, %v3129_v39  ;;  %v3134_v42 = vadd.f32 1.0, %v5306_v44 }
 0xd23   :  { %v3137_v53 = vmul.f32 %v5304_v46, %v3126_v7 }
 0xd24   :  { %v3136_v49 = vmul.f32 %v3130_v62, %v9807_v1  ;;  %v3135_v62 = vmul.f32 0.5, %v3134_v42  ;;  %v9816_v42 = vld [vmem:[#allocation69_spill] sm:$0xff] }
 0xd26   :  { %v8009_v33 = vadd.f32 %v3137_v53, %v3136_v49 }
 0xd28   :  { %9808 = vst [vmem:[#allocation13_spill] sm:$0xff] %v8009_v33  ;;  %5307 = vtanh.f32 %v8009_v33  ;;  %v9814_v33 = vld [vmem:[#allocation68_spill] sm:$0xff] }
 0xd29   :  { %v8024_v34 = vadd.f32 %v9815_v23, %v9814_v33  ;;  %v8471_v33 = vld [vmem:[%s9093_s11 + $0xa4] ss:$16 sps:$4 sm:$0xff]  }
 0xd2f   :  { %v3175_v15 = vpop.f32.mrb[52].mxu1  ;;  %v3216_v2 = vpop.f32.mrb[56].mxu0 }
 0xd30   :  { %v3223_v39 = vadd.f32 %v3175_v15, %v8014_v0  ;;  %v3177_v7 = vpop.f32.mrb[53].mxu1  ;;  %v3218_v46 = vpop.f32.mrb[57].mxu0  ;;  %v3225_v15 = vadd.f32 %v3216_v2, %v8024_v34 }
 0xd31   :  { %v3224_v53 = vadd.f32 %v3177_v7, %v8018_v3  ;;  %v3179_v1 = vpop.f32.mrb[54].mxu1  ;;  %v3220_v49 = vpop.f32.mrb[58].mxu0  ;;  %v8029_v7 = vadd.f32 %v9817_v30, %v9816_v42 }
 0xd32   :  { %v5308_v44 = vpop.eup %5307  ;;  %v3227_v37 = vmul.f32 0.5, %v3223_v39  ;;  %v3180_v63 = vpop.f32.mrb[55].mxu1 }
 0xd33   :  { %v3221_v11 = vpop.f32.mrb[59].mxu0  ;;  %v3231_v13 = vmul.f32 0.5, %v3224_v53  ;;  %v3140_v36 = vmul.f32 %v5308_v44, %v3135_v62  ;;  %v3226_v23 = vadd.f32 %v3218_v46, %v8029_v7 }
 0xd34   :  { %5309 = vtanh.f32 %v3227_v37 }
 0xd35   :  { %5311 = vtanh.f32 %v3231_v13  ;;  %v3249_v0 = vpack.c.bf16 %v3140_v36, %v3140_v36  ;;  %v3236_v1 = vmul.f32 0.5, %v3226_v23  ;;  %v3241_v36 = vrot.slane %v7903_v12, 6  ;;  %v8040_v12 = vld [vmem:[%s9091_s9 + $0x8] ss:$16 sps:$4 sm:$0xff]  }
 0xd36   :  { %5313 = vtanh.f32 %v3225_v15 }
 0xd37   :  { %3282 = vmatprep.mubr.bf16.mxu1 %v3249_v0  ;;  %3323 = vmatprep.mubr.bf16.mxu0 %v3249_v0  ;;  %5315 = vtanh.f32 %v3236_v1  ;;  %v8047_v1 = vld [vmem:[%s9091_s9 + $0x2c] ss:$16 sps:$4 sm:$0xff]  }
 0xd3e   :  { %v5310_v39 = vpop.eup %5309 }
 0xd3f   :  { %v5312_v63 = vpop.eup %5311  ;;  %v3229_v49 = vadd.f32 1.0, %v5310_v39  ;;  %v9855_v39 = vld [vmem:[#allocation60_spill] sm:$0xff] }
 0xd40   :  { %v3233_v53 = vadd.f32 1.0, %v5312_v63  ;;  %v5314_v62 = vpop.eup %5313  ;;  %v9856_v63 = vld [vmem:[#allocation61_spill] sm:$0xff] }
 0xd41   :  { %v3230_v37 = vmul.f32 0.5, %v3229_v49  ;;  %v5316_v0 = vpop.eup %5315  ;;  %v9857_v49 = vld [vmem:[#allocation71_spill] sm:$0xff] }
 0xd42   :  { %v3234_v2 = vmul.f32 0.5, %v3233_v53  ;;  %v3238_v11 = vadd.f32 1.0, %v5316_v0  ;;  %v9858_v53 = vld [vmem:[#allocation72_spill] sm:$0xff]  ;;  %v9865_v0 = vld [vmem:[#allocation79_spill] sm:$0xff] }
 0xd43   :  { %v3244_v13 = vmul.f32 %v5314_v62, %v3230_v37  ;;  %v9859_v37 = vld [vmem:[#allocation73_spill] sm:$0xff]  ;;  %v9860_v62 = vld [vmem:[#allocation74_spill] sm:$0xff] }
 0xd44   :  { %v3243_v44 = vmul.f32 %v3241_v36, %v3234_v2  ;;  %v3239_v46 = vmul.f32 0.5, %v3238_v11  ;;  %v9861_v2 = vld [vmem:[#allocation75_spill] sm:$0xff]  ;;  %v9862_v36 = vld [vmem:[#allocation76_spill] sm:$0xff] }
 0xd45   :  { %v8165_v11 = vld [vmem:[%s9091_s9 + $0x4] ss:$16 sps:$4 sm:$0xff]  }
 0xd46   :  { %v8033_v30 = vadd.f32 %v3244_v13, %v3243_v44  ;;  %v9863_v13 = vld [vmem:[#allocation77_spill] sm:$0xff]  ;;  %v9864_v44 = vld [vmem:[#allocation78_spill] sm:$0xff]  ;;  %9866 = vst [vmem:[#allocation15_spill] sm:$0xff] %v8165_v11 }
 0xd48   :  { %5317 = vtanh.f32 %v8033_v30 }
 0xd52   :  { %v5318_v15 = vpop.eup %5317 }
 0xd53   :  { %v3247_v23 = vmul.f32 %v5318_v15, %v3239_v46  ;;  %v8171_v46 = vld [vmem:[%s9091_s9 + $0xc] ss:$16 sps:$4 sm:$0xff]  }
 0xd54   :  { %9867 = vst [vmem:[#allocation16_spill] sm:$0xff] %v8171_v46 }
 0xd55   :  { %v3248_v42 = vpack.c.bf16 %v3247_v23, %v3247_v23 }
 0xd57   :  { %3283 = vmatmul.mubr.bf16.vlgmr.msra.gmra.mrb[56].mxu1 %v3248_v42  ;;  %3324 = vmatmul.mubr.bf16.vlgmr.msra.gmra.mrb[60].mxu0 %v3248_v42 }
 0xd58   :  { %3351 = vmatpush1.bf16.msra.mxu1 %v7353_v58  ;;  %3392 = vmatpush1.bf16.msra.mxu0 %v8040_v12  ;;  %v8056_v58 = vld [vmem:[%s9091_s9 + $0x28] ss:$16 sps:$4 sm:$0xff]  }
 0xd59   :  { %3352 = vmatprep.subr.bf16.mxu1 %v7360_v38  ;;  %3393 = vmatprep.subr.bf16.mxu0 %v8047_v1  ;;  %v8063_v38 = vld [vmem:[%s9091_s9 + $0x4c] ss:$16 sps:$4 sm:$0xff]  }
 0xd5a   :  { %3382 = vmatprep.mubr.bf16.mxu1 %v9563_v18  ;;  %3423 = vmatprep.mubr.bf16.mxu0 %v9563_v18 }
 0xd5c   :  { %3353 = vmatpush1.bf16.msra.mxu1 %v7369_v17  ;;  %3394 = vmatpush1.bf16.msra.mxu0 %v8056_v58  ;;  %v8070_v17 = vld [vmem:[%s9091_s9 + $0x48] ss:$16 sps:$4 sm:$0xff]  }
 0xd5d   :  { %3354 = vmatprep.subr.bf16.mxu1 %v7376_v25  ;;  %3395 = vmatprep.subr.bf16.mxu0 %v8063_v38  ;;  %v8077_v25 = vld [vmem:[%s9091_s9 + $0x6c] ss:$16 sps:$4 sm:$0xff]  }
 0xd60   :  { %3355 = vmatpush1.bf16.msra.mxu1 %v7383_v51  ;;  %3396 = vmatpush1.bf16.msra.mxu0 %v8070_v17  ;;  %v9818_v51 = vld [vmem:[#allocation23_spill] sm:$0xff] }
 0xd61   :  { %3356 = vmatprep.subr.bf16.mxu1 %v7390_v41  ;;  %3397 = vmatprep.subr.bf16.mxu0 %v8077_v25  ;;  %v9819_v41 = vld [vmem:[#allocation24_spill] sm:$0xff] }
 0xd64   :  { %3357 = vmatpush1.bf16.msra.mxu1 %v7397_v29  ;;  %3398 = vmatpush1.bf16.msra.mxu0 %v7403_v40  ;;  %v9820_v29 = vld [vmem:[#allocation25_spill] sm:$0xff]  ;;  %v9821_v40 = vld [vmem:[#allocation26_spill] sm:$0xff] }
 0xd65   :  { %3358 = vmatprep.subr.bf16.mxu1 %v7409_v6  ;;  %3399 = vmatprep.subr.bf16.mxu0 %v7415_v19  ;;  %v9822_v6 = vld [vmem:[#allocation27_spill] sm:$0xff]  ;;  %v9823_v19 = vld [vmem:[#allocation28_spill] sm:$0xff] }
 0xd68   :  { %3359 = vmatpush1.bf16.msra.mxu1 %v7421_v24  ;;  %3400 = vmatpush1.bf16.msra.mxu0 %v7427_v45  ;;  %v9824_v24 = vld [vmem:[#allocation29_spill] sm:$0xff]  ;;  %v9825_v45 = vld [vmem:[#allocation30_spill] sm:$0xff] }
 0xd69   :  { %3360 = vmatprep.subr.bf16.mxu1 %v7433_v43  ;;  %3401 = vmatprep.subr.bf16.mxu0 %v7439_v47  ;;  %v9826_v43 = vld [vmem:[#allocation31_spill] sm:$0xff]  ;;  %v9827_v47 = vld [vmem:[#allocation32_spill] sm:$0xff] }
 0xd6c   :  { %3361 = vmatpush1.bf16.msra.mxu1 %v7445_v35  ;;  %3402 = vmatpush1.bf16.msra.mxu0 %v7451_v4  ;;  %v9828_v35 = vld [vmem:[#allocation33_spill] sm:$0xff]  ;;  %v9829_v4 = vld [vmem:[#allocation34_spill] sm:$0xff] }
 0xd6d   :  { %3362 = vmatprep.subr.bf16.mxu1 %v7457_v22  ;;  %3403 = vmatprep.subr.bf16.mxu0 %v7463_v5  ;;  %v9830_v22 = vld [vmem:[#allocation35_spill] sm:$0xff]  ;;  %v9831_v5 = vld [vmem:[#allocation36_spill] sm:$0xff] }
 0xd6e   :  { %9900 = vst [vmem:[#allocation36_spill] sm:$0xff] %v8471_v33 }
 0xd70   :  { %3363 = vmatpush1.bf16.msra.mxu1 %v7469_v9  ;;  %3404 = vmatpush1.bf16.msra.mxu0 %v7475_v48  ;;  %v9832_v9 = vld [vmem:[#allocation37_spill] sm:$0xff]  ;;  %v9833_v48 = vld [vmem:[#allocation38_spill] sm:$0xff] }
 0xd71   :  { %3364 = vmatprep.subr.bf16.mxu1 %v7481_v50  ;;  %3405 = vmatprep.subr.bf16.mxu0 %v7487_v52  ;;  %v9834_v50 = vld [vmem:[#allocation39_spill] sm:$0xff]  ;;  %v9835_v52 = vld [vmem:[#allocation40_spill] sm:$0xff] }
 0xd74   :  { %3365 = vmatpush1.bf16.msra.mxu1 %v7493_v55  ;;  %3406 = vmatpush1.bf16.msra.mxu0 %v7499_v59  ;;  %v9836_v55 = vld [vmem:[#allocation41_spill] sm:$0xff]  ;;  %v9837_v59 = vld [vmem:[#allocation42_spill] sm:$0xff] }
 0xd75   :  { %3480 = vmatprep.subr.bf16.mxu1 %v7505_v60  ;;  %3521 = vmatprep.subr.bf16.mxu0 %v7511_v57  ;;  %v9838_v60 = vld [vmem:[#allocation43_spill] sm:$0xff]  ;;  %v9839_v57 = vld [vmem:[#allocation44_spill] sm:$0xff] }
 0xd77   :  { %3383 = vmatmul.mubr.bf16.vlgmr.msra.gmra.mrb[60].mxu1 %v3248_v42  ;;  %3424 = vmatmul.mubr.bf16.vlgmr.msra.gmra.mrb[64].mxu0 %v3248_v42  ;;  %v9854_v42 = vld [vmem:[#allocation59_spill] sm:$0xff] }
 0xd78   :  { %3481 = vmatpush1.bf16.msra.mxu1 %v7519_v61  ;;  %3522 = vmatpush1.bf16.msra.mxu0 %v7525_v31  ;;  %v9840_v61 = vld [vmem:[#allocation45_spill] sm:$0xff]  ;;  %v9841_v31 = vld [vmem:[#allocation46_spill] sm:$0xff] }
 0xd79   :  { %3482 = vmatprep.subr.bf16.mxu1 %v7531_v32  ;;  %3523 = vmatprep.subr.bf16.mxu0 %v7537_v8  ;;  %v9842_v32 = vld [vmem:[#allocation47_spill] sm:$0xff]  ;;  %v9843_v8 = vld [vmem:[#allocation48_spill] sm:$0xff] }
 0xd7c   :  { %3483 = vmatpush1.bf16.msra.mxu1 %v9744_v10  ;;  %3524 = vmatpush1.bf16.msra.mxu0 %v9745_v16  ;;  %v9844_v10 = vld [vmem:[#allocation49_spill] sm:$0xff]  ;;  %v9845_v16 = vld [vmem:[#allocation50_spill] sm:$0xff] }
 0xd7d   :  { %3484 = vmatprep.subr.bf16.mxu1 %v9746_v26  ;;  %3525 = vmatprep.subr.bf16.mxu0 %v9747_v21  ;;  %v9846_v26 = vld [vmem:[#allocation51_spill] sm:$0xff]  ;;  %v9847_v21 = vld [vmem:[#allocation52_spill] sm:$0xff] }
 0xd80   :  { %3485 = vmatpush1.bf16.msra.mxu1 %v9748_v27  ;;  %3526 = vmatpush1.bf16.msra.mxu0 %v9749_v14  ;;  %v9848_v27 = vld [vmem:[#allocation53_spill] sm:$0xff]  ;;  %v9849_v14 = vld [vmem:[#allocation54_spill] sm:$0xff] }
 0xd81   :  { %3486 = vmatprep.subr.bf16.mxu1 %v9750_v56  ;;  %3527 = vmatprep.subr.bf16.mxu0 %v9751_v28  ;;  %v9850_v56 = vld [vmem:[#allocation55_spill] sm:$0xff]  ;;  %v9851_v28 = vld [vmem:[#allocation56_spill] sm:$0xff] }
 0xd84   :  { %3487 = vmatpush1.bf16.msra.mxu1 %v9752_v20  ;;  %3528 = vmatpush1.bf16.msra.mxu0 %v9753_v54  ;;  %v9852_v20 = vld [vmem:[#allocation57_spill] sm:$0xff]  ;;  %v9853_v54 = vld [vmem:[#allocation58_spill] sm:$0xff] }
 0xd85   :  { %3488 = vmatprep.subr.bf16.mxu1 %v9818_v51  ;;  %3529 = vmatprep.subr.bf16.mxu0 %v9819_v41  ;;  %v9868_v51 = vld [vmem:[#allocation10_spill] sm:$0xff] }
 0xd88   :  { %3489 = vmatpush1.bf16.msra.mxu1 %v9820_v29  ;;  %3530 = vmatpush1.bf16.msra.mxu0 %v9821_v40 }
 0xd89   :  { %3490 = vmatprep.subr.bf16.mxu1 %v9822_v6  ;;  %3531 = vmatprep.subr.bf16.mxu0 %v9823_v19  ;;  %v9869_v6 = vld [vmem:[#allocation9_spill] sm:$0xff] }
 0xd8c   :  { %3491 = vmatpush1.bf16.msra.mxu1 %v9824_v24  ;;  %3532 = vmatpush1.bf16.msra.mxu0 %v9825_v45 }
 0xd8d   :  { %3492 = vmatprep.subr.bf16.mxu1 %v9826_v43  ;;  %3533 = vmatprep.subr.bf16.mxu0 %v9827_v47 }
 0xd90   :  { %3493 = vmatpush1.bf16.msra.mxu1 %v9828_v35  ;;  %3534 = vmatpush1.bf16.msra.mxu0 %v9829_v4 }
 0xd91   :  { %3494 = vmatprep.subr.bf16.mxu1 %v9830_v22  ;;  %3535 = vmatprep.subr.bf16.mxu0 %v9831_v5  ;;  %v9870_v22 = vld [vmem:[#allocation8_spill] sm:$0xff] }
 0xd94   :  { %3495 = vmatpush1.bf16.msra.mxu1 %v9832_v9  ;;  %3536 = vmatpush1.bf16.msra.mxu0 %v9833_v48  ;;  %v9871_v9 = vld [vmem:[#allocation70_spill] sm:$0xff] }
 0xd95   :  { %3496 = vmatprep.subr.bf16.mxu1 %v9834_v50  ;;  %3537 = vmatprep.subr.bf16.mxu0 %v9835_v52 }
 0xd98   :  { %3497 = vmatpush1.bf16.msra.mxu1 %v9836_v55  ;;  %3538 = vmatpush1.bf16.msra.mxu0 %v9837_v59 }
 0xd99   :  { %3498 = vmatprep.subr.bf16.mxu1 %v9838_v60  ;;  %3539 = vmatprep.subr.bf16.mxu0 %v9839_v57 }
 0xd9c   :  { %3499 = vmatpush1.bf16.msra.mxu1 %v9840_v61  ;;  %3540 = vmatpush1.bf16.msra.mxu0 %v9841_v31 }
 0xd9d   :  { %3500 = vmatprep.subr.bf16.mxu1 %v9842_v32  ;;  %3541 = vmatprep.subr.bf16.mxu0 %v9843_v8  ;;  %v9872_v8 = vld [vmem:[#allocation13_spill] sm:$0xff] }
 0xda0   :  { %3501 = vmatpush1.bf16.msra.mxu1 %v9844_v10  ;;  %3542 = vmatpush1.bf16.msra.mxu0 %v9845_v16 }
 0xda1   :  { %3502 = vmatprep.subr.bf16.mxu1 %v9846_v26  ;;  %3543 = vmatprep.subr.bf16.mxu0 %v9847_v21 }
 0xda4   :  { %3503 = vmatpush1.bf16.msra.mxu1 %v9848_v27  ;;  %3544 = vmatpush1.bf16.msra.mxu0 %v9849_v14 }
 0xda5   :  { %3504 = vmatprep.subr.bf16.mxu1 %v9850_v56  ;;  %3545 = vmatprep.subr.bf16.mxu0 %v9851_v28 }
 0xda8   :  { %3505 = vmatpush1.bf16.msra.mxu1 %v9852_v20  ;;  %3546 = vmatpush1.bf16.msra.mxu0 %v9853_v54 }
 0xda9   :  { %3506 = vmatprep.subr.bf16.mxu1 %v9854_v42  ;;  %3547 = vmatprep.subr.bf16.mxu0 %v9855_v39 }
 0xdac   :  { %3507 = vmatpush1.bf16.msra.mxu1 %v9856_v63  ;;  %3548 = vmatpush1.bf16.msra.mxu0 %v9857_v49 }
 0xdad   :  { %3508 = vmatprep.subr.bf16.mxu1 %v9858_v53  ;;  %3549 = vmatprep.subr.bf16.mxu0 %v9859_v37  ;;  %v9873_v53 = vld [vmem:[#allocation14_spill] sm:$0xff] }
 0xdb0   :  { %3509 = vmatpush1.bf16.msra.mxu1 %v9860_v62  ;;  %3550 = vmatpush1.bf16.msra.mxu0 %v9861_v2 }
 0xdb1   :  { %3510 = vmatprep.subr.bf16.mxu1 %v9862_v36  ;;  %3551 = vmatprep.subr.bf16.mxu0 %v9863_v13 }
 0xdb4   :  { %3511 = vmatpush1.bf16.msra.mxu1 %v9864_v44  ;;  %3552 = vmatpush1.bf16.msra.mxu0 %v9865_v0 }
 0xdb5   :  { %3580 = vmatprep.subr.bf16.mxu1 %v8165_v11  ;;  %3621 = vmatprep.subr.bf16.mxu0 %v8171_v46 }
 0xe2a   :  { %v3284_v15 = vpop.f32.mrb[56].mxu1  ;;  %v3325_v23 = vpop.f32.mrb[60].mxu0 }
 0xe2b   :  { %v3285_v41 = vadd.f32 %v3284_v15, %v9868_v51  ;;  %v3286_v29 = vpop.f32.mrb[57].mxu1  ;;  %v3327_v40 = vpop.f32.mrb[61].mxu0  ;;  %v3326_v5 = vadd.f32 %v3325_v23, %v9870_v22 }
 0xe2c   :  { %v3287_v19 = vadd.f32 %v3286_v29, %v9869_v6  ;;  %v3288_v24 = vpop.f32.mrb[58].mxu1  ;;  %v3329_v45 = vpop.f32.mrb[62].mxu0  ;;  %v3328_v48 = vadd.f32 %v3327_v40, %v9871_v9 }
 0xe2d   :  { %v3332_v43 = vmul.f32 0.5, %v3285_v41  ;;  %v3289_v47 = vpop.f32.mrb[59].mxu1  ;;  %v3330_v35 = vpop.f32.mrb[63].mxu0 }
 0xe2e   :  { %v3336_v4 = vmul.f32 0.5, %v3287_v19  ;;  %v3341_v50 = vmul.f32 0.5, %v3328_v48 }
 0xe2f   :  { %5319 = vtanh.f32 %v3332_v43 }
 0xe30   :  { %5321 = vtanh.f32 %v3336_v4 }
 0xe31   :  { %5323 = vtanh.f32 %v3326_v5 }
 0xe32   :  { %5325 = vtanh.f32 %v3341_v50 }
 0xe39   :  { %v5320_v52 = vpop.eup %5319 }
 0xe3a   :  { %v5322_v55 = vpop.eup %5321  ;;  %v3334_v59 = vadd.f32 1.0, %v5320_v52  ;;  %v3462_v52 = vrot.slane %v8033_v30, 6  ;;  %v8197_v30 = vld [vmem:[%s9091_s9] ss:$16 sps:$4 sm:$0xff]  }
 0xe3b   :  { %v3338_v60 = vadd.f32 1.0, %v5322_v55  ;;  %v5324_v61 = vpop.eup %5323 }
 0xe3c   :  { %v3335_v57 = vmul.f32 0.5, %v3334_v59  ;;  %v5326_v26 = vpop.eup %5325 }
 0xe3d   :  { %v3339_v31 = vmul.f32 0.5, %v3338_v60  ;;  %v3343_v21 = vadd.f32 1.0, %v5326_v26 }
 0xe3e   :  { %v3346_v32 = vmul.f32 %v5324_v61, %v3335_v57 }
 0xe3f   :  { %v3345_v10 = vmul.f32 %v3339_v31, %v9872_v8  ;;  %v3344_v54 = vmul.f32 0.5, %v3343_v21  ;;  %v8204_v21 = vld [vmem:[%s9091_s9 + $0x24] ss:$16 sps:$4 sm:$0xff]  }
 0xe41   :  { %v8179_v16 = vadd.f32 %v3346_v32, %v3345_v10 }
 0xe43   :  { %5327 = vtanh.f32 %v8179_v16 }
 0xe4a   :  { %v3384_v27 = vpop.f32.mrb[60].mxu1  ;;  %v3425_v14 = vpop.f32.mrb[64].mxu0 }
 0xe4b   :  { %v3436_v56 = vrot.slane %v3384_v27, 6  ;;  %v3386_v28 = vpop.f32.mrb[61].mxu1  ;;  %v3427_v20 = vpop.f32.mrb[65].mxu0  ;;  %v3438_v62 = vrot.slane %v3425_v14, 6  ;;  %v8213_v27 = vld [vmem:[%s9091_s9 + $0x20] ss:$16 sps:$4 sm:$0xff]  }
 0xe4c   :  { %v3437_v42 = vrot.slane %v3386_v28, 6  ;;  %v3388_v39 = vpop.f32.mrb[62].mxu1  ;;  %v3429_v63 = vpop.f32.mrb[66].mxu0  ;;  %v3439_v29 = vrot.slane %v3427_v20, 6  ;;  %v8220_v14 = vld [vmem:[%s9091_s9 + $0x44] ss:$16 sps:$4 sm:$0xff]  }
 0xe4d   :  { %v5328_v49 = vpop.eup %5327  ;;  %v3444_v37 = vadd.f32 %v3436_v56, %v9873_v53  ;;  %v3389_v2 = vpop.f32.mrb[63].mxu1  ;;  %v3446_v41 = vadd.f32 %v3438_v62, %v8024_v34  ;;  %v8227_v56 = vld [vmem:[%s9091_s9 + $0x40] ss:$16 sps:$4 sm:$0xff]   ;;  %v8234_v28 = vld [vmem:[%s9091_s9 + $0x64] ss:$16 sps:$4 sm:$0xff]  }
 0xe4e   :  { %v3430_v36 = vpop.f32.mrb[67].mxu0  ;;  %v3445_v13 = vadd.f32 %v3437_v42, %v8018_v3  ;;  %v3349_v44 = vmul.f32 %v5328_v49, %v3344_v54  ;;  %v3447_v24 = vadd.f32 %v3439_v29, %v8029_v7  ;;  %v8241_v20 = vld [vmem:[%s9091_s9 + $0x60] ss:$16 sps:$4 sm:$0xff]   ;;  %v8247_v54 = vld [vmem:[%s9091_s9 + $0x68] ss:$16 sps:$4 sm:$0xff]  }
 0xe4f   :  { %v3448_v0 = vmul.f32 0.5, %v3444_v37  ;;  %9874 = vst [vmem:[#allocation17_spill] sm:$0xff] %v8247_v54  ;;  %v8253_v42 = vld [vmem:[%s9091_s9 + $0x84] ss:$16 sps:$4 sm:$0xff]   ;;  %v8259_v39 = vld [vmem:[%s9091_s9 + $0x8c] ss:$16 sps:$4 sm:$0xff]  }
 0xe50   :  { %v3452_v15 = vmul.f32 0.5, %v3445_v13  ;;  %v3470_v23 = vrot.slane %v3349_v44, 6  ;;  %v3457_v45 = vmul.f32 0.5, %v3447_v24  ;;  %9875 = vst [vmem:[#allocation18_spill] sm:$0xff] %v8259_v39  ;;  %v8265_v63 = vld [vmem:[%s9091_s9 + $0x80] ss:$16 sps:$4 sm:$0xff]  }
 0xe51   :  { %5329 = vtanh.f32 %v3448_v0  ;;  %v8271_v49 = vld [vmem:[%s9091_s9 + $0x88] ss:$16 sps:$4 sm:$0xff]   ;;  %v8277_v37 = vld [vmem:[%s9091_s9 + $0xa4] ss:$16 sps:$4 sm:$0xff]   ;;  %v8283_v62 = vld [vmem:[%s9091_s9 + $0xac] ss:$16 sps:$4 sm:$0xff]  }
 0xe52   :  { %5331 = vtanh.f32 %v3452_v15  ;;  %v3473_v40 = vpack.c.bf16 %v3470_v23, %v3470_v23  ;;  %9876 = vst [vmem:[#allocation19_spill] sm:$0xff] %v8271_v49  ;;  %9877 = vst [vmem:[#allocation20_spill] sm:$0xff] %v8283_v62  ;;  %v8289_v2 = vld [vmem:[%s9091_s9 + $0xa0] ss:$16 sps:$4 sm:$0xff]   ;;  %v8295_v36 = vld [vmem:[%s9091_s9 + $0xa8] ss:$16 sps:$4 sm:$0xff]  }
 0xe53   :  { %5333 = vtanh.f32 %v3446_v41  ;;  %9878 = vst [vmem:[#allocation21_spill] sm:$0xff] %v8295_v36  ;;  %v8301_v13 = vld [vmem:[%s9091_s9 + $0xc4] ss:$16 sps:$4 sm:$0xff]   ;;  %v8307_v44 = vld [vmem:[%s9091_s9 + $0xcc] ss:$16 sps:$4 sm:$0xff]  }
 0xe54   :  { %v3477_v19 = vrot.slane %v3473_v40, 1  ;;  %5335 = vtanh.f32 %v3457_v45  ;;  %9879 = vst [vmem:[#allocation22_spill] sm:$0xff] %v8307_v44  ;;  %v8313_v0 = vld [vmem:[%s9091_s9 + $0xc0] ss:$16 sps:$4 sm:$0xff]   ;;  %v8319_v15 = vld [vmem:[%s9091_s9 + $0xc8] ss:$16 sps:$4 sm:$0xff]  }
 0xe55   :  { %9880 = vst [vmem:[#allocation11_spill] sm:$0xff] %v8319_v15  ;;  %v8325_v23 = vld [vmem:[%s9091_s9 + $0xe4] ss:$16 sps:$4 sm:$0xff]   ;;  %v8331_v41 = vld [vmem:[%s9091_s9 + $0xec] ss:$16 sps:$4 sm:$0xff]  }
 0xe56   :  { %3512 = vmatprep.mubr.bf16.mxu1 %v3477_v19  ;;  %3553 = vmatprep.mubr.bf16.mxu0 %v3477_v19  ;;  %9881 = vst [vmem:[#allocation12_spill] sm:$0xff] %v8331_v41  ;;  %v8337_v29 = vld [vmem:[%s9091_s9 + $0xe0] ss:$16 sps:$4 sm:$0xff]   ;;  %v8343_v40 = vld [vmem:[%s9091_s9 + $0xe8] ss:$16 sps:$4 sm:$0xff]  }
 0xe57   :  { %9882 = vst [vmem:[#allocation80_spill] sm:$0xff] %v8343_v40  ;;  %v8349_v19 = vld [vmem:[%s9093_s11 + $0x4] ss:$16 sps:$4 sm:$0xff]   ;;  %v8355_v24 = vld [vmem:[%s9093_s11 + $0xc] ss:$16 sps:$4 sm:$0xff]  }
 0xe58   :  { %9883 = vst [vmem:[#allocation62_spill] sm:$0xff] %v8355_v24  ;;  %v8363_v45 = vld [vmem:[%s9093_s11] ss:$16 sps:$4 sm:$0xff]  }
 0xe5b   :  { %v5330_v43 = vpop.eup %5329 }
 0xe5c   :  { %v5332_v47 = vpop.eup %5331  ;;  %v3450_v35 = vadd.f32 1.0, %v5330_v43  ;;  %v8369_v43 = vld [vmem:[%s9093_s11 + $0x8] ss:$16 sps:$4 sm:$0xff]  }
 0xe5d   :  { %v3454_v4 = vadd.f32 1.0, %v5332_v47  ;;  %v5334_v48 = vpop.eup %5333  ;;  %9884 = vst [vmem:[#allocation63_spill] sm:$0xff] %v8369_v43  ;;  %v8375_v47 = vld [vmem:[%s9093_s11 + $0x24] ss:$16 sps:$4 sm:$0xff]  }
 0xe5e   :  { %v3451_v5 = vmul.f32 0.5, %v3450_v35  ;;  %v5336_v57 = vpop.eup %5335  ;;  %v8381_v35 = vld [vmem:[%s9093_s11 + $0x2c] ss:$16 sps:$4 sm:$0xff]  }
 0xe5f   :  { %v3455_v50 = vmul.f32 0.5, %v3454_v4  ;;  %v3459_v61 = vadd.f32 1.0, %v5336_v57  ;;  %9885 = vst [vmem:[#allocation64_spill] sm:$0xff] %v8381_v35  ;;  %v8387_v4 = vld [vmem:[%s9093_s11 + $0x20] ss:$16 sps:$4 sm:$0xff]  }
 0xe60   :  { %v3465_v55 = vmul.f32 %v5334_v48, %v3451_v5  ;;  %9886 = vst [vmem:[#allocation65_spill] sm:$0xff] %v8387_v4  ;;  %v8393_v5 = vld [vmem:[%s9093_s11 + $0x28] ss:$16 sps:$4 sm:$0xff]   ;;  %v8399_v48 = vld [vmem:[%s9093_s11 + $0x44] ss:$16 sps:$4 sm:$0xff]  }
 0xe61   :  { %v3464_v59 = vmul.f32 %v3462_v52, %v3455_v50  ;;  %v3460_v31 = vmul.f32 0.5, %v3459_v61  ;;  %9887 = vst [vmem:[#allocation23_spill] sm:$0xff] %v8393_v5  ;;  %9888 = vst [vmem:[#allocation24_spill] sm:$0xff] %v8399_v48  ;;  %v8405_v50 = vld [vmem:[%s9093_s11 + $0x4c] ss:$16 sps:$4 sm:$0xff]  }
 0xe62   :  { %9889 = vst [vmem:[#allocation25_spill] sm:$0xff] %v8405_v50  ;;  %v8411_v52 = vld [vmem:[%s9093_s11 + $0x40] ss:$16 sps:$4 sm:$0xff]   ;;  %v8429_v57 = vld [vmem:[%s9093_s11 + $0x6c] ss:$16 sps:$4 sm:$0xff]  }
 0xe63   :  { %v8187_v60 = vadd.f32 %v3465_v55, %v3464_v59  ;;  %9890 = vst [vmem:[#allocation26_spill] sm:$0xff] %v8411_v52  ;;  %v8417_v55 = vld [vmem:[%s9093_s11 + $0x48] ss:$16 sps:$4 sm:$0xff]   ;;  %v8423_v59 = vld [vmem:[%s9093_s11 + $0x64] ss:$16 sps:$4 sm:$0xff]   ;;  %9893 = vst [vmem:[#allocation29_spill] sm:$0xff] %v8429_v57 }
 0xe64   :  { %9891 = vst [vmem:[#allocation27_spill] sm:$0xff] %v8417_v55  ;;  %9892 = vst [vmem:[#allocation28_spill] sm:$0xff] %v8423_v59  ;;  %v8435_v61 = vld [vmem:[%s9093_s11 + $0x60] ss:$16 sps:$4 sm:$0xff]  }
 0xe65   :  { %5337 = vtanh.f32 %v8187_v60  ;;  %9894 = vst [vmem:[#allocation30_spill] sm:$0xff] %v8435_v61 }
 0xe6f   :  { %v5338_v32 = vpop.eup %5337 }
 0xe70   :  { %v3468_v8 = vmul.f32 %v5338_v32, %v3460_v31  ;;  %v8441_v31 = vld [vmem:[%s9093_s11 + $0x68] ss:$16 sps:$4 sm:$0xff]   ;;  %v8447_v32 = vld [vmem:[%s9093_s11 + $0x84] ss:$16 sps:$4 sm:$0xff]  }
 0xe71   :  { %9895 = vst [vmem:[#allocation31_spill] sm:$0xff] %v8441_v31  ;;  %9896 = vst [vmem:[#allocation32_spill] sm:$0xff] %v8447_v32 }
 0xe72   :  { %v3472_v10 = vpack.c.bf16 %v3468_v8, %v3468_v8  ;;  %v8453_v8 = vld [vmem:[%s9093_s11 + $0x8c] ss:$16 sps:$4 sm:$0xff]  }
 0xe73   :  { %9897 = vst [vmem:[#allocation33_spill] sm:$0xff] %v8453_v8 }
 0xe74   :  { %v8190_v26 = vrot.slane %v3472_v10, 1  ;;  %v8459_v10 = vld [vmem:[%s9093_s11 + $0x80] ss:$16 sps:$4 sm:$0xff]  }
 0xe75   :  { %9898 = vst [vmem:[#allocation34_spill] sm:$0xff] %v8459_v10 }
 0xe76   :  { %3513 = vmatmul.mubr.bf16.vlgmr.msra.gmra.mrb[64].mxu1 %v8190_v26  ;;  %3554 = vmatmul.mubr.bf16.vlgmr.msra.gmra.mrb[68].mxu0 %v8190_v26 }
 0xe77   :  { %3581 = vmatpush1.bf16.msra.mxu1 %v8197_v30  ;;  %3622 = vmatpush1.bf16.msra.mxu0 %v8040_v12 }
 0xe78   :  { %3582 = vmatprep.subr.bf16.mxu1 %v8204_v21  ;;  %3623 = vmatprep.subr.bf16.mxu0 %v8047_v1 }
 0xe79   :  { %3612 = vmatprep.mubr.bf16.mxu1 %v9563_v18  ;;  %3653 = vmatprep.mubr.bf16.mxu0 %v9563_v18 }
 0xe7b   :  { %3583 = vmatpush1.bf16.msra.mxu1 %v8213_v27  ;;  %3624 = vmatpush1.bf16.msra.mxu0 %v8056_v58 }
 0xe7c   :  { %3584 = vmatprep.subr.bf16.mxu1 %v8220_v14  ;;  %3625 = vmatprep.subr.bf16.mxu0 %v8063_v38 }
 0xe7f   :  { %3585 = vmatpush1.bf16.msra.mxu1 %v8227_v56  ;;  %3626 = vmatpush1.bf16.msra.mxu0 %v8070_v17 }
 0xe80   :  { %3586 = vmatprep.subr.bf16.mxu1 %v8234_v28  ;;  %3627 = vmatprep.subr.bf16.mxu0 %v8077_v25 }
 0xe83   :  { %3587 = vmatpush1.bf16.msra.mxu1 %v8241_v20  ;;  %3628 = vmatpush1.bf16.msra.mxu0 %v8247_v54 }
 0xe84   :  { %3588 = vmatprep.subr.bf16.mxu1 %v8253_v42  ;;  %3629 = vmatprep.subr.bf16.mxu0 %v8259_v39 }
 0xe87   :  { %3589 = vmatpush1.bf16.msra.mxu1 %v8265_v63  ;;  %3630 = vmatpush1.bf16.msra.mxu0 %v8271_v49 }
 0xe88   :  { %3590 = vmatprep.subr.bf16.mxu1 %v8277_v37  ;;  %3631 = vmatprep.subr.bf16.mxu0 %v8283_v62 }
 0xe8b   :  { %3591 = vmatpush1.bf16.msra.mxu1 %v8289_v2  ;;  %3632 = vmatpush1.bf16.msra.mxu0 %v8295_v36 }
 0xe8c   :  { %3592 = vmatprep.subr.bf16.mxu1 %v8301_v13  ;;  %3633 = vmatprep.subr.bf16.mxu0 %v8307_v44 }
 0xe8f   :  { %3593 = vmatpush1.bf16.msra.mxu1 %v8313_v0  ;;  %3634 = vmatpush1.bf16.msra.mxu0 %v8319_v15 }
 0xe90   :  { %3594 = vmatprep.subr.bf16.mxu1 %v8325_v23  ;;  %3635 = vmatprep.subr.bf16.mxu0 %v8331_v41 }
 0xe93   :  { %3595 = vmatpush1.bf16.msra.mxu1 %v8337_v29  ;;  %3636 = vmatpush1.bf16.msra.mxu0 %v8343_v40 }
 0xe94   :  { %3710 = vmatprep.subr.bf16.mxu1 %v8349_v19  ;;  %3751 = vmatprep.subr.bf16.mxu0 %v8355_v24 }
 0xe96   :  { %3613 = vmatmul.mubr.bf16.vlgmr.msra.gmra.mrb[68].mxu1 %v8190_v26  ;;  %3654 = vmatmul.mubr.bf16.vlgmr.msra.gmra.mrb[72].mxu0 %v8190_v26  ;;  %v8465_v26 = vld [vmem:[%s9093_s11 + $0x88] ss:$16 sps:$4 sm:$0xff]  }
 0xe97   :  { %3711 = vmatpush1.bf16.msra.mxu1 %v8363_v45  ;;  %3752 = vmatpush1.bf16.msra.mxu0 %v8369_v43  ;;  %9899 = vst [vmem:[#allocation35_spill] sm:$0xff] %v8465_v26 }
 0xe98   :  { %3712 = vmatprep.subr.bf16.mxu1 %v8375_v47  ;;  %3753 = vmatprep.subr.bf16.mxu0 %v8381_v35 }
 0xe9b   :  { %3713 = vmatpush1.bf16.msra.mxu1 %v8387_v4  ;;  %3754 = vmatpush1.bf16.msra.mxu0 %v8393_v5 }
 0xe9c   :  { %3714 = vmatprep.subr.bf16.mxu1 %v8399_v48  ;;  %3755 = vmatprep.subr.bf16.mxu0 %v8405_v50 }
 0xe9f   :  { %3715 = vmatpush1.bf16.msra.mxu1 %v8411_v52  ;;  %3756 = vmatpush1.bf16.msra.mxu0 %v8417_v55 }
 0xea0   :  { %3716 = vmatprep.subr.bf16.mxu1 %v8423_v59  ;;  %3757 = vmatprep.subr.bf16.mxu0 %v8429_v57 }
 0xea3   :  { %3717 = vmatpush1.bf16.msra.mxu1 %v8435_v61  ;;  %3758 = vmatpush1.bf16.msra.mxu0 %v8441_v31 }
 0xea4   :  { %3718 = vmatprep.subr.bf16.mxu1 %v8447_v32  ;;  %3759 = vmatprep.subr.bf16.mxu0 %v8453_v8  ;;  %v8477_v8 = vld [vmem:[%s9093_s11 + $0xac] ss:$16 sps:$4 sm:$0xff]  }
 0xea5   :  { %9901 = vst [vmem:[#allocation37_spill] sm:$0xff] %v8477_v8 }
 0xea7   :  { %3719 = vmatpush1.bf16.msra.mxu1 %v8459_v10  ;;  %3760 = vmatpush1.bf16.msra.mxu0 %v8465_v26  ;;  %v8483_v10 = vld [vmem:[%s9093_s11 + $0xa0] ss:$16 sps:$4 sm:$0xff]   ;;  %v8489_v26 = vld [vmem:[%s9093_s11 + $0xa8] ss:$16 sps:$4 sm:$0xff]  }
 0xea8   :  { %3720 = vmatprep.subr.bf16.mxu1 %v8471_v33  ;;  %3761 = vmatprep.subr.bf16.mxu0 %v8477_v8  ;;  %9902 = vst [vmem:[#allocation38_spill] sm:$0xff] %v8483_v10  ;;  %9903 = vst [vmem:[#allocation39_spill] sm:$0xff] %v8489_v26  ;;  %v8495_v33 = vld [vmem:[%s9093_s11 + $0xc4] ss:$16 sps:$4 sm:$0xff]   ;;  %v8501_v8 = vld [vmem:[%s9093_s11 + $0xcc] ss:$16 sps:$4 sm:$0xff]  }
 0xea9   :  { %9904 = vst [vmem:[#allocation40_spill] sm:$0xff] %v8495_v33  ;;  %9905 = vst [vmem:[#allocation41_spill] sm:$0xff] %v8501_v8 }
 0xeab   :  { %3721 = vmatpush1.bf16.msra.mxu1 %v8483_v10  ;;  %3762 = vmatpush1.bf16.msra.mxu0 %v8489_v26  ;;  %v8507_v10 = vld [vmem:[%s9093_s11 + $0xc0] ss:$16 sps:$4 sm:$0xff]   ;;  %v8513_v26 = vld [vmem:[%s9093_s11 + $0xc8] ss:$16 sps:$4 sm:$0xff]  }
 0xeac   :  { %3722 = vmatprep.subr.bf16.mxu1 %v8495_v33  ;;  %3763 = vmatprep.subr.bf16.mxu0 %v8501_v8  ;;  %9906 = vst [vmem:[#allocation42_spill] sm:$0xff] %v8507_v10  ;;  %9907 = vst [vmem:[#allocation43_spill] sm:$0xff] %v8513_v26  ;;  %v8519_v33 = vld [vmem:[%s9093_s11 + $0xe4] ss:$16 sps:$4 sm:$0xff]   ;;  %v8525_v8 = vld [vmem:[%s9093_s11 + $0xec] ss:$16 sps:$4 sm:$0xff]  }
 0xead   :  { %9908 = vst [vmem:[#allocation44_spill] sm:$0xff] %v8519_v33  ;;  %9909 = vst [vmem:[#allocation45_spill] sm:$0xff] %v8525_v8 }
 0xeaf   :  { %3723 = vmatpush1.bf16.msra.mxu1 %v8507_v10  ;;  %3764 = vmatpush1.bf16.msra.mxu0 %v8513_v26  ;;  %v8531_v10 = vld [vmem:[%s9093_s11 + $0xe0] ss:$16 sps:$4 sm:$0xff]   ;;  %v8537_v26 = vld [vmem:[%s9093_s11 + $0xe8] ss:$16 sps:$4 sm:$0xff]  }
 0xeb0   :  { %3724 = vmatprep.subr.bf16.mxu1 %v8519_v33  ;;  %3765 = vmatprep.subr.bf16.mxu0 %v8525_v8  ;;  %9910 = vst [vmem:[#allocation46_spill] sm:$0xff] %v8531_v10  ;;  %9911 = vst [vmem:[#allocation47_spill] sm:$0xff] %v8537_v26  ;;  %v8543_v33 = vld [vmem:[%s9093_s11 + $0x104] ss:$16 sps:$4 sm:$0xff]   ;;  %v8549_v8 = vld [vmem:[%s9093_s11 + $0x10c] ss:$16 sps:$4 sm:$0xff]  }
 0xeb1   :  { %9912 = vst [vmem:[#allocation48_spill] sm:$0xff] %v8543_v33  ;;  %9913 = vst [vmem:[#allocation49_spill] sm:$0xff] %v8549_v8 }
 0xeb3   :  { %3725 = vmatpush1.bf16.msra.mxu1 %v8531_v10  ;;  %3766 = vmatpush1.bf16.msra.mxu0 %v8537_v26  ;;  %v8555_v10 = vld [vmem:[%s9093_s11 + $0x100] ss:$16 sps:$4 sm:$0xff]   ;;  %v8561_v26 = vld [vmem:[%s9093_s11 + $0x108] ss:$16 sps:$4 sm:$0xff]  }
 0xeb4   :  { %3726 = vmatprep.subr.bf16.mxu1 %v8543_v33  ;;  %3767 = vmatprep.subr.bf16.mxu0 %v8549_v8  ;;  %9914 = vst [vmem:[#allocation50_spill] sm:$0xff] %v8555_v10  ;;  %9915 = vst [vmem:[#allocation51_spill] sm:$0xff] %v8561_v26  ;;  %v8567_v33 = vld [vmem:[%s9093_s11 + $0x124] ss:$16 sps:$4 sm:$0xff]   ;;  %v8573_v8 = vld [vmem:[%s9093_s11 + $0x12c] ss:$16 sps:$4 sm:$0xff]  }
 0xeb5   :  { %9916 = vst [vmem:[#allocation52_spill] sm:$0xff] %v8567_v33  ;;  %9917 = vst [vmem:[#allocation53_spill] sm:$0xff] %v8573_v8 }
 0xeb7   :  { %3727 = vmatpush1.bf16.msra.mxu1 %v8555_v10  ;;  %3768 = vmatpush1.bf16.msra.mxu0 %v8561_v26  ;;  %v8579_v10 = vld [vmem:[%s9093_s11 + $0x120] ss:$16 sps:$4 sm:$0xff]   ;;  %v8585_v26 = vld [vmem:[%s9093_s11 + $0x128] ss:$16 sps:$4 sm:$0xff]  }
 0xeb8   :  { %3728 = vmatprep.subr.bf16.mxu1 %v8567_v33  ;;  %3769 = vmatprep.subr.bf16.mxu0 %v8573_v8  ;;  %9918 = vst [vmem:[#allocation54_spill] sm:$0xff] %v8579_v10  ;;  %9919 = vst [vmem:[#allocation55_spill] sm:$0xff] %v8585_v26  ;;  %v8591_v33 = vld [vmem:[%s9093_s11 + $0x144] ss:$16 sps:$4 sm:$0xff]   ;;  %v8597_v8 = vld [vmem:[%s9093_s11 + $0x14c] ss:$16 sps:$4 sm:$0xff]  }
 0xeb9   :  { %9920 = vst [vmem:[#allocation56_spill] sm:$0xff] %v8591_v33  ;;  %9921 = vst [vmem:[#allocation57_spill] sm:$0xff] %v8597_v8 }
 0xebb   :  { %3729 = vmatpush1.bf16.msra.mxu1 %v8579_v10  ;;  %3770 = vmatpush1.bf16.msra.mxu0 %v8585_v26  ;;  %v8603_v10 = vld [vmem:[%s9093_s11 + $0x140] ss:$16 sps:$4 sm:$0xff]   ;;  %v8609_v26 = vld [vmem:[%s9093_s11 + $0x148] ss:$16 sps:$4 sm:$0xff]  }
 0xebc   :  { %3730 = vmatprep.subr.bf16.mxu1 %v8591_v33  ;;  %3771 = vmatprep.subr.bf16.mxu0 %v8597_v8  ;;  %9922 = vst [vmem:[#allocation58_spill] sm:$0xff] %v8603_v10  ;;  %9923 = vst [vmem:[#allocation59_spill] sm:$0xff] %v8609_v26  ;;  %v8615_v33 = vld [vmem:[%s9093_s11 + $0x164] ss:$16 sps:$4 sm:$0xff]   ;;  %v8621_v8 = vld [vmem:[%s9093_s11 + $0x16c] ss:$16 sps:$4 sm:$0xff]  }
 0xebd   :  { %9924 = vst [vmem:[#allocation60_spill] sm:$0xff] %v8615_v33  ;;  %9925 = vst [vmem:[#allocation61_spill] sm:$0xff] %v8621_v8 }
 0xebf   :  { %3731 = vmatpush1.bf16.msra.mxu1 %v8603_v10  ;;  %3772 = vmatpush1.bf16.msra.mxu0 %v8609_v26  ;;  %v8627_v10 = vld [vmem:[%s9093_s11 + $0x160] ss:$16 sps:$4 sm:$0xff]   ;;  %v8633_v26 = vld [vmem:[%s9093_s11 + $0x168] ss:$16 sps:$4 sm:$0xff]  }
 0xec0   :  { %3732 = vmatprep.subr.bf16.mxu1 %v8615_v33  ;;  %3773 = vmatprep.subr.bf16.mxu0 %v8621_v8  ;;  %9926 = vst [vmem:[#allocation71_spill] sm:$0xff] %v8627_v10  ;;  %9927 = vst [vmem:[#allocation72_spill] sm:$0xff] %v8633_v26  ;;  %v8639_v33 = vld [vmem:[%s9093_s11 + $0x184] ss:$16 sps:$4 sm:$0xff]   ;;  %v8645_v8 = vld [vmem:[%s9093_s11 + $0x18c] ss:$16 sps:$4 sm:$0xff]  }
 0xec1   :  { %9928 = vst [vmem:[#allocation73_spill] sm:$0xff] %v8639_v33  ;;  %9929 = vst [vmem:[#allocation74_spill] sm:$0xff] %v8645_v8 }
 0xec3   :  { %3733 = vmatpush1.bf16.msra.mxu1 %v8627_v10  ;;  %3774 = vmatpush1.bf16.msra.mxu0 %v8633_v26  ;;  %v8651_v10 = vld [vmem:[%s9093_s11 + $0x180] ss:$16 sps:$4 sm:$0xff]   ;;  %v8657_v26 = vld [vmem:[%s9093_s11 + $0x188] ss:$16 sps:$4 sm:$0xff]  }
 0xec4   :  { %3734 = vmatprep.subr.bf16.mxu1 %v8639_v33  ;;  %3775 = vmatprep.subr.bf16.mxu0 %v8645_v8  ;;  %9930 = vst [vmem:[#allocation75_spill] sm:$0xff] %v8651_v10  ;;  %9931 = vst [vmem:[#allocation76_spill] sm:$0xff] %v8657_v26  ;;  %v8663_v33 = vld [vmem:[%s9093_s11 + $0x1a4] ss:$16 sps:$4 sm:$0xff]   ;;  %v8669_v8 = vld [vmem:[%s9093_s11 + $0x1ac] ss:$16 sps:$4 sm:$0xff]  }
 0xec5   :  { %9932 = vst [vmem:[#allocation77_spill] sm:$0xff] %v8663_v33  ;;  %9933 = vst [vmem:[#allocation78_spill] sm:$0xff] %v8669_v8 }
 0xec7   :  { %3735 = vmatpush1.bf16.msra.mxu1 %v8651_v10  ;;  %3776 = vmatpush1.bf16.msra.mxu0 %v8657_v26  ;;  %v8675_v10 = vld [vmem:[%s9093_s11 + $0x1a0] ss:$16 sps:$4 sm:$0xff]   ;;  %v8681_v26 = vld [vmem:[%s9093_s11 + $0x1a8] ss:$16 sps:$4 sm:$0xff]  }
 0xec8   :  { %3736 = vmatprep.subr.bf16.mxu1 %v8663_v33  ;;  %3777 = vmatprep.subr.bf16.mxu0 %v8669_v8  ;;  %9934 = vst [vmem:[#allocation79_spill] sm:$0xff] %v8675_v10  ;;  %9935 = vst [vmem:[#allocation13_spill] sm:$0xff] %v8681_v26  ;;  %v8687_v33 = vld [vmem:[%s9093_s11 + $0x1c4] ss:$16 sps:$4 sm:$0xff]   ;;  %v8693_v8 = vld [vmem:[%s9093_s11 + $0x1cc] ss:$16 sps:$4 sm:$0xff]  }
 0xec9   :  { %9936 = vst [vmem:[#allocation14_spill] sm:$0xff] %v8687_v33  ;;  %9937 = vst [vmem:[#allocation81_spill] sm:$0xff] %v8693_v8 }
 0xecb   :  { %3737 = vmatpush1.bf16.msra.mxu1 %v8675_v10  ;;  %3778 = vmatpush1.bf16.msra.mxu0 %v8681_v26  ;;  %v8699_v10 = vld [vmem:[%s9093_s11 + $0x1c0] ss:$16 sps:$4 sm:$0xff]   ;;  %v8705_v26 = vld [vmem:[%s9093_s11 + $0x1c8] ss:$16 sps:$4 sm:$0xff]  }
 0xecc   :  { %3738 = vmatprep.subr.bf16.mxu1 %v8687_v33  ;;  %3779 = vmatprep.subr.bf16.mxu0 %v8693_v8  ;;  %9938 = vst [vmem:[#allocation82_spill] sm:$0xff] %v8699_v10  ;;  %9939 = vst [vmem:[#allocation83_spill] sm:$0xff] %v8705_v26  ;;  %v8711_v33 = vld [vmem:[%s9093_s11 + $0x1e4] ss:$16 sps:$4 sm:$0xff]   ;;  %v8717_v8 = vld [vmem:[%s9093_s11 + $0x1ec] ss:$16 sps:$4 sm:$0xff]  }
 0xecd   :  { %9940 = vst [vmem:[#allocation84_spill] sm:$0xff] %v8711_v33  ;;  %9941 = vst [vmem:[#allocation85_spill] sm:$0xff] %v8717_v8 }
 0xecf   :  { %3739 = vmatpush1.bf16.msra.mxu1 %v8699_v10  ;;  %3780 = vmatpush1.bf16.msra.mxu0 %v8705_v26  ;;  %v8723_v10 = vld [vmem:[%s9093_s11 + $0x1e0] ss:$16 sps:$4 sm:$0xff]   ;;  %v8729_v26 = vld [vmem:[%s9093_s11 + $0x1e8] ss:$16 sps:$4 sm:$0xff]  }
 0xed0   :  { %3740 = vmatprep.subr.bf16.mxu1 %v8711_v33  ;;  %3781 = vmatprep.subr.bf16.mxu0 %v8717_v8  ;;  %9942 = vst [vmem:[#allocation86_spill] sm:$0xff] %v8723_v10  ;;  %9943 = vst [vmem:[#allocation87_spill] sm:$0xff] %v8729_v26 }
 0xed3   :  { %3741 = vmatpush1.bf16.msra.mxu1 %v8723_v10  ;;  %3782 = vmatpush1.bf16.msra.mxu0 %v8729_v26 }
 0xed4   :  { %3810 = vmatprep.subr.bf16.mxu1 %v8165_v11  ;;  %3851 = vmatprep.subr.bf16.mxu0 %v8171_v46 }
 0xf49   :  { %v3514_v33 = vpop.f32.mrb[64].mxu1  ;;  %v3555_v8 = vpop.f32.mrb[68].mxu0 }
 0xf4a   :  { %v3515_v32 = vadd.f32 %v3514_v33, %v9868_v51  ;;  %v3516_v31 = vpop.f32.mrb[65].mxu1  ;;  %v3557_v61 = vpop.f32.mrb[69].mxu0  ;;  %v3556_v26 = vadd.f32 %v3555_v8, %v9870_v22 }
 0xf4b   :  { %v3517_v57 = vadd.f32 %v3516_v31, %v9869_v6  ;;  %v3518_v10 = vpop.f32.mrb[66].mxu1  ;;  %v3559_v59 = vpop.f32.mrb[70].mxu0  ;;  %v3558_v46 = vadd.f32 %v3557_v61, %v9871_v9 }
 0xf4c   :  { %v3562_v55 = vmul.f32 0.5, %v3515_v32  ;;  %v3519_v52 = vpop.f32.mrb[67].mxu1  ;;  %v3560_v50 = vpop.f32.mrb[71].mxu0 }
 0xf4d   :  { %v3566_v48 = vmul.f32 0.5, %v3517_v57  ;;  %v3571_v11 = vmul.f32 0.5, %v3558_v46 }
 0xf4e   :  { %5339 = vtanh.f32 %v3562_v55 }
 0xf4f   :  { %5341 = vtanh.f32 %v3566_v48 }
 0xf50   :  { %5343 = vtanh.f32 %v3556_v26 }
 0xf51   :  { %5345 = vtanh.f32 %v3571_v11 }
 0xf58   :  { %v5340_v5 = vpop.eup %5339 }
 0xf59   :  { %v5342_v33 = vpop.eup %5341  ;;  %v3564_v51 = vadd.f32 1.0, %v5340_v5 }
 0xf5a   :  { %v3568_v4 = vadd.f32 1.0, %v5342_v33  ;;  %v5344_v10 = vpop.eup %5343 }
 0xf5b   :  { %v3565_v31 = vmul.f32 0.5, %v3564_v51  ;;  %v5346_v48 = vpop.eup %5345 }
 0xf5c   :  { %v3569_v59 = vmul.f32 0.5, %v3568_v4  ;;  %v3573_v55 = vadd.f32 1.0, %v5346_v48 }
 0xf5d   :  { %v3576_v32 = vmul.f32 %v5344_v10, %v3565_v31 }
 0xf5e   :  { %v3575_v50 = vmul.f32 %v3569_v59, %v8179_v16  ;;  %v3574_v5 = vmul.f32 0.5, %v3573_v55 }
 0xf60   :  { %v8739_v52 = vadd.f32 %v3576_v32, %v3575_v50 }
 0xf62   :  { %9944 = vst [vmem:[#allocation88_spill] sm:$0xff] %v8739_v52  ;;  %5347 = vtanh.f32 %v8739_v52 }
 0xf69   :  { %v3614_v57 = vpop.f32.mrb[68].mxu1  ;;  %v3655_v61 = vpop.f32.mrb[72].mxu0 }
 0xf6a   :  { %v3666_v46 = vrot.slane %v3614_v57, 4  ;;  %v3616_v8 = vpop.f32.mrb[69].mxu1  ;;  %v3657_v26 = vpop.f32.mrb[73].mxu0  ;;  %v3668_v31 = vrot.slane %v3655_v61, 4 }
 0xf6b   :  { %v3667_v33 = vrot.slane %v3616_v8, 4  ;;  %v3618_v11 = vpop.f32.mrb[70].mxu1  ;;  %v3659_v51 = vpop.f32.mrb[74].mxu0  ;;  %v3669_v22 = vrot.slane %v3657_v26, 4 }
 0xf6c   :  { %v5348_v9 = vpop.eup %5347  ;;  %v3674_v4 = vadd.f32 %v3666_v46, %v9873_v53  ;;  %v3619_v16 = vpop.f32.mrb[71].mxu1  ;;  %v3676_v57 = vadd.f32 %v3668_v31, %v8024_v34  ;;  %v3692_v31 = vrot.slane %v8187_v60, 6  ;;  %v9951_v60 = vld [vmem:[#allocation28_spill] sm:$0xff] }
 0xf6d   :  { %v3660_v10 = vpop.f32.mrb[75].mxu0  ;;  %v3675_v59 = vadd.f32 %v3667_v33, %v8018_v3  ;;  %v3579_v32 = vmul.f32 %v5348_v9, %v3574_v5  ;;  %v3677_v11 = vadd.f32 %v3669_v22, %v8029_v7 }
 0xf6e   :  { %v3678_v50 = vmul.f32 0.5, %v3674_v4 }
 0xf6f   :  { %v3682_v48 = vmul.f32 0.5, %v3675_v59  ;;  %v3700_v52 = vrot.slane %v3579_v32, 4  ;;  %v3687_v61 = vmul.f32 0.5, %v3677_v11  ;;  %v9953_v11 = vld [vmem:[#allocation30_spill] sm:$0xff] }
 0xf70   :  { %5349 = vtanh.f32 %v3678_v50 }
 0xf71   :  { %5351 = vtanh.f32 %v3682_v48  ;;  %v3703_v55 = vpack.c.bf16 %v3700_v52, %v3700_v52 }
 0xf72   :  { %5353 = vtanh.f32 %v3676_v57 }
 0xf73   :  { %v3707_v8 = vrot.slane %v3703_v55, 2  ;;  %5355 = vtanh.f32 %v3687_v61  ;;  %v9954_v61 = vld [vmem:[#allocation31_spill] sm:$0xff] }
 0xf75   :  { %3742 = vmatprep.mubr.bf16.mxu1 %v3707_v8  ;;  %3783 = vmatprep.mubr.bf16.mxu0 %v3707_v8  ;;  %v9952_v8 = vld [vmem:[#allocation29_spill] sm:$0xff] }
 0xf7a   :  { %v5350_v46 = vpop.eup %5349 }
 0xf7b   :  { %v5352_v51 = vpop.eup %5351  ;;  %v3680_v33 = vadd.f32 1.0, %v5350_v46  ;;  %v9955_v46 = vld [vmem:[#allocation32_spill] sm:$0xff] }
 0xf7c   :  { %v3684_v9 = vadd.f32 1.0, %v5352_v51  ;;  %v5354_v4 = vpop.eup %5353  ;;  %v9956_v51 = vld [vmem:[#allocation33_spill] sm:$0xff] }
 0xf7d   :  { %v3681_v5 = vmul.f32 0.5, %v3680_v33  ;;  %v5356_v22 = vpop.eup %5355  ;;  %v9957_v33 = vld [vmem:[#allocation34_spill] sm:$0xff] }
 0xf7e   :  { %v3685_v16 = vmul.f32 0.5, %v3684_v9  ;;  %v3689_v59 = vadd.f32 1.0, %v5356_v22  ;;  %v9958_v9 = vld [vmem:[#allocation35_spill] sm:$0xff]  ;;  %v9965_v22 = vld [vmem:[#allocation42_spill] sm:$0xff] }
 0xf7f   :  { %v3695_v26 = vmul.f32 %v5354_v4, %v3681_v5  ;;  %v9959_v5 = vld [vmem:[#allocation36_spill] sm:$0xff]  ;;  %v9960_v4 = vld [vmem:[#allocation37_spill] sm:$0xff] }
 0xf80   :  { %v3694_v10 = vmul.f32 %v3692_v31, %v3685_v16  ;;  %v3690_v32 = vmul.f32 0.5, %v3689_v59  ;;  %v9961_v16 = vld [vmem:[#allocation38_spill] sm:$0xff]  ;;  %v9962_v31 = vld [vmem:[#allocation39_spill] sm:$0xff] }
 0xf81   :  { %v9966_v59 = vld [vmem:[#allocation43_spill] sm:$0xff] }
 0xf82   :  { %v8747_v52 = vadd.f32 %v3695_v26, %v3694_v10  ;;  %v9963_v26 = vld [vmem:[#allocation40_spill] sm:$0xff]  ;;  %v9964_v10 = vld [vmem:[#allocation41_spill] sm:$0xff] }
 0xf84   :  { %5357 = vtanh.f32 %v8747_v52 }
 0xf8e   :  { %v5358_v50 = vpop.eup %5357 }
 0xf8f   :  { %v3698_v48 = vmul.f32 %v5358_v50, %v3690_v32  ;;  %v9967_v32 = vld [vmem:[#allocation44_spill] sm:$0xff]  ;;  %v9968_v50 = vld [vmem:[#allocation45_spill] sm:$0xff] }
 0xf91   :  { %v3702_v57 = vpack.c.bf16 %v3698_v48, %v3698_v48  ;;  %v9969_v48 = vld [vmem:[#allocation46_spill] sm:$0xff] }
 0xf93   :  { %v3706_v55 = vrot.slane %v3702_v57, 2  ;;  %v9970_v57 = vld [vmem:[#allocation47_spill] sm:$0xff] }
 0xf95   :  { %3743 = vmatmul.mubr.bf16.vlgmr.msra.gmra.mrb[72].mxu1 %v3706_v55  ;;  %3784 = vmatmul.mubr.bf16.vlgmr.msra.gmra.mrb[76].mxu0 %v3706_v55 }
 0xf96   :  { %3811 = vmatpush1.bf16.msra.mxu1 %v8197_v30  ;;  %3852 = vmatpush1.bf16.msra.mxu0 %v8040_v12  ;;  %v9945_v12 = vld [vmem:[#allocation65_spill] sm:$0xff] }
 0xf97   :  { %3812 = vmatprep.subr.bf16.mxu1 %v8204_v21  ;;  %3853 = vmatprep.subr.bf16.mxu0 %v8047_v1  ;;  %v9946_v1 = vld [vmem:[#allocation23_spill] sm:$0xff] }
 0xf98   :  { %3842 = vmatprep.mubr.bf16.mxu1 %v9563_v18  ;;  %3883 = vmatprep.mubr.bf16.mxu0 %v9563_v18 }
 0xf9a   :  { %3813 = vmatpush1.bf16.msra.mxu1 %v8213_v27  ;;  %3854 = vmatpush1.bf16.msra.mxu0 %v8056_v58  ;;  %v9947_v58 = vld [vmem:[#allocation24_spill] sm:$0xff] }
 0xf9b   :  { %3814 = vmatprep.subr.bf16.mxu1 %v8220_v14  ;;  %3855 = vmatprep.subr.bf16.mxu0 %v8063_v38  ;;  %v9948_v38 = vld [vmem:[#allocation25_spill] sm:$0xff] }
 0xf9e   :  { %3815 = vmatpush1.bf16.msra.mxu1 %v8227_v56  ;;  %3856 = vmatpush1.bf16.msra.mxu0 %v8070_v17  ;;  %v9949_v17 = vld [vmem:[#allocation26_spill] sm:$0xff] }
 0xf9f   :  { %3816 = vmatprep.subr.bf16.mxu1 %v8234_v28  ;;  %3857 = vmatprep.subr.bf16.mxu0 %v8077_v25  ;;  %v9950_v25 = vld [vmem:[#allocation27_spill] sm:$0xff] }
 0xfa2   :  { %3817 = vmatpush1.bf16.msra.mxu1 %v8241_v20  ;;  %3858 = vmatpush1.bf16.msra.mxu0 %v8247_v54 }
 0xfa3   :  { %3818 = vmatprep.subr.bf16.mxu1 %v8253_v42  ;;  %3859 = vmatprep.subr.bf16.mxu0 %v8259_v39 }
 0xfa6   :  { %3819 = vmatpush1.bf16.msra.mxu1 %v8265_v63  ;;  %3860 = vmatpush1.bf16.msra.mxu0 %v8271_v49 }
 0xfa7   :  { %3820 = vmatprep.subr.bf16.mxu1 %v8277_v37  ;;  %3861 = vmatprep.subr.bf16.mxu0 %v8283_v62 }
 0xfaa   :  { %3821 = vmatpush1.bf16.msra.mxu1 %v8289_v2  ;;  %3862 = vmatpush1.bf16.msra.mxu0 %v8295_v36  ;;  %v10002_v36 = vld [vmem:[#allocation87_spill] sm:$0xff] }
 0xfab   :  { %3822 = vmatprep.subr.bf16.mxu1 %v8301_v13  ;;  %3863 = vmatprep.subr.bf16.mxu0 %v8307_v44  ;;  %v10000_v44 = vld [vmem:[#allocation85_spill] sm:$0xff] }
 0xfae   :  { %3823 = vmatpush1.bf16.msra.mxu1 %v8313_v0  ;;  %3864 = vmatpush1.bf16.msra.mxu0 %v8319_v15  ;;  %v9998_v15 = vld [vmem:[#allocation83_spill] sm:$0xff] }
 0xfaf   :  { %3824 = vmatprep.subr.bf16.mxu1 %v8325_v23  ;;  %3865 = vmatprep.subr.bf16.mxu0 %v8331_v41  ;;  %v9996_v41 = vld [vmem:[#allocation81_spill] sm:$0xff] }
 0xfb2   :  { %3825 = vmatpush1.bf16.msra.mxu1 %v8337_v29  ;;  %3866 = vmatpush1.bf16.msra.mxu0 %v8343_v40  ;;  %v9994_v40 = vld [vmem:[#allocation13_spill] sm:$0xff] }
 0xfb3   :  { %3940 = vmatprep.subr.bf16.mxu1 %v8349_v19  ;;  %3981 = vmatprep.subr.bf16.mxu0 %v8355_v24  ;;  %v9992_v24 = vld [vmem:[#allocation78_spill] sm:$0xff] }
 0xfb5   :  { %3843 = vmatmul.mubr.bf16.vlgmr.msra.gmra.mrb[76].mxu1 %v3706_v55  ;;  %3884 = vmatmul.mubr.bf16.vlgmr.msra.gmra.mrb[80].mxu0 %v3706_v55  ;;  %v9971_v55 = vld [vmem:[#allocation48_spill] sm:$0xff] }
 0xfb6   :  { %3941 = vmatpush1.bf16.msra.mxu1 %v8363_v45  ;;  %3982 = vmatpush1.bf16.msra.mxu0 %v8369_v43  ;;  %v9990_v43 = vld [vmem:[#allocation76_spill] sm:$0xff] }
 0xfb7   :  { %3942 = vmatprep.subr.bf16.mxu1 %v8375_v47  ;;  %3983 = vmatprep.subr.bf16.mxu0 %v8381_v35  ;;  %v9988_v35 = vld [vmem:[#allocation74_spill] sm:$0xff] }
 0xfba   :  { %3943 = vmatpush1.bf16.msra.mxu1 %v9945_v12  ;;  %3984 = vmatpush1.bf16.msra.mxu0 %v9946_v1  ;;  %v9986_v1 = vld [vmem:[#allocation72_spill] sm:$0xff] }
 0xfbb   :  { %3944 = vmatprep.subr.bf16.mxu1 %v9947_v58  ;;  %3985 = vmatprep.subr.bf16.mxu0 %v9948_v38  ;;  %v9984_v38 = vld [vmem:[#allocation61_spill] sm:$0xff] }
 0xfbe   :  { %3945 = vmatpush1.bf16.msra.mxu1 %v9949_v17  ;;  %3986 = vmatpush1.bf16.msra.mxu0 %v9950_v25  ;;  %v9982_v25 = vld [vmem:[#allocation59_spill] sm:$0xff] }
 0xfbf   :  { %3946 = vmatprep.subr.bf16.mxu1 %v9951_v60  ;;  %3987 = vmatprep.subr.bf16.mxu0 %v9952_v8  ;;  %v9980_v8 = vld [vmem:[#allocation57_spill] sm:$0xff] }
 0xfc2   :  { %3947 = vmatpush1.bf16.msra.mxu1 %v9953_v11  ;;  %3988 = vmatpush1.bf16.msra.mxu0 %v9954_v61  ;;  %v9978_v61 = vld [vmem:[#allocation55_spill] sm:$0xff] }
 0xfc3   :  { %3948 = vmatprep.subr.bf16.mxu1 %v9955_v46  ;;  %3989 = vmatprep.subr.bf16.mxu0 %v9956_v51  ;;  %v9976_v51 = vld [vmem:[#allocation53_spill] sm:$0xff] }
 0xfc6   :  { %3949 = vmatpush1.bf16.msra.mxu1 %v9957_v33  ;;  %3990 = vmatpush1.bf16.msra.mxu0 %v9958_v9  ;;  %v9974_v9 = vld [vmem:[#allocation51_spill] sm:$0xff] }
 0xfc7   :  { %3950 = vmatprep.subr.bf16.mxu1 %v9959_v5  ;;  %3991 = vmatprep.subr.bf16.mxu0 %v9960_v4  ;;  %v9972_v4 = vld [vmem:[#allocation49_spill] sm:$0xff] }
 0xfca   :  { %3951 = vmatpush1.bf16.msra.mxu1 %v9961_v16  ;;  %3992 = vmatpush1.bf16.msra.mxu0 %v9962_v31  ;;  %v9973_v31 = vld [vmem:[#allocation50_spill] sm:$0xff] }
 0xfcb   :  { %3952 = vmatprep.subr.bf16.mxu1 %v9963_v26  ;;  %3993 = vmatprep.subr.bf16.mxu0 %v9964_v10  ;;  %v9975_v10 = vld [vmem:[#allocation52_spill] sm:$0xff] }
 0xfce   :  { %3953 = vmatpush1.bf16.msra.mxu1 %v9965_v22  ;;  %3994 = vmatpush1.bf16.msra.mxu0 %v9966_v59  ;;  %v9977_v59 = vld [vmem:[#allocation54_spill] sm:$0xff] }
 0xfcf   :  { %3954 = vmatprep.subr.bf16.mxu1 %v9967_v32  ;;  %3995 = vmatprep.subr.bf16.mxu0 %v9968_v50  ;;  %v9979_v50 = vld [vmem:[#allocation56_spill] sm:$0xff] }
 0xfd2   :  { %3955 = vmatpush1.bf16.msra.mxu1 %v9969_v48  ;;  %3996 = vmatpush1.bf16.msra.mxu0 %v9970_v57  ;;  %v9981_v57 = vld [vmem:[#allocation58_spill] sm:$0xff] }
 0xfd3   :  { %3956 = vmatprep.subr.bf16.mxu1 %v9971_v55  ;;  %3997 = vmatprep.subr.bf16.mxu0 %v9972_v4  ;;  %v9983_v4 = vld [vmem:[#allocation60_spill] sm:$0xff] }
 0xfd6   :  { %3957 = vmatpush1.bf16.msra.mxu1 %v9973_v31  ;;  %3998 = vmatpush1.bf16.msra.mxu0 %v9974_v9  ;;  %v9985_v9 = vld [vmem:[#allocation71_spill] sm:$0xff] }
 0xfd7   :  { %3958 = vmatprep.subr.bf16.mxu1 %v9975_v10  ;;  %3999 = vmatprep.subr.bf16.mxu0 %v9976_v51  ;;  %v9987_v51 = vld [vmem:[#allocation73_spill] sm:$0xff] }
 0xfda   :  { %3959 = vmatpush1.bf16.msra.mxu1 %v9977_v59  ;;  %4000 = vmatpush1.bf16.msra.mxu0 %v9978_v61  ;;  %v9989_v61 = vld [vmem:[#allocation75_spill] sm:$0xff] }
 0xfdb   :  { %3960 = vmatprep.subr.bf16.mxu1 %v9979_v50  ;;  %4001 = vmatprep.subr.bf16.mxu0 %v9980_v8  ;;  %v9991_v8 = vld [vmem:[#allocation77_spill] sm:$0xff] }
 0xfde   :  { %3961 = vmatpush1.bf16.msra.mxu1 %v9981_v57  ;;  %4002 = vmatpush1.bf16.msra.mxu0 %v9982_v25  ;;  %v9993_v25 = vld [vmem:[#allocation79_spill] sm:$0xff] }
 0xfdf   :  { %3962 = vmatprep.subr.bf16.mxu1 %v9983_v4  ;;  %4003 = vmatprep.subr.bf16.mxu0 %v9984_v38  ;;  %v9995_v38 = vld [vmem:[#allocation14_spill] sm:$0xff] }
 0xfe2   :  { %3963 = vmatpush1.bf16.msra.mxu1 %v9985_v9  ;;  %4004 = vmatpush1.bf16.msra.mxu0 %v9986_v1  ;;  %v9997_v1 = vld [vmem:[#allocation82_spill] sm:$0xff] }
 0xfe3   :  { %3964 = vmatprep.subr.bf16.mxu1 %v9987_v51  ;;  %4005 = vmatprep.subr.bf16.mxu0 %v9988_v35  ;;  %v9999_v35 = vld [vmem:[#allocation84_spill] sm:$0xff] }
 0xfe6   :  { %3965 = vmatpush1.bf16.msra.mxu1 %v9989_v61  ;;  %4006 = vmatpush1.bf16.msra.mxu0 %v9990_v43  ;;  %v10001_v43 = vld [vmem:[#allocation86_spill] sm:$0xff] }
 0xfe7   :  { %3966 = vmatprep.subr.bf16.mxu1 %v9991_v8  ;;  %4007 = vmatprep.subr.bf16.mxu0 %v9992_v24  ;;  %v10003_v24 = vld [vmem:[#allocation15_spill] sm:$0xff] }
 0xfea   :  { %3967 = vmatpush1.bf16.msra.mxu1 %v9993_v25  ;;  %4008 = vmatpush1.bf16.msra.mxu0 %v9994_v40  ;;  %v10004_v25 = vld [vmem:[#allocation10_spill] sm:$0xff] }
 0xfeb   :  { %3968 = vmatprep.subr.bf16.mxu1 %v9995_v38  ;;  %4009 = vmatprep.subr.bf16.mxu0 %v9996_v41 }
 0xfee   :  { %3969 = vmatpush1.bf16.msra.mxu1 %v9997_v1  ;;  %4010 = vmatpush1.bf16.msra.mxu0 %v9998_v15 }
 0xfef   :  { %3970 = vmatprep.subr.bf16.mxu1 %v9999_v35  ;;  %4011 = vmatprep.subr.bf16.mxu0 %v10000_v44 }
 0xff2   :  { %3971 = vmatpush1.bf16.msra.mxu1 %v10001_v43  ;;  %4012 = vmatpush1.bf16.msra.mxu0 %v10002_v36  ;;  %v10005_v36 = vld [vmem:[#allocation8_spill] sm:$0xff] }
 0xff3   :  { %4040 = vmatprep.subr.bf16.mxu1 %v10003_v24  ;;  %4149 = vmatprep.subr.bf16.mxu0 %v8349_v19  ;;  %v10006_v19 = vld [vmem:[#allocation70_spill] sm:$0xff] }
0x1068   :  { %v3744_v40 = vpop.f32.mrb[72].mxu1  ;;  %v3785_v38 = vpop.f32.mrb[76].mxu0 }
0x1069   :  { %v3745_v41 = vadd.f32 %v3744_v40, %v10004_v25  ;;  %v3746_v8 = vpop.f32.mrb[73].mxu1  ;;  %v3787_v1 = vpop.f32.mrb[77].mxu0  ;;  %v3786_v51 = vadd.f32 %v3785_v38, %v10005_v36 }
0x106a   :  { %v3747_v15 = vadd.f32 %v3746_v8, %v9869_v6  ;;  %v3748_v61 = vpop.f32.mrb[74].mxu1  ;;  %v3789_v35 = vpop.f32.mrb[78].mxu0  ;;  %v3788_v24 = vadd.f32 %v3787_v1, %v10006_v19 }
0x106b   :  { %v3792_v62 = vmul.f32 0.5, %v3745_v41  ;;  %v3749_v44 = vpop.f32.mrb[75].mxu1  ;;  %v3790_v49 = vpop.f32.mrb[79].mxu0 }
0x106c   :  { %v3796_v43 = vmul.f32 0.5, %v3747_v15  ;;  %v3801_v9 = vmul.f32 0.5, %v3788_v24  ;;  %v10007_v44 = vld [vmem:[#allocation88_spill] sm:$0xff] }
0x106d   :  { %5359 = vtanh.f32 %v3792_v62 }
0x106e   :  { %5361 = vtanh.f32 %v3796_v43 }
0x106f   :  { %5363 = vtanh.f32 %v3786_v51 }
0x1070   :  { %5365 = vtanh.f32 %v3801_v9 }
0x1077   :  { %v5360_v39 = vpop.eup %5359 }
0x1078   :  { %v5362_v40 = vpop.eup %5361  ;;  %v3794_v25 = vadd.f32 1.0, %v5360_v39 }
0x1079   :  { %v3798_v54 = vadd.f32 1.0, %v5362_v40  ;;  %v5364_v61 = vpop.eup %5363 }
0x107a   :  { %v3795_v8 = vmul.f32 0.5, %v3794_v25  ;;  %v5366_v62 = vpop.eup %5365 }
0x107b   :  { %v3799_v35 = vmul.f32 0.5, %v3798_v54  ;;  %v3803_v43 = vadd.f32 1.0, %v5366_v62 }
0x107c   :  { %v3806_v41 = vmul.f32 %v5364_v61, %v3795_v8 }
0x107d   :  { %v3805_v49 = vmul.f32 %v3799_v35, %v10007_v44  ;;  %v3804_v39 = vmul.f32 0.5, %v3803_v43 }
0x107f   :  { %v8853_v15 = vadd.f32 %v3806_v41, %v3805_v49 }
0x1081   :  { %10008 = vst [vmem:[#allocation65_spill] sm:$0xff] %v8853_v15  ;;  %5367 = vtanh.f32 %v8853_v15 }
0x1088   :  { %v3844_v38 = vpop.f32.mrb[76].mxu1  ;;  %v3885_v1 = vpop.f32.mrb[80].mxu0 }
0x1089   :  { %v3896_v51 = vrot.slane %v3844_v38, 2  ;;  %v3846_v24 = vpop.f32.mrb[77].mxu1  ;;  %v3887_v19 = vpop.f32.mrb[81].mxu0  ;;  %v3898_v8 = vrot.slane %v3885_v1, 2 }
0x108a   :  { %v3897_v40 = vrot.slane %v3846_v24, 2  ;;  %v3848_v9 = vpop.f32.mrb[78].mxu1  ;;  %v3889_v25 = vpop.f32.mrb[82].mxu0  ;;  %v3899_v6 = vrot.slane %v3887_v19, 2 }
0x108b   :  { %v5368_v36 = vpop.eup %5367  ;;  %v3904_v54 = vadd.f32 %v3896_v51, %v9873_v53  ;;  %v3849_v61 = vpop.f32.mrb[79].mxu1  ;;  %v3906_v38 = vadd.f32 %v3898_v8, %v8024_v34  ;;  %v3922_v34 = vrot.slane %v8747_v52, 6  ;;  %v10021_v52 = vld [vmem:[#allocation14_spill] sm:$0xff] }
0x108c   :  { %v3890_v35 = vpop.f32.mrb[83].mxu0  ;;  %v3905_v41 = vadd.f32 %v3897_v40, %v8018_v3  ;;  %v3809_v44 = vmul.f32 %v5368_v36, %v3804_v39  ;;  %v3907_v9 = vadd.f32 %v3899_v6, %v8029_v7 }
0x108d   :  { %v3908_v49 = vmul.f32 0.5, %v3904_v54 }
0x108e   :  { %v3912_v62 = vmul.f32 0.5, %v3905_v41  ;;  %v3930_v15 = vrot.slane %v3809_v44, 2  ;;  %v3917_v53 = vmul.f32 0.5, %v3907_v9  ;;  %v10047_v9 = vld [vmem:[#allocation53_spill] sm:$0xff] }
0x108f   :  { %5369 = vtanh.f32 %v3908_v49  ;;  %v10042_v49 = vld [vmem:[#allocation43_spill] sm:$0xff] }
0x1090   :  { %5371 = vtanh.f32 %v3912_v62  ;;  %v3933_v43 = vpack.c.bf16 %v3930_v15, %v3930_v15  ;;  %v10043_v62 = vld [vmem:[#allocation45_spill] sm:$0xff] }
0x1091   :  { %5373 = vtanh.f32 %v3906_v38  ;;  %v10044_v38 = vld [vmem:[#allocation47_spill] sm:$0xff] }
0x1092   :  { %v3937_v24 = vrot.slane %v3933_v43, 3  ;;  %5375 = vtanh.f32 %v3917_v53  ;;  %v10045_v43 = vld [vmem:[#allocation49_spill] sm:$0xff]  ;;  %v10048_v53 = vld [vmem:[#allocation55_spill] sm:$0xff] }
0x1094   :  { %3972 = vmatprep.mubr.bf16.mxu1 %v3937_v24  ;;  %4013 = vmatprep.mubr.bf16.mxu0 %v3937_v24  ;;  %v10046_v24 = vld [vmem:[#allocation51_spill] sm:$0xff] }
0x1099   :  { %v5370_v1 = vpop.eup %5369 }
0x109a   :  { %v5372_v51 = vpop.eup %5371  ;;  %v3910_v3 = vadd.f32 1.0, %v5370_v1  ;;  %v10049_v1 = vld [vmem:[#allocation57_spill] sm:$0xff] }
0x109b   :  { %v3914_v36 = vadd.f32 1.0, %v5372_v51  ;;  %v5374_v40 = vpop.eup %5373  ;;  %v10050_v51 = vld [vmem:[#allocation59_spill] sm:$0xff] }
0x109c   :  { %v3911_v39 = vmul.f32 0.5, %v3910_v3  ;;  %v5376_v7 = vpop.eup %5375  ;;  %v10051_v3 = vld [vmem:[#allocation61_spill] sm:$0xff] }
0x109d   :  { %v3915_v25 = vmul.f32 0.5, %v3914_v36  ;;  %v3919_v6 = vadd.f32 1.0, %v5376_v7  ;;  %v10052_v36 = vld [vmem:[#allocation72_spill] sm:$0xff]  ;;  %v10059_v7 = vld [vmem:[#allocation85_spill] sm:$0xff] }
0x109e   :  { %v3925_v19 = vmul.f32 %v5374_v40, %v3911_v39  ;;  %v10053_v39 = vld [vmem:[#allocation74_spill] sm:$0xff]  ;;  %v10054_v40 = vld [vmem:[#allocation76_spill] sm:$0xff] }
0x109f   :  { %v3924_v54 = vmul.f32 %v3922_v34, %v3915_v25  ;;  %v3920_v8 = vmul.f32 0.5, %v3919_v6  ;;  %v10055_v25 = vld [vmem:[#allocation78_spill] sm:$0xff]  ;;  %v10056_v34 = vld [vmem:[#allocation13_spill] sm:$0xff]  ;;  %v10060_v6 = vld [vmem:[#allocation87_spill] sm:$0xff] }
0x10a1   :  { %v8861_v15 = vadd.f32 %v3925_v19, %v3924_v54  ;;  %v10057_v19 = vld [vmem:[#allocation81_spill] sm:$0xff]  ;;  %v10058_v54 = vld [vmem:[#allocation83_spill] sm:$0xff] }
0x10a3   :  { %5377 = vtanh.f32 %v8861_v15 }
0x10ad   :  { %v5378_v61 = vpop.eup %5377 }
0x10ae   :  { %v3928_v35 = vmul.f32 %v5378_v61, %v3920_v8 }
0x10b0   :  { %v3932_v41 = vpack.c.bf16 %v3928_v35, %v3928_v35  ;;  %v10061_v35 = vld [vmem:[#allocation10_spill] sm:$0xff] }
0x10b2   :  { %v8864_v44 = vrot.slane %v3932_v41, 3 }
0x10b4   :  { %3973 = vmatmul.mubr.bf16.vlgmr.msra.gmra.mrb[80].mxu1 %v8864_v44  ;;  %4014 = vmatmul.mubr.bf16.vlgmr.msra.gmra.mrb[84].mxu0 %v8864_v44 }
0x10b5   :  { %4041 = vmatpush1.bf16.msra.mxu1 %v8197_v30  ;;  %4072 = vmatprep.mubr.bf16.mxu1 %v9563_v18  ;;  %v10009_v30 = vld [vmem:[#allocation16_spill] sm:$0xff] }
0x10b6   :  { %4042 = vmatprep.subr.bf16.mxu1 %v8204_v21  ;;  %4150 = vmatpush1.bf16.msra.mxu0 %v8363_v45  ;;  %v5605_v21 = vld [vmem:[%s9091_s9 + $0x8] ss:$16 sps:$4 sm:$0xff]  }
0x10b7   :  { %4151 = vmatprep.subr.bf16.mxu0 %v8375_v47  ;;  %v10019_v45 = vld [vmem:[#allocation22_spill] sm:$0xff]  ;;  %v10020_v47 = vld [vmem:[#allocation79_spill] sm:$0xff] }
0x10b9   :  { %4043 = vmatpush1.bf16.msra.mxu1 %v8213_v27  ;;  %v5606_v27 = vld [vmem:[%s9091_s9 + $0x2c] ss:$16 sps:$4 sm:$0xff]  }
0x10ba   :  { %4044 = vmatprep.subr.bf16.mxu1 %v8220_v14  ;;  %4152 = vmatpush1.bf16.msra.mxu0 %v9945_v12  ;;  %v5607_v14 = vld [vmem:[%s9091_s9 + $0x28] ss:$16 sps:$4 sm:$0xff]   ;;  %v10022_v12 = vld [vmem:[#allocation11_spill] sm:$0xff] }
0x10bb   :  { %4153 = vmatprep.subr.bf16.mxu0 %v9947_v58  ;;  %v10023_v58 = vld [vmem:[#allocation12_spill] sm:$0xff] }
0x10bd   :  { %4045 = vmatpush1.bf16.msra.mxu1 %v8227_v56  ;;  %v5608_v56 = vld [vmem:[%s9091_s9 + $0x4c] ss:$16 sps:$4 sm:$0xff]  }
0x10be   :  { %4046 = vmatprep.subr.bf16.mxu1 %v8234_v28  ;;  %4154 = vmatpush1.bf16.msra.mxu0 %v9949_v17  ;;  %v5610_v28 = vld [vmem:[%s9091_s9 + $0x6c] ss:$16 sps:$4 sm:$0xff]   ;;  %v10024_v17 = vld [vmem:[#allocation82_spill] sm:$0xff] }
0x10bf   :  { %4155 = vmatprep.subr.bf16.mxu0 %v9951_v60  ;;  %v10025_v60 = vld [vmem:[#allocation84_spill] sm:$0xff] }
0x10c1   :  { %4047 = vmatpush1.bf16.msra.mxu1 %v8241_v20  ;;  %v10010_v20 = vld [vmem:[#allocation17_spill] sm:$0xff] }
0x10c2   :  { %4048 = vmatprep.subr.bf16.mxu1 %v8253_v42  ;;  %4156 = vmatpush1.bf16.msra.mxu0 %v9953_v11  ;;  %v10011_v42 = vld [vmem:[#allocation18_spill] sm:$0xff]  ;;  %v10026_v11 = vld [vmem:[#allocation80_spill] sm:$0xff] }
0x10c3   :  { %4157 = vmatprep.subr.bf16.mxu0 %v9955_v46  ;;  %v10027_v46 = vld [vmem:[#allocation62_spill] sm:$0xff] }
0x10c5   :  { %4049 = vmatpush1.bf16.msra.mxu1 %v8265_v63  ;;  %v10012_v63 = vld [vmem:[#allocation71_spill] sm:$0xff] }
0x10c6   :  { %4050 = vmatprep.subr.bf16.mxu1 %v8277_v37  ;;  %4158 = vmatpush1.bf16.msra.mxu0 %v9957_v33  ;;  %v10013_v37 = vld [vmem:[#allocation73_spill] sm:$0xff]  ;;  %v10028_v33 = vld [vmem:[#allocation86_spill] sm:$0xff] }
0x10c7   :  { %4159 = vmatprep.subr.bf16.mxu0 %v9959_v5  ;;  %v10029_v5 = vmov 0.0|0.0  }
0x10c9   :  { %4051 = vmatpush1.bf16.msra.mxu1 %v8289_v2  ;;  %v10014_v2 = vld [vmem:[#allocation19_spill] sm:$0xff] }
0x10ca   :  { %4052 = vmatprep.subr.bf16.mxu1 %v8301_v13  ;;  %4160 = vmatpush1.bf16.msra.mxu0 %v9961_v16  ;;  %v10015_v13 = vld [vmem:[#allocation20_spill] sm:$0xff] }
0x10cb   :  { %4161 = vmatprep.subr.bf16.mxu0 %v9963_v26  ;;  %v10031_v16 = vld [vmem:[#allocation64_spill] sm:$0xff]  ;;  %v10033_v26 = vld [vmem:[#allocation25_spill] sm:$0xff] }
0x10cd   :  { %4053 = vmatpush1.bf16.msra.mxu1 %v8313_v0  ;;  %v10016_v0 = vld [vmem:[#allocation75_spill] sm:$0xff] }
0x10ce   :  { %4054 = vmatprep.subr.bf16.mxu1 %v8325_v23  ;;  %4162 = vmatpush1.bf16.msra.mxu0 %v9965_v22  ;;  %v10017_v23 = vld [vmem:[#allocation77_spill] sm:$0xff] }
0x10cf   :  { %4163 = vmatprep.subr.bf16.mxu0 %v9967_v32  ;;  %v10035_v22 = vld [vmem:[#allocation29_spill] sm:$0xff] }
0x10d0   :  { %v10037_v32 = vld [vmem:[#allocation33_spill] sm:$0xff] }
0x10d1   :  { %4055 = vmatpush1.bf16.msra.mxu1 %v8337_v29  ;;  %v10018_v29 = vld [vmem:[#allocation21_spill] sm:$0xff] }
0x10d2   :  { %4081 = vmatprep.subr.bf16.mxu1 %v10009_v30  ;;  %4164 = vmatpush1.bf16.msra.mxu0 %v9969_v48  ;;  %v10039_v48 = vld [vmem:[#allocation37_spill] sm:$0xff] }
0x10d3   :  { %4165 = vmatprep.subr.bf16.mxu0 %v9971_v55  ;;  %v10041_v55 = vld [vmem:[#allocation41_spill] sm:$0xff] }
0x10d4   :  { %4073 = vmatmul.mubr.bf16.vlgmr.msra.gmra.mrb[8].mxu1 %v8864_v44 }
0x10d5   :  { %4082 = vmatpush1.bf16.msra.mxu1 %v5605_v21  ;;  %4113 = vmatprep.mubr.bf16.mxu1 %v9563_v18  ;;  %v5609_v18 = vld [vmem:[%s9091_s9 + $0x48] ss:$16 sps:$4 sm:$0xff]   ;;  %v10062_v21 = vld [vmem:[#allocation9_spill] sm:$0xff] }
0x10d6   :  { %4083 = vmatprep.subr.bf16.mxu1 %v5606_v27  ;;  %4166 = vmatpush1.bf16.msra.mxu0 %v9973_v31  ;;  %v10032_v31 = vld [vmem:[#allocation23_spill] sm:$0xff] }
0x10d7   :  { %4167 = vmatprep.subr.bf16.mxu0 %v9975_v10  ;;  %v10034_v10 = vld [vmem:[#allocation27_spill] sm:$0xff] }
0x10d9   :  { %4084 = vmatpush1.bf16.msra.mxu1 %v5607_v14 }
0x10da   :  { %4085 = vmatprep.subr.bf16.mxu1 %v5608_v56  ;;  %4168 = vmatpush1.bf16.msra.mxu0 %v9977_v59  ;;  %v10036_v59 = vld [vmem:[#allocation31_spill] sm:$0xff] }
0x10db   :  { %4169 = vmatprep.subr.bf16.mxu0 %v9979_v50  ;;  %v10038_v50 = vld [vmem:[#allocation35_spill] sm:$0xff] }
0x10dd   :  { %4086 = vmatpush1.bf16.msra.mxu1 %v5609_v18 }
0x10de   :  { %4087 = vmatprep.subr.bf16.mxu1 %v5610_v28  ;;  %4170 = vmatpush1.bf16.msra.mxu0 %v9981_v57  ;;  %v10040_v57 = vld [vmem:[#allocation39_spill] sm:$0xff] }
0x10df   :  { %4171 = vmatprep.subr.bf16.mxu0 %v9983_v4  ;;  %v10030_v4 = vld [vmem:[#allocation63_spill] sm:$0xff] }
0x10e1   :  { %4088 = vmatpush1.bf16.msra.mxu1 %v10010_v20 }
0x10e2   :  { %4089 = vmatprep.subr.bf16.mxu1 %v10011_v42  ;;  %4172 = vmatpush1.bf16.msra.mxu0 %v10012_v63  ;;  %v10063_v63 = vld [vmem:[#allocation8_spill] sm:$0xff] }
0x10e3   :  { %4173 = vmatprep.subr.bf16.mxu0 %v10013_v37 }
0x10e5   :  { %4090 = vmatpush1.bf16.msra.mxu1 %v10014_v2  ;;  %v10064_v2 = vld [vmem:[#allocation70_spill] sm:$0xff] }
0x10e6   :  { %4091 = vmatprep.subr.bf16.mxu1 %v10015_v13  ;;  %4174 = vmatpush1.bf16.msra.mxu0 %v10016_v0 }
0x10e7   :  { %4175 = vmatprep.subr.bf16.mxu0 %v10017_v23 }
0x10e9   :  { %4092 = vmatpush1.bf16.msra.mxu1 %v10018_v29 }
0x10ea   :  { %4093 = vmatprep.subr.bf16.mxu1 %v10019_v45  ;;  %4176 = vmatpush1.bf16.msra.mxu0 %v10020_v47 }
0x10eb   :  { %4177 = vmatprep.subr.bf16.mxu0 %v10021_v52 }
0x10ed   :  { %4094 = vmatpush1.bf16.msra.mxu1 %v10022_v12 }
0x10ee   :  { %4095 = vmatprep.subr.bf16.mxu1 %v10023_v58  ;;  %4178 = vmatpush1.bf16.msra.mxu0 %v10024_v17 }
0x10ef   :  { %4179 = vmatprep.subr.bf16.mxu0 %v10025_v60  ;;  %v10065_v60 = vld [vmem:[#allocation65_spill] sm:$0xff] }
0x10f1   :  { %4096 = vmatpush1.bf16.msra.mxu1 %v10026_v11 }
0x10f2   :  { %4190 = vmatprep.subr.bf16.mxu1 %v10027_v46  ;;  %4180 = vmatpush1.bf16.msra.mxu0 %v10028_v33 }
0x10f3   :  { %4711 = vmatprep.subr.bf16.mxu0 %v10029_v5 }
0x10f4   :  { %4114 = vmatmul.mubr.bf16.vlgmr.msra.gmra.mrb[16].mxu1 %v8864_v44 }
0x10f5   :  { %4191 = vmatpush1.bf16.msra.mxu1 %v10030_v4 }
0x10f6   :  { %4192 = vmatprep.subr.bf16.mxu1 %v10031_v16 }
0x10f9   :  { %4193 = vmatpush1.bf16.msra.mxu1 %v10032_v31 }
0x10fa   :  { %4194 = vmatprep.subr.bf16.mxu1 %v10033_v26 }
0x10fd   :  { %4195 = vmatpush1.bf16.msra.mxu1 %v10034_v10  ;;  %v10066_v10 = vld [vmem:[#allocation67_spill] sm:$0xff] }
0x10fe   :  { %4196 = vmatprep.subr.bf16.mxu1 %v10035_v22 }
0x1101   :  { %4197 = vmatpush1.bf16.msra.mxu1 %v10036_v59 }
0x1102   :  { %4198 = vmatprep.subr.bf16.mxu1 %v10037_v32 }
0x1105   :  { %4199 = vmatpush1.bf16.msra.mxu1 %v10038_v50 }
0x1106   :  { %4200 = vmatprep.subr.bf16.mxu1 %v10039_v48 }
0x1109   :  { %4201 = vmatpush1.bf16.msra.mxu1 %v10040_v57 }
0x110a   :  { %4202 = vmatprep.subr.bf16.mxu1 %v10041_v55 }
0x110d   :  { %4203 = vmatpush1.bf16.msra.mxu1 %v10042_v49 }
0x110e   :  { %4204 = vmatprep.subr.bf16.mxu1 %v10043_v62 }
0x1111   :  { %4205 = vmatpush1.bf16.msra.mxu1 %v10044_v38  ;;  %v10067_v38 = vld [vmem:[#allocation66_spill] sm:$0xff] }
0x1112   :  { %4206 = vmatprep.subr.bf16.mxu1 %v10045_v43 }
0x1115   :  { %4207 = vmatpush1.bf16.msra.mxu1 %v10046_v24 }
0x1116   :  { %4208 = vmatprep.subr.bf16.mxu1 %v10047_v9  ;;  %v4140_v9 = vrot.slane %v8861_v15, 6 }
0x1119   :  { %4209 = vmatpush1.bf16.msra.mxu1 %v10048_v53 }
0x111a   :  { %4210 = vmatprep.subr.bf16.mxu1 %v10049_v1 }
0x111d   :  { %4211 = vmatpush1.bf16.msra.mxu1 %v10050_v51 }
0x111e   :  { %4212 = vmatprep.subr.bf16.mxu1 %v10051_v3  ;;  %v10068_v3 = vld [vmem:[#allocation68_spill] sm:$0xff] }
0x1121   :  { %4213 = vmatpush1.bf16.msra.mxu1 %v10052_v36 }
0x1122   :  { %4214 = vmatprep.subr.bf16.mxu1 %v10053_v39 }
0x1125   :  { %4215 = vmatpush1.bf16.msra.mxu1 %v10054_v40  ;;  %v10069_v40 = vld [vmem:[#allocation69_spill] sm:$0xff] }
0x1126   :  { %4216 = vmatprep.subr.bf16.mxu1 %v10055_v25 }
0x1129   :  { %4217 = vmatpush1.bf16.msra.mxu1 %v10056_v34 }
0x112a   :  { %4218 = vmatprep.subr.bf16.mxu1 %v10057_v19 }
0x112d   :  { %4219 = vmatpush1.bf16.msra.mxu1 %v10058_v54 }
0x112e   :  { %4220 = vmatprep.subr.bf16.mxu1 %v10059_v7 }
0x1131   :  { %4221 = vmatpush1.bf16.msra.mxu1 %v10060_v6 }
0x1187   :  { %v3974_v8 = vpop.f32.mrb[80].mxu1  ;;  %v4015_v61 = vpop.f32.mrb[84].mxu0 }
0x1188   :  { %v3975_v41 = vadd.f32 %v3974_v8, %v10061_v35  ;;  %v3976_v44 = vpop.f32.mrb[81].mxu1  ;;  %v4017_v30 = vpop.f32.mrb[85].mxu0  ;;  %v4016_v37 = vadd.f32 %v4015_v61, %v10063_v63 }
0x1189   :  { %v3977_v27 = vadd.f32 %v3976_v44, %v10062_v21  ;;  %v3978_v14 = vpop.f32.mrb[82].mxu1  ;;  %v4019_v56 = vpop.f32.mrb[86].mxu0  ;;  %v4018_v13 = vadd.f32 %v4017_v30, %v10064_v2 }
0x118a   :  { %v4022_v18 = vmul.f32 0.5, %v3975_v41  ;;  %v3979_v28 = vpop.f32.mrb[83].mxu1  ;;  %v4020_v20 = vpop.f32.mrb[87].mxu0 }
0x118b   :  { %v4026_v42 = vmul.f32 0.5, %v3977_v27  ;;  %v4031_v0 = vmul.f32 0.5, %v4018_v13  ;;  %v4250_v28 = vld [vmem:[%s9095_s13] sm:$0xff]  ;;  %v4251_v20 = vld [vmem:[%s9095_s13 + $0x8] sm:$0xff]  ;;  %v4253_v13 = vld [vmem:[%s9095_s13 + $0x18] sm:$0xff] }
0x118c   :  { %5379 = vtanh.f32 %v4022_v18 }
0x118d   :  { %5381 = vtanh.f32 %v4026_v42  ;;  %v4712_v42 = vpack.c.bf16 %v4251_v20, %v4250_v28 }
0x118e   :  { %5383 = vtanh.f32 %v4016_v37  ;;  %v4252_v37 = vld [vmem:[%s9095_s13 + $0x10] sm:$0xff] }
0x118f   :  { %5385 = vtanh.f32 %v4031_v0  ;;  %v4715_v0 = vpack.c.bf16 %v4253_v13, %v4252_v37 }
0x1196   :  { %v5380_v23 = vpop.eup %5379 }
0x1197   :  { %v5382_v29 = vpop.eup %5381  ;;  %v4024_v45 = vadd.f32 1.0, %v5380_v23  ;;  %v4254_v23 = vld [vmem:[%s9095_s13 + $0x20] sm:$0xff] }
0x1198   :  { %v4028_v47 = vadd.f32 1.0, %v5382_v29  ;;  %v5384_v12 = vpop.eup %5383  ;;  %v4255_v29 = vld [vmem:[%s9095_s13 + $0x28] sm:$0xff] }
0x1199   :  { %v4025_v52 = vmul.f32 0.5, %v4024_v45  ;;  %v5386_v33 = vpop.eup %5385  ;;  %v4718_v45 = vpack.c.bf16 %v4255_v29, %v4254_v23 }
0x119a   :  { %v4029_v58 = vmul.f32 0.5, %v4028_v47  ;;  %v4033_v4 = vadd.f32 1.0, %v5386_v33  ;;  %v4256_v47 = vld [vmem:[%s9095_s13 + $0x30] sm:$0xff]  ;;  %v4261_v33 = vld [vmem:[%s9095_s13 + $0x58] sm:$0xff] }
0x119b   :  { %v4036_v17 = vmul.f32 %v5384_v12, %v4025_v52  ;;  %v4257_v52 = vld [vmem:[%s9095_s13 + $0x38] sm:$0xff] }
0x119c   :  { %v4035_v11 = vmul.f32 %v4029_v58, %v10065_v60  ;;  %v4034_v26 = vmul.f32 0.5, %v4033_v4  ;;  %v4721_v12 = vpack.c.bf16 %v4257_v52, %v4256_v47  ;;  %v4258_v58 = vld [vmem:[%s9095_s13 + $0x40] sm:$0xff] }
0x119e   :  { %v8984_v46 = vadd.f32 %v4036_v17, %v4035_v11  ;;  %v4259_v17 = vld [vmem:[%s9095_s13 + $0x48] sm:$0xff]  ;;  %v4260_v11 = vld [vmem:[%s9095_s13 + $0x50] sm:$0xff] }
0x119f   :  { %v4724_v60 = vpack.c.bf16 %v4259_v17, %v4258_v58  ;;  %v4727_v4 = vpack.c.bf16 %v4261_v33, %v4260_v11 }
0x11a0   :  { %5387 = vtanh.f32 %v8984_v46 }
0x11a7   :  { %v4074_v16 = vpop.f32.mrb[8].mxu1 }
0x11a8   :  { %v4076_v31 = vpop.f32.mrb[9].mxu1  ;;  %v4735_v43 = vadd.f32 %v4074_v16, %v10067_v38  ;;  %v4262_v16 = vld [vmem:[%s9095_s13 + $0x60] sm:$0xff] }
0x11a9   :  { %v4736_v22 = vadd.f32 %v4076_v31, %v10066_v10  ;;  %v4078_v59 = vpop.f32.mrb[10].mxu1  ;;  %v4263_v31 = vld [vmem:[%s9095_s13 + $0x68] sm:$0xff]  ;;  %v4264_v10 = vld [vmem:[%s9095_s13 + $0x70] sm:$0xff] }
0x11aa   :  { %v5388_v32 = vpop.eup %5387  ;;  %v4079_v50 = vpop.f32.mrb[11].mxu1  ;;  %v4126_v1 = vmul.f32 0.5, %v4735_v43 }
0x11ab   :  { %v4130_v48 = vmul.f32 0.5, %v4736_v22  ;;  %v4039_v57 = vmul.f32 %v5388_v32, %v4034_v26  ;;  %v4730_v26 = vpack.c.bf16 %v4263_v31, %v4262_v16  ;;  %v4265_v22 = vld [vmem:[%s9095_s13 + $0x78] sm:$0xff]  ;;  %v5685_v32 = vmov 0.0  }
0x11ac   :  { %v4733_v59 = vpack.c.bf16 %v4265_v22, %v4264_v10 }
0x11ad   :  { %5389 = vtanh.f32 %v4130_v48  ;;  %v4148_v55 = vpack.c.bf16 %v4039_v57, %v4039_v57 }
0x11ae   :  { %5391 = vtanh.f32 %v4126_v1 }
0x11af   :  { %4181 = vmatprep.mubr.bf16.mxu0 %v4148_v55  ;;  %4222 = vmatprep.mubr.bf16.mxu1 %v4148_v55 }
0x11b7   :  { %v5390_v49 = vpop.eup %5389 }
0x11b8   :  { %v4132_v62 = vadd.f32 1.0, %v5390_v49  ;;  %v5392_v54 = vpop.eup %5391 }
0x11b9   :  { %v4128_v6 = vadd.f32 1.0, %v5392_v54 }
0x11ba   :  { %v4133_v24 = vmul.f32 0.5, %v4132_v62 }
0x11bb   :  { %v4129_v8 = vmul.f32 0.5, %v4128_v6 }
0x11bc   :  { %v4142_v53 = vmul.f32 %v4140_v9, %v4133_v24 }
0x11c7   :  { %v4115_v51 = vpop.f32.mrb[16].mxu1 }
0x11c8   :  { %v4737_v36 = vadd.f32 %v4115_v51, %v10068_v3  ;;  %v4117_v39 = vpop.f32.mrb[17].mxu1 }
0x11c9   :  { %v4738_v25 = vadd.f32 %v4117_v39, %v10069_v40  ;;  %v4119_v34 = vpop.f32.mrb[18].mxu1 }
0x11ca   :  { %5393 = vtanh.f32 %v4737_v36  ;;  %v4120_v19 = vpop.f32.mrb[19].mxu1 }
0x11cb   :  { %v4135_v7 = vmul.f32 0.5, %v4738_v25 }
0x11cd   :  { %5395 = vtanh.f32 %v4135_v7 }
0x11d4   :  { %v5394_v61 = vpop.eup %5393 }
0x11d5   :  { %v4143_v41 = vmul.f32 %v5394_v61, %v4129_v8 }
0x11d7   :  { %v4144_v15 = vadd.f32 %v4143_v41, %v4142_v53  ;;  %v5396_v44 = vpop.eup %5395 }
0x11d8   :  { %v4137_v30 = vadd.f32 1.0, %v5396_v44 }
0x11d9   :  { %5397 = vtanh.f32 %v4144_v15  ;;  %v4523_v15 = vld [vmem:[%s9096_s14] ss:$0 sm:$0xff] }
0x11da   :  { %v4138_v27 = vmul.f32 0.5, %v4137_v30 }
0x11e3   :  { %v5398_v14 = vpop.eup %5397 }
0x11e4   :  { %v4146_v56 = vmul.f32 %v5398_v14, %v4138_v27 }
0x11e6   :  { %v4147_v18 = vpack.c.bf16 %v4146_v56, %v4146_v56 }
0x11e8   :  { %4182 = vmatmul.mubr.bf16.vlgmr.msra.gmra.mrb[88].mxu0 %v4147_v18  ;;  %4223 = vmatmul.mubr.bf16.vlgmr.msra.gmra.mrb[84].mxu1 %v4147_v18 }
0x11e9   :  { %4713 = vmatpush3.bf16.msra.mxu0 %v4712_v42  ;;  %4656 = vmatprep.mubr.msk.f32.mxu0 %vm5684_vm5, %v5685_v32 }
0x11ea   :  { %4714 = vmatprep.subr.bf16.mxu0 %v10029_v5 }
0x11ed   :  { %4716 = vmatpush3.bf16.msra.mxu0 %v4715_v0 }
0x11ee   :  { %4717 = vmatprep.subr.bf16.mxu0 %v10029_v5 }
0x11f1   :  { %4719 = vmatpush3.bf16.msra.mxu0 %v4718_v45 }
0x11f2   :  { %4720 = vmatprep.subr.bf16.mxu0 %v10029_v5 }
0x11f5   :  { %4722 = vmatpush3.bf16.msra.mxu0 %v4721_v12 }
0x11f6   :  { %4723 = vmatprep.subr.bf16.mxu0 %v10029_v5 }
0x11f9   :  { %4725 = vmatpush3.bf16.msra.mxu0 %v4724_v60 }
0x11fa   :  { %4726 = vmatprep.subr.bf16.mxu0 %v10029_v5 }
0x11fd   :  { %4728 = vmatpush3.bf16.msra.mxu0 %v4727_v4 }
0x11fe   :  { %4729 = vmatprep.subr.bf16.mxu0 %v10029_v5 }
0x1201   :  { %4731 = vmatpush3.bf16.msra.mxu0 %v4730_v26 }
0x1202   :  { %4732 = vmatprep.subr.bf16.mxu0 %v10029_v5 }
0x1205   :  { %4734 = vmatpush3.bf16.msra.mxu0 %v4733_v59 }
0x12bb   :  { %v4183_v50 = vpop.f32.mrb[88].mxu0  ;;  %v4224_v48 = vpop.f32.mrb[84].mxu1 }
0x12bc   :  { %v4184_v57 = vadd.f32 %v4183_v50, %v10061_v35  ;;  %v4185_v55 = vpop.f32.mrb[89].mxu0  ;;  %v4226_v49 = vpop.f32.mrb[85].mxu1  ;;  %v4225_v1 = vadd.f32 %v4224_v48, %v10063_v63 }
0x12bd   :  { %v4186_v5 = vadd.f32 %v4185_v55, %v10062_v21  ;;  %v4187_v62 = vpop.f32.mrb[90].mxu0  ;;  %v4228_v38 = vpop.f32.mrb[86].mxu1  ;;  %v4227_v51 = vadd.f32 %v4226_v49, %v10064_v2 }
0x12be   :  { %v4231_v43 = vmul.f32 0.5, %v4184_v57  ;;  %v4188_v24 = vpop.f32.mrb[91].mxu0  ;;  %v4229_v9 = vpop.f32.mrb[87].mxu1 }
0x12bf   :  { %v4235_v53 = vmul.f32 0.5, %v4186_v5  ;;  %v4240_v3 = vmul.f32 0.5, %v4227_v51 }
0x12c0   :  { %5399 = vtanh.f32 %v4231_v43 }
0x12c1   :  { %5401 = vtanh.f32 %v4235_v53 }
0x12c2   :  { %5403 = vtanh.f32 %v4225_v1 }
0x12c3   :  { %5405 = vtanh.f32 %v4240_v3 }
0x12ca   :  { %v5400_v36 = vpop.eup %5399 }
0x12cb   :  { %v5402_v35 = vpop.eup %5401  ;;  %v4233_v39 = vadd.f32 1.0, %v5400_v36 }
0x12cc   :  { %v4237_v40 = vadd.f32 1.0, %v5402_v35  ;;  %v5404_v25 = vpop.eup %5403 }
0x12cd   :  { %v4234_v21 = vmul.f32 0.5, %v4233_v39  ;;  %v5406_v6 = vpop.eup %5405 }
0x12ce   :  { %v4238_v34 = vmul.f32 0.5, %v4237_v40  ;;  %v4242_v63 = vadd.f32 1.0, %v5406_v6 }
0x12cf   :  { %v4245_v19 = vmul.f32 %v5404_v25, %v4234_v21 }
0x12d0   :  { %v4244_v54 = vmul.f32 %v4238_v34, %v8984_v46  ;;  %v4243_v8 = vmul.f32 0.5, %v4242_v63 }
0x12d2   :  { %v4246_v7 = vadd.f32 %v4245_v19, %v4244_v54 }
0x12d4   :  { %5407 = vtanh.f32 %v4246_v7 }
0x12de   :  { %v5408_v61 = vpop.eup %5407 }
0x12df   :  { %v4248_v41 = vmul.f32 %v5408_v61, %v4243_v8 }
0x12e1   :  { %v4249_v2 = vmax.f32 %v4248_v41, 0.0 }
0x12e3   :  { %4356 = vst [vmem:[#allocation4] sm:$0x3] %v4249_v2  ;;  %4657 = vmatmul.mubr.f32.vlgmr.msra.gmra.mrb[92].mxu0 %v4249_v2 }
0x13b6   :  { %v4339_v44 = vpop.f32.mrb[92].mxu0 }
0x13b7   :  { %v4340_v30 = vadd.f32 %v4523_v15, %v4339_v44  ;;  %v4658_v27 = vpop.f32.mrb[93].mxu0 }
0x13b9   :  { %v4344_v46 = vsel %vm4343_vm13, %v4340_v30, -inf }
0x13ba   :  { %4345 = vmax.xlane.f32.xlu0 %v4344_v46 }
0x1447   :  { %v4346_v14 = vpop.xlane.xlu0 %4345 }
0x1448   :  { %v4347_v56 = vsub.f32 %v4340_v30, %v4346_v14 }
0x144a   :  { %v4348_v18 = vmul.f32 1.442695, %v4347_v56 }
0x144c   :  { %5409 = vpow2.f32 %v4348_v18 }
0x1456   :  { %v5410_v28 = vpop.eup %5409 }
0x1457   :  { %v4350_v20 = vsel %vm4343_vm13, %v5410_v28, 0.0 }
0x1458   :  { %4351 = vadd.xlane.f32.xlu1 %v4350_v20 }
0x1459   :  { %5622 = shalt.err (!%p5619_p4)
}
0x145a   :  { %s5623_s18 = scalar_lea.hbm %s9098_s16, 32 }
0x145b   :  { %p5624_p5 = scmp.ne.s32.totalorder %s9098_s16, %s5623_s18  ;;  %p5627_p6 = scmp.lt.u32.totalorder %s5623_s18, %s9098_s16 }
0x145d   :  { %p5629_p7 = pnand %p5627_p6, %p5624_p5 }
0x145f   :  { %5632 = shalt.err (!%p5629_p7)
}
0x1460   :  { %4376 = dma.vmem_to_hbm [thread:$0]  %s4374_s30, 32, %s9098_s16, [#allocation5]  }
0x1461   :  { %s5687_s4 = smov [#allocation2]  }
0x1462   :  { %s4363_s24 = sshll.u32 %s5687_s4, 4  ;;  %s4364_s24 = int_to_ptr.vmem [resolvable:$true] %s4363_s24 }
0x1463   :  { %s5633_s28 = scalar_lea.vmem %s4364_s24, 32  ;;  %p5638_p9 = scmp.lt.s32.totalorder %s4364_s24, %s4364_s24 }
0x1464   :  { %p5634_p8 = scmp.ne.s32.totalorder %s4364_s24, %s5633_s28  ;;  %p5639_p10 = scmp.lt.s32.totalorder %s5633_s28, %s5633_s28 }
0x1466   :  { %p5640_p11 = por %p5639_p10, %p5638_p9 }
0x1468   :  { %p5641_p12 = pnand %p5640_p11, %p5634_p8 }
0x14e5   :  { %v4352_v42 = vpop.xlane.xlu1 %4351 }
0x14e6   :  { %5411 = vrcp.f32 %v4352_v42 }
0x14f0   :  { %v5412_v37 = vpop.eup %5411 }
0x14f1   :  { %v4354_v13 = vmul.f32 %v5412_v37, %v5410_v28 }
0x14f3   :  { %4355 = vst.msk [vmem:[#allocation2] sm:$0x3] %vm4343_vm13, %v4354_v13 }
0x14f4   :  { %5644 = shalt.err (!%p5641_p12)
}
0x14f5   :  { %s5645_s16 = scalar_lea.hbm %s9097_s15, 32 }
0x14f6   :  { %p5646_p13 = scmp.ne.s32.totalorder %s9097_s15, %s5645_s16  ;;  %p5649_p0 = scmp.lt.u32.totalorder %s5645_s16, %s9097_s15 }
0x14f8   :  { %p5651_p1 = pnand %p5649_p0, %p5646_p13 }
0x14fa   :  { %5654 = shalt.err (!%p5651_p1)
}
0x14fb   :  { %4366 = dma.vmem_to_hbm [thread:$0]  %s4364_s24, 32, %s9097_s15, [#allocation3]  }
0x14fc   :  { %5655 = dma.done.wait [#allocation3], 32  }
0x14fd   :  { %5656 = vsyncadd [#allocation3], 4294967264 }
0x14fe   :  { %5657 = dma.done.wait [#allocation5], 32  }
0x14ff   :  { %5658 = vsyncadd [#allocation5], 4294967264 }
0x1500   :  { %4383 = vsyncpa [#allocation3], 1 }
0x1501   :  { %4384 = vsyncpa [#allocation5], 1 }

</bundles_post_ra>
